<compile_context>
chip_gen: v7x
topology: tpu7x:2x2x1
jax: 0.10.0
libtpu: 0.0.40
codegen_flags: <defaults>
</compile_context>

<pallas_src>
import functools

import jax
import jax.numpy as jnp
from jax.experimental import pallas as pl
from jax.experimental.pallas import tpu as pltpu

EPS = 1e-5
VMEM_LIMIT = 32 * 1024 * 1024      # safe on v5e/v6e (128 MiB) and v7x (64 MiB)

# ---------------------------------------------------------------------------
# small config (scaled-down but structurally identical to the PyTorch module)
# ---------------------------------------------------------------------------
CFG = dict(
    n_fft=32, hop=16, n_freqs=17,          # n_freqs = n_fft // 2 + 1
    emb_dim=8, n_head=4, emb_ks=4, emb_hs=1,
    lstm_hidden=16,                        # lstm_hidden_units
    gla_hidden=32, gla_key=16, gla_low_rank=16,   # GLA: expand_k = 0.5
    n_layers=2, cond_dim=16,
    batch=2, audio_len=128,
)


def _cparams(ndims=1):
    return pltpu.CompilerParams(
        dimension_semantics=("parallel",) * ndims,
        vmem_limit_bytes=VMEM_LIMIT)


def _row_tile(M):
    # full-dim tile (always layout-legal) for small M, 512-row tiles otherwise.
    return M if M <= 512 else 512


def _log_sigmoid(x):
    # numerically-stable log-sigmoid with only exp / log / where (Mosaic-safe)
    return jnp.where(x >= 0.0,
                     -jnp.log(1.0 + jnp.exp(-x)),
                     x - jnp.log(1.0 + jnp.exp(x)))


# ---------------------------------------------------------------------------
# Pallas kernels
# ---------------------------------------------------------------------------
def _matmul_kernel(a_ref, b_ref, bias_ref, o_ref):
    a = a_ref[...].astype(jnp.bfloat16)
    b = b_ref[...].astype(jnp.bfloat16)
    o_ref[...] = (jnp.dot(a, b, preferred_element_type=jnp.float32)
                  + bias_ref[...])


def _ln_kernel(x_ref, g_ref, b_ref, o_ref, *, eps):
    x = x_ref[...]
    mu = jnp.mean(x, axis=-1, keepdims=True)
    var = jnp.mean(jnp.square(x - mu), axis=-1, keepdims=True)
    o_ref[...] = (x - mu) * jax.lax.rsqrt(var + eps) * g_ref[...] + b_ref[...]


def _conv_headnorm_kernel(x_ref, w_ref, b_ref, a_ref, gsum_ref, g_ref, be_ref,
                          o_ref, *, inv_e, eps):
    # fused: 1x1 conv + per-head PReLU + per-head LayerNorm (over E features)
    z = (jnp.dot(x_ref[...].astype(jnp.bfloat16),
                 w_ref[...].astype(jnp.bfloat16),
                 preferred_element_type=jnp.float32) + b_ref[...])
    z = jnp.where(z >= 0.0, z, a_ref[...] * z)
    gsum = gsum_ref[...]                                   # (C,C) head-group sum
    mu = jnp.dot(z, gsum, preferred_element_type=jnp.float32) * inv_e
    zc = z - mu
    var = jnp.dot(zc * zc, gsum, preferred_element_type=jnp.float32) * inv_e
    o_ref[...] = zc * jax.lax.rsqrt(var + eps) * g_ref[...] + be_ref[...]


def _concat_proj_gate_kernel(att_ref, y_ref, f_ref, fb_ref, w_ref, b_ref,
                             a_ref, g_ref, be_ref, o_ref, *, eps):
    # fused: concat_proj (1x1 conv + PReLU + channel LN) + residual + filter gate
    z = (jnp.dot(att_ref[...].astype(jnp.bfloat16),
                 w_ref[...].astype(jnp.bfloat16),
                 preferred_element_type=jnp.float32) + b_ref[...])
    z = jnp.where(z >= 0.0, z, a_ref[...] * z)
    mu = jnp.mean(z, axis=-1, keepdims=True)
    var = jnp.mean(jnp.square(z - mu), axis=-1, keepdims=True)
    z = (z - mu) * jax.lax.rsqrt(var + eps) * g_ref[...] + be_ref[...]
    o = z + y_ref[...]
    # TODO(synk): WHYVFilterGate source unavailable; reconstructed as
    #             x * sigmoid(gtf * w) + gtb * b (same as previous version).
    o_ref[...] = o * jax.nn.sigmoid(f_ref[...]) + fb_ref[...]


def _lstm_cell(gates, c, H):
    i = jax.nn.sigmoid(gates[:, 0:H])
    f = jax.nn.sigmoid(gates[:, H:2 * H])
    g = jnp.tanh(gates[:, 2 * H:3 * H])
    o = jax.nn.sigmoid(gates[:, 3 * H:4 * H])
    c_new = f * c + i * g
    return o * jnp.tanh(c_new), c_new


def _lstm_kernel(seq_ref, wih_ref, b_ref, whh_ref, out_ref):
    # seq_ref: (L, TN, Cin) time-major; input projection folded into the kernel.
    L, TN, _ = seq_ref.shape
    H = whh_ref.shape[0]
    wih = wih_ref[...].astype(jnp.bfloat16)
    whh = whh_ref[...].astype(jnp.bfloat16)
    b = b_ref[...]

    def step(t, carry):
        h, c = carry
        xt = seq_ref[t].astype(jnp.bfloat16)
        gates = (jnp.dot(xt, wih, preferred_element_type=jnp.float32) + b
                 + jnp.dot(h.astype(jnp.bfloat16), whh,
                           preferred_element_type=jnp.float32))
        h, c = _lstm_cell(gates, c, H)
        out_ref[t] = h
        return (h, c)

    z = jnp.zeros((TN, H), jnp.float32)
    jax.lax.fori_loop(0, L, step, (z, z))


def _bilstm_kernel(seq_ref, wih_f_ref, b_f_ref, whh_f_ref,
                   wih_b_ref, b_b_ref, whh_b_ref, out_ref, hf_s, hb_s):
    # bidirectional LSTM in one kernel; out_ref: (L, TN, 2H)
    L, TN, _ = seq_ref.shape
    H = whh_f_ref.shape[0]
    wih_f = wih_f_ref[...].astype(jnp.bfloat16)
    whh_f = whh_f_ref[...].astype(jnp.bfloat16)
    b_f = b_f_ref[...]
    wih_b = wih_b_ref[...].astype(jnp.bfloat16)
    whh_b = whh_b_ref[...].astype(jnp.bfloat16)
    b_b = b_b_ref[...]

    def fwd(t, carry):
        h, c = carry
        xt = seq_ref[t].astype(jnp.bfloat16)
        gates = (jnp.dot(xt, wih_f, preferred_element_type=jnp.float32) + b_f
                 + jnp.dot(h.astype(jnp.bfloat16), whh_f,
                           preferred_element_type=jnp.float32))
        h, c = _lstm_cell(gates, c, H)
        hf_s[t] = h
        return (h, c)

    def bwd(s, carry):
        h, c = carry
        t = L - 1 - s
        xt = seq_ref[t].astype(jnp.bfloat16)
        gates = (jnp.dot(xt, wih_b, preferred_element_type=jnp.float32) + b_b
                 + jnp.dot(h.astype(jnp.bfloat16), whh_b,
                           preferred_element_type=jnp.float32))
        h, c = _lstm_cell(gates, c, H)
        hb_s[t] = h
        return (h, c)

    z = jnp.zeros((TN, H), jnp.float32)
    jax.lax.fori_loop(0, L, fwd, (z, z))
    jax.lax.fori_loop(0, L, bwd, (z, z))
    out_ref[:, :, 0:H] = hf_s[...]
    out_ref[:, :, H:2 * H] = hb_s[...]


def _gla_kernel(x_ref, wcat_ref, wgk1_ref, bgk1_ref, gnw_ref, wo_ref, o_ref,
                q_s, k_s, v_s, g_s, gk_s, att_s, *, K, V, R, scale, gln, eps):
    # fused GatedLinearAttention (num_heads=1) for one (batch*head) slice:
    # fused projections -> gate -> recurrence -> RMSNorm-swish -> out proj.
    T = x_ref.shape[1]
    x = x_ref[0].astype(jnp.bfloat16)                         # (T, D)
    proj = jnp.dot(x, wcat_ref[...].astype(jnp.bfloat16),
                   preferred_element_type=jnp.float32)        # (T, 2K+2V+R)
    q_s[...] = proj[:, 0:K]
    k_s[...] = proj[:, K:2 * K]
    v_s[...] = proj[:, 2 * K:2 * K + V]
    g_s[...] = proj[:, 2 * K + V:2 * K + 2 * V]
    gk_pre = (jnp.dot(proj[:, 2 * K + 2 * V:2 * K + 2 * V + R]
                      .astype(jnp.bfloat16),
                      wgk1_ref[...].astype(jnp.bfloat16),
                      preferred_element_type=jnp.float32) + bgk1_ref[...])
    gk_s[...] = _log_sigmoid(gk_pre) / gln

    def step(t, S):                                           # S: (1, K, V)
        kt = k_s[pl.ds(t, 1), :]                              # (1, K)
        vt = v_s[pl.ds(t, 1), :]                              # (1, V)
        qt = q_s[pl.ds(t, 1), :] * scale                      # (1, K)
        dec = jnp.exp(gk_s[pl.ds(t, 1), :])                   # (1, K)
        S = S * dec[:, :, None] + kt[:, :, None] * vt[:, None, :]
        att_s[pl.ds(t, 1), :] = jnp.dot(qt, S[0],
                                        preferred_element_type=jnp.float32)
        return S

    jax.lax.fori_loop(0, T, step, jnp.zeros((1, K, V), jnp.float32))

    o = att_s[...]
    g = g_s[...]
    ms = jnp.mean(jnp.square(o), axis=-1, keepdims=True)
    on = o * jax.lax.rsqrt(ms + eps) * gnw_ref[...]
    og = on * (g * jax.nn.sigmoid(g))
    o_ref[0] = jnp.dot(og.astype(jnp.bfloat16),
                       wo_ref[...].astype(jnp.bfloat16),
                       preferred_element_type=jnp.float32)


# ---------------------------------------------------------------------------
# Pallas wrappers
# ---------------------------------------------------------------------------
def pallas_linear(a, w, b=None):
    """a:(M,K) @ w:(K,N) + b, row-tiled on a Pallas grid (no pad/slice)."""
    a = a.astype(jnp.float32)
    w = w.astype(jnp.float32)
    M, K = a.shape
    N = w.shape[1]
    bias = (jnp.zeros((N,), jnp.float32) if b is None
            else b.astype(jnp.float32)).reshape(1, N)
    TM = _row_tile(M)
    return pl.pallas_call(
        _matmul_kernel,
        grid=(pl.cdiv(M, TM),),
        in_specs=[pl.BlockSpec((TM, K), lambda i: (i, 0)),
                  pl.BlockSpec((K, N), lambda i: (0, 0)),
                  pl.BlockSpec((1, N), lambda i: (0, 0))],
        out_specs=pl.BlockSpec((TM, N), lambda i: (i, 0)),
        out_shape=jax.ShapeDtypeStruct((M, N), jnp.float32),
        compiler_params=_cparams(1),
    )(a, w, bias)


def pallas_layernorm(x, gamma, beta, eps):
    """row-wise layer-norm over the last dim of x:(M,C)."""
    x = x.astype(jnp.float32)
    M, C = x.shape
    TM = _row_tile(M)
    return pl.pallas_call(
        functools.partial(_ln_kernel, eps=eps),
        grid=(pl.cdiv(M, TM),),
        in_specs=[pl.BlockSpec((TM, C), lambda i: (i, 0)),
                  pl.BlockSpec((1, C), lambda i: (0, 0)),
                  pl.BlockSpec((1, C), lambda i: (0, 0))],
        out_specs=pl.BlockSpec((TM, C), lambda i: (i, 0)),
        out_shape=jax.ShapeDtypeStruct((M, C), jnp.float32),
        compiler_params=_cparams(1),
    )(x, gamma.reshape(1, C).astype(jnp.float32),
      beta.reshape(1, C).astype(jnp.float32))


def conv_headnorm(x_rows, w, b, alpha_h, gamma_he, beta_he, n_head):
    """fused 1x1 conv + per-head PReLU + per-head LN on rows (M, C)."""
    M, C = x_rows.shape
    E = C // n_head
    heads = jnp.arange(C) // E
    gsum = (heads[:, None] == heads[None, :]).astype(jnp.float32)
    TM = _row_tile(M)
    return pl.pallas_call(
        functools.partial(_conv_headnorm_kernel, inv_e=1.0 / E, eps=EPS),
        grid=(pl.cdiv(M, TM),),
        in_specs=[pl.BlockSpec((TM, C), lambda i: (i, 0)),
                  pl.BlockSpec((C, C), lambda i: (0, 0)),
                  pl.BlockSpec((1, C), lambda i: (0, 0)),
                  pl.BlockSpec((1, C), lambda i: (0, 0)),
                  pl.BlockSpec((C, C), lambda i: (0, 0)),
                  pl.BlockSpec((1, C), lambda i: (0, 0)),
                  pl.BlockSpec((1, C), lambda i: (0, 0))],
        out_specs=pl.BlockSpec((TM, C), lambda i: (i, 0)),
        out_shape=jax.ShapeDtypeStruct((M, C), jnp.float32),
        compiler_params=_cparams(1),
    )(x_rows, w, b.reshape(1, C), jnp.repeat(alpha_h, E).reshape(1, C), gsum,
      gamma_he.reshape(1, C), beta_he.reshape(1, C))


def concat_proj_gate(att_rows, y_rows, f_rows, fb_rows, w, b, alpha, gamma, beta):
    """fused concat_proj + residual + WHYV filter gate on rows (M, C)."""
    M, C = att_rows.shape
    TM = _row_tile(M)
    return pl.pallas_call(
        functools.partial(_concat_proj_gate_kernel, eps=EPS),
        grid=(pl.cdiv(M, TM),),
        in_specs=[pl.BlockSpec((TM, C), lambda i: (i, 0)),
                  pl.BlockSpec((TM, C), lambda i: (i, 0)),
                  pl.BlockSpec((TM, C), lambda i: (i, 0)),
                  pl.BlockSpec((TM, C), lambda i: (i, 0)),
                  pl.BlockSpec((C, C), lambda i: (0, 0)),
                  pl.BlockSpec((1, C), lambda i: (0, 0)),
                  pl.BlockSpec((1, 1), lambda i: (0, 0)),
                  pl.BlockSpec((1, C), lambda i: (0, 0)),
                  pl.BlockSpec((1, C), lambda i: (0, 0))],
        out_specs=pl.BlockSpec((TM, C), lambda i: (i, 0)),
        out_shape=jax.ShapeDtypeStruct((M, C), jnp.float32),
        compiler_params=_cparams(1),
    )(att_rows, y_rows, f_rows, fb_rows, w, b.reshape(1, C), alpha,
      gamma.reshape(1, C), beta.reshape(1, C))


def lstm_pallas(seq_tm, p, H):
    """single-layer LSTM, time-major seq:(L,N,Cin) -> (L,N,H); grid over N."""
    L, N, Cin = seq_tm.shape
    TN = N if N <= 128 else 128
    return pl.pallas_call(
        _lstm_kernel,
        grid=(pl.cdiv(N, TN),),
        in_specs=[pl.BlockSpec((L, TN, Cin), lambda i: (0, i, 0)),
                  pl.BlockSpec((Cin, 4 * H), lambda i: (0, 0)),
                  pl.BlockSpec((1, 4 * H), lambda i: (0, 0)),
                  pl.BlockSpec((H, 4 * H), lambda i: (0, 0))],
        out_specs=pl.BlockSpec((L, TN, H), lambda i: (0, i, 0)),
        out_shape=jax.ShapeDtypeStruct((L, N, H), jnp.float32),
        compiler_params=_cparams(1),
    )(seq_tm, p['wih'], p['b'].reshape(1, 4 * H), p['whh'])


def bilstm_pallas(seq_tm, pf, pb, H):
    """bidirectional LSTM in one kernel: (L,N,Cin) -> (L,N,2H); grid over N."""
    L, N, Cin = seq_tm.shape
    TN = N if N <= 128 else 128
    return pl.pallas_call(
        _bilstm_kernel,
        grid=(pl.cdiv(N, TN),),
        in_specs=[pl.BlockSpec((L, TN, Cin), lambda i: (0, i, 0)),
                  pl.BlockSpec((Cin, 4 * H), lambda i: (0, 0)),
                  pl.BlockSpec((1, 4 * H), lambda i: (0, 0)),
                  pl.BlockSpec((H, 4 * H), lambda i: (0, 0)),
                  pl.BlockSpec((Cin, 4 * H), lambda i: (0, 0)),
                  pl.BlockSpec((1, 4 * H), lambda i: (0, 0)),
                  pl.BlockSpec((H, 4 * H), lambda i: (0, 0))],
        out_specs=pl.BlockSpec((L, TN, 2 * H), lambda i: (0, i, 0)),
        out_shape=jax.ShapeDtypeStruct((L, N, 2 * H), jnp.float32),
        scratch_shapes=[pltpu.VMEM((L, TN, H), jnp.float32),
                        pltpu.VMEM((L, TN, H), jnp.float32)],
        compiler_params=_cparams(1),
    )(seq_tm, pf['wih'], pf['b'].reshape(1, 4 * H), pf['whh'],
      pb['wih'], pb['b'].reshape(1, 4 * H), pb['whh'])


def gla_forward(p, x):
    """fused fla GatedLinearAttention (num_heads=1) over x:(BH, T, D)."""
    BH, T, D = x.shape
    K, V, R = CFG['gla_key'], CFG['gla_hidden'], CFG['gla_low_rank']
    kern = functools.partial(_gla_kernel, K=K, V=V, R=R,
                             scale=float(K) ** -0.5, gln=16.0, eps=1e-5)
    return pl.pallas_call(
        kern,
        grid=(BH,),
        in_specs=[pl.BlockSpec((1, T, D), lambda i: (i, 0, 0)),
                  pl.BlockSpec(p['wcat'].shape, lambda i: (0, 0)),
                  pl.BlockSpec(p['wgk1'].shape, lambda i: (0, 0)),
                  pl.BlockSpec((1, K), lambda i: (0, 0)),
                  pl.BlockSpec((1, V), lambda i: (0, 0)),
                  pl.BlockSpec(p['wo'].shape, lambda i: (0, 0))],
        out_specs=pl.BlockSpec((1, T, D), lambda i: (i, 0, 0)),
        out_shape=jax.ShapeDtypeStruct((BH, T, D), jnp.float32),
        scratch_shapes=[pltpu.VMEM((T, K), jnp.float32),
                        pltpu.VMEM((T, K), jnp.float32),
                        pltpu.VMEM((T, V), jnp.float32),
                        pltpu.VMEM((T, V), jnp.float32),
                        pltpu.VMEM((T, K), jnp.float32),
                        pltpu.VMEM((T, V), jnp.float32)],
        compiler_params=_cparams(1),
    )(x, p['wcat'], p['wgk1'], p['bgk1'].reshape(1, K),
      p['gnorm_w'].reshape(1, V), p['wo'])


# ---------------------------------------------------------------------------
# building blocks (glue in JAX, compute in Pallas)
# ---------------------------------------------------------------------------
def conv2d_cl(x_cl, w, b, padding):
    """conv (stride 1) via channels-last im2col (taps packed along K)."""
    B, F, T, Cin = x_cl.shape
    Cout, _, kF, kT = w.shape
    pF, pT = padding
    xp = jnp.pad(x_cl, ((0, 0), (pF, pF), (pT, pT), (0, 0)))
    Fo = F + 2 * pF - kF + 1
    To = T + 2 * pT - kT + 1
    cols = [xp[:, i:i + Fo, j:j + To, :] for i in range(kF) for j in range(kT)]
    patches = jnp.concatenate(cols, axis=-1).reshape(B * Fo * To, kF * kT * Cin)
    wm = jnp.transpose(w, (2, 3, 1, 0)).reshape(kF * kT * Cin, Cout)
    y = pallas_linear(patches, wm, b)
    return y.reshape(B, Fo, To, Cout)


def deconv1d(x, w, b, ks):
    """ConvTranspose1d (stride 1) as ONE matmul + overlap-add.  x:(N,Lp,Cin)."""
    N, Lp, Cin = x.shape
    Cout = w.shape[1]
    wm = jnp.transpose(w, (0, 2, 1)).reshape(Cin, ks * Cout)
    y = pallas_linear(x.reshape(N * Lp, Cin), wm).reshape(N, Lp, ks, Cout)
    L = Lp + ks - 1
    out = jnp.zeros((N, L, Cout), jnp.float32)
    for j in range(ks):
        out = out.at[:, j:j + Lp, :].add(y[:, :, j, :])
    return out + b.reshape(1, 1, Cout)


def band_module(p, x):
    """CausalIntraAndInterBandModule on canonical (B, T, Q, C) layout."""
    B, T, Q, C = x.shape
    ks = CFG['emb_ks']
    Hl = CFG['lstm_hidden']
    # ---- intra band (frequency axis, bidirectional) ----
    xi = pallas_layernorm(x.reshape(-1, C), p['intra_ln_g'], p['intra_ln_b'], EPS)
    xi = xi.reshape(B * T, Q, C)
    Lq = Q - ks + 1
    # TODO(synk): feature order is (tap, channel) vs torch-unfold's (channel, tap);
    #             equivalent up to a fixed permutation of the learned weights.
    seq = jnp.concatenate([xi[:, k:k + Lq, :] for k in range(ks)], axis=-1)
    rnn = bilstm_pallas(jnp.transpose(seq, (1, 0, 2)),
                        p['intra_f'], p['intra_b'], Hl)           # (Lq, BT, 2H)
    y = deconv1d(jnp.transpose(rnn, (1, 0, 2)), p['intra_dw'], p['intra_db'], ks)
    x = x + y.reshape(B, T, Q, C)
    # ---- inter band (time axis, causal / unidirectional) ----
    xj = pallas_layernorm(x.reshape(-1, C), p['inter_ln_g'], p['inter_ln_b'], EPS)
    xj = jnp.transpose(xj.reshape(B, T, Q, C), (0, 2, 1, 3)).reshape(B * Q, T, C)
    Lt = T - ks + 1
    seq2 = jnp.concatenate([xj[:, k:k + Lt, :] for k in range(ks)], axis=-1)
    rnn2 = lstm_pallas(jnp.transpose(seq2, (1, 0, 2)), p['inter_f'], Hl)
    y2 = deconv1d(jnp.transpose(rnn2, (1, 0, 2)), p['inter_dw'], p['inter_db'], ks)
    y2 = jnp.transpose(y2.reshape(B, Q, T, C), (0, 2, 1, 3))
    return x + y2


def block_forward(p, x, gtf, gtb):
    """WHYV2BlockWithGLA.forward (return_hidden=False) on (B, T, Q, C)."""
    B, T, Q, C = x.shape
    H = CFG['n_head']
    E = C // H
    y = band_module(p, x)                                     # (B, T, Q, C)
    y_rows = y.reshape(B * T * Q, C)
    # conv1x1 + AllHeadPReLULayerNormalization4DC, fused
    z = conv_headnorm(y_rows, p['conv_w'], p['conv_b'],
                      p['prelu_h'], p['norm_g'], p['norm_b'], H)
    # 'B H C T Q -> (B H) T (C Q)'
    z5 = jnp.transpose(z.reshape(B, T, Q, H, E), (0, 3, 1, 4, 2))
    z5 = z5.reshape(B * H, T, E * Q)
    qd = pallas_linear(z5.reshape(B * H * T, E * Q), p['down_w'], p['down_b'])
    att = gla_forward(p['gla'], qd.reshape(B * H, T, -1))     # (BH, T, Dg)
    att = pallas_linear(att.reshape(B * H * T, -1), p['up_w'], p['up_b'])
    # '(B H) T (C Q) -> B (H C) T Q'  (rows layout (B,T,Q) x channel (H*E))
    att_rows = jnp.transpose(att.reshape(B, H, T, E, Q),
                             (0, 2, 4, 1, 3)).reshape(B * T * Q, C)
    # WHYVFilterGate inputs broadcast to the row layout
    f = gtf * p['fg_w'][None]                                 # (B, C, Q)
    fb = gtb * p['fg_b'][None]
    f_rows = jnp.broadcast_to(jnp.transpose(f, (0, 2, 1))[:, None],
                              (B, T, Q, C)).reshape(-1, C)
    fb_rows = jnp.broadcast_to(jnp.transpose(fb, (0, 2, 1))[:, None],
                               (B, T, Q, C)).reshape(-1, C)
    o_rows = concat_proj_gate(att_rows, y_rows, f_rows, fb_rows,
                              p['cp_w'], p['cp_b'], p['cp_prelu'],
                              p['cp_ln_g'], p['cp_ln_b'])
    return o_rows.reshape(B, T, Q, C)


# ---------------------------------------------------------------------------
# STFT / ISTFT (plain JAX — no FFT primitive in Pallas)
# ---------------------------------------------------------------------------
def hann(n_fft):
    n = jnp.arange(n_fft)
    return 0.5 - 0.5 * jnp.cos(2.0 * jnp.pi * n / n_fft)


def stft(x, n_fft, hop):
    B, C, L = x.shape
    pad = n_fft // 2
    xp = jnp.pad(x, ((0, 0), (0, 0), (pad, pad)), mode='reflect')
    n_frames = 1 + (xp.shape[-1] - n_fft) // hop
    idx = jnp.arange(n_frames)[:, None] * hop + jnp.arange(n_fft)[None, :]
    frames = xp[:, :, idx]                                   # (B,C,T,n_fft)
    spec = jnp.fft.rfft(frames * hann(n_fft), axis=-1)
    return jnp.transpose(spec, (0, 1, 3, 2))                 # (B,C,F,T)


def istft(spec, n_fft, hop, length):
    B, N, F, T = spec.shape
    frames = jnp.fft.irfft(jnp.transpose(spec, (0, 1, 3, 2)), n=n_fft, axis=-1)
    win = hann(n_fft)
    frames = frames * win
    out_len = n_fft + hop * (T - 1)
    ola = jnp.zeros((B, N, out_len), jnp.float32)
    wsq = jnp.zeros((out_len,), jnp.float32)
    for t in range(T):
        ola = ola.at[:, :, t * hop:t * hop + n_fft].add(frames[:, :, t])
        wsq = wsq.at[t * hop:t * hop + n_fft].add(win * win)
    ola = ola / jnp.maximum(wsq, 1e-8)
    pad = n_fft // 2
    return ola[:, :, pad:pad + length]


# ---------------------------------------------------------------------------
# top-level model forward
# ---------------------------------------------------------------------------
def whyv2_forward(params, audio, spk_emb):
    n_fft, hop = CFG['n_fft'], CFG['hop']
    C = CFG['emb_dim']
    Qf = CFG['n_freqs']
    B, L = audio.shape
    x = audio[:, None, :]                                    # (B,1,L)
    std = jnp.sqrt(jnp.mean(jnp.square(x), axis=(1, 2), keepdims=True) + 1e-8)
    x = x / std
    spec = stft(x, n_fft, hop)                               # (B,1,F,T) complex
    xr = jnp.concatenate([spec.real, spec.imag], axis=1)     # (B,2,F,T)
    xcl = jnp.transpose(xr, (0, 2, 3, 1))                    # (B,F,T,2)
    # DimensionEmbedding: Conv2d(2,C,3,3,pad=1) + GroupNorm(1,C)
    xe = conv2d_cl(xcl, params['emb_conv_w'], params['emb_conv_b'], (1, 1))
    _, Fq, T, _ = xe.shape
    gfull = jnp.tile(params['emb_gn_g'], Fq * T)
    bfull = jnp.tile(params['emb_gn_b'], Fq * T)
    xe = pallas_layernorm(xe.reshape(B, -1), gfull, bfull, EPS).reshape(B, Fq, T, C)
    x_cur = jnp.transpose(xe, (0, 2, 1, 3))                  # canonical (B,T,Q,C)
    # speaker-conditioned filter / bias, fused into a single matmul
    fb = pallas_linear(spk_emb, params['fbgen_w'], params['fbgen_b'])
    gtf = fb[:, :C * Qf].reshape(B, C, Qf)
    gtb = fb[:, C * Qf:].reshape(B, C, Qf)
    for bp in params['blocks']:
        x_cur = block_forward(bp, x_cur, gtf, gtb)
    # WHYVDeconv: ConvTranspose2d(C, 2*n_srcs, 3, padding=1) == conv w/ flipped kernel
    xcl2 = jnp.transpose(x_cur, (0, 2, 1, 3))                # (B,F,T,C)
    wt = params['deconv_w']                                  # (C, 2, 3, 3)
    wconv = jnp.transpose(wt, (1, 0, 2, 3))[:, :, ::-1, ::-1]
    d = conv2d_cl(xcl2, wconv, params['deconv_b'], (1, 1))   # (B,F,T,2)
    spec_out = (d[..., 0] + 1j * d[..., 1])[:, None]         # (B,1,F,T)
    wav = istft(spec_out, n_fft, hop, L)                     # (B,1,L)
    wav = wav * std                                          # RMSDenormalizeOutput
    return wav[:, 0]


# ---------------------------------------------------------------------------
# deterministic parameter init
# ---------------------------------------------------------------------------
def init_whyv2_params(key):
    C = CFG['emb_dim']
    H = CFG['n_head']
    E = C // H
    Qf = CFG['n_freqs']
    ks = CFG['emb_ks']
    Hl = CFG['lstm_hidden']
    Dg = CFG['gla_hidden']
    Kg = CFG['gla_key']
    R = CFG['gla_low_rank']
    cond = CFG['cond_dim']
    ki = iter(jax.random.split(key, 256))

    def W(*shape, s=0.08):
        return s * jax.random.normal(next(ki), shape, jnp.float32)

    def zeros(*shape):
        return jnp.zeros(shape, jnp.float32)

    def ones(*shape):
        return jnp.ones(shape, jnp.float32)

    def lstm_p(cin):
        return dict(wih=W(cin, 4 * Hl), b=zeros(4 * Hl), whh=W(Hl, 4 * Hl))

    def block_p():
        Cin = C * ks
        return dict(
            intra_ln_g=ones(C), intra_ln_b=zeros(C),
            intra_f=lstm_p(Cin), intra_b=lstm_p(Cin),
            intra_dw=W(2 * Hl, C, ks), intra_db=zeros(C),
            inter_ln_g=ones(C), inter_ln_b=zeros(C),
            inter_f=lstm_p(Cin),
            inter_dw=W(Hl, C, ks), inter_db=zeros(C),
            conv_w=W(C, C), conv_b=zeros(C),
            prelu_h=0.25 * ones(H), norm_g=ones(H, E), norm_b=zeros(H, E),
            down_w=W(E * Qf, Dg), down_b=zeros(Dg),
            gla=dict(wcat=W(Dg, 2 * Kg + 2 * Dg + R),   # [wq|wk|wv|wg|wgk0] fused
                     wgk1=W(R, Kg), bgk1=zeros(Kg),
                     gnorm_w=ones(Dg), wo=W(Dg, Dg)),
            up_w=W(Dg, E * Qf), up_b=zeros(E * Qf),
            cp_w=W(C, C), cp_b=zeros(C),
            cp_prelu=jnp.full((1, 1), 0.25, jnp.float32),
            cp_ln_g=ones(C), cp_ln_b=zeros(C),
            fg_w=ones(C, Qf), fg_b=ones(C, Qf),
        )

    return dict(
        emb_conv_w=W(C, 2, 3, 3), emb_conv_b=zeros(C),
        emb_gn_g=ones(C), emb_gn_b=zeros(C),
        fbgen_w=W(cond, 2 * C * Qf), fbgen_b=zeros(2 * C * Qf),
        blocks=[block_p() for _ in range(CFG['n_layers'])],
        deconv_w=W(C, 2, 3, 3), deconv_b=zeros(2),
    )


# ---------------------------------------------------------------------------
if __name__ == "__main__":
    root = jax.random.PRNGKey(0)
    kp, ka, ks_ = jax.random.split(root, 3)
    params = init_whyv2_params(kp)
    audio = jax.random.normal(ka, (CFG['batch'], CFG['audio_len']), jnp.float32)
    spk_emb = jax.random.normal(ks_, (CFG['batch'], CFG['cond_dim']), jnp.float32)

    forward = jax.jit(whyv2_forward)
    out = jax.block_until_ready(forward(params, audio, spk_emb))

    assert out.shape == (CFG['batch'], CFG['audio_len']), out.shape
    assert bool(jnp.all(jnp.isfinite(out)))
    print("KERNEL_OK")
</pallas_src>

<mosaic_0001>
module attributes {stable_mosaic.version = 11 : i64} {
  func.func @_matmul_kernel(%arg0: i32, %arg1: memref<306x18xf32, #tpu.memory_space<vmem>>, %arg2: memref<18x8xf32, #tpu.memory_space<vmem>>, %arg3: memref<1x8xf32, #tpu.memory_space<vmem>>, %arg4: memref<306x8xf32, #tpu.memory_space<vmem>>) attributes {dimension_semantics = [#tpu.dimension_semantics<parallel>], iteration_bounds = array<i64: 1>, scalar_prefetch = 0 : i64, scratch_operands = 0 : i64, tpu.core_type = #tpu.core_type<tc>, window_params = [{transform_indices = @transform_0, window_bounds = array<i64: 306, 18>}, {pipeline_mode = #tpu.pipeline_mode<synchronous>, transform_indices = @transform_1, window_bounds = array<i64: 18, 8>}, {pipeline_mode = #tpu.pipeline_mode<synchronous>, transform_indices = @transform_2, window_bounds = array<i64: 1, 8>}, {transform_indices = @transform_3, window_bounds = array<i64: 306, 8>}]} {
    %c0 = arith.constant 0 : index
    %c0_0 = arith.constant 0 : index
    %0 = vector.load %arg1[%c0, %c0_0] : memref<306x18xf32, #tpu.memory_space<vmem>>, vector<306x18xf32>
    %1 = arith.truncf %0 : vector<306x18xf32> to vector<306x18xbf16>
    %c0_1 = arith.constant 0 : index
    %c0_2 = arith.constant 0 : index
    %2 = vector.load %arg2[%c0_1, %c0_2] : memref<18x8xf32, #tpu.memory_space<vmem>>, vector<18x8xf32>
    %3 = arith.truncf %2 : vector<18x8xf32> to vector<18x8xbf16>
    %cst = arith.constant dense<0.000000e+00> : vector<306x8xf32>
    %4 = tpu.matmul %1, %3, %cst {dimension_numbers = #tpu.dot_dimension_numbers<[1], [0], [0], [1], [0, 0, 1, 1], [], []>} : vector<306x18xbf16>, vector<18x8xbf16>, vector<306x8xf32> -> vector<306x8xf32>
    %c0_3 = arith.constant 0 : index
    %c0_4 = arith.constant 0 : index
    %5 = vector.load %arg3[%c0_3, %c0_4] : memref<1x8xf32, #tpu.memory_space<vmem>>, vector<1x8xf32>
    %6 = vector.broadcast %5 : vector<1x8xf32> to vector<306x8xf32>
    %7 = arith.addf %4, %6 : vector<306x8xf32>
    %c0_5 = arith.constant 0 : index
    %c0_6 = arith.constant 0 : index
    %8 = vector.load %arg4[%c0_5, %c0_6] : memref<306x8xf32, #tpu.memory_space<vmem>>, vector<306x8xf32>
    tpu.vector_store %arg4[%c0_5, %c0_6], %7 {strides = array<i32>} : memref<306x8xf32, #tpu.memory_space<vmem>>, vector<306x8xf32>,
    return
  }
  func.func @transform_0(%arg0: i32) -> (i32, i32) {
    %c0_i32 = arith.constant 0 : i32
    %c0_i32_0 = arith.constant 0 : i32
    return %arg0, %c0_i32 : i32, i32
  }
  func.func @transform_1(%arg0: i32) -> (i32, i32) {
    %c0_i32 = arith.constant 0 : i32
    %c0_i32_0 = arith.constant 0 : i32
    %c0_i32_1 = arith.constant 0 : i32
    return %c0_i32, %c0_i32_0 : i32, i32
  }
  func.func @transform_2(%arg0: i32) -> (i32, i32) {
    %c0_i32 = arith.constant 0 : i32
    %c0_i32_0 = arith.constant 0 : i32
    %c0_i32_1 = arith.constant 0 : i32
    return %c0_i32, %c0_i32_0 : i32, i32
  }
  func.func @transform_3(%arg0: i32) -> (i32, i32) {
    %c0_i32 = arith.constant 0 : i32
    %c0_i32_0 = arith.constant 0 : i32
    return %arg0, %c0_i32 : i32, i32
  }
}

module attributes {stable_mosaic.version = 11 : i64} {
  func.func @_ln_kernel(%arg0: i32, %arg1: memref<2x1224xf32, #tpu.memory_space<vmem>>, %arg2: memref<1x1224xf32, #tpu.memory_space<vmem>>, %arg3: memref<1x1224xf32, #tpu.memory_space<vmem>>, %arg4: memref<2x1224xf32, #tpu.memory_space<vmem>>) attributes {dimension_semantics = [#tpu.dimension_semantics<parallel>], iteration_bounds = array<i64: 1>, scalar_prefetch = 0 : i64, scratch_operands = 0 : i64, tpu.core_type = #tpu.core_type<tc>, window_params = [{transform_indices = @transform_0, window_bounds = array<i64: 2, 1224>}, {pipeline_mode = #tpu.pipeline_mode<synchronous>, transform_indices = @transform_1, window_bounds = array<i64: 1, 1224>}, {pipeline_mode = #tpu.pipeline_mode<synchronous>, transform_indices = @transform_2, window_bounds = array<i64: 1, 1224>}, {transform_indices = @transform_3, window_bounds = array<i64: 2, 1224>}]} {
    %c0 = arith.constant 0 : index
    %c0_0 = arith.constant 0 : index
    %0 = vector.load %arg1[%c0, %c0_0] : memref<2x1224xf32, #tpu.memory_space<vmem>>, vector<2x1224xf32>
    %cst = arith.constant dense<0.000000e+00> : vector<2xf32>
    %1 = vector.multi_reduction <add>, %0, %cst [1] : vector<2x1224xf32> to vector<2xf32>
    %2 = vector.shape_cast %1 : vector<2xf32> to vector<2x1xf32>
    %cst_1 = arith.constant 1.224000e+03 : f32
    %3 = vector.broadcast %cst_1 : f32 to vector<2x1xf32>
    %4 = arith.divf %2, %3 : vector<2x1xf32>
    %5 = vector.broadcast %4 : vector<2x1xf32> to vector<2x1224xf32>
    %6 = arith.subf %0, %5 : vector<2x1224xf32>
    %7 = arith.mulf %6, %6 : vector<2x1224xf32>
    %cst_2 = arith.constant dense<0.000000e+00> : vector<2xf32>
    %8 = vector.multi_reduction <add>, %7, %cst_2 [1] : vector<2x1224xf32> to vector<2xf32>
    %9 = vector.shape_cast %8 : vector<2xf32> to vector<2x1xf32>
    %cst_3 = arith.constant 1.224000e+03 : f32
    %10 = vector.broadcast %cst_3 : f32 to vector<2x1xf32>
    %11 = arith.divf %9, %10 : vector<2x1xf32>
    %12 = vector.broadcast %4 : vector<2x1xf32> to vector<2x1224xf32>
    %13 = arith.subf %0, %12 : vector<2x1224xf32>
    %cst_4 = arith.constant 9.99999974E-6 : f32
    %14 = vector.broadcast %cst_4 : f32 to vector<2x1xf32>
    %15 = arith.addf %11, %14 : vector<2x1xf32>
    %16 = math.rsqrt %15 : vector<2x1xf32>
    %17 = vector.broadcast %16 : vector<2x1xf32> to vector<2x1224xf32>
    %18 = arith.mulf %13, %17 : vector<2x1224xf32>
    %c0_5 = arith.constant 0 : index
    %c0_6 = arith.constant 0 : index
    %19 = vector.load %arg2[%c0_5, %c0_6] : memref<1x1224xf32, #tpu.memory_space<vmem>>, vector<1x1224xf32>
    %20 = vector.broadcast %19 : vector<1x1224xf32> to vector<2x1224xf32>
    %21 = arith.mulf %18, %20 : vector<2x1224xf32>
    %c0_7 = arith.constant 0 : index
    %c0_8 = arith.constant 0 : index
    %22 = vector.load %arg3[%c0_7, %c0_8] : memref<1x1224xf32, #tpu.memory_space<vmem>>, vector<1x1224xf32>
    %23 = vector.broadcast %22 : vector<1x1224xf32> to vector<2x1224xf32>
    %24 = arith.addf %21, %23 : vector<2x1224xf32>
    %c0_9 = arith.constant 0 : index
    %c0_10 = arith.constant 0 : index
    %25 = vector.load %arg4[%c0_9, %c0_10] : memref<2x1224xf32, #tpu.memory_space<vmem>>, vector<2x1224xf32>
    tpu.vector_store %arg4[%c0_9, %c0_10], %24 {strides = array<i32>} : memref<2x1224xf32, #tpu.memory_space<vmem>>, vector<2x1224xf32>,
    return
  }
  func.func @transform_0(%arg0: i32) -> (i32, i32) {
    %c0_i32 = arith.constant 0 : i32
    %c0_i32_0 = arith.constant 0 : i32
    return %arg0, %c0_i32 : i32, i32
  }
  func.func @transform_1(%arg0: i32) -> (i32, i32) {
    %c0_i32 = arith.constant 0 : i32
    %c0_i32_0 = arith.constant 0 : i32
    %c0_i32_1 = arith.constant 0 : i32
    return %c0_i32, %c0_i32_0 : i32, i32
  }
  func.func @transform_2(%arg0: i32) -> (i32, i32) {
    %c0_i32 = arith.constant 0 : i32
    %c0_i32_0 = arith.constant 0 : i32
    %c0_i32_1 = arith.constant 0 : i32
    return %c0_i32, %c0_i32_0 : i32, i32
  }
  func.func @transform_3(%arg0: i32) -> (i32, i32) {
    %c0_i32 = arith.constant 0 : i32
    %c0_i32_0 = arith.constant 0 : i32
    return %arg0, %c0_i32 : i32, i32
  }
}

module attributes {stable_mosaic.version = 11 : i64} {
  func.func @_ln_kernel(%arg0: i32, %arg1: memref<306x8xf32, #tpu.memory_space<vmem>>, %arg2: memref<1x8xf32, #tpu.memory_space<vmem>>, %arg3: memref<1x8xf32, #tpu.memory_space<vmem>>, %arg4: memref<306x8xf32, #tpu.memory_space<vmem>>) attributes {dimension_semantics = [#tpu.dimension_semantics<parallel>], iteration_bounds = array<i64: 1>, scalar_prefetch = 0 : i64, scratch_operands = 0 : i64, tpu.core_type = #tpu.core_type<tc>, window_params = [{transform_indices = @transform_0, window_bounds = array<i64: 306, 8>}, {pipeline_mode = #tpu.pipeline_mode<synchronous>, transform_indices = @transform_1, window_bounds = array<i64: 1, 8>}, {pipeline_mode = #tpu.pipeline_mode<synchronous>, transform_indices = @transform_2, window_bounds = array<i64: 1, 8>}, {transform_indices = @transform_3, window_bounds = array<i64: 306, 8>}]} {
    %c0 = arith.constant 0 : index
    %c0_0 = arith.constant 0 : index
    %0 = vector.load %arg1[%c0, %c0_0] : memref<306x8xf32, #tpu.memory_space<vmem>>, vector<306x8xf32>
    %cst = arith.constant dense<0.000000e+00> : vector<306xf32>
    %1 = vector.multi_reduction <add>, %0, %cst [1] : vector<306x8xf32> to vector<306xf32>
    %2 = vector.shape_cast %1 : vector<306xf32> to vector<306x1xf32>
    %cst_1 = arith.constant 8.000000e+00 : f32
    %3 = vector.broadcast %cst_1 : f32 to vector<306x1xf32>
    %4 = arith.divf %2, %3 : vector<306x1xf32>
    %5 = vector.broadcast %4 : vector<306x1xf32> to vector<306x8xf32>
    %6 = arith.subf %0, %5 : vector<306x8xf32>
    %7 = arith.mulf %6, %6 : vector<306x8xf32>
    %cst_2 = arith.constant dense<0.000000e+00> : vector<306xf32>
    %8 = vector.multi_reduction <add>, %7, %cst_2 [1] : vector<306x8xf32> to vector<306xf32>
    %9 = vector.shape_cast %8 : vector<306xf32> to vector<306x1xf32>
    %cst_3 = arith.constant 8.000000e+00 : f32
    %10 = vector.broadcast %cst_3 : f32 to vector<306x1xf32>
    %11 = arith.divf %9, %10 : vector<306x1xf32>
    %12 = vector.broadcast %4 : vector<306x1xf32> to vector<306x8xf32>
    %13 = arith.subf %0, %12 : vector<306x8xf32>
    %cst_4 = arith.constant 9.99999974E-6 : f32
    %14 = vector.broadcast %cst_4 : f32 to vector<306x1xf32>
    %15 = arith.addf %11, %14 : vector<306x1xf32>
    %16 = math.rsqrt %15 : vector<306x1xf32>
    %17 = vector.broadcast %16 : vector<306x1xf32> to vector<306x8xf32>
    %18 = arith.mulf %13, %17 : vector<306x8xf32>
    %c0_5 = arith.constant 0 : index
    %c0_6 = arith.constant 0 : index
    %19 = vector.load %arg2[%c0_5, %c0_6] : memref<1x8xf32, #tpu.memory_space<vmem>>, vector<1x8xf32>
    %20 = vector.broadcast %19 : vector<1x8xf32> to vector<306x8xf32>
    %21 = arith.mulf %18, %20 : vector<306x8xf32>
    %c0_7 = arith.constant 0 : index
    %c0_8 = arith.constant 0 : index
    %22 = vector.load %arg3[%c0_7, %c0_8] : memref<1x8xf32, #tpu.memory_space<vmem>>, vector<1x8xf32>
    %23 = vector.broadcast %22 : vector<1x8xf32> to vector<306x8xf32>
    %24 = arith.addf %21, %23 : vector<306x8xf32>
    %c0_9 = arith.constant 0 : index
    %c0_10 = arith.constant 0 : index
    %25 = vector.load %arg4[%c0_9, %c0_10] : memref<306x8xf32, #tpu.memory_space<vmem>>, vector<306x8xf32>
    tpu.vector_store %arg4[%c0_9, %c0_10], %24 {strides = array<i32>} : memref<306x8xf32, #tpu.memory_space<vmem>>, vector<306x8xf32>,
    return
  }
  func.func @transform_0(%arg0: i32) -> (i32, i32) {
    %c0_i32 = arith.constant 0 : i32
    %c0_i32_0 = arith.constant 0 : i32
    return %arg0, %c0_i32 : i32, i32
  }
  func.func @transform_1(%arg0: i32) -> (i32, i32) {
    %c0_i32 = arith.constant 0 : i32
    %c0_i32_0 = arith.constant 0 : i32
    %c0_i32_1 = arith.constant 0 : i32
    return %c0_i32, %c0_i32_0 : i32, i32
  }
  func.func @transform_2(%arg0: i32) -> (i32, i32) {
    %c0_i32 = arith.constant 0 : i32
    %c0_i32_0 = arith.constant 0 : i32
    %c0_i32_1 = arith.constant 0 : i32
    return %c0_i32, %c0_i32_0 : i32, i32
  }
  func.func @transform_3(%arg0: i32) -> (i32, i32) {
    %c0_i32 = arith.constant 0 : i32
    %c0_i32_0 = arith.constant 0 : i32
    return %arg0, %c0_i32 : i32, i32
  }
}

module attributes {stable_mosaic.version = 11 : i64} {
  func.func @_bilstm_kernel(%arg0: i32, %arg1: memref<14x18x32xf32, #tpu.memory_space<vmem>>, %arg2: memref<32x64xf32, #tpu.memory_space<vmem>>, %arg3: memref<1x64xf32, #tpu.memory_space<vmem>>, %arg4: memref<16x64xf32, #tpu.memory_space<vmem>>, %arg5: memref<32x64xf32, #tpu.memory_space<vmem>>, %arg6: memref<1x64xf32, #tpu.memory_space<vmem>>, %arg7: memref<16x64xf32, #tpu.memory_space<vmem>>, %arg8: memref<14x18x32xf32, #tpu.memory_space<vmem>>, %arg9: memref<14x18x16xf32, #tpu.memory_space<vmem>>, %arg10: memref<14x18x16xf32, #tpu.memory_space<vmem>>) attributes {dimension_semantics = [#tpu.dimension_semantics<parallel>], iteration_bounds = array<i64: 1>, scalar_prefetch = 0 : i64, scratch_operands = 2 : i64, tpu.core_type = #tpu.core_type<tc>, window_params = [{transform_indices = @transform_0, window_bounds = array<i64: 14, 18, 32>}, {pipeline_mode = #tpu.pipeline_mode<synchronous>, transform_indices = @transform_1, window_bounds = array<i64: 32, 64>}, {pipeline_mode = #tpu.pipeline_mode<synchronous>, transform_indices = @transform_2, window_bounds = array<i64: 1, 64>}, {pipeline_mode = #tpu.pipeline_mode<synchronous>, transform_indices = @transform_3, window_bounds = array<i64: 16, 64>}, {pipeline_mode = #tpu.pipeline_mode<synchronous>, transform_indices = @transform_4, window_bounds = array<i64: 32, 64>}, {pipeline_mode = #tpu.pipeline_mode<synchronous>, transform_indices = @transform_5, window_bounds = array<i64: 1, 64>}, {pipeline_mode = #tpu.pipeline_mode<synchronous>, transform_indices = @transform_6, window_bounds = array<i64: 16, 64>}, {transform_indices = @transform_7, window_bounds = array<i64: 14, 18, 32>}]} {
    %c0 = arith.constant 0 : index
    %c0_0 = arith.constant 0 : index
    %0 = vector.load %arg2[%c0, %c0_0] : memref<32x64xf32, #tpu.memory_space<vmem>>, vector<32x64xf32>
    %1 = arith.truncf %0 : vector<32x64xf32> to vector<32x64xbf16>
    %c0_1 = arith.constant 0 : index
    %c0_2 = arith.constant 0 : index
    %2 = vector.load %arg4[%c0_1, %c0_2] : memref<16x64xf32, #tpu.memory_space<vmem>>, vector<16x64xf32>
    %3 = arith.truncf %2 : vector<16x64xf32> to vector<16x64xbf16>
    %c0_3 = arith.constant 0 : index
    %c0_4 = arith.constant 0 : index
    %4 = vector.load %arg3[%c0_3, %c0_4] : memref<1x64xf32, #tpu.memory_space<vmem>>, vector<1x64xf32>
    %c0_5 = arith.constant 0 : index
    %c0_6 = arith.constant 0 : index
    %5 = vector.load %arg5[%c0_5, %c0_6] : memref<32x64xf32, #tpu.memory_space<vmem>>, vector<32x64xf32>
    %6 = arith.truncf %5 : vector<32x64xf32> to vector<32x64xbf16>
    %c0_7 = arith.constant 0 : index
    %c0_8 = arith.constant 0 : index
    %7 = vector.load %arg7[%c0_7, %c0_8] : memref<16x64xf32, #tpu.memory_space<vmem>>, vector<16x64xf32>
    %8 = arith.truncf %7 : vector<16x64xf32> to vector<16x64xbf16>
    %c0_9 = arith.constant 0 : index
    %c0_10 = arith.constant 0 : index
    %9 = vector.load %arg6[%c0_9, %c0_10] : memref<1x64xf32, #tpu.memory_space<vmem>>, vector<1x64xf32>
    %cst = arith.constant 0.000000e+00 : f32
    %10 = vector.broadcast %cst : f32 to vector<18x16xf32>
    %c0_i32 = arith.constant 0 : i32
    %c14_i32 = arith.constant 14 : i32
    %11 = arith.addi %c0_i32, %c14_i32 : i32
    %c1_i32 = arith.constant 1 : i32
    %12:2 = scf.for %arg11 = %c0_i32 to %11 step %c1_i32 iter_args(%arg12 = %10, %arg13 = %10) -> (vector<18x16xf32>, vector<18x16xf32>)  : i32 {
      %19 = arith.index_cast %arg11 : i32 to index
      %c0_27 = arith.constant 0 : index
      %c0_28 = arith.constant 0 : index
      %20 = vector.load %arg1[%19, %c0_27, %c0_28] : memref<14x18x32xf32, #tpu.memory_space<vmem>>, vector<1x18x32xf32>
      %21 = vector.shape_cast %20 : vector<1x18x32xf32> to vector<18x32xf32>
      %22 = arith.truncf %21 : vector<18x32xf32> to vector<18x32xbf16>
      %cst_29 = arith.constant dense<0.000000e+00> : vector<18x64xf32>
      %23 = tpu.matmul %22, %1, %cst_29 {dimension_numbers = #tpu.dot_dimension_numbers<[1], [0], [0], [1], [0, 0, 1, 1], [], []>} : vector<18x32xbf16>, vector<32x64xbf16>, vector<18x64xf32> -> vector<18x64xf32>
      %24 = vector.broadcast %4 : vector<1x64xf32> to vector<18x64xf32>
      %25 = arith.addf %23, %24 : vector<18x64xf32>
      %26 = arith.truncf %arg12 : vector<18x16xf32> to vector<18x16xbf16>
      %cst_30 = arith.constant dense<0.000000e+00> : vector<18x64xf32>
      %27 = tpu.matmul %26, %3, %cst_30 {dimension_numbers = #tpu.dot_dimension_numbers<[1], [0], [0], [1], [0, 0, 1, 1], [], []>} : vector<18x16xbf16>, vector<16x64xbf16>, vector<18x64xf32> -> vector<18x64xf32>
      %28 = arith.addf %25, %27 : vector<18x64xf32>
      %29 = vector.extract_strided_slice %28 {offsets = [0, 0], sizes = [18, 16], strides = [1, 1]} : vector<18x64xf32> to vector<18x16xf32>
      %30 = arith.negf %29 : vector<18x16xf32>
      %31 = math.exp %30 : vector<18x16xf32>
      %cst_31 = arith.constant 1.000000e+00 : f32
      %32 = vector.broadcast %cst_31 : f32 to vector<18x16xf32>
      %33 = arith.addf %32, %31 : vector<18x16xf32>
      %34 = arith.divf %32, %33 : vector<18x16xf32>
      %35 = vector.extract_strided_slice %28 {offsets = [0, 16], sizes = [18, 16], strides = [1, 1]} : vector<18x64xf32> to vector<18x16xf32>
      %36 = arith.negf %35 : vector<18x16xf32>
      %37 = math.exp %36 : vector<18x16xf32>
      %cst_32 = arith.constant 1.000000e+00 : f32
      %38 = vector.broadcast %cst_32 : f32 to vector<18x16xf32>
      %39 = arith.addf %38, %37 : vector<18x16xf32>
      %40 = arith.divf %38, %39 : vector<18x16xf32>
      %41 = vector.extract_strided_slice %28 {offsets = [0, 32], sizes = [18, 16], strides = [1, 1]} : vector<18x64xf32> to vector<18x16xf32>
      %42 = math.tanh %41 : vector<18x16xf32>
      %43 = vector.extract_strided_slice %28 {offsets = [0, 48], sizes = [18, 16], strides = [1, 1]} : vector<18x64xf32> to vector<18x16xf32>
      %44 = arith.negf %43 : vector<18x16xf32>
      %45 = math.exp %44 : vector<18x16xf32>
      %cst_33 = arith.constant 1.000000e+00 : f32
      %46 = vector.broadcast %cst_33 : f32 to vector<18x16xf32>
      %47 = arith.addf %46, %45 : vector<18x16xf32>
      %48 = arith.divf %46, %47 : vector<18x16xf32>
      %49 = arith.mulf %40, %arg13 : vector<18x16xf32>
      %50 = arith.mulf %34, %42 : vector<18x16xf32>
      %51 = arith.addf %49, %50 : vector<18x16xf32>
      %52 = math.tanh %51 : vector<18x16xf32>
      %53 = arith.mulf %48, %52 : vector<18x16xf32>
      %54 = arith.index_cast %arg11 : i32 to index
      %c0_34 = arith.constant 0 : index
      %c0_35 = arith.constant 0 : index
      %55 = vector.load %arg9[%54, %c0_34, %c0_35] : memref<14x18x16xf32, #tpu.memory_space<vmem>>, vector<1x18x16xf32>
      %56 = vector.shape_cast %55 : vector<1x18x16xf32> to vector<18x16xf32>
      %57 = vector.shape_cast %53 : vector<18x16xf32> to vector<1x18x16xf32>
      tpu.vector_store %arg9[%54, %c0_34, %c0_35], %57 {strides = array<i32>} : memref<14x18x16xf32, #tpu.memory_space<vmem>>, vector<1x18x16xf32>,
      scf.yield %53, %51 : vector<18x16xf32>, vector<18x16xf32>
    }
    %c14_i32_11 = arith.constant 14 : i32
    %c0_i32_12 = arith.constant 0 : i32
    %c14_i32_13 = arith.constant 14 : i32
    %13 = arith.addi %c0_i32_12, %c14_i32_13 : i32
    %c1_i32_14 = arith.constant 1 : i32
    %14:2 = scf.for %arg11 = %c0_i32_12 to %13 step %c1_i32_14 iter_args(%arg12 = %10, %arg13 = %10) -> (vector<18x16xf32>, vector<18x16xf32>)  : i32 {
      %c13_i32 = arith.constant 13 : i32
      %19 = arith.subi %c13_i32, %arg11 : i32
      %20 = arith.index_cast %19 : i32 to index
      %c0_27 = arith.constant 0 : index
      %c0_28 = arith.constant 0 : index
      %21 = vector.load %arg1[%20, %c0_27, %c0_28] : memref<14x18x32xf32, #tpu.memory_space<vmem>>, vector<1x18x32xf32>
      %22 = vector.shape_cast %21 : vector<1x18x32xf32> to vector<18x32xf32>
      %23 = arith.truncf %22 : vector<18x32xf32> to vector<18x32xbf16>
      %cst_29 = arith.constant dense<0.000000e+00> : vector<18x64xf32>
      %24 = tpu.matmul %23, %6, %cst_29 {dimension_numbers = #tpu.dot_dimension_numbers<[1], [0], [0], [1], [0, 0, 1, 1], [], []>} : vector<18x32xbf16>, vector<32x64xbf16>, vector<18x64xf32> -> vector<18x64xf32>
      %25 = vector.broadcast %9 : vector<1x64xf32> to vector<18x64xf32>
      %26 = arith.addf %24, %25 : vector<18x64xf32>
      %27 = arith.truncf %arg12 : vector<18x16xf32> to vector<18x16xbf16>
      %cst_30 = arith.constant dense<0.000000e+00> : vector<18x64xf32>
      %28 = tpu.matmul %27, %8, %cst_30 {dimension_numbers = #tpu.dot_dimension_numbers<[1], [0], [0], [1], [0, 0, 1, 1], [], []>} : vector<18x16xbf16>, vector<16x64xbf16>, vector<18x64xf32> -> vector<18x64xf32>
      %29 = arith.addf %26, %28 : vector<18x64xf32>
      %30 = vector.extract_strided_slice %29 {offsets = [0, 0], sizes = [18, 16], strides = [1, 1]} : vector<18x64xf32> to vector<18x16xf32>
      %31 = arith.negf %30 : vector<18x16xf32>
      %32 = math.exp %31 : vector<18x16xf32>
      %cst_31 = arith.constant 1.000000e+00 : f32
      %33 = vector.broadcast %cst_31 : f32 to vector<18x16xf32>
      %34 = arith.addf %33, %32 : vector<18x16xf32>
      %35 = arith.divf %33, %34 : vector<18x16xf32>
      %36 = vector.extract_strided_slice %29 {offsets = [0, 16], sizes = [18, 16], strides = [1, 1]} : vector<18x64xf32> to vector<18x16xf32>
      %37 = arith.negf %36 : vector<18x16xf32>
      %38 = math.exp %37 : vector<18x16xf32>
      %cst_32 = arith.constant 1.000000e+00 : f32
      %39 = vector.broadcast %cst_32 : f32 to vector<18x16xf32>
      %40 = arith.addf %39, %38 : vector<18x16xf32>
      %41 = arith.divf %39, %40 : vector<18x16xf32>
      %42 = vector.extract_strided_slice %29 {offsets = [0, 32], sizes = [18, 16], strides = [1, 1]} : vector<18x64xf32> to vector<18x16xf32>
      %43 = math.tanh %42 : vector<18x16xf32>
      %44 = vector.extract_strided_slice %29 {offsets = [0, 48], sizes = [18, 16], strides = [1, 1]} : vector<18x64xf32> to vector<18x16xf32>
      %45 = arith.negf %44 : vector<18x16xf32>
      %46 = math.exp %45 : vector<18x16xf32>
      %cst_33 = arith.constant 1.000000e+00 : f32
      %47 = vector.broadcast %cst_33 : f32 to vector<18x16xf32>
      %48 = arith.addf %47, %46 : vector<18x16xf32>
      %49 = arith.divf %47, %48 : vector<18x16xf32>
      %50 = arith.mulf %41, %arg13 : vector<18x16xf32>
      %51 = arith.mulf %35, %43 : vector<18x16xf32>
      %52 = arith.addf %50, %51 : vector<18x16xf32>
      %53 = math.tanh %52 : vector<18x16xf32>
      %54 = arith.mulf %49, %53 : vector<18x16xf32>
      %55 = arith.index_cast %19 : i32 to index
      %c0_34 = arith.constant 0 : index
      %c0_35 = arith.constant 0 : index
      %56 = vector.load %arg10[%55, %c0_34, %c0_35] : memref<14x18x16xf32, #tpu.memory_space<vmem>>, vector<1x18x16xf32>
      %57 = vector.shape_cast %56 : vector<1x18x16xf32> to vector<18x16xf32>
      %58 = vector.shape_cast %54 : vector<18x16xf32> to vector<1x18x16xf32>
      tpu.vector_store %arg10[%55, %c0_34, %c0_35], %58 {strides = array<i32>} : memref<14x18x16xf32, #tpu.memory_space<vmem>>, vector<1x18x16xf32>,
      scf.yield %54, %52 : vector<18x16xf32>, vector<18x16xf32>
    }
    %c14_i32_15 = arith.constant 14 : i32
    %c0_16 = arith.constant 0 : index
    %c0_17 = arith.constant 0 : index
    %c0_18 = arith.constant 0 : index
    %15 = vector.load %arg9[%c0_16, %c0_17, %c0_18] : memref<14x18x16xf32, #tpu.memory_space<vmem>>, vector<14x18x16xf32>
    %c0_19 = arith.constant 0 : index
    %c0_20 = arith.constant 0 : index
    %c0_21 = arith.constant 0 : index
    %16 = vector.load %arg8[%c0_19, %c0_20, %c0_21] : memref<14x18x32xf32, #tpu.memory_space<vmem>>, vector<14x18x16xf32>
    tpu.vector_store %arg8[%c0_19, %c0_20, %c0_21], %15 {strides = array<i32>} : memref<14x18x32xf32, #tpu.memory_space<vmem>>, vector<14x18x16xf32>,
    %c0_22 = arith.constant 0 : index
    %c0_23 = arith.constant 0 : index
    %c0_24 = arith.constant 0 : index
    %17 = vector.load %arg10[%c0_22, %c0_23, %c0_24] : memref<14x18x16xf32, #tpu.memory_space<vmem>>, vector<14x18x16xf32>
    %c0_25 = arith.constant 0 : index
    %c0_26 = arith.constant 0 : index
    %c16 = arith.constant 16 : index
    %18 = vector.load %arg8[%c0_25, %c0_26, %c16] : memref<14x18x32xf32, #tpu.memory_space<vmem>>, vector<14x18x16xf32>
    tpu.vector_store %arg8[%c0_25, %c0_26, %c16], %17 {strides = array<i32>} : memref<14x18x32xf32, #tpu.memory_space<vmem>>, vector<14x18x16xf32>,
    return
  }
  func.func @transform_0(%arg0: i32) -> (i32, i32, i32) {
    %c0_i32 = arith.constant 0 : i32
    %c0_i32_0 = arith.constant 0 : i32
    %c0_i32_1 = arith.constant 0 : i32
    return %c0_i32, %arg0, %c0_i32_0 : i32, i32, i32
  }
  func.func @transform_1(%arg0: i32) -> (i32, i32) {
    %c0_i32 = arith.constant 0 : i32
    %c0_i32_0 = arith.constant 0 : i32
    %c0_i32_1 = arith.constant 0 : i32
    return %c0_i32, %c0_i32_0 : i32, i32
  }
  func.func @transform_2(%arg0: i32) -> (i32, i32) {
    %c0_i32 = arith.constant 0 : i32
    %c0_i32_0 = arith.constant 0 : i32
    %c0_i32_1 = arith.constant 0 : i32
    return %c0_i32, %c0_i32_0 : i32, i32
  }
  func.func @transform_3(%arg0: i32) -> (i32, i32) {
    %c0_i32 = arith.constant 0 : i32
    %c0_i32_0 = arith.constant 0 : i32
    %c0_i32_1 = arith.constant 0 : i32
    return %c0_i32, %c0_i32_0 : i32, i32
  }
  func.func @transform_4(%arg0: i32) -> (i32, i32) {
    %c0_i32 = arith.constant 0 : i32
    %c0_i32_0 = arith.constant 0 : i32
    %c0_i32_1 = arith.constant 0 : i32
    return %c0_i32, %c0_i32_0 : i32, i32
  }
  func.func @transform_5(%arg0: i32) -> (i32, i32) {
    %c0_i32 = arith.constant 0 : i32
    %c0_i32_0 = arith.constant 0 : i32
    %c0_i32_1 = arith.constant 0 : i32
    return %c0_i32, %c0_i32_0 : i32, i32
  }
  func.func @transform_6(%arg0: i32) -> (i32, i32) {
    %c0_i32 = arith.constant 0 : i32
    %c0_i32_0 = arith.constant 0 : i32
    %c0_i32_1 = arith.constant 0 : i32
    return %c0_i32, %c0_i32_0 : i32, i32
  }
  func.func @transform_7(%arg0: i32) -> (i32, i32, i32) {
    %c0_i32 = arith.constant 0 : i32
    %c0_i32_0 = arith.constant 0 : i32
    %c0_i32_1 = arith.constant 0 : i32
    return %c0_i32, %arg0, %c0_i32_0 : i32, i32, i32
  }
}

module attributes {stable_mosaic.version = 11 : i64} {
  func.func @_matmul_kernel(%arg0: i32, %arg1: memref<252x32xf32, #tpu.memory_space<vmem>>, %arg2: memref<32x32xf32, #tpu.memory_space<vmem>>, %arg3: memref<1x32xf32, #tpu.memory_space<vmem>>, %arg4: memref<252x32xf32, #tpu.memory_space<vmem>>) attributes {dimension_semantics = [#tpu.dimension_semantics<parallel>], iteration_bounds = array<i64: 1>, scalar_prefetch = 0 : i64, scratch_operands = 0 : i64, tpu.core_type = #tpu.core_type<tc>, window_params = [{transform_indices = @transform_0, window_bounds = array<i64: 252, 32>}, {pipeline_mode = #tpu.pipeline_mode<synchronous>, transform_indices = @transform_1, window_bounds = array<i64: 32, 32>}, {pipeline_mode = #tpu.pipeline_mode<synchronous>, transform_indices = @transform_2, window_bounds = array<i64: 1, 32>}, {transform_indices = @transform_3, window_bounds = array<i64: 252, 32>}]} {
    %c0 = arith.constant 0 : index
    %c0_0 = arith.constant 0 : index
    %0 = vector.load %arg1[%c0, %c0_0] : memref<252x32xf32, #tpu.memory_space<vmem>>, vector<252x32xf32>
    %1 = arith.truncf %0 : vector<252x32xf32> to vector<252x32xbf16>
    %c0_1 = arith.constant 0 : index
    %c0_2 = arith.constant 0 : index
    %2 = vector.load %arg2[%c0_1, %c0_2] : memref<32x32xf32, #tpu.memory_space<vmem>>, vector<32x32xf32>
    %3 = arith.truncf %2 : vector<32x32xf32> to vector<32x32xbf16>
    %cst = arith.constant dense<0.000000e+00> : vector<252x32xf32>
    %4 = tpu.matmul %1, %3, %cst {dimension_numbers = #tpu.dot_dimension_numbers<[1], [0], [0], [1], [0, 0, 1, 1], [], []>} : vector<252x32xbf16>, vector<32x32xbf16>, vector<252x32xf32> -> vector<252x32xf32>
    %c0_3 = arith.constant 0 : index
    %c0_4 = arith.constant 0 : index
    %5 = vector.load %arg3[%c0_3, %c0_4] : memref<1x32xf32, #tpu.memory_space<vmem>>, vector<1x32xf32>
    %6 = vector.broadcast %5 : vector<1x32xf32> to vector<252x32xf32>
    %7 = arith.addf %4, %6 : vector<252x32xf32>
    %c0_5 = arith.constant 0 : index
    %c0_6 = arith.constant 0 : index
    %8 = vector.load %arg4[%c0_5, %c0_6] : memref<252x32xf32, #tpu.memory_space<vmem>>, vector<252x32xf32>
    tpu.vector_store %arg4[%c0_5, %c0_6], %7 {strides = array<i32>} : memref<252x32xf32, #tpu.memory_space<vmem>>, vector<252x32xf32>,
    return
  }
  func.func @transform_0(%arg0: i32) -> (i32, i32) {
    %c0_i32 = arith.constant 0 : i32
    %c0_i32_0 = arith.constant 0 : i32
    return %arg0, %c0_i32 : i32, i32
  }
  func.func @transform_1(%arg0: i32) -> (i32, i32) {
    %c0_i32 = arith.constant 0 : i32
    %c0_i32_0 = arith.constant 0 : i32
    %c0_i32_1 = arith.constant 0 : i32
    return %c0_i32, %c0_i32_0 : i32, i32
  }
  func.func @transform_2(%arg0: i32) -> (i32, i32) {
    %c0_i32 = arith.constant 0 : i32
    %c0_i32_0 = arith.constant 0 : i32
    %c0_i32_1 = arith.constant 0 : i32
    return %c0_i32, %c0_i32_0 : i32, i32
  }
  func.func @transform_3(%arg0: i32) -> (i32, i32) {
    %c0_i32 = arith.constant 0 : i32
    %c0_i32_0 = arith.constant 0 : i32
    return %arg0, %c0_i32 : i32, i32
  }
}

module attributes {stable_mosaic.version = 11 : i64} {
  func.func @_lstm_kernel(%arg0: i32, %arg1: memref<6x34x32xf32, #tpu.memory_space<vmem>>, %arg2: memref<32x64xf32, #tpu.memory_space<vmem>>, %arg3: memref<1x64xf32, #tpu.memory_space<vmem>>, %arg4: memref<16x64xf32, #tpu.memory_space<vmem>>, %arg5: memref<6x34x16xf32, #tpu.memory_space<vmem>>) attributes {dimension_semantics = [#tpu.dimension_semantics<parallel>], iteration_bounds = array<i64: 1>, scalar_prefetch = 0 : i64, scratch_operands = 0 : i64, tpu.core_type = #tpu.core_type<tc>, window_params = [{transform_indices = @transform_0, window_bounds = array<i64: 6, 34, 32>}, {pipeline_mode = #tpu.pipeline_mode<synchronous>, transform_indices = @transform_1, window_bounds = array<i64: 32, 64>}, {pipeline_mode = #tpu.pipeline_mode<synchronous>, transform_indices = @transform_2, window_bounds = array<i64: 1, 64>}, {pipeline_mode = #tpu.pipeline_mode<synchronous>, transform_indices = @transform_3, window_bounds = array<i64: 16, 64>}, {transform_indices = @transform_4, window_bounds = array<i64: 6, 34, 16>}]} {
    %c0 = arith.constant 0 : index
    %c0_0 = arith.constant 0 : index
    %0 = vector.load %arg2[%c0, %c0_0] : memref<32x64xf32, #tpu.memory_space<vmem>>, vector<32x64xf32>
    %1 = arith.truncf %0 : vector<32x64xf32> to vector<32x64xbf16>
    %c0_1 = arith.constant 0 : index
    %c0_2 = arith.constant 0 : index
    %2 = vector.load %arg4[%c0_1, %c0_2] : memref<16x64xf32, #tpu.memory_space<vmem>>, vector<16x64xf32>
    %3 = arith.truncf %2 : vector<16x64xf32> to vector<16x64xbf16>
    %c0_3 = arith.constant 0 : index
    %c0_4 = arith.constant 0 : index
    %4 = vector.load %arg3[%c0_3, %c0_4] : memref<1x64xf32, #tpu.memory_space<vmem>>, vector<1x64xf32>
    %cst = arith.constant 0.000000e+00 : f32
    %5 = vector.broadcast %cst : f32 to vector<34x16xf32>
    %c0_i32 = arith.constant 0 : i32
    %c6_i32 = arith.constant 6 : i32
    %6 = arith.addi %c0_i32, %c6_i32 : i32
    %c1_i32 = arith.constant 1 : i32
    %7:2 = scf.for %arg6 = %c0_i32 to %6 step %c1_i32 iter_args(%arg7 = %5, %arg8 = %5) -> (vector<34x16xf32>, vector<34x16xf32>)  : i32 {
      %8 = arith.index_cast %arg6 : i32 to index
      %c0_6 = arith.constant 0 : index
      %c0_7 = arith.constant 0 : index
      %9 = vector.load %arg1[%8, %c0_6, %c0_7] : memref<6x34x32xf32, #tpu.memory_space<vmem>>, vector<1x34x32xf32>
      %10 = vector.shape_cast %9 : vector<1x34x32xf32> to vector<34x32xf32>
      %11 = arith.truncf %10 : vector<34x32xf32> to vector<34x32xbf16>
      %cst_8 = arith.constant dense<0.000000e+00> : vector<34x64xf32>
      %12 = tpu.matmul %11, %1, %cst_8 {dimension_numbers = #tpu.dot_dimension_numbers<[1], [0], [0], [1], [0, 0, 1, 1], [], []>} : vector<34x32xbf16>, vector<32x64xbf16>, vector<34x64xf32> -> vector<34x64xf32>
      %13 = vector.broadcast %4 : vector<1x64xf32> to vector<34x64xf32>
      %14 = arith.addf %12, %13 : vector<34x64xf32>
      %15 = arith.truncf %arg7 : vector<34x16xf32> to vector<34x16xbf16>
      %cst_9 = arith.constant dense<0.000000e+00> : vector<34x64xf32>
      %16 = tpu.matmul %15, %3, %cst_9 {dimension_numbers = #tpu.dot_dimension_numbers<[1], [0], [0], [1], [0, 0, 1, 1], [], []>} : vector<34x16xbf16>, vector<16x64xbf16>, vector<34x64xf32> -> vector<34x64xf32>
      %17 = arith.addf %14, %16 : vector<34x64xf32>
      %18 = vector.extract_strided_slice %17 {offsets = [0, 0], sizes = [34, 16], strides = [1, 1]} : vector<34x64xf32> to vector<34x16xf32>
      %19 = arith.negf %18 : vector<34x16xf32>
      %20 = math.exp %19 : vector<34x16xf32>
      %cst_10 = arith.constant 1.000000e+00 : f32
      %21 = vector.broadcast %cst_10 : f32 to vector<34x16xf32>
      %22 = arith.addf %21, %20 : vector<34x16xf32>
      %23 = arith.divf %21, %22 : vector<34x16xf32>
      %24 = vector.extract_strided_slice %17 {offsets = [0, 16], sizes = [34, 16], strides = [1, 1]} : vector<34x64xf32> to vector<34x16xf32>
      %25 = arith.negf %24 : vector<34x16xf32>
      %26 = math.exp %25 : vector<34x16xf32>
      %cst_11 = arith.constant 1.000000e+00 : f32
      %27 = vector.broadcast %cst_11 : f32 to vector<34x16xf32>
      %28 = arith.addf %27, %26 : vector<34x16xf32>
      %29 = arith.divf %27, %28 : vector<34x16xf32>
      %30 = vector.extract_strided_slice %17 {offsets = [0, 32], sizes = [34, 16], strides = [1, 1]} : vector<34x64xf32> to vector<34x16xf32>
      %31 = math.tanh %30 : vector<34x16xf32>
      %32 = vector.extract_strided_slice %17 {offsets = [0, 48], sizes = [34, 16], strides = [1, 1]} : vector<34x64xf32> to vector<34x16xf32>
      %33 = arith.negf %32 : vector<34x16xf32>
      %34 = math.exp %33 : vector<34x16xf32>
      %cst_12 = arith.constant 1.000000e+00 : f32
      %35 = vector.broadcast %cst_12 : f32 to vector<34x16xf32>
      %36 = arith.addf %35, %34 : vector<34x16xf32>
      %37 = arith.divf %35, %36 : vector<34x16xf32>
      %38 = arith.mulf %29, %arg8 : vector<34x16xf32>
      %39 = arith.mulf %23, %31 : vector<34x16xf32>
      %40 = arith.addf %38, %39 : vector<34x16xf32>
      %41 = math.tanh %40 : vector<34x16xf32>
      %42 = arith.mulf %37, %41 : vector<34x16xf32>
      %43 = arith.index_cast %arg6 : i32 to index
      %c0_13 = arith.constant 0 : index
      %c0_14 = arith.constant 0 : index
      %44 = vector.load %arg5[%43, %c0_13, %c0_14] : memref<6x34x16xf32, #tpu.memory_space<vmem>>, vector<1x34x16xf32>
      %45 = vector.shape_cast %44 : vector<1x34x16xf32> to vector<34x16xf32>
      %46 = vector.shape_cast %42 : vector<34x16xf32> to vector<1x34x16xf32>
      tpu.vector_store %arg5[%43, %c0_13, %c0_14], %46 {strides = array<i32>} : memref<6x34x16xf32, #tpu.memory_space<vmem>>, vector<1x34x16xf32>,
      scf.yield %42, %40 : vector<34x16xf32>, vector<34x16xf32>
    }
    %c6_i32_5 = arith.constant 6 : i32
    return
  }
  func.func @transform_0(%arg0: i32) -> (i32, i32, i32) {
    %c0_i32 = arith.constant 0 : i32
    %c0_i32_0 = arith.constant 0 : i32
    %c0_i32_1 = arith.constant 0 : i32
    return %c0_i32, %arg0, %c0_i32_0 : i32, i32, i32
  }
  func.func @transform_1(%arg0: i32) -> (i32, i32) {
    %c0_i32 = arith.constant 0 : i32
    %c0_i32_0 = arith.constant 0 : i32
    %c0_i32_1 = arith.constant 0 : i32
    return %c0_i32, %c0_i32_0 : i32, i32
  }
  func.func @transform_2(%arg0: i32) -> (i32, i32) {
    %c0_i32 = arith.constant 0 : i32
    %c0_i32_0 = arith.constant 0 : i32
    %c0_i32_1 = arith.constant 0 : i32
    return %c0_i32, %c0_i32_0 : i32, i32
  }
  func.func @transform_3(%arg0: i32) -> (i32, i32) {
    %c0_i32 = arith.constant 0 : i32
    %c0_i32_0 = arith.constant 0 : i32
    %c0_i32_1 = arith.constant 0 : i32
    return %c0_i32, %c0_i32_0 : i32, i32
  }
  func.func @transform_4(%arg0: i32) -> (i32, i32, i32) {
    %c0_i32 = arith.constant 0 : i32
    %c0_i32_0 = arith.constant 0 : i32
    %c0_i32_1 = arith.constant 0 : i32
    return %c0_i32, %arg0, %c0_i32_0 : i32, i32, i32
  }
}

module attributes {stable_mosaic.version = 11 : i64} {
  func.func @_matmul_kernel(%arg0: i32, %arg1: memref<204x16xf32, #tpu.memory_space<vmem>>, %arg2: memref<16x32xf32, #tpu.memory_space<vmem>>, %arg3: memref<1x32xf32, #tpu.memory_space<vmem>>, %arg4: memref<204x32xf32, #tpu.memory_space<vmem>>) attributes {dimension_semantics = [#tpu.dimension_semantics<parallel>], iteration_bounds = array<i64: 1>, scalar_prefetch = 0 : i64, scratch_operands = 0 : i64, tpu.core_type = #tpu.core_type<tc>, window_params = [{transform_indices = @transform_0, window_bounds = array<i64: 204, 16>}, {pipeline_mode = #tpu.pipeline_mode<synchronous>, transform_indices = @transform_1, window_bounds = array<i64: 16, 32>}, {pipeline_mode = #tpu.pipeline_mode<synchronous>, transform_indices = @transform_2, window_bounds = array<i64: 1, 32>}, {transform_indices = @transform_3, window_bounds = array<i64: 204, 32>}]} {
    %c0 = arith.constant 0 : index
    %c0_0 = arith.constant 0 : index
    %0 = vector.load %arg1[%c0, %c0_0] : memref<204x16xf32, #tpu.memory_space<vmem>>, vector<204x16xf32>
    %1 = arith.truncf %0 : vector<204x16xf32> to vector<204x16xbf16>
    %c0_1 = arith.constant 0 : index
    %c0_2 = arith.constant 0 : index
    %2 = vector.load %arg2[%c0_1, %c0_2] : memref<16x32xf32, #tpu.memory_space<vmem>>, vector<16x32xf32>
    %3 = arith.truncf %2 : vector<16x32xf32> to vector<16x32xbf16>
    %cst = arith.constant dense<0.000000e+00> : vector<204x32xf32>
    %4 = tpu.matmul %1, %3, %cst {dimension_numbers = #tpu.dot_dimension_numbers<[1], [0], [0], [1], [0, 0, 1, 1], [], []>} : vector<204x16xbf16>, vector<16x32xbf16>, vector<204x32xf32> -> vector<204x32xf32>
    %c0_3 = arith.constant 0 : index
    %c0_4 = arith.constant 0 : index
    %5 = vector.load %arg3[%c0_3, %c0_4] : memref<1x32xf32, #tpu.memory_space<vmem>>, vector<1x32xf32>
    %6 = vector.broadcast %5 : vector<1x32xf32> to vector<204x32xf32>
    %7 = arith.addf %4, %6 : vector<204x32xf32>
    %c0_5 = arith.constant 0 : index
    %c0_6 = arith.constant 0 : index
    %8 = vector.load %arg4[%c0_5, %c0_6] : memref<204x32xf32, #tpu.memory_space<vmem>>, vector<204x32xf32>
    tpu.vector_store %arg4[%c0_5, %c0_6], %7 {strides = array<i32>} : memref<204x32xf32, #tpu.memory_space<vmem>>, vector<204x32xf32>,
    return
  }
  func.func @transform_0(%arg0: i32) -> (i32, i32) {
    %c0_i32 = arith.constant 0 : i32
    %c0_i32_0 = arith.constant 0 : i32
    return %arg0, %c0_i32 : i32, i32
  }
  func.func @transform_1(%arg0: i32) -> (i32, i32) {
    %c0_i32 = arith.constant 0 : i32
    %c0_i32_0 = arith.constant 0 : i32
    %c0_i32_1 = arith.constant 0 : i32
    return %c0_i32, %c0_i32_0 : i32, i32
  }
  func.func @transform_2(%arg0: i32) -> (i32, i32) {
    %c0_i32 = arith.constant 0 : i32
    %c0_i32_0 = arith.constant 0 : i32
    %c0_i32_1 = arith.constant 0 : i32
    return %c0_i32, %c0_i32_0 : i32, i32
  }
  func.func @transform_3(%arg0: i32) -> (i32, i32) {
    %c0_i32 = arith.constant 0 : i32
    %c0_i32_0 = arith.constant 0 : i32
    return %arg0, %c0_i32 : i32, i32
  }
}

module attributes {stable_mosaic.version = 11 : i64} {
  func.func @_gla_kernel(%arg0: i32, %arg1: memref<1x9x32xf32, #tpu.memory_space<vmem>>, %arg2: memref<32x112xf32, #tpu.memory_space<vmem>>, %arg3: memref<16x16xf32, #tpu.memory_space<vmem>>, %arg4: memref<1x16xf32, #tpu.memory_space<vmem>>, %arg5: memref<1x32xf32, #tpu.memory_space<vmem>>, %arg6: memref<32x32xf32, #tpu.memory_space<vmem>>, %arg7: memref<1x9x32xf32, #tpu.memory_space<vmem>>, %arg8: memref<9x16xf32, #tpu.memory_space<vmem>>, %arg9: memref<9x16xf32, #tpu.memory_space<vmem>>, %arg10: memref<9x32xf32, #tpu.memory_space<vmem>>, %arg11: memref<9x32xf32, #tpu.memory_space<vmem>>, %arg12: memref<9x16xf32, #tpu.memory_space<vmem>>, %arg13: memref<9x32xf32, #tpu.memory_space<vmem>>) attributes {dimension_semantics = [#tpu.dimension_semantics<parallel>], iteration_bounds = array<i64: 8>, scalar_prefetch = 0 : i64, scratch_operands = 6 : i64, tpu.core_type = #tpu.core_type<tc>, window_params = [{transform_indices = @transform_0, window_bounds = array<i64: 1, 9, 32>}, {pipeline_mode = #tpu.pipeline_mode<synchronous>, transform_indices = @transform_1, window_bounds = array<i64: 32, 112>}, {pipeline_mode = #tpu.pipeline_mode<synchronous>, transform_indices = @transform_2, window_bounds = array<i64: 16, 16>}, {pipeline_mode = #tpu.pipeline_mode<synchronous>, transform_indices = @transform_3, window_bounds = array<i64: 1, 16>}, {pipeline_mode = #tpu.pipeline_mode<synchronous>, transform_indices = @transform_4, window_bounds = array<i64: 1, 32>}, {pipeline_mode = #tpu.pipeline_mode<synchronous>, transform_indices = @transform_5, window_bounds = array<i64: 32, 32>}, {transform_indices = @transform_6, window_bounds = array<i64: 1, 9, 32>}]} {
    %c0 = arith.constant 0 : index
    %c0_0 = arith.constant 0 : index
    %c0_1 = arith.constant 0 : index
    %0 = vector.load %arg1[%c0, %c0_0, %c0_1] : memref<1x9x32xf32, #tpu.memory_space<vmem>>, vector<1x9x32xf32>
    %1 = vector.shape_cast %0 : vector<1x9x32xf32> to vector<9x32xf32>
    %2 = arith.truncf %1 : vector<9x32xf32> to vector<9x32xbf16>
    %c0_2 = arith.constant 0 : index
    %c0_3 = arith.constant 0 : index
    %3 = vector.load %arg2[%c0_2, %c0_3] : memref<32x112xf32, #tpu.memory_space<vmem>>, vector<32x112xf32>
    %4 = arith.truncf %3 : vector<32x112xf32> to vector<32x112xbf16>
    %cst = arith.constant dense<0.000000e+00> : vector<9x112xf32>
    %5 = tpu.matmul %2, %4, %cst {dimension_numbers = #tpu.dot_dimension_numbers<[1], [0], [0], [1], [0, 0, 1, 1], [], []>} : vector<9x32xbf16>, vector<32x112xbf16>, vector<9x112xf32> -> vector<9x112xf32>
    %6 = vector.extract_strided_slice %5 {offsets = [0, 0], sizes = [9, 16], strides = [1, 1]} : vector<9x112xf32> to vector<9x16xf32>
    %c0_4 = arith.constant 0 : index
    %c0_5 = arith.constant 0 : index
    %7 = vector.load %arg8[%c0_4, %c0_5] : memref<9x16xf32, #tpu.memory_space<vmem>>, vector<9x16xf32>
    tpu.vector_store %arg8[%c0_4, %c0_5], %6 {strides = array<i32>} : memref<9x16xf32, #tpu.memory_space<vmem>>, vector<9x16xf32>,
    %8 = vector.extract_strided_slice %5 {offsets = [0, 16], sizes = [9, 16], strides = [1, 1]} : vector<9x112xf32> to vector<9x16xf32>
    %c0_6 = arith.constant 0 : index
    %c0_7 = arith.constant 0 : index
    %9 = vector.load %arg9[%c0_6, %c0_7] : memref<9x16xf32, #tpu.memory_space<vmem>>, vector<9x16xf32>
    tpu.vector_store %arg9[%c0_6, %c0_7], %8 {strides = array<i32>} : memref<9x16xf32, #tpu.memory_space<vmem>>, vector<9x16xf32>,
    %10 = vector.extract_strided_slice %5 {offsets = [0, 32], sizes = [9, 32], strides = [1, 1]} : vector<9x112xf32> to vector<9x32xf32>
    %c0_8 = arith.constant 0 : index
    %c0_9 = arith.constant 0 : index
    %11 = vector.load %arg10[%c0_8, %c0_9] : memref<9x32xf32, #tpu.memory_space<vmem>>, vector<9x32xf32>
    tpu.vector_store %arg10[%c0_8, %c0_9], %10 {strides = array<i32>} : memref<9x32xf32, #tpu.memory_space<vmem>>, vector<9x32xf32>,
    %12 = vector.extract_strided_slice %5 {offsets = [0, 64], sizes = [9, 32], strides = [1, 1]} : vector<9x112xf32> to vector<9x32xf32>
    %c0_10 = arith.constant 0 : index
    %c0_11 = arith.constant 0 : index
    %13 = vector.load %arg11[%c0_10, %c0_11] : memref<9x32xf32, #tpu.memory_space<vmem>>, vector<9x32xf32>
    tpu.vector_store %arg11[%c0_10, %c0_11], %12 {strides = array<i32>} : memref<9x32xf32, #tpu.memory_space<vmem>>, vector<9x32xf32>,
    %14 = vector.extract_strided_slice %5 {offsets = [0, 96], sizes = [9, 16], strides = [1, 1]} : vector<9x112xf32> to vector<9x16xf32>
    %15 = arith.truncf %14 : vector<9x16xf32> to vector<9x16xbf16>
    %c0_12 = arith.constant 0 : index
    %c0_13 = arith.constant 0 : index
    %16 = vector.load %arg3[%c0_12, %c0_13] : memref<16x16xf32, #tpu.memory_space<vmem>>, vector<16x16xf32>
    %17 = arith.truncf %16 : vector<16x16xf32> to vector<16x16xbf16>
    %cst_14 = arith.constant dense<0.000000e+00> : vector<9x16xf32>
    %18 = tpu.matmul %15, %17, %cst_14 {dimension_numbers = #tpu.dot_dimension_numbers<[1], [0], [0], [1], [0, 0, 1, 1], [], []>} : vector<9x16xbf16>, vector<16x16xbf16>, vector<9x16xf32> -> vector<9x16xf32>
    %c0_15 = arith.constant 0 : index
    %c0_16 = arith.constant 0 : index
    %19 = vector.load %arg4[%c0_15, %c0_16] : memref<1x16xf32, #tpu.memory_space<vmem>>, vector<1x16xf32>
    %20 = vector.broadcast %19 : vector<1x16xf32> to vector<9x16xf32>
    %21 = arith.addf %18, %20 : vector<9x16xf32>
    %cst_17 = arith.constant 0.000000e+00 : f32
    %22 = vector.broadcast %cst_17 : f32 to vector<9x16xf32>
    %23 = arith.cmpf oge, %21, %22 : vector<9x16xf32>
    %cst_18 = arith.constant 0.000000e+00 : f32
    %24 = vector.broadcast %cst_18 : f32 to vector<9x16xf32>
    %25 = arith.subf %24, %21 : vector<9x16xf32>
    %26 = math.exp %25 : vector<9x16xf32>
    %cst_19 = arith.constant 1.000000e+00 : f32
    %27 = vector.broadcast %cst_19 : f32 to vector<9x16xf32>
    %28 = arith.addf %27, %26 : vector<9x16xf32>
    %29 = math.log %28 : vector<9x16xf32>
    %cst_20 = arith.constant 0.000000e+00 : f32
    %30 = vector.broadcast %cst_20 : f32 to vector<9x16xf32>
    %31 = arith.subf %30, %29 : vector<9x16xf32>
    %32 = math.exp %21 : vector<9x16xf32>
    %cst_21 = arith.constant 1.000000e+00 : f32
    %33 = vector.broadcast %cst_21 : f32 to vector<9x16xf32>
    %34 = arith.addf %33, %32 : vector<9x16xf32>
    %35 = math.log %34 : vector<9x16xf32>
    %36 = arith.subf %21, %35 : vector<9x16xf32>
    %37 = arith.select %23, %31, %36 : vector<9x16xi1>, vector<9x16xf32>
    %cst_22 = arith.constant 1.600000e+01 : f32
    %38 = vector.broadcast %cst_22 : f32 to vector<9x16xf32>
    %39 = arith.divf %37, %38 : vector<9x16xf32>
    %c0_23 = arith.constant 0 : index
    %c0_24 = arith.constant 0 : index
    %40 = vector.load %arg12[%c0_23, %c0_24] : memref<9x16xf32, #tpu.memory_space<vmem>>, vector<9x16xf32>
    tpu.vector_store %arg12[%c0_23, %c0_24], %39 {strides = array<i32>} : memref<9x16xf32, #tpu.memory_space<vmem>>, vector<9x16xf32>,
    %cst_25 = arith.constant 0.000000e+00 : f32
    %41 = vector.broadcast %cst_25 : f32 to vector<1x16x32xf32>
    %c0_i32 = arith.constant 0 : i32
    %c9_i32 = arith.constant 9 : i32
    %42 = arith.addi %c0_i32, %c9_i32 : i32
    %c1_i32 = arith.constant 1 : i32
    %43 = scf.for %arg14 = %c0_i32 to %42 step %c1_i32 iter_args(%arg15 = %41) -> (vector<1x16x32xf32>)  : i32 {
      %73 = arith.index_cast %arg14 : i32 to index
      %c0_43 = arith.constant 0 : index
      %74 = vector.load %arg9[%73, %c0_43] : memref<9x16xf32, #tpu.memory_space<vmem>>, vector<1x16xf32>
      %75 = arith.index_cast %arg14 : i32 to index
      %c0_44 = arith.constant 0 : index
      %76 = vector.load %arg10[%75, %c0_44] : memref<9x32xf32, #tpu.memory_space<vmem>>, vector<1x32xf32>
      %77 = arith.index_cast %arg14 : i32 to index
      %c0_45 = arith.constant 0 : index
      %78 = vector.load %arg8[%77, %c0_45] : memref<9x16xf32, #tpu.memory_space<vmem>>, vector<1x16xf32>
      %cst_46 = arith.constant 2.500000e-01 : f32
      %79 = vector.broadcast %cst_46 : f32 to vector<1x16xf32>
      %80 = arith.mulf %78, %79 : vector<1x16xf32>
      %81 = arith.index_cast %arg14 : i32 to index
      %c0_47 = arith.constant 0 : index
      %82 = vector.load %arg12[%81, %c0_47] : memref<9x16xf32, #tpu.memory_space<vmem>>, vector<1x16xf32>
      %83 = math.exp %82 : vector<1x16xf32>
      %84 = vector.shape_cast %83 : vector<1x16xf32> to vector<1x16x1xf32>
      %85 = vector.broadcast %84 : vector<1x16x1xf32> to vector<1x16x32xf32>
      %86 = arith.mulf %arg15, %85 : vector<1x16x32xf32>
      %87 = vector.shape_cast %74 : vector<1x16xf32> to vector<1x16x1xf32>
      %88 = vector.shape_cast %76 : vector<1x32xf32> to vector<1x1x32xf32>
      %89 = vector.broadcast %87 : vector<1x16x1xf32> to vector<1x16x32xf32>
      %90 = vector.broadcast %88 : vector<1x1x32xf32> to vector<1x16x32xf32>
      %91 = arith.mulf %89, %90 : vector<1x16x32xf32>
      %92 = arith.addf %86, %91 : vector<1x16x32xf32>
      %93 = vector.shape_cast %92 : vector<1x16x32xf32> to vector<16x32xf32>
      %cst_48 = arith.constant dense<0.000000e+00> : vector<1x32xf32>
      %94 = tpu.matmul %80, %93, %cst_48 {dimension_numbers = #tpu.dot_dimension_numbers<[1], [0], [0], [1], [0, 0, 1, 1], [], []>} : vector<1x16xf32>, vector<16x32xf32>, vector<1x32xf32> -> vector<1x32xf32>
      %95 = arith.index_cast %arg14 : i32 to index
      %c0_49 = arith.constant 0 : index
      %96 = vector.load %arg13[%95, %c0_49] : memref<9x32xf32, #tpu.memory_space<vmem>>, vector<1x32xf32>
      tpu.vector_store %arg13[%95, %c0_49], %94 {strides = array<i32>} : memref<9x32xf32, #tpu.memory_space<vmem>>, vector<1x32xf32>,
      scf.yield %92 : vector<1x16x32xf32>
    }
    %c9_i32_26 = arith.constant 9 : i32
    %c0_27 = arith.constant 0 : index
    %c0_28 = arith.constant 0 : index
    %44 = vector.load %arg13[%c0_27, %c0_28] : memref<9x32xf32, #tpu.memory_space<vmem>>, vector<9x32xf32>
    %c0_29 = arith.constant 0 : index
    %c0_30 = arith.constant 0 : index
    %45 = vector.load %arg11[%c0_29, %c0_30] : memref<9x32xf32, #tpu.memory_space<vmem>>, vector<9x32xf32>
    %46 = arith.mulf %44, %44 : vector<9x32xf32>
    %cst_31 = arith.constant dense<0.000000e+00> : vector<9xf32>
    %47 = vector.multi_reduction <add>, %46, %cst_31 [1] : vector<9x32xf32> to vector<9xf32>
    %48 = vector.shape_cast %47 : vector<9xf32> to vector<9x1xf32>
    %cst_32 = arith.constant 3.200000e+01 : f32
    %49 = vector.broadcast %cst_32 : f32 to vector<9x1xf32>
    %50 = arith.divf %48, %49 : vector<9x1xf32>
    %cst_33 = arith.constant 9.99999974E-6 : f32
    %51 = vector.broadcast %cst_33 : f32 to vector<9x1xf32>
    %52 = arith.addf %50, %51 : vector<9x1xf32>
    %53 = math.rsqrt %52 : vector<9x1xf32>
    %54 = vector.broadcast %53 : vector<9x1xf32> to vector<9x32xf32>
    %55 = arith.mulf %44, %54 : vector<9x32xf32>
    %c0_34 = arith.constant 0 : index
    %c0_35 = arith.constant 0 : index
    %56 = vector.load %arg5[%c0_34, %c0_35] : memref<1x32xf32, #tpu.memory_space<vmem>>, vector<1x32xf32>
    %57 = vector.broadcast %56 : vector<1x32xf32> to vector<9x32xf32>
    %58 = arith.mulf %55, %57 : vector<9x32xf32>
    %59 = arith.negf %45 : vector<9x32xf32>
    %60 = math.exp %59 : vector<9x32xf32>
    %cst_36 = arith.constant 1.000000e+00 : f32
    %61 = vector.broadcast %cst_36 : f32 to vector<9x32xf32>
    %62 = arith.addf %61, %60 : vector<9x32xf32>
    %63 = arith.divf %61, %62 : vector<9x32xf32>
    %64 = arith.mulf %45, %63 : vector<9x32xf32>
    %65 = arith.mulf %58, %64 : vector<9x32xf32>
    %66 = arith.truncf %65 : vector<9x32xf32> to vector<9x32xbf16>
    %c0_37 = arith.constant 0 : index
    %c0_38 = arith.constant 0 : index
    %67 = vector.load %arg6[%c0_37, %c0_38] : memref<32x32xf32, #tpu.memory_space<vmem>>, vector<32x32xf32>
    %68 = arith.truncf %67 : vector<32x32xf32> to vector<32x32xbf16>
    %cst_39 = arith.constant dense<0.000000e+00> : vector<9x32xf32>
    %69 = tpu.matmul %66, %68, %cst_39 {dimension_numbers = #tpu.dot_dimension_numbers<[1], [0], [0], [1], [0, 0, 1, 1], [], []>} : vector<9x32xbf16>, vector<32x32xbf16>, vector<9x32xf32> -> vector<9x32xf32>
    %c0_40 = arith.constant 0 : index
    %c0_41 = arith.constant 0 : index
    %c0_42 = arith.constant 0 : index
    %70 = vector.load %arg7[%c0_40, %c0_41, %c0_42] : memref<1x9x32xf32, #tpu.memory_space<vmem>>, vector<1x9x32xf32>
    %71 = vector.shape_cast %70 : vector<1x9x32xf32> to vector<9x32xf32>
    %72 = vector.shape_cast %69 : vector<9x32xf32> to vector<1x9x32xf32>
    tpu.vector_store %arg7[%c0_40, %c0_41, %c0_42], %72 {strides = array<i32>} : memref<1x9x32xf32, #tpu.memory_space<vmem>>, vector<1x9x32xf32>,
    return
  }
  func.func @transform_0(%arg0: i32) -> (i32, i32, i32) {
    %c0_i32 = arith.constant 0 : i32
    %c0_i32_0 = arith.constant 0 : i32
    %c0_i32_1 = arith.constant 0 : i32
    return %arg0, %c0_i32, %c0_i32_0 : i32, i32, i32
  }
  func.func @transform_1(%arg0: i32) -> (i32, i32) {
    %c0_i32 = arith.constant 0 : i32
    %c0_i32_0 = arith.constant 0 : i32
    %c0_i32_1 = arith.constant 0 : i32
    return %c0_i32, %c0_i32_0 : i32, i32
  }
  func.func @transform_2(%arg0: i32) -> (i32, i32) {
    %c0_i32 = arith.constant 0 : i32
    %c0_i32_0 = arith.constant 0 : i32
    %c0_i32_1 = arith.constant 0 : i32
    return %c0_i32, %c0_i32_0 : i32, i32
  }
  func.func @transform_3(%arg0: i32) -> (i32, i32) {
    %c0_i32 = arith.constant 0 : i32
    %c0_i32_0 = arith.constant 0 : i32
    %c0_i32_1 = arith.constant 0 : i32
    return %c0_i32, %c0_i32_0 : i32, i32
  }
  func.func @transform_4(%arg0: i32) -> (i32, i32) {
    %c0_i32 = arith.constant 0 : i32
    %c0_i32_0 = arith.constant 0 : i32
    %c0_i32_1 = arith.constant 0 : i32
    return %c0_i32, %c0_i32_0 : i32, i32
  }
  func.func @transform_5(%arg0: i32) -> (i32, i32) {
    %c0_i32 = arith.constant 0 : i32
    %c0_i32_0 = arith.constant 0 : i32
    %c0_i32_1 = arith.constant 0 : i32
    return %c0_i32, %c0_i32_0 : i32, i32
  }
  func.func @transform_6(%arg0: i32) -> (i32, i32, i32) {
    %c0_i32 = arith.constant 0 : i32
    %c0_i32_0 = arith.constant 0 : i32
    %c0_i32_1 = arith.constant 0 : i32
    return %arg0, %c0_i32, %c0_i32_0 : i32, i32, i32
  }
}

module attributes {stable_mosaic.version = 11 : i64} {
  func.func @_conv_headnorm_kernel(%arg0: i32, %arg1: memref<306x8xf32, #tpu.memory_space<vmem>>, %arg2: memref<8x8xf32, #tpu.memory_space<vmem>>, %arg3: memref<1x8xf32, #tpu.memory_space<vmem>>, %arg4: memref<1x8xf32, #tpu.memory_space<vmem>>, %arg5: memref<8x8xf32, #tpu.memory_space<vmem>>, %arg6: memref<1x8xf32, #tpu.memory_space<vmem>>, %arg7: memref<1x8xf32, #tpu.memory_space<vmem>>, %arg8: memref<306x8xf32, #tpu.memory_space<vmem>>) attributes {dimension_semantics = [#tpu.dimension_semantics<parallel>], iteration_bounds = array<i64: 1>, scalar_prefetch = 0 : i64, scratch_operands = 0 : i64, tpu.core_type = #tpu.core_type<tc>, window_params = [{transform_indices = @transform_0, window_bounds = array<i64: 306, 8>}, {pipeline_mode = #tpu.pipeline_mode<synchronous>, transform_indices = @transform_1, window_bounds = array<i64: 8, 8>}, {pipeline_mode = #tpu.pipeline_mode<synchronous>, transform_indices = @transform_2, window_bounds = array<i64: 1, 8>}, {pipeline_mode = #tpu.pipeline_mode<synchronous>, transform_indices = @transform_3, window_bounds = array<i64: 1, 8>}, {pipeline_mode = #tpu.pipeline_mode<synchronous>, transform_indices = @transform_4, window_bounds = array<i64: 8, 8>}, {pipeline_mode = #tpu.pipeline_mode<synchronous>, transform_indices = @transform_5, window_bounds = array<i64: 1, 8>}, {pipeline_mode = #tpu.pipeline_mode<synchronous>, transform_indices = @transform_6, window_bounds = array<i64: 1, 8>}, {transform_indices = @transform_7, window_bounds = array<i64: 306, 8>}]} {
    %c0 = arith.constant 0 : index
    %c0_0 = arith.constant 0 : index
    %0 = vector.load %arg1[%c0, %c0_0] : memref<306x8xf32, #tpu.memory_space<vmem>>, vector<306x8xf32>
    %1 = arith.truncf %0 : vector<306x8xf32> to vector<306x8xbf16>
    %c0_1 = arith.constant 0 : index
    %c0_2 = arith.constant 0 : index
    %2 = vector.load %arg2[%c0_1, %c0_2] : memref<8x8xf32, #tpu.memory_space<vmem>>, vector<8x8xf32>
    %3 = arith.truncf %2 : vector<8x8xf32> to vector<8x8xbf16>
    %cst = arith.constant dense<0.000000e+00> : vector<306x8xf32>
    %4 = tpu.matmul %1, %3, %cst {dimension_numbers = #tpu.dot_dimension_numbers<[1], [0], [0], [1], [0, 0, 1, 1], [], []>} : vector<306x8xbf16>, vector<8x8xbf16>, vector<306x8xf32> -> vector<306x8xf32>
    %c0_3 = arith.constant 0 : index
    %c0_4 = arith.constant 0 : index
    %5 = vector.load %arg3[%c0_3, %c0_4] : memref<1x8xf32, #tpu.memory_space<vmem>>, vector<1x8xf32>
    %6 = vector.broadcast %5 : vector<1x8xf32> to vector<306x8xf32>
    %7 = arith.addf %4, %6 : vector<306x8xf32>
    %cst_5 = arith.constant 0.000000e+00 : f32
    %8 = vector.broadcast %cst_5 : f32 to vector<306x8xf32>
    %9 = arith.cmpf oge, %7, %8 : vector<306x8xf32>
    %c0_6 = arith.constant 0 : index
    %c0_7 = arith.constant 0 : index
    %10 = vector.load %arg4[%c0_6, %c0_7] : memref<1x8xf32, #tpu.memory_space<vmem>>, vector<1x8xf32>
    %11 = vector.broadcast %10 : vector<1x8xf32> to vector<306x8xf32>
    %12 = arith.mulf %11, %7 : vector<306x8xf32>
    %13 = arith.select %9, %7, %12 : vector<306x8xi1>, vector<306x8xf32>
    %c0_8 = arith.constant 0 : index
    %c0_9 = arith.constant 0 : index
    %14 = vector.load %arg5[%c0_8, %c0_9] : memref<8x8xf32, #tpu.memory_space<vmem>>, vector<8x8xf32>
    %cst_10 = arith.constant dense<0.000000e+00> : vector<306x8xf32>
    %15 = tpu.matmul %13, %14, %cst_10 {dimension_numbers = #tpu.dot_dimension_numbers<[1], [0], [0], [1], [0, 0, 1, 1], [], []>} : vector<306x8xf32>, vector<8x8xf32>, vector<306x8xf32> -> vector<306x8xf32>
    %cst_11 = arith.constant 5.000000e-01 : f32
    %16 = vector.broadcast %cst_11 : f32 to vector<306x8xf32>
    %17 = arith.mulf %15, %16 : vector<306x8xf32>
    %18 = arith.subf %13, %17 : vector<306x8xf32>
    %19 = arith.mulf %18, %18 : vector<306x8xf32>
    %cst_12 = arith.constant dense<0.000000e+00> : vector<306x8xf32>
    %20 = tpu.matmul %19, %14, %cst_12 {dimension_numbers = #tpu.dot_dimension_numbers<[1], [0], [0], [1], [0, 0, 1, 1], [], []>} : vector<306x8xf32>, vector<8x8xf32>, vector<306x8xf32> -> vector<306x8xf32>
    %cst_13 = arith.constant 5.000000e-01 : f32
    %21 = vector.broadcast %cst_13 : f32 to vector<306x8xf32>
    %22 = arith.mulf %20, %21 : vector<306x8xf32>
    %cst_14 = arith.constant 9.99999974E-6 : f32
    %23 = vector.broadcast %cst_14 : f32 to vector<306x8xf32>
    %24 = arith.addf %22, %23 : vector<306x8xf32>
    %25 = math.rsqrt %24 : vector<306x8xf32>
    %26 = arith.mulf %18, %25 : vector<306x8xf32>
    %c0_15 = arith.constant 0 : index
    %c0_16 = arith.constant 0 : index
    %27 = vector.load %arg6[%c0_15, %c0_16] : memref<1x8xf32, #tpu.memory_space<vmem>>, vector<1x8xf32>
    %28 = vector.broadcast %27 : vector<1x8xf32> to vector<306x8xf32>
    %29 = arith.mulf %26, %28 : vector<306x8xf32>
    %c0_17 = arith.constant 0 : index
    %c0_18 = arith.constant 0 : index
    %30 = vector.load %arg7[%c0_17, %c0_18] : memref<1x8xf32, #tpu.memory_space<vmem>>, vector<1x8xf32>
    %31 = vector.broadcast %30 : vector<1x8xf32> to vector<306x8xf32>
    %32 = arith.addf %29, %31 : vector<306x8xf32>
    %c0_19 = arith.constant 0 : index
    %c0_20 = arith.constant 0 : index
    %33 = vector.load %arg8[%c0_19, %c0_20] : memref<306x8xf32, #tpu.memory_space<vmem>>, vector<306x8xf32>
    tpu.vector_store %arg8[%c0_19, %c0_20], %32 {strides = array<i32>} : memref<306x8xf32, #tpu.memory_space<vmem>>, vector<306x8xf32>,
    return
  }
  func.func @transform_0(%arg0: i32) -> (i32, i32) {
    %c0_i32 = arith.constant 0 : i32
    %c0_i32_0 = arith.constant 0 : i32
    return %arg0, %c0_i32 : i32, i32
  }
  func.func @transform_1(%arg0: i32) -> (i32, i32) {
    %c0_i32 = arith.constant 0 : i32
    %c0_i32_0 = arith.constant 0 : i32
    %c0_i32_1 = arith.constant 0 : i32
    return %c0_i32, %c0_i32_0 : i32, i32
  }
  func.func @transform_2(%arg0: i32) -> (i32, i32) {
    %c0_i32 = arith.constant 0 : i32
    %c0_i32_0 = arith.constant 0 : i32
    %c0_i32_1 = arith.constant 0 : i32
    return %c0_i32, %c0_i32_0 : i32, i32
  }
  func.func @transform_3(%arg0: i32) -> (i32, i32) {
    %c0_i32 = arith.constant 0 : i32
    %c0_i32_0 = arith.constant 0 : i32
    %c0_i32_1 = arith.constant 0 : i32
    return %c0_i32, %c0_i32_0 : i32, i32
  }
  func.func @transform_4(%arg0: i32) -> (i32, i32) {
    %c0_i32 = arith.constant 0 : i32
    %c0_i32_0 = arith.constant 0 : i32
    %c0_i32_1 = arith.constant 0 : i32
    return %c0_i32, %c0_i32_0 : i32, i32
  }
  func.func @transform_5(%arg0: i32) -> (i32, i32) {
    %c0_i32 = arith.constant 0 : i32
    %c0_i32_0 = arith.constant 0 : i32
    %c0_i32_1 = arith.constant 0 : i32
    return %c0_i32, %c0_i32_0 : i32, i32
  }
  func.func @transform_6(%arg0: i32) -> (i32, i32) {
    %c0_i32 = arith.constant 0 : i32
    %c0_i32_0 = arith.constant 0 : i32
    %c0_i32_1 = arith.constant 0 : i32
    return %c0_i32, %c0_i32_0 : i32, i32
  }
  func.func @transform_7(%arg0: i32) -> (i32, i32) {
    %c0_i32 = arith.constant 0 : i32
    %c0_i32_0 = arith.constant 0 : i32
    return %arg0, %c0_i32 : i32, i32
  }
}

module attributes {stable_mosaic.version = 11 : i64} {
  func.func @_matmul_kernel(%arg0: i32, %arg1: memref<72x34xf32, #tpu.memory_space<vmem>>, %arg2: memref<34x32xf32, #tpu.memory_space<vmem>>, %arg3: memref<1x32xf32, #tpu.memory_space<vmem>>, %arg4: memref<72x32xf32, #tpu.memory_space<vmem>>) attributes {dimension_semantics = [#tpu.dimension_semantics<parallel>], iteration_bounds = array<i64: 1>, scalar_prefetch = 0 : i64, scratch_operands = 0 : i64, tpu.core_type = #tpu.core_type<tc>, window_params = [{transform_indices = @transform_0, window_bounds = array<i64: 72, 34>}, {pipeline_mode = #tpu.pipeline_mode<synchronous>, transform_indices = @transform_1, window_bounds = array<i64: 34, 32>}, {pipeline_mode = #tpu.pipeline_mode<synchronous>, transform_indices = @transform_2, window_bounds = array<i64: 1, 32>}, {transform_indices = @transform_3, window_bounds = array<i64: 72, 32>}]} {
    %c0 = arith.constant 0 : index
    %c0_0 = arith.constant 0 : index
    %0 = vector.load %arg1[%c0, %c0_0] : memref<72x34xf32, #tpu.memory_space<vmem>>, vector<72x34xf32>
    %1 = arith.truncf %0 : vector<72x34xf32> to vector<72x34xbf16>
    %c0_1 = arith.constant 0 : index
    %c0_2 = arith.constant 0 : index
    %2 = vector.load %arg2[%c0_1, %c0_2] : memref<34x32xf32, #tpu.memory_space<vmem>>, vector<34x32xf32>
    %3 = arith.truncf %2 : vector<34x32xf32> to vector<34x32xbf16>
    %cst = arith.constant dense<0.000000e+00> : vector<72x32xf32>
    %4 = tpu.matmul %1, %3, %cst {dimension_numbers = #tpu.dot_dimension_numbers<[1], [0], [0], [1], [0, 0, 1, 1], [], []>} : vector<72x34xbf16>, vector<34x32xbf16>, vector<72x32xf32> -> vector<72x32xf32>
    %c0_3 = arith.constant 0 : index
    %c0_4 = arith.constant 0 : index
    %5 = vector.load %arg3[%c0_3, %c0_4] : memref<1x32xf32, #tpu.memory_space<vmem>>, vector<1x32xf32>
    %6 = vector.broadcast %5 : vector<1x32xf32> to vector<72x32xf32>
    %7 = arith.addf %4, %6 : vector<72x32xf32>
    %c0_5 = arith.constant 0 : index
    %c0_6 = arith.constant 0 : index
    %8 = vector.load %arg4[%c0_5, %c0_6] : memref<72x32xf32, #tpu.memory_space<vmem>>, vector<72x32xf32>
    tpu.vector_store %arg4[%c0_5, %c0_6], %7 {strides = array<i32>} : memref<72x32xf32, #tpu.memory_space<vmem>>, vector<72x32xf32>,
    return
  }
  func.func @transform_0(%arg0: i32) -> (i32, i32) {
    %c0_i32 = arith.constant 0 : i32
    %c0_i32_0 = arith.constant 0 : i32
    return %arg0, %c0_i32 : i32, i32
  }
  func.func @transform_1(%arg0: i32) -> (i32, i32) {
    %c0_i32 = arith.constant 0 : i32
    %c0_i32_0 = arith.constant 0 : i32
    %c0_i32_1 = arith.constant 0 : i32
    return %c0_i32, %c0_i32_0 : i32, i32
  }
  func.func @transform_2(%arg0: i32) -> (i32, i32) {
    %c0_i32 = arith.constant 0 : i32
    %c0_i32_0 = arith.constant 0 : i32
    %c0_i32_1 = arith.constant 0 : i32
    return %c0_i32, %c0_i32_0 : i32, i32
  }
  func.func @transform_3(%arg0: i32) -> (i32, i32) {
    %c0_i32 = arith.constant 0 : i32
    %c0_i32_0 = arith.constant 0 : i32
    return %arg0, %c0_i32 : i32, i32
  }
}

module attributes {stable_mosaic.version = 11 : i64} {
  func.func @_matmul_kernel(%arg0: i32, %arg1: memref<72x32xf32, #tpu.memory_space<vmem>>, %arg2: memref<32x34xf32, #tpu.memory_space<vmem>>, %arg3: memref<1x34xf32, #tpu.memory_space<vmem>>, %arg4: memref<72x34xf32, #tpu.memory_space<vmem>>) attributes {dimension_semantics = [#tpu.dimension_semantics<parallel>], iteration_bounds = array<i64: 1>, scalar_prefetch = 0 : i64, scratch_operands = 0 : i64, tpu.core_type = #tpu.core_type<tc>, window_params = [{transform_indices = @transform_0, window_bounds = array<i64: 72, 32>}, {pipeline_mode = #tpu.pipeline_mode<synchronous>, transform_indices = @transform_1, window_bounds = array<i64: 32, 34>}, {pipeline_mode = #tpu.pipeline_mode<synchronous>, transform_indices = @transform_2, window_bounds = array<i64: 1, 34>}, {transform_indices = @transform_3, window_bounds = array<i64: 72, 34>}]} {
    %c0 = arith.constant 0 : index
    %c0_0 = arith.constant 0 : index
    %0 = vector.load %arg1[%c0, %c0_0] : memref<72x32xf32, #tpu.memory_space<vmem>>, vector<72x32xf32>
    %1 = arith.truncf %0 : vector<72x32xf32> to vector<72x32xbf16>
    %c0_1 = arith.constant 0 : index
    %c0_2 = arith.constant 0 : index
    %2 = vector.load %arg2[%c0_1, %c0_2] : memref<32x34xf32, #tpu.memory_space<vmem>>, vector<32x34xf32>
    %3 = arith.truncf %2 : vector<32x34xf32> to vector<32x34xbf16>
    %cst = arith.constant dense<0.000000e+00> : vector<72x34xf32>
    %4 = tpu.matmul %1, %3, %cst {dimension_numbers = #tpu.dot_dimension_numbers<[1], [0], [0], [1], [0, 0, 1, 1], [], []>} : vector<72x32xbf16>, vector<32x34xbf16>, vector<72x34xf32> -> vector<72x34xf32>
    %c0_3 = arith.constant 0 : index
    %c0_4 = arith.constant 0 : index
    %5 = vector.load %arg3[%c0_3, %c0_4] : memref<1x34xf32, #tpu.memory_space<vmem>>, vector<1x34xf32>
    %6 = vector.broadcast %5 : vector<1x34xf32> to vector<72x34xf32>
    %7 = arith.addf %4, %6 : vector<72x34xf32>
    %c0_5 = arith.constant 0 : index
    %c0_6 = arith.constant 0 : index
    %8 = vector.load %arg4[%c0_5, %c0_6] : memref<72x34xf32, #tpu.memory_space<vmem>>, vector<72x34xf32>
    tpu.vector_store %arg4[%c0_5, %c0_6], %7 {strides = array<i32>} : memref<72x34xf32, #tpu.memory_space<vmem>>, vector<72x34xf32>,
    return
  }
  func.func @transform_0(%arg0: i32) -> (i32, i32) {
    %c0_i32 = arith.constant 0 : i32
    %c0_i32_0 = arith.constant 0 : i32
    return %arg0, %c0_i32 : i32, i32
  }
  func.func @transform_1(%arg0: i32) -> (i32, i32) {
    %c0_i32 = arith.constant 0 : i32
    %c0_i32_0 = arith.constant 0 : i32
    %c0_i32_1 = arith.constant 0 : i32
    return %c0_i32, %c0_i32_0 : i32, i32
  }
  func.func @transform_2(%arg0: i32) -> (i32, i32) {
    %c0_i32 = arith.constant 0 : i32
    %c0_i32_0 = arith.constant 0 : i32
    %c0_i32_1 = arith.constant 0 : i32
    return %c0_i32, %c0_i32_0 : i32, i32
  }
  func.func @transform_3(%arg0: i32) -> (i32, i32) {
    %c0_i32 = arith.constant 0 : i32
    %c0_i32_0 = arith.constant 0 : i32
    return %arg0, %c0_i32 : i32, i32
  }
}

module attributes {stable_mosaic.version = 11 : i64} {
  func.func @_matmul_kernel(%arg0: i32, %arg1: memref<2x16xf32, #tpu.memory_space<vmem>>, %arg2: memref<16x272xf32, #tpu.memory_space<vmem>>, %arg3: memref<1x272xf32, #tpu.memory_space<vmem>>, %arg4: memref<2x272xf32, #tpu.memory_space<vmem>>) attributes {dimension_semantics = [#tpu.dimension_semantics<parallel>], iteration_bounds = array<i64: 1>, scalar_prefetch = 0 : i64, scratch_operands = 0 : i64, tpu.core_type = #tpu.core_type<tc>, window_params = [{transform_indices = @transform_0, window_bounds = array<i64: 2, 16>}, {pipeline_mode = #tpu.pipeline_mode<synchronous>, transform_indices = @transform_1, window_bounds = array<i64: 16, 272>}, {pipeline_mode = #tpu.pipeline_mode<synchronous>, transform_indices = @transform_2, window_bounds = array<i64: 1, 272>}, {transform_indices = @transform_3, window_bounds = array<i64: 2, 272>}]} {
    %c0 = arith.constant 0 : index
    %c0_0 = arith.constant 0 : index
    %0 = vector.load %arg1[%c0, %c0_0] : memref<2x16xf32, #tpu.memory_space<vmem>>, vector<2x16xf32>
    %1 = arith.truncf %0 : vector<2x16xf32> to vector<2x16xbf16>
    %c0_1 = arith.constant 0 : index
    %c0_2 = arith.constant 0 : index
    %2 = vector.load %arg2[%c0_1, %c0_2] : memref<16x272xf32, #tpu.memory_space<vmem>>, vector<16x272xf32>
    %3 = arith.truncf %2 : vector<16x272xf32> to vector<16x272xbf16>
    %cst = arith.constant dense<0.000000e+00> : vector<2x272xf32>
    %4 = tpu.matmul %1, %3, %cst {dimension_numbers = #tpu.dot_dimension_numbers<[1], [0], [0], [1], [0, 0, 1, 1], [], []>} : vector<2x16xbf16>, vector<16x272xbf16>, vector<2x272xf32> -> vector<2x272xf32>
    %c0_3 = arith.constant 0 : index
    %c0_4 = arith.constant 0 : index
    %5 = vector.load %arg3[%c0_3, %c0_4] : memref<1x272xf32, #tpu.memory_space<vmem>>, vector<1x272xf32>
    %6 = vector.broadcast %5 : vector<1x272xf32> to vector<2x272xf32>
    %7 = arith.addf %4, %6 : vector<2x272xf32>
    %c0_5 = arith.constant 0 : index
    %c0_6 = arith.constant 0 : index
    %8 = vector.load %arg4[%c0_5, %c0_6] : memref<2x272xf32, #tpu.memory_space<vmem>>, vector<2x272xf32>
    tpu.vector_store %arg4[%c0_5, %c0_6], %7 {strides = array<i32>} : memref<2x272xf32, #tpu.memory_space<vmem>>, vector<2x272xf32>,
    return
  }
  func.func @transform_0(%arg0: i32) -> (i32, i32) {
    %c0_i32 = arith.constant 0 : i32
    %c0_i32_0 = arith.constant 0 : i32
    return %arg0, %c0_i32 : i32, i32
  }
  func.func @transform_1(%arg0: i32) -> (i32, i32) {
    %c0_i32 = arith.constant 0 : i32
    %c0_i32_0 = arith.constant 0 : i32
    %c0_i32_1 = arith.constant 0 : i32
    return %c0_i32, %c0_i32_0 : i32, i32
  }
  func.func @transform_2(%arg0: i32) -> (i32, i32) {
    %c0_i32 = arith.constant 0 : i32
    %c0_i32_0 = arith.constant 0 : i32
    %c0_i32_1 = arith.constant 0 : i32
    return %c0_i32, %c0_i32_0 : i32, i32
  }
  func.func @transform_3(%arg0: i32) -> (i32, i32) {
    %c0_i32 = arith.constant 0 : i32
    %c0_i32_0 = arith.constant 0 : i32
    return %arg0, %c0_i32 : i32, i32
  }
}

module attributes {stable_mosaic.version = 11 : i64} {
  func.func @_concat_proj_gate_kernel(%arg0: i32, %arg1: memref<306x8xf32, #tpu.memory_space<vmem>>, %arg2: memref<306x8xf32, #tpu.memory_space<vmem>>, %arg3: memref<306x8xf32, #tpu.memory_space<vmem>>, %arg4: memref<306x8xf32, #tpu.memory_space<vmem>>, %arg5: memref<8x8xf32, #tpu.memory_space<vmem>>, %arg6: memref<1x8xf32, #tpu.memory_space<vmem>>, %arg7: memref<1x1xf32, #tpu.memory_space<vmem>>, %arg8: memref<1x8xf32, #tpu.memory_space<vmem>>, %arg9: memref<1x8xf32, #tpu.memory_space<vmem>>, %arg10: memref<306x8xf32, #tpu.memory_space<vmem>>) attributes {dimension_semantics = [#tpu.dimension_semantics<parallel>], iteration_bounds = array<i64: 1>, scalar_prefetch = 0 : i64, scratch_operands = 0 : i64, tpu.core_type = #tpu.core_type<tc>, window_params = [{transform_indices = @transform_0, window_bounds = array<i64: 306, 8>}, {transform_indices = @transform_1, window_bounds = array<i64: 306, 8>}, {transform_indices = @transform_2, window_bounds = array<i64: 306, 8>}, {transform_indices = @transform_3, window_bounds = array<i64: 306, 8>}, {pipeline_mode = #tpu.pipeline_mode<synchronous>, transform_indices = @transform_4, window_bounds = array<i64: 8, 8>}, {pipeline_mode = #tpu.pipeline_mode<synchronous>, transform_indices = @transform_5, window_bounds = array<i64: 1, 8>}, {pipeline_mode = #tpu.pipeline_mode<synchronous>, transform_indices = @transform_6, window_bounds = array<i64: 1, 1>}, {pipeline_mode = #tpu.pipeline_mode<synchronous>, transform_indices = @transform_7, window_bounds = array<i64: 1, 8>}, {pipeline_mode = #tpu.pipeline_mode<synchronous>, transform_indices = @transform_8, window_bounds = array<i64: 1, 8>}, {transform_indices = @transform_9, window_bounds = array<i64: 306, 8>}]} {
    %c0 = arith.constant 0 : index
    %c0_0 = arith.constant 0 : index
    %0 = vector.load %arg1[%c0, %c0_0] : memref<306x8xf32, #tpu.memory_space<vmem>>, vector<306x8xf32>
    %1 = arith.truncf %0 : vector<306x8xf32> to vector<306x8xbf16>
    %c0_1 = arith.constant 0 : index
    %c0_2 = arith.constant 0 : index
    %2 = vector.load %arg5[%c0_1, %c0_2] : memref<8x8xf32, #tpu.memory_space<vmem>>, vector<8x8xf32>
    %3 = arith.truncf %2 : vector<8x8xf32> to vector<8x8xbf16>
    %cst = arith.constant dense<0.000000e+00> : vector<306x8xf32>
    %4 = tpu.matmul %1, %3, %cst {dimension_numbers = #tpu.dot_dimension_numbers<[1], [0], [0], [1], [0, 0, 1, 1], [], []>} : vector<306x8xbf16>, vector<8x8xbf16>, vector<306x8xf32> -> vector<306x8xf32>
    %c0_3 = arith.constant 0 : index
    %c0_4 = arith.constant 0 : index
    %5 = vector.load %arg6[%c0_3, %c0_4] : memref<1x8xf32, #tpu.memory_space<vmem>>, vector<1x8xf32>
    %6 = vector.broadcast %5 : vector<1x8xf32> to vector<306x8xf32>
    %7 = arith.addf %4, %6 : vector<306x8xf32>
    %cst_5 = arith.constant 0.000000e+00 : f32
    %8 = vector.broadcast %cst_5 : f32 to vector<306x8xf32>
    %9 = arith.cmpf oge, %7, %8 : vector<306x8xf32>
    %c0_6 = arith.constant 0 : index
    %c0_7 = arith.constant 0 : index
    %10 = vector.load %arg7[%c0_6, %c0_7] : memref<1x1xf32, #tpu.memory_space<vmem>>, vector<1x1xf32>
    %11 = vector.broadcast %10 : vector<1x1xf32> to vector<306x8xf32>
    %12 = arith.mulf %11, %7 : vector<306x8xf32>
    %13 = arith.select %9, %7, %12 : vector<306x8xi1>, vector<306x8xf32>
    %cst_8 = arith.constant dense<0.000000e+00> : vector<306xf32>
    %14 = vector.multi_reduction <add>, %13, %cst_8 [1] : vector<306x8xf32> to vector<306xf32>
    %15 = vector.shape_cast %14 : vector<306xf32> to vector<306x1xf32>
    %cst_9 = arith.constant 8.000000e+00 : f32
    %16 = vector.broadcast %cst_9 : f32 to vector<306x1xf32>
    %17 = arith.divf %15, %16 : vector<306x1xf32>
    %18 = vector.broadcast %17 : vector<306x1xf32> to vector<306x8xf32>
    %19 = arith.subf %13, %18 : vector<306x8xf32>
    %20 = arith.mulf %19, %19 : vector<306x8xf32>
    %cst_10 = arith.constant dense<0.000000e+00> : vector<306xf32>
    %21 = vector.multi_reduction <add>, %20, %cst_10 [1] : vector<306x8xf32> to vector<306xf32>
    %22 = vector.shape_cast %21 : vector<306xf32> to vector<306x1xf32>
    %cst_11 = arith.constant 8.000000e+00 : f32
    %23 = vector.broadcast %cst_11 : f32 to vector<306x1xf32>
    %24 = arith.divf %22, %23 : vector<306x1xf32>
    %25 = vector.broadcast %17 : vector<306x1xf32> to vector<306x8xf32>
    %26 = arith.subf %13, %25 : vector<306x8xf32>
    %cst_12 = arith.constant 9.99999974E-6 : f32
    %27 = vector.broadcast %cst_12 : f32 to vector<306x1xf32>
    %28 = arith.addf %24, %27 : vector<306x1xf32>
    %29 = math.rsqrt %28 : vector<306x1xf32>
    %30 = vector.broadcast %29 : vector<306x1xf32> to vector<306x8xf32>
    %31 = arith.mulf %26, %30 : vector<306x8xf32>
    %c0_13 = arith.constant 0 : index
    %c0_14 = arith.constant 0 : index
    %32 = vector.load %arg8[%c0_13, %c0_14] : memref<1x8xf32, #tpu.memory_space<vmem>>, vector<1x8xf32>
    %33 = vector.broadcast %32 : vector<1x8xf32> to vector<306x8xf32>
    %34 = arith.mulf %31, %33 : vector<306x8xf32>
    %c0_15 = arith.constant 0 : index
    %c0_16 = arith.constant 0 : index
    %35 = vector.load %arg9[%c0_15, %c0_16] : memref<1x8xf32, #tpu.memory_space<vmem>>, vector<1x8xf32>
    %36 = vector.broadcast %35 : vector<1x8xf32> to vector<306x8xf32>
    %37 = arith.addf %34, %36 : vector<306x8xf32>
    %c0_17 = arith.constant 0 : index
    %c0_18 = arith.constant 0 : index
    %38 = vector.load %arg2[%c0_17, %c0_18] : memref<306x8xf32, #tpu.memory_space<vmem>>, vector<306x8xf32>
    %39 = arith.addf %37, %38 : vector<306x8xf32>
    %c0_19 = arith.constant 0 : index
    %c0_20 = arith.constant 0 : index
    %40 = vector.load %arg3[%c0_19, %c0_20] : memref<306x8xf32, #tpu.memory_space<vmem>>, vector<306x8xf32>
    %41 = arith.negf %40 : vector<306x8xf32>
    %42 = math.exp %41 : vector<306x8xf32>
    %cst_21 = arith.constant 1.000000e+00 : f32
    %43 = vector.broadcast %cst_21 : f32 to vector<306x8xf32>
    %44 = arith.addf %43, %42 : vector<306x8xf32>
    %45 = arith.divf %43, %44 : vector<306x8xf32>
    %46 = arith.mulf %39, %45 : vector<306x8xf32>
    %c0_22 = arith.constant 0 : index
    %c0_23 = arith.constant 0 : index
    %47 = vector.load %arg4[%c0_22, %c0_23] : memref<306x8xf32, #tpu.memory_space<vmem>>, vector<306x8xf32>
    %48 = arith.addf %46, %47 : vector<306x8xf32>
    %c0_24 = arith.constant 0 : index
    %c0_25 = arith.constant 0 : index
    %49 = vector.load %arg10[%c0_24, %c0_25] : memref<306x8xf32, #tpu.memory_space<vmem>>, vector<306x8xf32>
    tpu.vector_store %arg10[%c0_24, %c0_25], %48 {strides = array<i32>} : memref<306x8xf32, #tpu.memory_space<vmem>>, vector<306x8xf32>,
    return
  }
  func.func @transform_0(%arg0: i32) -> (i32, i32) {
    %c0_i32 = arith.constant 0 : i32
    %c0_i32_0 = arith.constant 0 : i32
    return %arg0, %c0_i32 : i32, i32
  }
  func.func @transform_1(%arg0: i32) -> (i32, i32) {
    %c0_i32 = arith.constant 0 : i32
    %c0_i32_0 = arith.constant 0 : i32
    return %arg0, %c0_i32 : i32, i32
  }
  func.func @transform_2(%arg0: i32) -> (i32, i32) {
    %c0_i32 = arith.constant 0 : i32
    %c0_i32_0 = arith.constant 0 : i32
    return %arg0, %c0_i32 : i32, i32
  }
  func.func @transform_3(%arg0: i32) -> (i32, i32) {
    %c0_i32 = arith.constant 0 : i32
    %c0_i32_0 = arith.constant 0 : i32
    return %arg0, %c0_i32 : i32, i32
  }
  func.func @transform_4(%arg0: i32) -> (i32, i32) {
    %c0_i32 = arith.constant 0 : i32
    %c0_i32_0 = arith.constant 0 : i32
    %c0_i32_1 = arith.constant 0 : i32
    return %c0_i32, %c0_i32_0 : i32, i32
  }
  func.func @transform_5(%arg0: i32) -> (i32, i32) {
    %c0_i32 = arith.constant 0 : i32
    %c0_i32_0 = arith.constant 0 : i32
    %c0_i32_1 = arith.constant 0 : i32
    return %c0_i32, %c0_i32_0 : i32, i32
  }
  func.func @transform_6(%arg0: i32) -> (i32, i32) {
    %c0_i32 = arith.constant 0 : i32
    %c0_i32_0 = arith.constant 0 : i32
    %c0_i32_1 = arith.constant 0 : i32
    return %c0_i32, %c0_i32_0 : i32, i32
  }
  func.func @transform_7(%arg0: i32) -> (i32, i32) {
    %c0_i32 = arith.constant 0 : i32
    %c0_i32_0 = arith.constant 0 : i32
    %c0_i32_1 = arith.constant 0 : i32
    return %c0_i32, %c0_i32_0 : i32, i32
  }
  func.func @transform_8(%arg0: i32) -> (i32, i32) {
    %c0_i32 = arith.constant 0 : i32
    %c0_i32_0 = arith.constant 0 : i32
    %c0_i32_1 = arith.constant 0 : i32
    return %c0_i32, %c0_i32_0 : i32, i32
  }
  func.func @transform_9(%arg0: i32) -> (i32, i32) {
    %c0_i32 = arith.constant 0 : i32
    %c0_i32_0 = arith.constant 0 : i32
    return %arg0, %c0_i32 : i32, i32
  }
}

module attributes {stable_mosaic.version = 11 : i64} {
  func.func @_matmul_kernel(%arg0: i32, %arg1: memref<306x72xf32, #tpu.memory_space<vmem>>, %arg2: memref<72x2xf32, #tpu.memory_space<vmem>>, %arg3: memref<1x2xf32, #tpu.memory_space<vmem>>, %arg4: memref<306x2xf32, #tpu.memory_space<vmem>>) attributes {dimension_semantics = [#tpu.dimension_semantics<parallel>], iteration_bounds = array<i64: 1>, scalar_prefetch = 0 : i64, scratch_operands = 0 : i64, tpu.core_type = #tpu.core_type<tc>, window_params = [{transform_indices = @transform_0, window_bounds = array<i64: 306, 72>}, {pipeline_mode = #tpu.pipeline_mode<synchronous>, transform_indices = @transform_1, window_bounds = array<i64: 72, 2>}, {pipeline_mode = #tpu.pipeline_mode<synchronous>, transform_indices = @transform_2, window_bounds = array<i64: 1, 2>}, {transform_indices = @transform_3, window_bounds = array<i64: 306, 2>}]} {
    %c0 = arith.constant 0 : index
    %c0_0 = arith.constant 0 : index
    %0 = vector.load %arg1[%c0, %c0_0] : memref<306x72xf32, #tpu.memory_space<vmem>>, vector<306x72xf32>
    %1 = arith.truncf %0 : vector<306x72xf32> to vector<306x72xbf16>
    %c0_1 = arith.constant 0 : index
    %c0_2 = arith.constant 0 : index
    %2 = vector.load %arg2[%c0_1, %c0_2] : memref<72x2xf32, #tpu.memory_space<vmem>>, vector<72x2xf32>
    %3 = arith.truncf %2 : vector<72x2xf32> to vector<72x2xbf16>
    %cst = arith.constant dense<0.000000e+00> : vector<306x2xf32>
    %4 = tpu.matmul %1, %3, %cst {dimension_numbers = #tpu.dot_dimension_numbers<[1], [0], [0], [1], [0, 0, 1, 1], [], []>} : vector<306x72xbf16>, vector<72x2xbf16>, vector<306x2xf32> -> vector<306x2xf32>
    %c0_3 = arith.constant 0 : index
    %c0_4 = arith.constant 0 : index
    %5 = vector.load %arg3[%c0_3, %c0_4] : memref<1x2xf32, #tpu.memory_space<vmem>>, vector<1x2xf32>
    %6 = vector.broadcast %5 : vector<1x2xf32> to vector<306x2xf32>
    %7 = arith.addf %4, %6 : vector<306x2xf32>
    %c0_5 = arith.constant 0 : index
    %c0_6 = arith.constant 0 : index
    %8 = vector.load %arg4[%c0_5, %c0_6] : memref<306x2xf32, #tpu.memory_space<vmem>>, vector<306x2xf32>
    tpu.vector_store %arg4[%c0_5, %c0_6], %7 {strides = array<i32>} : memref<306x2xf32, #tpu.memory_space<vmem>>, vector<306x2xf32>,
    return
  }
  func.func @transform_0(%arg0: i32) -> (i32, i32) {
    %c0_i32 = arith.constant 0 : i32
    %c0_i32_0 = arith.constant 0 : i32
    return %arg0, %c0_i32 : i32, i32
  }
  func.func @transform_1(%arg0: i32) -> (i32, i32) {
    %c0_i32 = arith.constant 0 : i32
    %c0_i32_0 = arith.constant 0 : i32
    %c0_i32_1 = arith.constant 0 : i32
    return %c0_i32, %c0_i32_0 : i32, i32
  }
  func.func @transform_2(%arg0: i32) -> (i32, i32) {
    %c0_i32 = arith.constant 0 : i32
    %c0_i32_0 = arith.constant 0 : i32
    %c0_i32_1 = arith.constant 0 : i32
    return %c0_i32, %c0_i32_0 : i32, i32
  }
  func.func @transform_3(%arg0: i32) -> (i32, i32) {
    %c0_i32 = arith.constant 0 : i32
    %c0_i32_0 = arith.constant 0 : i32
    return %arg0, %c0_i32 : i32, i32
  }
}

</mosaic_0001>

<bundles_post_ra>
// kernel: tile.13
= control target key start
LH: loop header
LB: loop body
LE: loop exit
PB: predicated region body
PF: predicated region fallthrough
CT: control target
= control target key end

     0   :  { %s136_s0 = inlined_call_operand.vmem [shape: f32[8], index: 0, kind: input, shape index: {}]   ;;  %s137_s1 = inlined_call_operand.vmem [shape: f32[153,8], index: 1, kind: output, shape index: {}]  }
   0x1   :  { %v4_v0 = vld [vmem:[%s136_s0] ss:$0 sm:$0xff] }
   0x2   :  { %5 = vst [vmem:[%s137_s1] sm:$0xff] %v4_v0  ;;  %44 = vst [vmem:[%s137_s1 + $0x8] sm:$0xff] %v4_v0 }
   0x3   :  { %45 = vst [vmem:[%s137_s1 + $0x10] sm:$0xff] %v4_v0  ;;  %46 = vst [vmem:[%s137_s1 + $0x18] sm:$0xff] %v4_v0 }
   0x4   :  { %47 = vst [vmem:[%s137_s1 + $0x20] sm:$0xff] %v4_v0  ;;  %48 = vst [vmem:[%s137_s1 + $0x28] sm:$0xff] %v4_v0 }
   0x5   :  { %49 = vst [vmem:[%s137_s1 + $0x30] sm:$0xff] %v4_v0  ;;  %50 = vst [vmem:[%s137_s1 + $0x38] sm:$0xff] %v4_v0 }
   0x6   :  { %51 = vst [vmem:[%s137_s1 + $0x40] sm:$0xff] %v4_v0  ;;  %52 = vst [vmem:[%s137_s1 + $0x48] sm:$0xff] %v4_v0 }
   0x7   :  { %53 = vst [vmem:[%s137_s1 + $0x50] sm:$0xff] %v4_v0  ;;  %54 = vst [vmem:[%s137_s1 + $0x58] sm:$0xff] %v4_v0 }
   0x8   :  { %55 = vst [vmem:[%s137_s1 + $0x60] sm:$0xff] %v4_v0  ;;  %56 = vst [vmem:[%s137_s1 + $0x68] sm:$0xff] %v4_v0 }
   0x9   :  { %57 = vst [vmem:[%s137_s1 + $0x70] sm:$0xff] %v4_v0  ;;  %58 = vst [vmem:[%s137_s1 + $0x78] sm:$0xff] %v4_v0 }
   0xa   :  { %59 = vst [vmem:[%s137_s1 + $0x80] sm:$0xff] %v4_v0  ;;  %60 = vst [vmem:[%s137_s1 + $0x88] sm:$0xff] %v4_v0 }
   0xb   :  { %61 = vst [vmem:[%s137_s1 + $0x90] sm:$0xff] %v4_v0  ;;  %62 = vst [vmem:[%s137_s1 + $0x98] sm:$0xff] %v4_v0 }

// kernel: tile.18
= control target key start
LH: loop header
LB: loop body
LE: loop exit
PB: predicated region body
PF: predicated region fallthrough
CT: control target
= control target key end

     0   :  { %s650_s10 = smov 112   ;;  %s651_s11 = smov 120   ;;  %vm6_vm0 = vcmask 1043458   ;;  %vm10_vm1 = vcmask 1045508   ;;  %vm14_vm2 = vcmask 1047558   ;;  %vm16_vm3 = vcmask 64512   ;;  %s998_s0 = inlined_call_operand.vmem [shape: f32[153,8], index: 0, kind: input, shape index: {}]   ;;  %s999_s1 = inlined_call_operand.vmem [shape: f32[1,1224], index: 1, kind: output, shape index: {}]  }
   0x1   :  { %v560_v0 = vld [vmem:[%s998_s0 + $0x8e] sm:$0x1]   ;;  %v555_v1 = vld [vmem:[%s998_s0 + $0x8f] sm:$0x1]   ;;  %s56_s12 = smov 3  ;;  %s59_s13 = smov 12 }
   0x2   :  { %80 = vrot.lane.b32.xlu1 %v560_v0, %s650_s10  ;;  %50 = vrot.lane.b32.xlu0 %v555_v1, %s651_s11  ;;  %v556_v2 = vld [vmem:[%s998_s0 + $0xe] ss:$16 sm:%s56_s12]   ;;  %s64_s18 = smov 48  ;;  %s69_s19 = smov 192  ;;  %vm45_vm4 = vcmask 1048512   ;;  %vm75_vm5 = vcmask 982912  }
   0x3   :  { %v557_v3 = vld [vmem:[%s998_s0 + $0xe] ss:$16 sm:%s59_s13]   ;;  %s26_s24 = smov 3  ;;  %s29_s25 = smov 12  ;;  %v565_v15 = vld [vmem:[%s998_s0 + $0x8d] sm:$0x1]  }
   0x4   :  { %v62_v4 = vsel %vm6_vm0, %v557_v3, %v556_v2  ;;  %v558_v5 = vld [vmem:[%s998_s0 + $0xe] ss:$16 sm:%s64_s18]   ;;  %v551_v8 = vld [vmem:[%s998_s0 + $0xf] ss:$16 sm:%s26_s24]   ;;  %s34_s30 = smov 48  ;;  %s39_s2 = smov 192 }
   0x5   :  { %v559_v6 = vld [vmem:[%s998_s0 + $0xe] ss:$16 sm:%s69_s19]   ;;  %v67_v7 = vsel %vm10_vm1, %v558_v5, %v62_v4  ;;  %v552_v9 = vld [vmem:[%s998_s0 + $0xf] ss:$16 sm:%s29_s25]   ;;  %s86_s7 = smov 3  ;;  %s89_s13 = smov 12 }
   0x6   :  { %v72_v10 = vsel %vm14_vm2, %v559_v6, %v67_v7  ;;  %v32_v11 = vsel %vm6_vm0, %v552_v9, %v551_v8  ;;  %v553_v12 = vld [vmem:[%s998_s0 + $0xf] ss:$16 sm:%s34_s30]   ;;  %v561_v16 = vld [vmem:[%s998_s0 + $0xd] ss:$16 sm:%s86_s7]   ;;  %s94_s14 = smov 48  ;;  %s99_s19 = smov 192 }
   0x7   :  { %v554_v13 = vld [vmem:[%s998_s0 + $0xf] ss:$16 sm:%s39_s2]   ;;  %73 = vrot.lane.b32.xlu1 %v72_v10, %s650_s10  ;;  %v37_v14 = vsel %vm10_vm1, %v553_v12, %v32_v11  ;;  %s116_s21 = smov 3  ;;  %s119_s22 = smov 12  ;;  %v570_v26 = vld [vmem:[%s998_s0 + $0x8c] sm:$0x1]  }
   0x8   :  { %v42_v17 = vsel %vm14_vm2, %v554_v13, %v37_v14  ;;  %v562_v18 = vld [vmem:[%s998_s0 + $0xd] ss:$16 sm:%s89_s13]   ;;  %v566_v23 = vld [vmem:[%s998_s0 + $0xc] ss:$16 sm:%s116_s21]   ;;  %s124_s27 = smov 48  ;;  %s129_s28 = smov 192 }
   0x9   :  { %v563_v19 = vld [vmem:[%s998_s0 + $0xd] ss:$16 sm:%s94_s14]   ;;  %43 = vrot.lane.b32.xlu0 %v42_v17, %s651_s11  ;;  %v92_v20 = vsel %vm6_vm0, %v562_v18, %v561_v16  ;;  %s652_s29 = smov 104   ;;  %s146_s5 = smov 3  ;;  %v575_v37 = vld [vmem:[%s998_s0 + $0x8b] sm:$0x1]  }
   0xa   :  { %v564_v21 = vld [vmem:[%s998_s0 + $0xd] ss:$16 sm:%s99_s19]   ;;  %v97_v22 = vsel %vm10_vm1, %v563_v19, %v92_v20  ;;  %v567_v24 = vld [vmem:[%s998_s0 + $0xc] ss:$16 sm:%s119_s22]   ;;  %s149_s10 = smov 12  ;;  %s154_s12 = smov 48 }
   0xb   :  { %110 = vrot.lane.b32.xlu1 %v565_v15, %s652_s29  ;;  %v102_v25 = vsel %vm14_vm2, %v564_v21, %v97_v22  ;;  %v122_v27 = vsel %vm6_vm0, %v567_v24, %v566_v23  ;;  %v568_v28 = vld [vmem:[%s998_s0 + $0xc] ss:$16 sm:%s124_s27]   ;;  %s159_s15 = smov 192  ;;  %s176_s11 = smov 3  ;;  %v580_v48 = vld [vmem:[%s998_s0 + $0x8a] sm:$0x1]  }
   0xc   :  { %v127_v29 = vsel %vm10_vm1, %v568_v28, %v122_v27  ;;  %v569_v30 = vld [vmem:[%s998_s0 + $0xc] ss:$16 sm:%s129_s28]   ;;  %v571_v31 = vld [vmem:[%s998_s0 + $0xb] ss:$16 sm:%s146_s5]   ;;  %s179_s20 = smov 12  ;;  %s653_s21 = smov 96  }
   0xd   :  { %103 = vrot.lane.b32.xlu0 %v102_v25, %s652_s29  ;;  %v572_v32 = vld [vmem:[%s998_s0 + $0xb] ss:$16 sm:%s149_s10]   ;;  %v132_v33 = vsel %vm14_vm2, %v569_v30, %v127_v29  ;;  %s184_s26 = smov 48  ;;  %s189_s2 = smov 192  ;;  %v585_v54 = vld [vmem:[%s998_s0 + $0x89] sm:$0x1]  }
   0xe   :  { %v152_v34 = vsel %vm6_vm0, %v572_v32, %v571_v31  ;;  %v573_v35 = vld [vmem:[%s998_s0 + $0xb] ss:$16 sm:%s154_s12]   ;;  %v576_v39 = vld [vmem:[%s998_s0 + $0xa] ss:$16 sm:%s176_s11]   ;;  %s206_s3 = smov 3  ;;  %s209_s4 = smov 12 }
   0xf   :  { %v574_v36 = vld [vmem:[%s998_s0 + $0xb] ss:$16 sm:%s159_s15]   ;;  %140 = vrot.lane.b32.xlu1 %v570_v26, %s653_s21  ;;  %v157_v38 = vsel %vm10_vm1, %v573_v35, %v152_v34  ;;  %s214_s5 = smov 48  ;;  %s654_s10 = smov 88   ;;  %vm105_vm6 = vcmask 917312   ;;  %vm135_vm7 = vcmask 851712  }
  0x10   :  { %v577_v40 = vld [vmem:[%s998_s0 + $0xa] ss:$16 sm:%s179_s20]   ;;  %v162_v43 = vsel %vm14_vm2, %v574_v36, %v157_v38  ;;  %v581_v44 = vld [vmem:[%s998_s0 + $0x9] ss:$16 sm:%s206_s3]   ;;  %s236_s14 = smov 3  ;;  %s219_s19 = smov 192 }
  0x11   :  { %v578_v41 = vld [vmem:[%s998_s0 + $0xa] ss:$16 sm:%s184_s26]   ;;  %133 = vrot.lane.b32.xlu0 %v132_v33, %s653_s21  ;;  %v182_v42 = vsel %vm6_vm0, %v577_v40, %v576_v39  ;;  %s239_s11 = smov 12  ;;  %s244_s22 = smov 48  ;;  %vm165_vm8 = vcmask 786112   ;;  %vm195_vm9 = vcmask 720512  }
  0x12   :  { %v582_v45 = vld [vmem:[%s998_s0 + $0x9] ss:$16 sm:%s209_s4]   ;;  %v187_v46 = vsel %vm10_vm1, %v578_v41, %v182_v42  ;;  %v579_v47 = vld [vmem:[%s998_s0 + $0xa] ss:$16 sm:%s189_s2]   ;;  %s267_s25 = smov 3  ;;  %s655_s26 = smov 80  }
  0x13   :  { %170 = vrot.lane.b32.xlu1 %v575_v37, %s654_s10  ;;  %v212_v49 = vsel %vm6_vm0, %v582_v45, %v581_v44  ;;  %v583_v50 = vld [vmem:[%s998_s0 + $0x9] ss:$16 sm:%s214_s5]   ;;  %v192_v52 = vsel %vm14_vm2, %v579_v47, %v187_v46  ;;  %s259_s2 = smov 3  ;;  %s270_s3 = smov 12  ;;  %vm225_vm10 = vcmask 654912   ;;  %vm255_vm11 = vcmask 589312  }
  0x14   :  { %v586_v51 = vld [vmem:[%s998_s0 + $0x8] ss:$16 sm:%s236_s14]   ;;  %v217_v55 = vsel %vm10_vm1, %v583_v50, %v212_v49  ;;  %v584_v56 = vld [vmem:[%s998_s0 + $0x9] ss:$16 sm:%s219_s19]   ;;  %s249_s6 = smov 192  ;;  %s275_s12 = smov 48 }
  0x15   :  { %163 = vrot.lane.b32.xlu0 %v162_v43, %s654_s10  ;;  %v587_v53 = vld [vmem:[%s998_s0 + $0x8] ss:$16 sm:%s239_s11]   ;;  %s298_s13 = smov 3  ;;  %v222_v61 = vsel %vm14_vm2, %v584_v56, %v217_v55  ;;  %s301_s16 = smov 12  ;;  %vm286_vm12 = vcmask 523712   ;;  %vm317_vm13 = vcmask 458112  }
  0x16   :  { %v242_v57 = vsel %vm6_vm0, %v587_v53, %v586_v51  ;;  %v588_v58 = vld [vmem:[%s998_s0 + $0x8] ss:$16 sm:%s244_s22]   ;;  %v591_v59 = vld [vmem:[%s998_s0 + $0x7] ss:$16 sm:%s267_s25]   ;;  %s656_s17 = smov 72   ;;  %s290_s11 = smov 3 }
  0x17   :  { %200 = vrot.lane.b32.xlu1 %v580_v48, %s655_s26  ;;  %v592_v60 = vld [vmem:[%s998_s0 + $0x7] ss:$16 sm:%s270_s3]   ;;  %v247_v63 = vsel %vm10_vm1, %v588_v58, %v242_v57  ;;  %s280_s22 = smov 192  ;;  %s306_s27 = smov 48  ;;  %vm348_vm14 = vcmask 392512   ;;  %vm379_vm15 = vcmask 326912  }
  0x18   :  { %v590_v62 = vld [vmem:[%s998_s0 + $0x88] ss:$16 sm:%s259_s2]   ;;  %v273_v1 = vsel %vm6_vm0, %v592_v60, %v591_v59  ;;  %v593_v2 = vld [vmem:[%s998_s0 + $0x7] ss:$16 sm:%s275_s12]   ;;  %s329_s28 = smov 3  ;;  %s332_s2 = smov 12 }
  0x19   :  { %193 = vrot.lane.b32.xlu0 %v192_v52, %s655_s26  ;;  %v589_v0 = vld [vmem:[%s998_s0 + $0x8] ss:$16 sm:%s249_s6]   ;;  %s657_s3 = smov 64   ;;  %v278_v7 = vsel %vm10_vm1, %v593_v2, %v273_v1  ;;  %s321_s6 = smov 3 }
  0x1a   :  { %v596_v3 = vld [vmem:[%s998_s0 + $0x6] ss:$16 sm:%s298_s13]   ;;  %v252_v5 = vsel %vm14_vm2, %v589_v0, %v247_v63  ;;  %v595_v6 = vld [vmem:[%s998_s0 + $0x87] ss:$16 sm:%s290_s11]   ;;  %s311_s9 = smov 192  ;;  %s337_s15 = smov 48 }
  0x1b   :  { %230 = vrot.lane.b32.xlu1 %v585_v54, %s656_s17  ;;  %v597_v4 = vld [vmem:[%s998_s0 + $0x6] ss:$16 sm:%s301_s16]   ;;  %s360_s16 = smov 3  ;;  %s363_s19 = smov 12 }
  0x1c   :  { %v594_v8 = vld [vmem:[%s998_s0 + $0x7] ss:$16 sm:%s280_s22]   ;;  %v304_v9 = vsel %vm6_vm0, %v597_v4, %v596_v3  ;;  %v598_v10 = vld [vmem:[%s998_s0 + $0x6] ss:$16 sm:%s306_s27]   ;;  %s658_s11 = smov 56   ;;  %s352_s22 = smov 3 }
  0x1d   :  { %223 = vrot.lane.b32.xlu0 %v222_v61, %s656_s17  ;;  %v601_v11 = vld [vmem:[%s998_s0 + $0x5] ss:$16 sm:%s329_s28]   ;;  %v283_v13 = vsel %vm14_vm2, %v594_v8, %v278_v7  ;;  %v309_v15 = vsel %vm10_vm1, %v598_v10, %v304_v9  ;;  %s342_s25 = smov 192  ;;  %s368_s30 = smov 48 }
  0x1e   :  { %v602_v12 = vld [vmem:[%s998_s0 + $0x5] ss:$16 sm:%s332_s2]   ;;  %v600_v14 = vld [vmem:[%s998_s0 + $0x86] ss:$16 sm:%s321_s6]   ;;  %s391_s2 = smov 3  ;;  %s394_s5 = smov 12 }
  0x1f   :  { %261 = vrot.lane.b32.xlu1 %v590_v62, %s657_s3  ;;  %v599_v16 = vld [vmem:[%s998_s0 + $0x6] ss:$16 sm:%s311_s9]   ;;  %v335_v17 = vsel %vm6_vm0, %v602_v12, %v601_v11  ;;  %s659_s6 = smov 48   ;;  %s383_s9 = smov 3 }
  0x20   :  { %v603_v18 = vld [vmem:[%s998_s0 + $0x5] ss:$16 sm:%s337_s15]   ;;  %v606_v19 = vld [vmem:[%s998_s0 + $0x4] ss:$16 sm:%s360_s16]   ;;  %v314_v21 = vsel %vm14_vm2, %v599_v16, %v309_v15  ;;  %s373_s13 = smov 192  ;;  %s399_s18 = smov 48 }
  0x21   :  { %253 = vrot.lane.b32.xlu0 %v252_v5, %s657_s3  ;;  %v607_v20 = vld [vmem:[%s998_s0 + $0x4] ss:$16 sm:%s363_s19]   ;;  %v340_v23 = vsel %vm10_vm1, %v603_v18, %v335_v17  ;;  %s422_s19 = smov 3  ;;  %s414_s21 = smov 3 }
  0x22   :  { %v605_v22 = vld [vmem:[%s998_s0 + $0x85] ss:$16 sm:%s352_s22]   ;;  %v366_v25 = vsel %vm6_vm0, %v607_v20, %v606_v19  ;;  %v608_v26 = vld [vmem:[%s998_s0 + $0x4] ss:$16 sm:%s368_s30]   ;;  %s425_s22 = smov 12  ;;  %s660_s23 = smov 40  }
  0x23   :  { %292 = vrot.lane.b32.xlu1 %v595_v6, %s658_s11  ;;  %v604_v24 = vld [vmem:[%s998_s0 + $0x5] ss:$16 sm:%s342_s25]   ;;  %v371_v31 = vsel %vm10_vm1, %v608_v26, %v366_v25  ;;  %s404_s26 = smov 192  ;;  %s430_s27 = smov 48 }
  0x24   :  { %v611_v27 = vld [vmem:[%s998_s0 + $0x3] ss:$16 sm:%s391_s2]   ;;  %v345_v29 = vsel %vm14_vm2, %v604_v24, %v340_v23  ;;  %v610_v30 = vld [vmem:[%s998_s0 + $0x84] ss:$16 sm:%s383_s9]   ;;  %s453_s3 = smov 3  ;;  %s20_s4 = smov 3 }
  0x25   :  { %284 = vrot.lane.b32.xlu0 %v283_v13, %s658_s11  ;;  %v612_v28 = vld [vmem:[%s998_s0 + $0x3] ss:$16 sm:%s394_s5]   ;;  %s456_s7 = smov 12  ;;  %s8_s8 = smov 48 }
  0x26   :  { %v609_v32 = vld [vmem:[%s998_s0 + $0x4] ss:$16 sm:%s373_s13]   ;;  %v397_v33 = vsel %vm6_vm0, %v612_v28, %v611_v27  ;;  %v613_v34 = vld [vmem:[%s998_s0 + $0x3] ss:$16 sm:%s399_s18]   ;;  %s2_s16 = smov 3  ;;  %s661_s17 = smov 32  }
  0x27   :  { %323 = vrot.lane.b32.xlu1 %v600_v14, %s659_s6  ;;  %v616_v35 = vld [vmem:[%s998_s0 + $0x2] ss:$16 sm:%s422_s19]   ;;  %v376_v37 = vsel %vm14_vm2, %v609_v32, %v371_v31  ;;  %v402_v41 = vsel %vm10_vm1, %v613_v34, %v397_v33  ;;  %s445_s28 = smov 3  ;;  %s461_s29 = smov 48 }
  0x28   :  { %v617_v36 = vld [vmem:[%s998_s0 + $0x2] ss:$16 sm:%s425_s22]   ;;  %v615_v38 = vld [vmem:[%s998_s0 + $0x83] ss:$16 sm:%s414_s21]   ;;  %s12_s21 = smov 192  ;;  %s4_s22 = smov 12 }
  0x29   :  { %315 = vrot.lane.b32.xlu0 %v314_v21, %s659_s6  ;;  %v614_v39 = vld [vmem:[%s998_s0 + $0x3] ss:$16 sm:%s404_s26]   ;;  %v428_v44 = vsel %vm6_vm0, %v617_v36, %v616_v35  ;;  %s466_s15 = smov 192 }
  0x2a   :  { %v618_v40 = vld [vmem:[%s998_s0 + $0x2] ss:$16 sm:%s430_s27]   ;;  %v621_v42 = vld [vmem:[%s998_s0 + $0x1] ss:$16 sm:%s453_s3]   ;;  %v407_v48 = vsel %vm14_vm2, %v614_v39, %v402_v41 }
  0x2b   :  { %354 = vrot.lane.b32.xlu1 %v605_v22, %s660_s23  ;;  %v550_v43 = vld [vmem:[%s998_s0 + $0x80] ss:$16 sm:%s20_s4]   ;;  %v433_v51 = vsel %vm10_vm1, %v618_v40, %v428_v44 }
  0x2c   :  { %v622_v45 = vld [vmem:[%s998_s0 + $0x1] ss:$16 sm:%s456_s7]   ;;  %24 = vst.msk [vmem:[#allocation0 + $0x40] ss:$8 sm:$0x3] %vm16_vm3, %v550_v43   ;;  %s662_s7 = smov 24  }
  0x2d   :  { %346 = vrot.lane.b32.xlu0 %v345_v29, %s660_s23  ;;  %s435_s23 = smov 192  ;;  %v9_v46 = vld [vmem:[%s998_s0] ss:$16 sm:%s8_s8]   ;;  %v459_v55 = vsel %vm6_vm0, %v622_v45, %v621_v42 }
  0x2e   :  { %v3_v47 = vld [vmem:[%s998_s0] ss:$16 sm:%s2_s16]   ;;  %v619_v52 = vld [vmem:[%s998_s0 + $0x2] ss:$16 sm:%s435_s23]   ;;  %s476_s16 = smov 3 }
  0x2f   :  { %385 = vrot.lane.b32.xlu1 %v610_v30, %s661_s17  ;;  %v13_v49 = vld [vmem:[%s998_s0] ss:$16 sm:%s12_s21]   ;;  %v438_v59 = vsel %vm14_vm2, %v619_v52, %v433_v51 }
  0x30   :  { %v5_v50 = vld [vmem:[%s998_s0] ss:$16 sm:%s4_s22]   ;;  %v620_v54 = vld [vmem:[%s998_s0 + $0x82] ss:$16 sm:%s445_s28]  }
  0x31   :  { %377 = vrot.lane.b32.xlu0 %v376_v37, %s661_s17  ;;  %v7_v53 = vsel %vm6_vm0, %v5_v50, %v3_v47  ;;  %v623_v56 = vld [vmem:[%s998_s0 + $0x1] ss:$16 sm:%s461_s29]   ;;  %s663_s17 = smov 16   ;;  %vm410_vm0 = vcmask 261312  }
  0x32   :  { %v11_v57 = vsel %vm10_vm1, %v9_v46, %v7_v53  ;;  %v464_v60 = vsel %vm10_vm1, %v623_v56, %v459_v55  ;;  %v624_v61 = vld [vmem:[%s998_s0 + $0x1] ss:$16 sm:%s466_s15]   ;;  %vm441_vm1 = vcmask 195712  }
  0x33   :  { %416 = vrot.lane.b32.xlu1 %v615_v38, %s662_s7  ;;  %v15_v58 = vsel %vm14_vm2, %v13_v49, %v11_v57  ;;  %v625_v62 = vld [vmem:[%s998_s0 + $0x81] ss:$16 sm:%s476_s16]   ;;  %v469_v63 = vsel %vm14_vm2, %v624_v61, %v464_v60  ;;  %s664_s0 = smov 8   ;;  %vm472_vm2 = vcmask 130112  }
  0x34   :  { %17 = vst.msk [vmem:[#allocation0] ss:$8 sm:$0xf] %vm16_vm3, %v15_v58   ;;  %18 = vst.msk [vmem:[#allocation0] ss:$8 sm:$0xf0] %vm16_vm3, %v15_v58  }
  0x35   :  { %408 = vrot.lane.b32.xlu0 %v407_v48, %s662_s7 }
  0x37   :  { %447 = vrot.lane.b32.xlu1 %v620_v54, %s663_s17 }
  0x39   :  { %439 = vrot.lane.b32.xlu0 %v438_v59, %s663_s17 }
  0x3b   :  { %478 = vrot.lane.b32.xlu1 %v625_v62, %s664_s0 }
  0x3d   :  { %470 = vrot.lane.b32.xlu0 %v469_v63, %s664_s0 }
  0x74   :  { %v81_v0 = vpop.permute.xlu1 %80   ;;  %v51_v1 = vpop.permute.xlu0 %50  }
  0x75   :  { %54 = vst.msk [vmem:[#allocation0 + $0x40] sm:$0x1] %vm45_vm4, %v51_v1  }
  0x76   :  { %84 = vst.msk [vmem:[#allocation0 + $0x40] sm:$0x1] %vm75_vm5, %v81_v0  }
  0x79   :  { %v74_v2 = vpop.permute.xlu1 %73  }
  0x7b   :  { %v44_v3 = vpop.permute.xlu0 %43  }
  0x7c   :  { %46 = vst.msk [vmem:[#allocation0] ss:$8 sm:$0xf] %vm45_vm4, %v44_v3   ;;  %47 = vst.msk [vmem:[#allocation0] ss:$8 sm:$0xf0] %vm45_vm4, %v44_v3  }
  0x7d   :  { %76 = vst.msk [vmem:[#allocation0] ss:$8 sm:$0xf] %vm75_vm5, %v74_v2   ;;  %77 = vst.msk [vmem:[#allocation0] ss:$8 sm:$0xf0] %vm75_vm5, %v74_v2   ;;  %v111_v4 = vpop.permute.xlu1 %110  }
  0x7e   :  { %114 = vst.msk [vmem:[#allocation0 + $0x40] sm:$0x1] %vm105_vm6, %v111_v4  }
  0x7f   :  { %v104_v5 = vpop.permute.xlu0 %103  }
  0x80   :  { %106 = vst.msk [vmem:[#allocation0] ss:$8 sm:$0xf] %vm105_vm6, %v104_v5   ;;  %107 = vst.msk [vmem:[#allocation0] ss:$8 sm:$0xf0] %vm105_vm6, %v104_v5  }
  0x81   :  { %v141_v6 = vpop.permute.xlu1 %140  }
  0x82   :  { %144 = vst.msk [vmem:[#allocation0 + $0x40] sm:$0x1] %vm135_vm7, %v141_v6  }
  0x83   :  { %v134_v7 = vpop.permute.xlu0 %133  }
  0x84   :  { %136 = vst.msk [vmem:[#allocation0] ss:$8 sm:$0xf] %vm135_vm7, %v134_v7   ;;  %137 = vst.msk [vmem:[#allocation0] ss:$8 sm:$0xf0] %vm135_vm7, %v134_v7  }
  0x85   :  { %v171_v8 = vpop.permute.xlu1 %170  }
  0x86   :  { %174 = vst.msk [vmem:[#allocation0 + $0x40] sm:$0x1] %vm165_vm8, %v171_v8  }
  0x87   :  { %v164_v9 = vpop.permute.xlu0 %163  }
  0x88   :  { %166 = vst.msk [vmem:[#allocation0] ss:$8 sm:$0xf] %vm165_vm8, %v164_v9   ;;  %167 = vst.msk [vmem:[#allocation0] ss:$8 sm:$0xf0] %vm165_vm8, %v164_v9  }
  0x89   :  { %v201_v10 = vpop.permute.xlu1 %200  }
  0x8a   :  { %204 = vst.msk [vmem:[#allocation0 + $0x40] sm:$0x1] %vm195_vm9, %v201_v10  }
  0x8b   :  { %v194_v11 = vpop.permute.xlu0 %193  }
  0x8c   :  { %196 = vst.msk [vmem:[#allocation0] ss:$8 sm:$0xf] %vm195_vm9, %v194_v11   ;;  %197 = vst.msk [vmem:[#allocation0] ss:$8 sm:$0xf0] %vm195_vm9, %v194_v11  }
  0x8d   :  { %v231_v12 = vpop.permute.xlu1 %230  }
  0x8e   :  { %234 = vst.msk [vmem:[#allocation0 + $0x40] sm:$0x1] %vm225_vm10, %v231_v12  }
  0x8f   :  { %v224_v13 = vpop.permute.xlu0 %223  }
  0x90   :  { %226 = vst.msk [vmem:[#allocation0] ss:$8 sm:$0xf] %vm225_vm10, %v224_v13   ;;  %227 = vst.msk [vmem:[#allocation0] ss:$8 sm:$0xf0] %vm225_vm10, %v224_v13  }
  0x91   :  { %v262_v14 = vpop.permute.xlu1 %261  }
  0x92   :  { %265 = vst.msk [vmem:[#allocation0 + $0x40] ss:$8 sm:$0x3] %vm255_vm11, %v262_v14  }
  0x93   :  { %v254_v15 = vpop.permute.xlu0 %253  }
  0x94   :  { %256 = vst.msk [vmem:[#allocation0] ss:$8 sm:$0xf] %vm255_vm11, %v254_v15   ;;  %257 = vst.msk [vmem:[#allocation0] ss:$8 sm:$0xf0] %vm255_vm11, %v254_v15  }
  0x95   :  { %v293_v16 = vpop.permute.xlu1 %292  }
  0x96   :  { %296 = vst.msk [vmem:[#allocation0 + $0x40] ss:$8 sm:$0x3] %vm286_vm12, %v293_v16  }
  0x97   :  { %v285_v17 = vpop.permute.xlu0 %284  }
  0x98   :  { %287 = vst.msk [vmem:[#allocation0] ss:$8 sm:$0xf] %vm286_vm12, %v285_v17   ;;  %288 = vst.msk [vmem:[#allocation0] ss:$8 sm:$0xf0] %vm286_vm12, %v285_v17  }
  0x99   :  { %v324_v18 = vpop.permute.xlu1 %323  }
  0x9a   :  { %327 = vst.msk [vmem:[#allocation0 + $0x40] ss:$8 sm:$0x3] %vm317_vm13, %v324_v18  }
  0x9b   :  { %v316_v19 = vpop.permute.xlu0 %315  }
  0x9c   :  { %318 = vst.msk [vmem:[#allocation0] ss:$8 sm:$0xf] %vm317_vm13, %v316_v19   ;;  %319 = vst.msk [vmem:[#allocation0] ss:$8 sm:$0xf0] %vm317_vm13, %v316_v19  }
  0x9d   :  { %v355_v20 = vpop.permute.xlu1 %354  }
  0x9e   :  { %358 = vst.msk [vmem:[#allocation0 + $0x40] ss:$8 sm:$0x3] %vm348_vm14, %v355_v20  }
  0x9f   :  { %v347_v21 = vpop.permute.xlu0 %346  }
  0xa0   :  { %349 = vst.msk [vmem:[#allocation0] ss:$8 sm:$0xf] %vm348_vm14, %v347_v21   ;;  %350 = vst.msk [vmem:[#allocation0] ss:$8 sm:$0xf0] %vm348_vm14, %v347_v21  }
  0xa1   :  { %v386_v22 = vpop.permute.xlu1 %385  }
  0xa2   :  { %389 = vst.msk [vmem:[#allocation0 + $0x40] ss:$8 sm:$0x3] %vm379_vm15, %v386_v22  }
  0xa3   :  { %v378_v23 = vpop.permute.xlu0 %377  }
  0xa4   :  { %380 = vst.msk [vmem:[#allocation0] ss:$8 sm:$0xf] %vm379_vm15, %v378_v23   ;;  %381 = vst.msk [vmem:[#allocation0] ss:$8 sm:$0xf0] %vm379_vm15, %v378_v23  }
  0xa5   :  { %v417_v24 = vpop.permute.xlu1 %416  }
  0xa6   :  { %420 = vst.msk [vmem:[#allocation0 + $0x40] ss:$8 sm:$0x3] %vm410_vm0, %v417_v24  }
  0xa7   :  { %v409_v25 = vpop.permute.xlu0 %408  }
  0xa8   :  { %411 = vst.msk [vmem:[#allocation0] ss:$8 sm:$0xf] %vm410_vm0, %v409_v25   ;;  %412 = vst.msk [vmem:[#allocation0] ss:$8 sm:$0xf0] %vm410_vm0, %v409_v25  }
  0xa9   :  { %v448_v26 = vpop.permute.xlu1 %447  }
  0xaa   :  { %451 = vst.msk [vmem:[#allocation0 + $0x40] ss:$8 sm:$0x3] %vm441_vm1, %v448_v26  }
  0xab   :  { %v440_v27 = vpop.permute.xlu0 %439  }
  0xac   :  { %442 = vst.msk [vmem:[#allocation0] ss:$8 sm:$0xf] %vm441_vm1, %v440_v27   ;;  %443 = vst.msk [vmem:[#allocation0] ss:$8 sm:$0xf0] %vm441_vm1, %v440_v27  }
  0xad   :  { %v479_v28 = vpop.permute.xlu1 %478  }
  0xae   :  { %482 = vst.msk [vmem:[#allocation0 + $0x40] ss:$8 sm:$0x3] %vm472_vm2, %v479_v28  }
  0xaf   :  { %v471_v29 = vpop.permute.xlu0 %470  }
  0xb0   :  { %473 = vst.msk [vmem:[#allocation0] ss:$8 sm:$0xf] %vm472_vm2, %v471_v29   ;;  %474 = vst.msk [vmem:[#allocation0] ss:$8 sm:$0xf0] %vm472_vm2, %v471_v29  }
  0xb5   :  { %v531_v30 = vld [vmem:[#allocation0 + $0x40] sm:$0x1]  ;;  %v537_v31 = vld [vmem:[#allocation0 + $0x48] sm:$0x1] }
  0xb6   :  { %633 = vst [vmem:[%s999_s1 + $0x8] sm:$0x1] %v531_v30  ;;  %634 = vst [vmem:[%s999_s1 + $0x9] sm:$0x1] %v537_v31 }
  0xb7   :  { %v486_v32 = vld [vmem:[#allocation0] sm:$0x1]  ;;  %v490_v33 = vld [vmem:[#allocation0 + $0x8] sm:$0x1]  ;;  %v495_v34 = vld [vmem:[#allocation0 + $0x10] sm:$0x1] }
  0xb8   :  { %488 = vst [vmem:[%s999_s1] sm:$0x1] %v486_v32  ;;  %626 = vst [vmem:[%s999_s1 + $0x1] sm:$0x1] %v490_v33  ;;  %v501_v35 = vld [vmem:[#allocation0 + $0x18] sm:$0x1] }
  0xb9   :  { %627 = vst [vmem:[%s999_s1 + $0x2] sm:$0x1] %v495_v34  ;;  %v507_v36 = vld [vmem:[#allocation0 + $0x20] sm:$0x1]  ;;  %v513_v37 = vld [vmem:[#allocation0 + $0x28] sm:$0x1] }
  0xba   :  { %628 = vst [vmem:[%s999_s1 + $0x3] sm:$0x1] %v501_v35  ;;  %629 = vst [vmem:[%s999_s1 + $0x4] sm:$0x1] %v507_v36  ;;  %v519_v38 = vld [vmem:[#allocation0 + $0x30] sm:$0x1] }
  0xbb   :  { %630 = vst [vmem:[%s999_s1 + $0x5] sm:$0x1] %v513_v37  ;;  %v525_v39 = vld [vmem:[#allocation0 + $0x38] sm:$0x1]  ;;  %631 = vst [vmem:[%s999_s1 + $0x6] sm:$0x1] %v519_v38 }
  0xbc   :  { %632 = vst [vmem:[%s999_s1 + $0x7] sm:$0x1] %v525_v39 }

// kernel: whyv2_forward.27
= control target key start
LH: loop header
LB: loop body
LE: loop exit
PB: predicated region body
PF: predicated region fallthrough
CT: control target
= control target key end

     0   :  { %v24_v0 = vlaneseq  ;;  %v402_v1 = vmov 1983009808   ;;  %vm72_vm0 = vcmask 1041408   ;;  %vm90_vm1 = vcmask 582656   ;;  %s528_s0 = inlined_call_operand.vmem [shape: f32[2,1224], index: 0, kind: input, shape index: {}]   ;;  %s529_s1 = inlined_call_operand.vmem [shape: f32[1,1224], index: 1, kind: input, shape index: {}]   ;;  %s530_s2 = inlined_call_operand.vmem [shape: f32[1,1224], index: 2, kind: input, shape index: {}]   ;;  %s531_s3 = inlined_call_operand.vmem [shape: f32[2,1224], index: 3, kind: output, shape index: {}]  }
   0x1   :  { %v22_v2 = vunpack.c.l.s4 %v402_v1  ;;  %v14_v3 = vld [vmem:[%s528_s0] sm:$0xff]  ;;  %v15_v8 = vld [vmem:[%s528_s0 + $0x8] sm:$0xff]  ;;  %v16_v22 = vld [vmem:[%s528_s0 + $0x10] sm:$0xf]  ;;  %v403_v40 = vmov 269488144  }
   0x2   :  { %v427_v4 = vshrl.u32 %v24_v0, 7  ;;  %v20_v5 = vcombine.high %v14_v3, %v14_v3  ;;  %v37_v13 = vcombine.high %v15_v8, %v15_v8  ;;  %v99_v41 = vunpack.c.l.s4 %v403_v40  ;;  %v204_v40 = vld [vmem:[%s529_s1 + $0x8] sm:$0x3] }
   0x3   :  { %v23_v6 = vunpack.c.0.s8 %v22_v2  ;;  %vm389_vm2 = vcmask 584706  }
   0x4   :  { %v100_v42 = vunpack.c.0.s8 %v99_v41  ;;  %vm390_vm3 = vmor %vm389_vm2, %vm72_vm0 }
   0x5   :  { %v430_v7 = vsub.s32 %v23_v6, %v427_v4 }
   0x6   :  { %v454_v43 = vsub.s32 %v100_v42, %v427_v4 }
   0x7   :  { %v27_v9 = vrot.slane %v14_v3, %v430_v7  ;;  %v34_v10 = vrot.slane %v20_v5, %v430_v7  ;;  %v44_v14 = vrot.slane %v15_v8, %v430_v7  ;;  %v51_v19 = vrot.slane %v37_v13, %v430_v7 }
   0x8   :  { %v60_v27 = vrot.slane %v16_v22, %v430_v7 }
   0x9   :  { %v35_v11 = vcombine.high %v27_v9, %v27_v9  ;;  %v36_v12 = vcombine.high %v34_v10, %v34_v10  ;;  %v73_v15 = vsel %vm72_vm0, %v27_v9, 0.0  ;;  %v76_v17 = vsel %vm72_vm0, %v34_v10, 0.0 }
   0xa   :  { %v52_v20 = vcombine.high %v44_v14, %v44_v14  ;;  %v80_v24 = vsel %vm72_vm0, %v44_v14, 0.0  ;;  %v53_v26 = vcombine.high %v51_v19, %v51_v19  ;;  %v84_v30 = vsel %vm72_vm0, %v51_v19, 0.0 }
   0xb   :  { %v74_v16 = vsel %vm72_vm0, %v35_v11, 0.0  ;;  %v78_v21 = vsel %vm72_vm0, %v36_v12, 0.0  ;;  %v61_v32 = vcombine.high %v60_v27, %v60_v27  ;;  %v88_v35 = vsel %vm72_vm0, %v60_v27, 0.0 }
   0xc   :  { %v75_v18 = vadd.f32 %v74_v16, %v73_v15  ;;  %v82_v28 = vsel %vm72_vm0, %v52_v20, 0.0  ;;  %v86_v33 = vsel %vm72_vm0, %v53_v26, 0.0  ;;  %v221_v26 = vsub.s32 3, %v427_v4 }
   0xd   :  { %v91_v37 = vsel %vm90_vm1, %v61_v32, 0.0  ;;  %v225_v27 = vsub.s32 4, %v427_v4  ;;  %v295_v32 = vld [vmem:[%s530_s2] sm:$0xff] }
   0xe   :  { %v77_v23 = vadd.f32 %v76_v17, %v75_v18 }
  0x10   :  { %v79_v25 = vadd.f32 %v78_v21, %v77_v23  ;;  %v213_v23 = vsub.s32 1, %v427_v4 }
  0x12   :  { %v81_v29 = vadd.f32 %v80_v24, %v79_v25  ;;  %v203_v24 = vld [vmem:[%s529_s1] sm:$0xff]  ;;  %v217_v25 = vsub.s32 2, %v427_v4 }
  0x14   :  { %v83_v31 = vadd.f32 %v82_v28, %v81_v29  ;;  %v229_v28 = vsub.s32 5, %v427_v4  ;;  %v233_v29 = vsub.s32 6, %v427_v4 }
  0x16   :  { %v85_v34 = vadd.f32 %v84_v30, %v83_v31  ;;  %v237_v30 = vsub.s32 7, %v427_v4  ;;  %v230_v41 = vrot.slane %v203_v24, %v229_v28  ;;  %v234_v42 = vrot.slane %v203_v24, %v233_v29 }
  0x18   :  { %v87_v36 = vadd.f32 %v86_v33, %v85_v34 }
  0x1a   :  { %v89_v38 = vadd.f32 %v88_v35, %v87_v36  ;;  %v214_v35 = vrot.slane %v203_v24, %v213_v23  ;;  %v218_v36 = vrot.slane %v203_v24, %v217_v25 }
  0x1c   :  { %v92_v39 = vadd.f32 %v91_v37, %v89_v38  ;;  %v222_v37 = vrot.slane %v203_v24, %v221_v26  ;;  %v226_v38 = vrot.slane %v203_v24, %v225_v27 }
  0x1e   :  { %93 = vadd.xlane.f32.xlu0 %v92_v39 }
  0xab   :  { %v94_v44 = vpop.xlane.xlu0 %93 }
  0xac   :  { %v96_v45 = vmul.f32 0.0008169935, %v94_v44  ;;  %v238_v44 = vrot.slane %v203_v24, %v237_v30 }
  0xae   :  { %v104_v46 = vrot.slane %v96_v45, %v454_v43  ;;  %v306_v45 = vrot.slane %v295_v32, %v213_v23 }
  0xb0   :  { %v457_v47 = vsub.f32 %v14_v3, %v104_v46  ;;  %v459_v48 = vsub.f32 %v15_v8, %v104_v46  ;;  %v467_v55 = vsub.f32 %v16_v22, %v104_v46  ;;  %v209_v22 = vsub.s32 0, %v427_v4 }
  0xb1   :  { %v310_v46 = vrot.slane %v295_v32, %v217_v25 }
  0xb2   :  { %v109_v49 = vmul.f32 %v457_v47, %v457_v47  ;;  %v110_v50 = vmul.f32 %v459_v48, %v459_v48  ;;  %v111_v0 = vmul.f32 %v467_v55, %v467_v55  ;;  %v210_v34 = vrot.slane %v203_v24, %v209_v22 }
  0xb3   :  { %v302_v4 = vrot.slane %v295_v32, %v209_v22 }
  0xb4   :  { %v115_v51 = vcombine.high %v109_v49, %v109_v49  ;;  %v122_v52 = vrot.slane %v109_v49, %v430_v7  ;;  %v132_v56 = vcombine.high %v110_v50, %v110_v50  ;;  %v139_v58 = vrot.slane %v110_v50, %v430_v7  ;;  %v296_v50 = vld [vmem:[%s530_s2 + $0x8] sm:$0x3] }
  0xb5   :  { %v155_v10 = vrot.slane %v111_v0, %v430_v7  ;;  %v314_v49 = vrot.slane %v295_v32, %v221_v26  ;;  %v339_v0 = vcombine.low %v302_v4, %v306_v45 }
  0xb6   :  { %v129_v53 = vrot.slane %v115_v51, %v430_v7  ;;  %v130_v54 = vcombine.high %v122_v52, %v122_v52  ;;  %v167_v59 = vsel %vm72_vm0, %v122_v52, 0.0  ;;  %v146_v1 = vrot.slane %v132_v56, %v430_v7 }
  0xb7   :  { %v147_v2 = vcombine.high %v139_v58, %v139_v58  ;;  %v174_v6 = vsel %vm72_vm0, %v139_v58, 0.0  ;;  %v156_v15 = vcombine.high %v155_v10, %v155_v10  ;;  %v182_v18 = vsel %vm72_vm0, %v155_v10, 0.0 }
  0xb8   :  { %v131_v57 = vcombine.high %v129_v53, %v129_v53  ;;  %v168_v60 = vsel %vm72_vm0, %v130_v54, 0.0  ;;  %v170_v62 = vsel %vm72_vm0, %v129_v53, 0.0  ;;  %v148_v9 = vcombine.high %v146_v1, %v146_v1 }
  0xb9   :  { %v169_v61 = vadd.f32 %v168_v60, %v167_v59  ;;  %v176_v11 = vsel %vm72_vm0, %v147_v2, 0.0  ;;  %v178_v13 = vsel %vm72_vm0, %v146_v1, 0.0  ;;  %v184_v20 = vsel %vm90_vm1, %v156_v15, 0.0 }
  0xba   :  { %v172_v3 = vsel %vm72_vm0, %v131_v57, 0.0  ;;  %v180_v16 = vsel %vm72_vm0, %v148_v9, 0.0  ;;  %v318_v51 = vrot.slane %v295_v32, %v225_v27  ;;  %v322_v52 = vrot.slane %v295_v32, %v229_v28 }
  0xbb   :  { %v171_v63 = vadd.f32 %v170_v62, %v169_v61  ;;  %v326_v53 = vrot.slane %v295_v32, %v233_v29  ;;  %v330_v54 = vrot.slane %v295_v32, %v237_v30  ;;  %v242_v56 = vrot.slane %v204_v40, %v209_v22 }
  0xbc   :  { %v247_v57 = vcombine.low %v210_v34, %v214_v35  ;;  %v246_v58 = vrot.slane %v204_v40, %v213_v23  ;;  %v248_v59 = vcombine.low %v218_v36, %v222_v37  ;;  %v264_v60 = vcombine.low %v226_v38, %v230_v41 }
  0xbd   :  { %v173_v5 = vadd.f32 %v172_v3, %v171_v63  ;;  %v265_v61 = vcombine.low %v234_v42, %v238_v44  ;;  %v334_v62 = vrot.slane %v296_v50, %v209_v22  ;;  %v338_v63 = vrot.slane %v296_v50, %v213_v23 }
  0xbe   :  { %v340_v1 = vcombine.low %v310_v46, %v314_v49  ;;  %v356_v2 = vcombine.low %v318_v51, %v322_v52  ;;  %v357_v3 = vcombine.low %v326_v53, %v330_v54  ;;  %v281_v10 = vcombine.low %v242_v56, %v246_v58 }
  0xbf   :  { %v175_v8 = vadd.f32 %v174_v6, %v173_v5  ;;  %v255_v5 = vrot.slane %v247_v57, %v430_v7  ;;  %v262_v6 = vrot.slane %v248_v59, %v430_v7  ;;  %v279_v9 = vrot.slane %v265_v61, %v430_v7 }
  0xc0   :  { %v371_v15 = vrot.slane %v357_v3, %v430_v7 }
  0xc1   :  { %v177_v12 = vadd.f32 %v176_v11, %v175_v8  ;;  %v272_v8 = vrot.slane %v264_v60, %v430_v7  ;;  %v347_v11 = vrot.slane %v339_v0, %v430_v7 }
  0xc3   :  { %v179_v14 = vadd.f32 %v178_v13, %v177_v12  ;;  %v354_v12 = vrot.slane %v340_v1, %v430_v7  ;;  %v373_v13 = vcombine.low %v334_v62, %v338_v63 }
  0xc5   :  { %v181_v17 = vadd.f32 %v180_v16, %v179_v14  ;;  %v364_v14 = vrot.slane %v356_v2, %v430_v7  ;;  %v380_v22 = vrot.slane %v373_v13, %v430_v7 }
  0xc7   :  { %v183_v19 = vadd.f32 %v182_v18, %v181_v17  ;;  %v263_v17 = vcombine.low %v255_v5, %v262_v6  ;;  %v280_v18 = vcombine.low %v272_v8, %v279_v9  ;;  %v372_v23 = vcombine.low %v364_v14, %v371_v15 }
  0xc9   :  { %v185_v21 = vadd.f32 %v184_v20, %v183_v19  ;;  %v288_v19 = vrot.slane %v281_v10, %v430_v7 }
  0xcb   :  { %186 = vadd.xlane.f32.xlu0 %v185_v21  ;;  %v355_v21 = vcombine.low %v347_v11, %v354_v12 }
 0x158   :  { %v187_v31 = vpop.xlane.xlu0 %186 }
 0x159   :  { %v188_v33 = vmul.f32 0.0008169935, %v187_v31 }
 0x15b   :  { %v189_v39 = vadd.f32 1e-05, %v188_v33 }
 0x15d   :  { %400 = vrsqrt.f32 %v189_v39 }
 0x167   :  { %v401_v16 = vpop.eup %400 }
 0x168   :  { %v198_v20 = vrot.slane %v401_v16, %v454_v43 }
 0x16a   :  { %v200_v24 = vmul.f32 %v198_v20, %v457_v47  ;;  %v201_v25 = vmul.f32 %v198_v20, %v459_v48  ;;  %v202_v26 = vmul.f32 %v198_v20, %v467_v55 }
 0x16c   :  { %v292_v27 = vmul.f32 %v263_v17, %v200_v24  ;;  %v293_v28 = vmul.f32 %v280_v18, %v201_v25  ;;  %v294_v29 = vmul.f32 %v288_v19, %v202_v26 }
 0x16e   :  { %v384_v30 = vadd.f32 %v355_v21, %v292_v27  ;;  %v385_v31 = vadd.f32 %v372_v23, %v293_v28  ;;  %v386_v32 = vadd.f32 %v380_v22, %v294_v29 }
 0x170   :  { %387 = vst [vmem:[%s531_s3] sm:$0xff] %v384_v30  ;;  %388 = vst [vmem:[%s531_s3 + $0x8] sm:$0xff] %v385_v31 }
 0x171   :  { %391 = vst.msk [vmem:[%s531_s3 + $0x10] sm:$0xf] %vm390_vm3, %v386_v32 }

// kernel: whyv2_forward.26
= control target key start
LH: loop header
LB: loop body
LE: loop exit
PB: predicated region body
PF: predicated region fallthrough
CT: control target
= control target key end

     0   :  { %vm147_vm0 = vcmask 1040384   ;;  %vm86_vm1 = vcmask 146432   ;;  %vm343_vm2 = vcmask 64512   ;;  %vm382_vm3 = vcmask 58368   ;;  %s849_s1 = inlined_call_operand.vmem [shape: f32[18,8], index: 1, kind: input, shape index: {}]   ;;  %s850_s0 = inlined_call_operand.vmem [shape: f32[306,18], index: 0, kind: input, shape index: {}]   ;;  %s851_s2 = inlined_call_operand.vmem [shape: f32[1,8], index: 2, kind: input, shape index: {}]   ;;  %s852_s3 = inlined_call_operand.vmem [shape: f32[306,8], index: 3, kind: output, shape index: {}]  }
   0x1   :  { %v74_v0 = vld [vmem:[%s849_s1] sm:$0xff]  ;;  %v75_v1 = vld [vmem:[%s849_s1 + $0x8] sm:$0xff]  ;;  %v76_v2 = vld [vmem:[%s849_s1 + $0x10] sm:$0x3] }
   0x2   :  { %v77_v3 = vpack.c.bf16 %v75_v1, %v74_v0  ;;  %v78_v4 = vpack.c.bf16 %v76_v2, %v76_v2  ;;  %v15_v5 = vld [vmem:[%s850_s0] sm:$0xff]  ;;  %v16_v6 = vld [vmem:[%s850_s0 + $0x8] sm:$0xff]  ;;  %v17_v11 = vld [vmem:[%s850_s0 + $0x10] sm:$0xff] }
   0x3   :  { %v35_v7 = vld [vmem:[%s850_s0 + $0xa0] sm:$0xff]  ;;  %v54_v8 = vpack.c.bf16 %v16_v6, %v15_v5  ;;  %v36_v9 = vld [vmem:[%s850_s0 + $0xa8] sm:$0xff]  ;;  %v18_v12 = vld [vmem:[%s850_s0 + $0x18] sm:$0xff] }
   0x4   :  { %431 = vmatprep.subr.bf16.mxu0 %v77_v3  ;;  %475 = vmatprep.subr.bf16.mxu1 %v77_v3  ;;  %v64_v10 = vpack.c.bf16 %v36_v9, %v35_v7  ;;  %v37_v13 = vld [vmem:[%s850_s0 + $0xb0] sm:$0xff]  ;;  %v38_v14 = vld [vmem:[%s850_s0 + $0xb8] sm:$0xff]  ;;  %v19_v15 = vld [vmem:[%s850_s0 + $0x20] sm:$0xff]  ;;  %v149_v16 = vsel %vm147_vm0, %v78_v4, 0  ;;  %v55_v20 = vpack.c.bf16 %v18_v12, %v17_v11 }
   0x5   :  { %432 = vmatpush3.bf16.msra.mxu0 %v77_v3  ;;  %477 = vmatpush3.bf16.msra.mxu1 %v77_v3  ;;  %v20_v17 = vld [vmem:[%s850_s0 + $0x28] sm:$0xff]  ;;  %v39_v18 = vld [vmem:[%s850_s0 + $0xc0] sm:$0xff]  ;;  %v65_v21 = vpack.c.bf16 %v38_v14, %v37_v13  ;;  %v21_v24 = vld [vmem:[%s850_s0 + $0x30] sm:$0xff] }
   0x6   :  { %479 = vmatprep.subr.msk.bf16.mxu0 %vm147_vm0, %v78_v4  ;;  %480 = vmatprep.subr.msk.bf16.mxu1 %vm147_vm0, %v78_v4  ;;  %v40_v19 = vld [vmem:[%s850_s0 + $0xc8] sm:$0xff]  ;;  %v56_v22 = vpack.c.bf16 %v20_v17, %v19_v15  ;;  %v22_v25 = vld [vmem:[%s850_s0 + $0x38] sm:$0xff]  ;;  %v41_v26 = vld [vmem:[%s850_s0 + $0xd0] sm:$0xff] }
   0x7   :  { %435 = vmatprep.mubr.msk.bf16.mxu0 %vm86_vm1, %v54_v8  ;;  %455 = vmatprep.mubr.msk.bf16.mxu1 %vm86_vm1, %v64_v10  ;;  %v66_v23 = vpack.c.bf16 %v40_v19, %v39_v18  ;;  %v42_v27 = vld [vmem:[%s850_s0 + $0xd8] sm:$0xff]  ;;  %v23_v28 = vld [vmem:[%s850_s0 + $0x40] sm:$0xff]  ;;  %v24_v29 = vld [vmem:[%s850_s0 + $0x48] sm:$0xff]  ;;  %v57_v32 = vpack.c.bf16 %v22_v25, %v21_v24 }
   0x8   :  { %v43_v30 = vld [vmem:[%s850_s0 + $0xe0] sm:$0xff]  ;;  %v44_v31 = vld [vmem:[%s850_s0 + $0xe8] sm:$0xff]  ;;  %v67_v33 = vpack.c.bf16 %v42_v27, %v41_v26  ;;  %v58_v34 = vpack.c.bf16 %v24_v29, %v23_v28  ;;  %v25_v36 = vld [vmem:[%s850_s0 + $0x50] sm:$0xff] }
   0x9   :  { %434 = vmatpush3.bf16.msra.mxu0 %v149_v16  ;;  %478 = vmatpush3.bf16.msra.mxu1 %v149_v16  ;;  %v68_v35 = vpack.c.bf16 %v44_v31, %v43_v30  ;;  %v26_v37 = vld [vmem:[%s850_s0 + $0x58] sm:$0xff]  ;;  %v45_v38 = vld [vmem:[%s850_s0 + $0xf0] sm:$0xff]  ;;  %v27_v40 = vld [vmem:[%s850_s0 + $0x60] sm:$0xff] }
   0xa   :  { %v46_v39 = vld [vmem:[%s850_s0 + $0xf8] sm:$0xff]  ;;  %v28_v41 = vld [vmem:[%s850_s0 + $0x68] sm:$0xff]  ;;  %v47_v42 = vld [vmem:[%s850_s0 + $0x100] sm:$0xff]  ;;  %v59_v44 = vpack.c.bf16 %v26_v37, %v25_v36 }
   0xb   :  { %v48_v43 = vld [vmem:[%s850_s0 + $0x108] sm:$0xff]  ;;  %v69_v45 = vpack.c.bf16 %v46_v39, %v45_v38  ;;  %v60_v46 = vpack.c.bf16 %v28_v41, %v27_v40  ;;  %v29_v48 = vld [vmem:[%s850_s0 + $0x70] sm:$0xff]  ;;  %v30_v49 = vld [vmem:[%s850_s0 + $0x78] sm:$0xff] }
   0xc   :  { %436 = vmatmul.mubr.msk.bf16.vlgmr.msra.gmra.mrb[0].mxu0 %vm86_vm1, %v55_v20  ;;  %456 = vmatmul.mubr.msk.bf16.vlgmr.msra.gmra.mrb[0].mxu1 %vm86_vm1, %v65_v21  ;;  %v70_v47 = vpack.c.bf16 %v48_v43, %v47_v42  ;;  %v49_v50 = vld [vmem:[%s850_s0 + $0x110] sm:$0xff]  ;;  %v50_v51 = vld [vmem:[%s850_s0 + $0x118] sm:$0xff]  ;;  %v31_v52 = vld [vmem:[%s850_s0 + $0x80] sm:$0xff]  ;;  %v61_v56 = vpack.c.bf16 %v30_v49, %v29_v48 }
   0xd   :  { %439 = vmatprep.mubr.msk.bf16.mxu0 %vm86_vm1, %v56_v22  ;;  %459 = vmatprep.mubr.msk.bf16.mxu1 %vm86_vm1, %v66_v23  ;;  %v32_v53 = vld [vmem:[%s850_s0 + $0x88] sm:$0xff]  ;;  %v51_v54 = vld [vmem:[%s850_s0 + $0x120] sm:$0xff]  ;;  %v71_v57 = vpack.c.bf16 %v50_v51, %v49_v50  ;;  %v33_v60 = vld [vmem:[%s850_s0 + $0x90] sm:$0xff] }
   0xe   :  { %v52_v55 = vld [vmem:[%s850_s0 + $0x128] sm:$0xff]  ;;  %v62_v58 = vpack.c.bf16 %v32_v53, %v31_v52  ;;  %v34_v61 = vld [vmem:[%s850_s0 + $0x98] sm:$0xff]  ;;  %v53_v62 = vld [vmem:[%s850_s0 + $0x130] sm:$0x3] }
   0xf   :  { %v72_v59 = vpack.c.bf16 %v52_v55, %v51_v54  ;;  %v63_v63 = vpack.c.bf16 %v34_v61, %v33_v60  ;;  %v73_v0 = vpack.c.bf16 %v53_v62, %v53_v62  ;;  %v653_v1 = vld [vmem:[%s851_s2] ss:$0 sm:$0xff] }
  0x14   :  { %440 = vmatmul.mubr.msk.bf16.gmra.mrb[4].mxu0 %vm86_vm1, %v57_v32  ;;  %460 = vmatmul.mubr.msk.bf16.gmra.mrb[4].mxu1 %vm86_vm1, %v67_v33 }
  0x15   :  { %443 = vmatprep.mubr.msk.bf16.mxu0 %vm86_vm1, %v58_v34  ;;  %463 = vmatprep.mubr.msk.bf16.mxu1 %vm86_vm1, %v68_v35 }
  0x1c   :  { %444 = vmatmul.mubr.msk.bf16.gmra.mrb[8].mxu0 %vm86_vm1, %v59_v44  ;;  %464 = vmatmul.mubr.msk.bf16.gmra.mrb[8].mxu1 %vm86_vm1, %v69_v45 }
  0x1d   :  { %447 = vmatprep.mubr.msk.bf16.mxu0 %vm86_vm1, %v60_v46  ;;  %467 = vmatprep.mubr.msk.bf16.mxu1 %vm86_vm1, %v70_v47 }
  0x24   :  { %448 = vmatmul.mubr.msk.bf16.gmra.mrb[12].mxu0 %vm86_vm1, %v61_v56  ;;  %468 = vmatmul.mubr.msk.bf16.gmra.mrb[12].mxu1 %vm86_vm1, %v71_v57 }
  0x25   :  { %451 = vmatprep.mubr.msk.bf16.mxu0 %vm86_vm1, %v62_v58  ;;  %471 = vmatprep.mubr.msk.bf16.mxu1 %vm86_vm1, %v72_v59 }
  0x2c   :  { %452 = vmatmul.mubr.msk.bf16.gmra.mrb[16].mxu0 %vm86_vm1, %v63_v63  ;;  %472 = vmatmul.mubr.msk.bf16.gmra.mrb[16].mxu1 %vm86_vm1, %v73_v0 }
  0xdf   :  { %v437_v2 = vpop.f32.mrb[0].mxu0  ;;  %v457_v3 = vpop.f32.mrb[0].mxu1 }
  0xe0   :  { %v194_v4 = vadd.f32 %v437_v2, %v653_v1  ;;  %v274_v5 = vadd.f32 %v457_v3, %v653_v1  ;;  %v185_v6 = vpop.f32.mrb[1].mxu0  ;;  %v265_v7 = vpop.f32.mrb[1].mxu1 }
  0xe1   :  { %v186_v8 = vadd.f32 %v653_v1, %v185_v6  ;;  %v266_v9 = vadd.f32 %v653_v1, %v265_v7  ;;  %v438_v10 = vpop.f32.mrb[2].mxu0  ;;  %v458_v11 = vpop.f32.mrb[2].mxu1 }
  0xe2   :  { %346 = vst.msk [vmem:[%s852_s3 + $0x10] sm:$0xff] %vm343_vm2, %v194_v4  ;;  %366 = vst.msk [vmem:[%s852_s3 + $0xb0] sm:$0xff] %vm343_vm2, %v274_v5  ;;  %v197_v12 = vadd.f32 %v438_v10, %v653_v1  ;;  %v277_v13 = vadd.f32 %v458_v11, %v653_v1  ;;  %v188_v14 = vpop.f32.mrb[3].mxu0  ;;  %v268_v15 = vpop.f32.mrb[3].mxu1 }
  0xe3   :  { %344 = vst.msk [vmem:[%s852_s3] sm:$0xff] %vm343_vm2, %v186_v8  ;;  %364 = vst.msk [vmem:[%s852_s3 + $0xa0] sm:$0xff] %vm343_vm2, %v266_v9  ;;  %v189_v16 = vadd.f32 %v653_v1, %v188_v14  ;;  %v269_v17 = vadd.f32 %v653_v1, %v268_v15 }
  0xe4   :  { %347 = vst.msk [vmem:[%s852_s3 + $0x18] sm:$0xff] %vm343_vm2, %v197_v12  ;;  %367 = vst.msk [vmem:[%s852_s3 + $0xb8] sm:$0xff] %vm343_vm2, %v277_v13 }
  0xe5   :  { %345 = vst.msk [vmem:[%s852_s3 + $0x8] sm:$0xff] %vm343_vm2, %v189_v16  ;;  %365 = vst.msk [vmem:[%s852_s3 + $0xa8] sm:$0xff] %vm343_vm2, %v269_v17 }
  0xe7   :  { %v441_v18 = vpop.f32.mrb[4].mxu0  ;;  %v461_v19 = vpop.f32.mrb[4].mxu1 }
  0xe8   :  { %v210_v20 = vadd.f32 %v441_v18, %v653_v1  ;;  %v290_v21 = vadd.f32 %v461_v19, %v653_v1  ;;  %v201_v22 = vpop.f32.mrb[5].mxu0  ;;  %v281_v23 = vpop.f32.mrb[5].mxu1 }
  0xe9   :  { %v202_v24 = vadd.f32 %v653_v1, %v201_v22  ;;  %v282_v25 = vadd.f32 %v653_v1, %v281_v23  ;;  %v442_v26 = vpop.f32.mrb[6].mxu0  ;;  %v462_v27 = vpop.f32.mrb[6].mxu1 }
  0xea   :  { %350 = vst.msk [vmem:[%s852_s3 + $0x30] sm:$0xff] %vm343_vm2, %v210_v20  ;;  %370 = vst.msk [vmem:[%s852_s3 + $0xd0] sm:$0xff] %vm343_vm2, %v290_v21  ;;  %v213_v28 = vadd.f32 %v442_v26, %v653_v1  ;;  %v293_v29 = vadd.f32 %v462_v27, %v653_v1  ;;  %v204_v30 = vpop.f32.mrb[7].mxu0  ;;  %v284_v31 = vpop.f32.mrb[7].mxu1 }
  0xeb   :  { %348 = vst.msk [vmem:[%s852_s3 + $0x20] sm:$0xff] %vm343_vm2, %v202_v24  ;;  %368 = vst.msk [vmem:[%s852_s3 + $0xc0] sm:$0xff] %vm343_vm2, %v282_v25  ;;  %v205_v32 = vadd.f32 %v653_v1, %v204_v30  ;;  %v285_v33 = vadd.f32 %v653_v1, %v284_v31 }
  0xec   :  { %351 = vst.msk [vmem:[%s852_s3 + $0x38] sm:$0xff] %vm343_vm2, %v213_v28  ;;  %371 = vst.msk [vmem:[%s852_s3 + $0xd8] sm:$0xff] %vm343_vm2, %v293_v29 }
  0xed   :  { %349 = vst.msk [vmem:[%s852_s3 + $0x28] sm:$0xff] %vm343_vm2, %v205_v32  ;;  %369 = vst.msk [vmem:[%s852_s3 + $0xc8] sm:$0xff] %vm343_vm2, %v285_v33 }
  0xef   :  { %v445_v34 = vpop.f32.mrb[8].mxu0  ;;  %v465_v35 = vpop.f32.mrb[8].mxu1 }
  0xf0   :  { %v226_v36 = vadd.f32 %v445_v34, %v653_v1  ;;  %v306_v37 = vadd.f32 %v465_v35, %v653_v1  ;;  %v217_v38 = vpop.f32.mrb[9].mxu0  ;;  %v297_v39 = vpop.f32.mrb[9].mxu1 }
  0xf1   :  { %v218_v40 = vadd.f32 %v653_v1, %v217_v38  ;;  %v298_v41 = vadd.f32 %v653_v1, %v297_v39  ;;  %v446_v42 = vpop.f32.mrb[10].mxu0  ;;  %v466_v43 = vpop.f32.mrb[10].mxu1 }
  0xf2   :  { %354 = vst.msk [vmem:[%s852_s3 + $0x50] sm:$0xff] %vm343_vm2, %v226_v36  ;;  %374 = vst.msk [vmem:[%s852_s3 + $0xf0] sm:$0xff] %vm343_vm2, %v306_v37  ;;  %v229_v44 = vadd.f32 %v446_v42, %v653_v1  ;;  %v309_v45 = vadd.f32 %v466_v43, %v653_v1  ;;  %v220_v46 = vpop.f32.mrb[11].mxu0  ;;  %v300_v47 = vpop.f32.mrb[11].mxu1 }
  0xf3   :  { %352 = vst.msk [vmem:[%s852_s3 + $0x40] sm:$0xff] %vm343_vm2, %v218_v40  ;;  %372 = vst.msk [vmem:[%s852_s3 + $0xe0] sm:$0xff] %vm343_vm2, %v298_v41  ;;  %v221_v48 = vadd.f32 %v653_v1, %v220_v46  ;;  %v301_v49 = vadd.f32 %v653_v1, %v300_v47 }
  0xf4   :  { %355 = vst.msk [vmem:[%s852_s3 + $0x58] sm:$0xff] %vm343_vm2, %v229_v44  ;;  %375 = vst.msk [vmem:[%s852_s3 + $0xf8] sm:$0xff] %vm343_vm2, %v309_v45 }
  0xf5   :  { %353 = vst.msk [vmem:[%s852_s3 + $0x48] sm:$0xff] %vm343_vm2, %v221_v48  ;;  %373 = vst.msk [vmem:[%s852_s3 + $0xe8] sm:$0xff] %vm343_vm2, %v301_v49 }
  0xf7   :  { %v449_v50 = vpop.f32.mrb[12].mxu0  ;;  %v469_v51 = vpop.f32.mrb[12].mxu1 }
  0xf8   :  { %v242_v52 = vadd.f32 %v449_v50, %v653_v1  ;;  %v322_v53 = vadd.f32 %v469_v51, %v653_v1  ;;  %v233_v54 = vpop.f32.mrb[13].mxu0  ;;  %v313_v55 = vpop.f32.mrb[13].mxu1 }
  0xf9   :  { %v234_v56 = vadd.f32 %v653_v1, %v233_v54  ;;  %v314_v57 = vadd.f32 %v653_v1, %v313_v55  ;;  %v450_v58 = vpop.f32.mrb[14].mxu0  ;;  %v470_v59 = vpop.f32.mrb[14].mxu1 }
  0xfa   :  { %358 = vst.msk [vmem:[%s852_s3 + $0x70] sm:$0xff] %vm343_vm2, %v242_v52  ;;  %378 = vst.msk [vmem:[%s852_s3 + $0x110] sm:$0xff] %vm343_vm2, %v322_v53  ;;  %v245_v60 = vadd.f32 %v450_v58, %v653_v1  ;;  %v325_v61 = vadd.f32 %v470_v59, %v653_v1  ;;  %v236_v62 = vpop.f32.mrb[15].mxu0  ;;  %v316_v63 = vpop.f32.mrb[15].mxu1 }
  0xfb   :  { %356 = vst.msk [vmem:[%s852_s3 + $0x60] sm:$0xff] %vm343_vm2, %v234_v56  ;;  %376 = vst.msk [vmem:[%s852_s3 + $0x100] sm:$0xff] %vm343_vm2, %v314_v57  ;;  %v237_v0 = vadd.f32 %v653_v1, %v236_v62  ;;  %v317_v2 = vadd.f32 %v653_v1, %v316_v63 }
  0xfc   :  { %359 = vst.msk [vmem:[%s852_s3 + $0x78] sm:$0xff] %vm343_vm2, %v245_v60  ;;  %379 = vst.msk [vmem:[%s852_s3 + $0x118] sm:$0xff] %vm343_vm2, %v325_v61 }
  0xfd   :  { %357 = vst.msk [vmem:[%s852_s3 + $0x68] sm:$0xff] %vm343_vm2, %v237_v0  ;;  %377 = vst.msk [vmem:[%s852_s3 + $0x108] sm:$0xff] %vm343_vm2, %v317_v2 }
  0xff   :  { %v453_v3 = vpop.f32.mrb[16].mxu0  ;;  %v473_v4 = vpop.f32.mrb[16].mxu1 }
 0x100   :  { %v258_v5 = vadd.f32 %v453_v3, %v653_v1  ;;  %v338_v6 = vadd.f32 %v473_v4, %v653_v1  ;;  %v249_v7 = vpop.f32.mrb[17].mxu0  ;;  %v329_v8 = vpop.f32.mrb[17].mxu1 }
 0x101   :  { %v250_v9 = vadd.f32 %v653_v1, %v249_v7  ;;  %v330_v10 = vadd.f32 %v653_v1, %v329_v8  ;;  %v454_v11 = vpop.f32.mrb[18].mxu0  ;;  %v474_v12 = vpop.f32.mrb[18].mxu1 }
 0x102   :  { %362 = vst.msk [vmem:[%s852_s3 + $0x90] sm:$0xff] %vm343_vm2, %v258_v5  ;;  %v261_v13 = vadd.f32 %v454_v11, %v653_v1  ;;  %v252_v14 = vpop.f32.mrb[19].mxu0  ;;  %v332_v15 = vpop.f32.mrb[19].mxu1 }
 0x103   :  { %383 = vst.msk [vmem:[%s852_s3 + $0x130] sm:$0x3] %vm382_vm3, %v338_v6  ;;  %v253_v16 = vadd.f32 %v653_v1, %v252_v14  ;;  %v333_v17 = vadd.f32 %v653_v1, %v332_v15 }
 0x104   :  { %360 = vst.msk [vmem:[%s852_s3 + $0x80] sm:$0xff] %vm343_vm2, %v250_v9  ;;  %380 = vst.msk [vmem:[%s852_s3 + $0x120] sm:$0xff] %vm343_vm2, %v330_v10 }
 0x105   :  { %363 = vst.msk [vmem:[%s852_s3 + $0x98] sm:$0xff] %vm343_vm2, %v261_v13  ;;  %361 = vst.msk [vmem:[%s852_s3 + $0x88] sm:$0xff] %vm343_vm2, %v253_v16 }
 0x106   :  { %381 = vst.msk [vmem:[%s852_s3 + $0x128] sm:$0xff] %vm343_vm2, %v333_v17 }

// kernel: whyv2_forward.28
= control target key start
LH: loop header
LB: loop body
LE: loop exit
PB: predicated region body
PF: predicated region fallthrough
CT: control target
= control target key end

     0   :  { %vm53_vm0 = vcmask 64512   ;;  %vm168_vm1 = vcmask 58368   ;;  %s1588_s0 = inlined_call_operand.vmem [shape: f32[306,8], index: 0, kind: input, shape index: {}]   ;;  %s1589_s1 = inlined_call_operand.vmem [shape: f32[1,8], index: 1, kind: input, shape index: {}]   ;;  %s1590_s2 = inlined_call_operand.vmem [shape: f32[1,8], index: 2, kind: input, shape index: {}]   ;;  %s1591_s3 = inlined_call_operand.vmem [shape: f32[306,8], index: 3, kind: output, shape index: {}]  }
   0x1   :  { %v801_v0 = vld [vmem:[%s1588_s0] sm:$0xff]  ;;  %v806_v1 = vld [vmem:[%s1588_s0 + $0x10] sm:$0xff]  ;;  %v811_v2 = vld [vmem:[%s1588_s0 + $0x8] sm:$0xff] }
   0x2   :  { %v54_v3 = vsel %vm53_vm0, %v801_v0, 0.0  ;;  %v60_v4 = vsel %vm53_vm0, %v806_v1, 0.0  ;;  %v820_v5 = vld [vmem:[%s1588_s0 + $0x18] sm:$0xff]  ;;  %v57_v6 = vsel %vm53_vm0, %v811_v2, 0.0  ;;  %v829_v8 = vld [vmem:[%s1588_s0 + $0x20] sm:$0xff]  ;;  %v834_v9 = vld [vmem:[%s1588_s0 + $0x28] sm:$0xff] }
   0x3   :  { %55 = vadd.xlane.f32.xlu0 %v54_v3  ;;  %61 = vadd.xlane.f32.xlu1 %v60_v4  ;;  %v63_v7 = vsel %vm53_vm0, %v820_v5, 0.0  ;;  %v66_v10 = vsel %vm53_vm0, %v829_v8, 0.0  ;;  %v69_v11 = vsel %vm53_vm0, %v834_v9, 0.0  ;;  %v843_v12 = vld [vmem:[%s1588_s0 + $0x30] sm:$0xff]  ;;  %v848_v13 = vld [vmem:[%s1588_s0 + $0x38] sm:$0xff]  ;;  %v857_v16 = vld [vmem:[%s1588_s0 + $0x40] sm:$0xff] }
   0x4   :  { %v72_v14 = vsel %vm53_vm0, %v843_v12, 0.0  ;;  %v75_v15 = vsel %vm53_vm0, %v848_v13, 0.0  ;;  %v862_v17 = vld [vmem:[%s1588_s0 + $0x48] sm:$0xff]  ;;  %v78_v18 = vsel %vm53_vm0, %v857_v16, 0.0  ;;  %v871_v20 = vld [vmem:[%s1588_s0 + $0x50] sm:$0xff]  ;;  %v876_v21 = vld [vmem:[%s1588_s0 + $0x58] sm:$0xff] }
   0x5   :  { %v81_v19 = vsel %vm53_vm0, %v862_v17, 0.0  ;;  %v84_v22 = vsel %vm53_vm0, %v871_v20, 0.0  ;;  %v87_v23 = vsel %vm53_vm0, %v876_v21, 0.0  ;;  %v885_v24 = vld [vmem:[%s1588_s0 + $0x60] sm:$0xff]  ;;  %v890_v25 = vld [vmem:[%s1588_s0 + $0x68] sm:$0xff]  ;;  %v899_v28 = vld [vmem:[%s1588_s0 + $0x70] sm:$0xff] }
   0x6   :  { %v90_v26 = vsel %vm53_vm0, %v885_v24, 0.0  ;;  %v93_v27 = vsel %vm53_vm0, %v890_v25, 0.0  ;;  %v904_v29 = vld [vmem:[%s1588_s0 + $0x78] sm:$0xff]  ;;  %v96_v30 = vsel %vm53_vm0, %v899_v28, 0.0  ;;  %v913_v32 = vld [vmem:[%s1588_s0 + $0x80] sm:$0xff]  ;;  %v918_v33 = vld [vmem:[%s1588_s0 + $0x88] sm:$0xff] }
   0x7   :  { %58 = vadd.xlane.f32.xlu0 %v57_v6  ;;  %64 = vadd.xlane.f32.xlu1 %v63_v7  ;;  %v99_v31 = vsel %vm53_vm0, %v904_v29, 0.0  ;;  %v102_v34 = vsel %vm53_vm0, %v913_v32, 0.0  ;;  %v105_v35 = vsel %vm53_vm0, %v918_v33, 0.0  ;;  %v927_v36 = vld [vmem:[%s1588_s0 + $0x90] sm:$0xff]  ;;  %v932_v37 = vld [vmem:[%s1588_s0 + $0x98] sm:$0xff]  ;;  %v941_v40 = vld [vmem:[%s1588_s0 + $0xa0] sm:$0xff] }
   0x8   :  { %v108_v38 = vsel %vm53_vm0, %v927_v36, 0.0  ;;  %v111_v39 = vsel %vm53_vm0, %v932_v37, 0.0  ;;  %v946_v41 = vld [vmem:[%s1588_s0 + $0xa8] sm:$0xff]  ;;  %v114_v42 = vsel %vm53_vm0, %v941_v40, 0.0  ;;  %v955_v44 = vld [vmem:[%s1588_s0 + $0xb0] sm:$0xff]  ;;  %v960_v45 = vld [vmem:[%s1588_s0 + $0xb8] sm:$0xff] }
   0x9   :  { %v117_v43 = vsel %vm53_vm0, %v946_v41, 0.0  ;;  %v120_v46 = vsel %vm53_vm0, %v955_v44, 0.0  ;;  %v123_v47 = vsel %vm53_vm0, %v960_v45, 0.0  ;;  %v969_v48 = vld [vmem:[%s1588_s0 + $0xc0] sm:$0xff]  ;;  %v974_v49 = vld [vmem:[%s1588_s0 + $0xc8] sm:$0xff]  ;;  %v983_v52 = vld [vmem:[%s1588_s0 + $0xd0] sm:$0xff] }
   0xa   :  { %v126_v50 = vsel %vm53_vm0, %v969_v48, 0.0  ;;  %v129_v51 = vsel %vm53_vm0, %v974_v49, 0.0  ;;  %v988_v53 = vld [vmem:[%s1588_s0 + $0xd8] sm:$0xff]  ;;  %v132_v54 = vsel %vm53_vm0, %v983_v52, 0.0  ;;  %v997_v56 = vld [vmem:[%s1588_s0 + $0xe0] sm:$0xff]  ;;  %v1002_v57 = vld [vmem:[%s1588_s0 + $0xe8] sm:$0xff] }
   0xb   :  { %67 = vadd.xlane.f32.xlu0 %v66_v10  ;;  %70 = vadd.xlane.f32.xlu1 %v69_v11  ;;  %v135_v55 = vsel %vm53_vm0, %v988_v53, 0.0  ;;  %v138_v58 = vsel %vm53_vm0, %v997_v56, 0.0  ;;  %v141_v59 = vsel %vm53_vm0, %v1002_v57, 0.0  ;;  %v1011_v60 = vld [vmem:[%s1588_s0 + $0xf0] sm:$0xff]  ;;  %v1016_v61 = vld [vmem:[%s1588_s0 + $0xf8] sm:$0xff]  ;;  %v1025_v3 = vld [vmem:[%s1588_s0 + $0x100] sm:$0xff] }
   0xc   :  { %v144_v62 = vsel %vm53_vm0, %v1011_v60, 0.0  ;;  %v147_v63 = vsel %vm53_vm0, %v1016_v61, 0.0  ;;  %v1030_v4 = vld [vmem:[%s1588_s0 + $0x108] sm:$0xff]  ;;  %v150_v6 = vsel %vm53_vm0, %v1025_v3, 0.0  ;;  %v1039_v10 = vld [vmem:[%s1588_s0 + $0x110] sm:$0xff]  ;;  %v1044_v11 = vld [vmem:[%s1588_s0 + $0x118] sm:$0xff] }
   0xd   :  { %v153_v7 = vsel %vm53_vm0, %v1030_v4, 0.0 }
   0xf   :  { %73 = vadd.xlane.f32.xlu0 %v72_v14  ;;  %76 = vadd.xlane.f32.xlu1 %v75_v15  ;;  %v156_v14 = vsel %vm53_vm0, %v1039_v10, 0.0  ;;  %v159_v15 = vsel %vm53_vm0, %v1044_v11, 0.0 }
  0x13   :  { %79 = vadd.xlane.f32.xlu0 %v78_v18  ;;  %82 = vadd.xlane.f32.xlu1 %v81_v19  ;;  %v1053_v18 = vld [vmem:[%s1588_s0 + $0x120] sm:$0xff]  ;;  %v1058_v19 = vld [vmem:[%s1588_s0 + $0x128] sm:$0xff] }
  0x17   :  { %85 = vadd.xlane.f32.xlu0 %v84_v22  ;;  %88 = vadd.xlane.f32.xlu1 %v87_v23  ;;  %v162_v22 = vsel %vm53_vm0, %v1053_v18, 0.0  ;;  %v165_v23 = vsel %vm53_vm0, %v1058_v19, 0.0 }
  0x1b   :  { %91 = vadd.xlane.f32.xlu0 %v90_v26  ;;  %94 = vadd.xlane.f32.xlu1 %v93_v27  ;;  %v1067_v26 = vld [vmem:[%s1588_s0 + $0x130] sm:$0x3] }
  0x1c   :  { %v169_v27 = vsel %vm168_vm1, %v1067_v26, 0.0 }
  0x1f   :  { %97 = vadd.xlane.f32.xlu0 %v96_v30  ;;  %100 = vadd.xlane.f32.xlu1 %v99_v31 }
  0x23   :  { %103 = vadd.xlane.f32.xlu0 %v102_v34  ;;  %106 = vadd.xlane.f32.xlu1 %v105_v35 }
  0x27   :  { %109 = vadd.xlane.f32.xlu0 %v108_v38  ;;  %112 = vadd.xlane.f32.xlu1 %v111_v39 }
  0x2b   :  { %115 = vadd.xlane.f32.xlu0 %v114_v42  ;;  %118 = vadd.xlane.f32.xlu1 %v117_v43 }
  0x2f   :  { %121 = vadd.xlane.f32.xlu0 %v120_v46  ;;  %124 = vadd.xlane.f32.xlu1 %v123_v47 }
  0x33   :  { %127 = vadd.xlane.f32.xlu0 %v126_v50  ;;  %130 = vadd.xlane.f32.xlu1 %v129_v51 }
  0x37   :  { %133 = vadd.xlane.f32.xlu0 %v132_v54  ;;  %136 = vadd.xlane.f32.xlu1 %v135_v55 }
  0x3b   :  { %139 = vadd.xlane.f32.xlu0 %v138_v58  ;;  %142 = vadd.xlane.f32.xlu1 %v141_v59 }
  0x3f   :  { %145 = vadd.xlane.f32.xlu0 %v144_v62  ;;  %148 = vadd.xlane.f32.xlu1 %v147_v63 }
  0x43   :  { %151 = vadd.xlane.f32.xlu0 %v150_v6  ;;  %154 = vadd.xlane.f32.xlu1 %v153_v7 }
  0x47   :  { %157 = vadd.xlane.f32.xlu0 %v156_v14  ;;  %160 = vadd.xlane.f32.xlu1 %v159_v15 }
  0x4b   :  { %163 = vadd.xlane.f32.xlu0 %v162_v22  ;;  %166 = vadd.xlane.f32.xlu1 %v165_v23 }
  0x4f   :  { %170 = vadd.xlane.f32.xlu0 %v169_v27 }
  0x90   :  { %v56_v30 = vpop.xlane.xlu0 %55  ;;  %v62_v31 = vpop.xlane.xlu1 %61 }
  0x91   :  { %v173_v34 = vmul.f32 0.125, %v56_v30  ;;  %v175_v35 = vmul.f32 0.125, %v62_v31 }
  0x93   :  { %v1072_v38 = vsub.f32 %v801_v0, %v173_v34  ;;  %v1075_v39 = vsub.f32 %v806_v1, %v175_v35 }
  0x94   :  { %v59_v42 = vpop.xlane.xlu0 %58  ;;  %v65_v43 = vpop.xlane.xlu1 %64 }
  0x95   :  { %v174_v46 = vmul.f32 0.125, %v59_v42  ;;  %v176_v47 = vmul.f32 0.125, %v65_v43  ;;  %v251_v50 = vmul.f32 %v1072_v38, %v1072_v38  ;;  %v253_v51 = vmul.f32 %v1075_v39, %v1075_v39 }
  0x97   :  { %v1082_v54 = vsub.f32 %v811_v2, %v174_v46  ;;  %v1085_v55 = vsub.f32 %v820_v5, %v176_v47  ;;  %v290_v0 = vsel %vm53_vm0, %v251_v50, 0.0  ;;  %v296_v59 = vsel %vm53_vm0, %v253_v51, 0.0 }
  0x98   :  { %291 = vadd.xlane.f32.xlu1 %v290_v0  ;;  %v68_v1 = vpop.xlane.xlu0 %67  ;;  %v71_v58 = vpop.xlane.xlu1 %70 }
  0x99   :  { %v177_v62 = vmul.f32 0.125, %v68_v1  ;;  %v178_v63 = vmul.f32 0.125, %v71_v58  ;;  %v252_v6 = vmul.f32 %v1082_v54, %v1082_v54  ;;  %v254_v7 = vmul.f32 %v1085_v55, %v1085_v55 }
  0x9b   :  { %v1094_v2 = vsub.f32 %v829_v8, %v177_v62  ;;  %v1097_v5 = vsub.f32 %v834_v9, %v178_v63  ;;  %v293_v14 = vsel %vm53_vm0, %v252_v6, 0.0  ;;  %v299_v23 = vsel %vm53_vm0, %v254_v7, 0.0 }
  0x9c   :  { %297 = vadd.xlane.f32.xlu1 %v296_v59  ;;  %294 = vadd.xlane.f32.xlu0 %v293_v14  ;;  %v74_v15 = vpop.xlane.xlu0 %73  ;;  %v77_v22 = vpop.xlane.xlu1 %76 }
  0x9d   :  { %v179_v27 = vmul.f32 0.125, %v74_v15  ;;  %v180_v30 = vmul.f32 0.125, %v77_v22  ;;  %v255_v31 = vmul.f32 %v1094_v2, %v1094_v2  ;;  %v256_v8 = vmul.f32 %v1097_v5, %v1097_v5 }
  0x9f   :  { %v1106_v34 = vsub.f32 %v843_v12, %v179_v27  ;;  %v1109_v9 = vsub.f32 %v848_v13, %v180_v30  ;;  %v302_v35 = vsel %vm53_vm0, %v255_v31, 0.0  ;;  %v305_v46 = vsel %vm53_vm0, %v256_v8, 0.0 }
  0xa0   :  { %300 = vadd.xlane.f32.xlu0 %v299_v23  ;;  %303 = vadd.xlane.f32.xlu1 %v302_v35  ;;  %v80_v42 = vpop.xlane.xlu0 %79  ;;  %v83_v43 = vpop.xlane.xlu1 %82 }
  0xa1   :  { %v181_v47 = vmul.f32 0.125, %v80_v42  ;;  %v182_v50 = vmul.f32 0.125, %v83_v43  ;;  %v257_v51 = vmul.f32 %v1106_v34, %v1106_v34  ;;  %v258_v12 = vmul.f32 %v1109_v9, %v1109_v9 }
  0xa3   :  { %v1118_v0 = vsub.f32 %v857_v16, %v181_v47  ;;  %v1121_v13 = vsub.f32 %v862_v17, %v182_v50  ;;  %v308_v1 = vsel %vm53_vm0, %v257_v51, 0.0  ;;  %v311_v62 = vsel %vm53_vm0, %v258_v12, 0.0 }
  0xa4   :  { %306 = vadd.xlane.f32.xlu0 %v305_v46  ;;  %309 = vadd.xlane.f32.xlu1 %v308_v1  ;;  %v86_v58 = vpop.xlane.xlu0 %85  ;;  %v89_v59 = vpop.xlane.xlu1 %88 }
  0xa5   :  { %v183_v63 = vmul.f32 0.125, %v86_v58  ;;  %v184_v6 = vmul.f32 0.125, %v89_v59  ;;  %v259_v7 = vmul.f32 %v1118_v0, %v1118_v0  ;;  %v260_v16 = vmul.f32 %v1121_v13, %v1121_v13 }
  0xa7   :  { %v1130_v14 = vsub.f32 %v871_v20, %v183_v63  ;;  %v1133_v17 = vsub.f32 %v876_v21, %v184_v6  ;;  %v314_v15 = vsel %vm53_vm0, %v259_v7, 0.0  ;;  %v317_v27 = vsel %vm53_vm0, %v260_v16, 0.0 }
  0xa8   :  { %312 = vadd.xlane.f32.xlu0 %v311_v62  ;;  %315 = vadd.xlane.f32.xlu1 %v314_v15  ;;  %v92_v22 = vpop.xlane.xlu0 %91  ;;  %v95_v23 = vpop.xlane.xlu1 %94 }
  0xa9   :  { %v185_v30 = vmul.f32 0.125, %v92_v22  ;;  %v186_v31 = vmul.f32 0.125, %v95_v23  ;;  %v261_v8 = vmul.f32 %v1130_v14, %v1130_v14  ;;  %v262_v20 = vmul.f32 %v1133_v17, %v1133_v17 }
  0xab   :  { %v1142_v35 = vsub.f32 %v885_v24, %v185_v30  ;;  %v1145_v21 = vsub.f32 %v890_v25, %v186_v31  ;;  %v320_v42 = vsel %vm53_vm0, %v261_v8, 0.0  ;;  %v323_v47 = vsel %vm53_vm0, %v262_v20, 0.0 }
  0xac   :  { %318 = vadd.xlane.f32.xlu0 %v317_v27  ;;  %321 = vadd.xlane.f32.xlu1 %v320_v42  ;;  %v98_v43 = vpop.xlane.xlu0 %97  ;;  %v101_v46 = vpop.xlane.xlu1 %100 }
  0xad   :  { %v187_v50 = vmul.f32 0.125, %v98_v43  ;;  %v188_v51 = vmul.f32 0.125, %v101_v46  ;;  %v263_v12 = vmul.f32 %v1142_v35, %v1142_v35  ;;  %v264_v24 = vmul.f32 %v1145_v21, %v1145_v21 }
  0xaf   :  { %v1154_v1 = vsub.f32 %v899_v28, %v187_v50  ;;  %v1157_v25 = vsub.f32 %v904_v29, %v188_v51  ;;  %v326_v58 = vsel %vm53_vm0, %v263_v12, 0.0  ;;  %v329_v63 = vsel %vm53_vm0, %v264_v24, 0.0 }
  0xb0   :  { %324 = vadd.xlane.f32.xlu0 %v323_v47  ;;  %327 = vadd.xlane.f32.xlu1 %v326_v58  ;;  %v104_v59 = vpop.xlane.xlu0 %103  ;;  %v107_v62 = vpop.xlane.xlu1 %106 }
  0xb1   :  { %v189_v6 = vmul.f32 0.125, %v104_v59  ;;  %v190_v7 = vmul.f32 0.125, %v107_v62  ;;  %v265_v16 = vmul.f32 %v1154_v1, %v1154_v1  ;;  %v266_v28 = vmul.f32 %v1157_v25, %v1157_v25 }
  0xb3   :  { %v1166_v15 = vsub.f32 %v913_v32, %v189_v6  ;;  %v1169_v29 = vsub.f32 %v918_v33, %v190_v7  ;;  %v332_v22 = vsel %vm53_vm0, %v265_v16, 0.0  ;;  %v335_v30 = vsel %vm53_vm0, %v266_v28, 0.0 }
  0xb4   :  { %330 = vadd.xlane.f32.xlu0 %v329_v63  ;;  %333 = vadd.xlane.f32.xlu1 %v332_v22  ;;  %v110_v23 = vpop.xlane.xlu0 %109  ;;  %v113_v27 = vpop.xlane.xlu1 %112 }
  0xb5   :  { %v191_v31 = vmul.f32 0.125, %v110_v23  ;;  %v192_v8 = vmul.f32 0.125, %v113_v27  ;;  %v267_v20 = vmul.f32 %v1166_v15, %v1166_v15  ;;  %v268_v32 = vmul.f32 %v1169_v29, %v1169_v29 }
  0xb7   :  { %v1178_v42 = vsub.f32 %v927_v36, %v191_v31  ;;  %v1181_v33 = vsub.f32 %v932_v37, %v192_v8  ;;  %v338_v43 = vsel %vm53_vm0, %v267_v20, 0.0  ;;  %v341_v50 = vsel %vm53_vm0, %v268_v32, 0.0 }
  0xb8   :  { %336 = vadd.xlane.f32.xlu0 %v335_v30  ;;  %339 = vadd.xlane.f32.xlu1 %v338_v43  ;;  %v116_v46 = vpop.xlane.xlu0 %115  ;;  %v119_v47 = vpop.xlane.xlu1 %118 }
  0xb9   :  { %v193_v51 = vmul.f32 0.125, %v116_v46  ;;  %v194_v12 = vmul.f32 0.125, %v119_v47  ;;  %v269_v24 = vmul.f32 %v1178_v42, %v1178_v42  ;;  %v270_v36 = vmul.f32 %v1181_v33, %v1181_v33 }
  0xbb   :  { %v1190_v58 = vsub.f32 %v941_v40, %v193_v51  ;;  %v1193_v37 = vsub.f32 %v946_v41, %v194_v12  ;;  %v344_v59 = vsel %vm53_vm0, %v269_v24, 0.0  ;;  %v347_v6 = vsel %vm53_vm0, %v270_v36, 0.0 }
  0xbc   :  { %342 = vadd.xlane.f32.xlu0 %v341_v50  ;;  %345 = vadd.xlane.f32.xlu1 %v344_v59  ;;  %v122_v62 = vpop.xlane.xlu0 %121  ;;  %v125_v63 = vpop.xlane.xlu1 %124 }
  0xbd   :  { %v195_v7 = vmul.f32 0.125, %v122_v62  ;;  %v196_v16 = vmul.f32 0.125, %v125_v63  ;;  %v271_v28 = vmul.f32 %v1190_v58, %v1190_v58  ;;  %v272_v40 = vmul.f32 %v1193_v37, %v1193_v37 }
  0xbf   :  { %v1202_v22 = vsub.f32 %v955_v44, %v195_v7  ;;  %v1205_v41 = vsub.f32 %v960_v45, %v196_v16  ;;  %v350_v23 = vsel %vm53_vm0, %v271_v28, 0.0  ;;  %v353_v31 = vsel %vm53_vm0, %v272_v40, 0.0 }
  0xc0   :  { %348 = vadd.xlane.f32.xlu0 %v347_v6  ;;  %351 = vadd.xlane.f32.xlu1 %v350_v23  ;;  %v128_v27 = vpop.xlane.xlu0 %127  ;;  %v131_v30 = vpop.xlane.xlu1 %130 }
  0xc1   :  { %v197_v8 = vmul.f32 0.125, %v128_v27  ;;  %v198_v20 = vmul.f32 0.125, %v131_v30  ;;  %v273_v32 = vmul.f32 %v1202_v22, %v1202_v22  ;;  %v274_v44 = vmul.f32 %v1205_v41, %v1205_v41 }
  0xc3   :  { %v1214_v43 = vsub.f32 %v969_v48, %v197_v8  ;;  %v1217_v45 = vsub.f32 %v974_v49, %v198_v20  ;;  %v356_v46 = vsel %vm53_vm0, %v273_v32, 0.0  ;;  %v359_v51 = vsel %vm53_vm0, %v274_v44, 0.0 }
  0xc4   :  { %354 = vadd.xlane.f32.xlu0 %v353_v31  ;;  %357 = vadd.xlane.f32.xlu1 %v356_v46  ;;  %v134_v47 = vpop.xlane.xlu0 %133  ;;  %v137_v50 = vpop.xlane.xlu1 %136 }
  0xc5   :  { %v199_v12 = vmul.f32 0.125, %v134_v47  ;;  %v200_v24 = vmul.f32 0.125, %v137_v50  ;;  %v275_v36 = vmul.f32 %v1214_v43, %v1214_v43  ;;  %v276_v48 = vmul.f32 %v1217_v45, %v1217_v45 }
  0xc7   :  { %v1226_v59 = vsub.f32 %v983_v52, %v199_v12  ;;  %v1229_v49 = vsub.f32 %v988_v53, %v200_v24  ;;  %v362_v62 = vsel %vm53_vm0, %v275_v36, 0.0  ;;  %v365_v7 = vsel %vm53_vm0, %v276_v48, 0.0 }
  0xc8   :  { %360 = vadd.xlane.f32.xlu0 %v359_v51  ;;  %363 = vadd.xlane.f32.xlu1 %v362_v62  ;;  %v140_v63 = vpop.xlane.xlu0 %139  ;;  %v143_v6 = vpop.xlane.xlu1 %142 }
  0xc9   :  { %v201_v16 = vmul.f32 0.125, %v140_v63  ;;  %v202_v28 = vmul.f32 0.125, %v143_v6  ;;  %v277_v40 = vmul.f32 %v1226_v59, %v1226_v59  ;;  %v278_v52 = vmul.f32 %v1229_v49, %v1229_v49 }
  0xcb   :  { %v1238_v23 = vsub.f32 %v997_v56, %v201_v16  ;;  %v1241_v53 = vsub.f32 %v1002_v57, %v202_v28  ;;  %v368_v27 = vsel %vm53_vm0, %v277_v40, 0.0  ;;  %v371_v8 = vsel %vm53_vm0, %v278_v52, 0.0 }
  0xcc   :  { %366 = vadd.xlane.f32.xlu0 %v365_v7  ;;  %369 = vadd.xlane.f32.xlu1 %v368_v27  ;;  %v146_v30 = vpop.xlane.xlu0 %145  ;;  %v149_v31 = vpop.xlane.xlu1 %148 }
  0xcd   :  { %v203_v20 = vmul.f32 0.125, %v146_v30  ;;  %v204_v32 = vmul.f32 0.125, %v149_v31  ;;  %v279_v44 = vmul.f32 %v1238_v23, %v1238_v23  ;;  %v280_v56 = vmul.f32 %v1241_v53, %v1241_v53 }
  0xcf   :  { %v1250_v46 = vsub.f32 %v1011_v60, %v203_v20  ;;  %v1253_v57 = vsub.f32 %v1016_v61, %v204_v32  ;;  %v374_v47 = vsel %vm53_vm0, %v279_v44, 0.0  ;;  %v377_v12 = vsel %vm53_vm0, %v280_v56, 0.0 }
  0xd0   :  { %372 = vadd.xlane.f32.xlu0 %v371_v8  ;;  %375 = vadd.xlane.f32.xlu1 %v374_v47  ;;  %v152_v50 = vpop.xlane.xlu0 %151  ;;  %v155_v51 = vpop.xlane.xlu1 %154 }
  0xd1   :  { %v205_v24 = vmul.f32 0.125, %v152_v50  ;;  %v206_v36 = vmul.f32 0.125, %v155_v51  ;;  %v281_v48 = vmul.f32 %v1250_v46, %v1250_v46  ;;  %v282_v60 = vmul.f32 %v1253_v57, %v1253_v57 }
  0xd3   :  { %v1262_v62 = vsub.f32 %v1025_v3, %v205_v24  ;;  %v1265_v61 = vsub.f32 %v1030_v4, %v206_v36  ;;  %v380_v63 = vsel %vm53_vm0, %v281_v48, 0.0  ;;  %v383_v16 = vsel %vm53_vm0, %v282_v60, 0.0 }
  0xd4   :  { %378 = vadd.xlane.f32.xlu0 %v377_v12  ;;  %381 = vadd.xlane.f32.xlu1 %v380_v63  ;;  %v158_v6 = vpop.xlane.xlu0 %157  ;;  %v161_v7 = vpop.xlane.xlu1 %160 }
  0xd5   :  { %v207_v28 = vmul.f32 0.125, %v158_v6  ;;  %v208_v40 = vmul.f32 0.125, %v161_v7  ;;  %v283_v52 = vmul.f32 %v1262_v62, %v1262_v62  ;;  %v284_v3 = vmul.f32 %v1265_v61, %v1265_v61 }
  0xd7   :  { %v1274_v27 = vsub.f32 %v1039_v10, %v207_v28  ;;  %v1277_v4 = vsub.f32 %v1044_v11, %v208_v40  ;;  %v386_v30 = vsel %vm53_vm0, %v283_v52, 0.0  ;;  %v389_v20 = vsel %vm53_vm0, %v284_v3, 0.0 }
  0xd8   :  { %384 = vadd.xlane.f32.xlu0 %v383_v16  ;;  %387 = vadd.xlane.f32.xlu1 %v386_v30  ;;  %v164_v31 = vpop.xlane.xlu0 %163  ;;  %v167_v8 = vpop.xlane.xlu1 %166 }
  0xd9   :  { %v209_v32 = vmul.f32 0.125, %v164_v31  ;;  %v210_v44 = vmul.f32 0.125, %v167_v8  ;;  %v285_v56 = vmul.f32 %v1274_v27, %v1274_v27  ;;  %v286_v10 = vmul.f32 %v1277_v4, %v1277_v4 }
  0xdb   :  { %v1286_v47 = vsub.f32 %v1053_v18, %v209_v32  ;;  %v1289_v11 = vsub.f32 %v1058_v19, %v210_v44  ;;  %v392_v50 = vsel %vm53_vm0, %v285_v56, 0.0  ;;  %v395_v24 = vsel %vm53_vm0, %v286_v10, 0.0 }
  0xdc   :  { %390 = vadd.xlane.f32.xlu0 %v389_v20  ;;  %393 = vadd.xlane.f32.xlu1 %v392_v50  ;;  %v171_v51 = vpop.xlane.xlu0 %170 }
  0xdd   :  { %v211_v12 = vmul.f32 0.125, %v171_v51  ;;  %v287_v36 = vmul.f32 %v1286_v47, %v1286_v47  ;;  %v288_v48 = vmul.f32 %v1289_v11, %v1289_v11 }
  0xdf   :  { %v1298_v18 = vsub.f32 %v1067_v26, %v211_v12  ;;  %v398_v19 = vsel %vm53_vm0, %v287_v36, 0.0  ;;  %v401_v60 = vsel %vm53_vm0, %v288_v48, 0.0  ;;  %v1308_v48 = vld [vmem:[%s1589_s1] ss:$0 sm:$0xff] }
  0xe0   :  { %396 = vadd.xlane.f32.xlu0 %v395_v24  ;;  %399 = vadd.xlane.f32.xlu1 %v398_v19 }
  0xe1   :  { %v289_v63 = vmul.f32 %v1298_v18, %v1298_v18 }
  0xe3   :  { %v404_v6 = vsel %vm168_vm1, %v289_v63, 0.0 }
  0xe4   :  { %402 = vadd.xlane.f32.xlu0 %v401_v60  ;;  %405 = vadd.xlane.f32.xlu1 %v404_v6 }
 0x125   :  { %v292_v7 = vpop.xlane.xlu1 %291 }
 0x126   :  { %v407_v16 = vmul.f32 0.125, %v292_v7 }
 0x128   :  { %v446_v28 = vadd.f32 1e-05, %v407_v16  ;;  %v1314_v16 = vld [vmem:[%s1590_s2] ss:$0 sm:$0xff] }
 0x129   :  { %v298_v40 = vpop.xlane.xlu1 %297  ;;  %v295_v52 = vpop.xlane.xlu0 %294 }
 0x12a   :  { %700 = vrsqrt.f32 %v446_v28  ;;  %v409_v26 = vmul.f32 0.125, %v298_v40  ;;  %v408_v3 = vmul.f32 0.125, %v295_v52 }
 0x12c   :  { %v448_v30 = vadd.f32 1e-05, %v409_v26  ;;  %v447_v31 = vadd.f32 1e-05, %v408_v3 }
 0x12d   :  { %v304_v8 = vpop.xlane.xlu1 %303  ;;  %v301_v20 = vpop.xlane.xlu0 %300 }
 0x12e   :  { %702 = vrsqrt.f32 %v448_v30  ;;  %v411_v32 = vmul.f32 0.125, %v304_v8  ;;  %v410_v44 = vmul.f32 0.125, %v301_v20 }
 0x12f   :  { %704 = vrsqrt.f32 %v447_v31 }
 0x130   :  { %v450_v56 = vadd.f32 1e-05, %v411_v32  ;;  %v449_v10 = vadd.f32 1e-05, %v410_v44 }
 0x131   :  { %v310_v50 = vpop.xlane.xlu1 %309  ;;  %v307_v51 = vpop.xlane.xlu0 %306 }
 0x132   :  { %706 = vrsqrt.f32 %v450_v56  ;;  %v413_v12 = vmul.f32 0.125, %v310_v50  ;;  %v412_v24 = vmul.f32 0.125, %v307_v51 }
 0x133   :  { %708 = vrsqrt.f32 %v449_v10 }
 0x134   :  { %v701_v36 = vpop.eup %700  ;;  %v452_v19 = vadd.f32 1e-05, %v413_v12  ;;  %v451_v60 = vadd.f32 1e-05, %v412_v24 }
 0x135   :  { %v524_v63 = vmul.f32 %v701_v36, %v1072_v38  ;;  %v316_v6 = vpop.xlane.xlu1 %315  ;;  %v313_v7 = vpop.xlane.xlu0 %312 }
 0x136   :  { %710 = vrsqrt.f32 %v452_v19  ;;  %v415_v28 = vmul.f32 0.125, %v316_v6  ;;  %v414_v40 = vmul.f32 0.125, %v313_v7 }
 0x137   :  { %v570_v52 = vmul.f32 %v1308_v48, %v524_v63  ;;  %712 = vrsqrt.f32 %v451_v60 }
 0x138   :  { %v703_v26 = vpop.eup %702  ;;  %v454_v3 = vadd.f32 1e-05, %v415_v28  ;;  %v453_v30 = vadd.f32 1e-05, %v414_v40 }
 0x139   :  { %v705_v31 = vpop.eup %704  ;;  %v616_v8 = vadd.f32 %v1314_v16, %v570_v52  ;;  %v526_v38 = vmul.f32 %v703_v26, %v1075_v39  ;;  %v322_v20 = vpop.xlane.xlu1 %321 }
 0x13a   :  { %v319_v32 = vpop.xlane.xlu0 %318  ;;  %v525_v44 = vmul.f32 %v705_v31, %v1082_v54  ;;  %714 = vrsqrt.f32 %v454_v3  ;;  %v417_v56 = vmul.f32 0.125, %v322_v20 }
 0x13b   :  { %v416_v10 = vmul.f32 0.125, %v319_v32  ;;  %655 = vst.msk [vmem:[%s1591_s3] sm:$0xff] %vm53_vm0, %v616_v8  ;;  %v572_v50 = vmul.f32 %v1308_v48, %v526_v38  ;;  %716 = vrsqrt.f32 %v453_v30 }
 0x13c   :  { %v707_v51 = vpop.eup %706  ;;  %v571_v12 = vmul.f32 %v1308_v48, %v525_v44  ;;  %v456_v24 = vadd.f32 1e-05, %v417_v56 }
 0x13d   :  { %v455_v39 = vadd.f32 1e-05, %v416_v10  ;;  %v709_v36 = vpop.eup %708  ;;  %v618_v19 = vadd.f32 %v1314_v16, %v572_v50  ;;  %v528_v54 = vmul.f32 %v707_v51, %v1094_v2  ;;  %v328_v60 = vpop.xlane.xlu1 %327 }
 0x13e   :  { %v325_v63 = vpop.xlane.xlu0 %324  ;;  %v617_v6 = vadd.f32 %v1314_v16, %v571_v12  ;;  %v527_v7 = vmul.f32 %v709_v36, %v1085_v55  ;;  %718 = vrsqrt.f32 %v456_v24  ;;  %v419_v28 = vmul.f32 0.125, %v328_v60 }
 0x13f   :  { %657 = vst.msk [vmem:[%s1591_s3 + $0x10] sm:$0xff] %vm53_vm0, %v618_v19  ;;  %v574_v40 = vmul.f32 %v1308_v48, %v528_v54  ;;  %720 = vrsqrt.f32 %v455_v39  ;;  %v418_v52 = vmul.f32 0.125, %v325_v63 }
 0x140   :  { %v711_v26 = vpop.eup %710  ;;  %656 = vst.msk [vmem:[%s1591_s3 + $0x8] sm:$0xff] %vm53_vm0, %v617_v6  ;;  %v573_v2 = vmul.f32 %v1308_v48, %v527_v7  ;;  %v458_v55 = vadd.f32 1e-05, %v419_v28 }
 0x141   :  { %v713_v3 = vpop.eup %712  ;;  %v620_v30 = vadd.f32 %v1314_v16, %v574_v40  ;;  %v530_v31 = vmul.f32 %v711_v26, %v1106_v34  ;;  %v457_v8 = vadd.f32 1e-05, %v418_v52  ;;  %v334_v38 = vpop.xlane.xlu1 %333 }
 0x142   :  { %v331_v20 = vpop.xlane.xlu0 %330  ;;  %v619_v32 = vadd.f32 %v1314_v16, %v573_v2  ;;  %v529_v44 = vmul.f32 %v713_v3, %v1097_v5  ;;  %722 = vrsqrt.f32 %v458_v55  ;;  %v421_v56 = vmul.f32 0.125, %v334_v38 }
 0x143   :  { %659 = vst.msk [vmem:[%s1591_s3 + $0x20] sm:$0xff] %vm53_vm0, %v620_v30  ;;  %v576_v10 = vmul.f32 %v1308_v48, %v530_v31  ;;  %724 = vrsqrt.f32 %v457_v8  ;;  %v420_v50 = vmul.f32 0.125, %v331_v20 }
 0x144   :  { %v715_v51 = vpop.eup %714  ;;  %658 = vst.msk [vmem:[%s1591_s3 + $0x18] sm:$0xff] %vm53_vm0, %v619_v32  ;;  %v575_v34 = vmul.f32 %v1308_v48, %v529_v44  ;;  %v460_v5 = vadd.f32 1e-05, %v421_v56 }
 0x145   :  { %v717_v12 = vpop.eup %716  ;;  %v622_v24 = vadd.f32 %v1314_v16, %v576_v10  ;;  %v532_v39 = vmul.f32 %v715_v51, %v1118_v0  ;;  %v459_v36 = vadd.f32 1e-05, %v420_v50  ;;  %v340_v19 = vpop.xlane.xlu1 %339 }
 0x146   :  { %v337_v54 = vpop.xlane.xlu0 %336  ;;  %v621_v60 = vadd.f32 %v1314_v16, %v575_v34  ;;  %v531_v63 = vmul.f32 %v717_v12, %v1109_v9  ;;  %726 = vrsqrt.f32 %v460_v5  ;;  %v423_v6 = vmul.f32 0.125, %v340_v19 }
 0x147   :  { %661 = vst.msk [vmem:[%s1591_s3 + $0x30] sm:$0xff] %vm53_vm0, %v622_v24  ;;  %v578_v7 = vmul.f32 %v1308_v48, %v532_v39  ;;  %728 = vrsqrt.f32 %v459_v36  ;;  %v422_v28 = vmul.f32 0.125, %v337_v54 }
 0x148   :  { %v719_v40 = vpop.eup %718  ;;  %660 = vst.msk [vmem:[%s1591_s3 + $0x28] sm:$0xff] %vm53_vm0, %v621_v60  ;;  %v577_v0 = vmul.f32 %v1308_v48, %v531_v63  ;;  %v462_v9 = vadd.f32 1e-05, %v423_v6 }
 0x149   :  { %v721_v52 = vpop.eup %720  ;;  %v624_v26 = vadd.f32 %v1314_v16, %v578_v7  ;;  %v534_v2 = vmul.f32 %v719_v40, %v1130_v14  ;;  %v461_v55 = vadd.f32 1e-05, %v422_v28  ;;  %v346_v3 = vpop.xlane.xlu1 %345 }
 0x14a   :  { %v343_v30 = vpop.xlane.xlu0 %342  ;;  %v623_v31 = vadd.f32 %v1314_v16, %v577_v0  ;;  %v533_v8 = vmul.f32 %v721_v52, %v1121_v13  ;;  %730 = vrsqrt.f32 %v462_v9  ;;  %v425_v38 = vmul.f32 0.125, %v346_v3 }
 0x14b   :  { %663 = vst.msk [vmem:[%s1591_s3 + $0x40] sm:$0xff] %vm53_vm0, %v624_v26  ;;  %v580_v20 = vmul.f32 %v1308_v48, %v534_v2  ;;  %732 = vrsqrt.f32 %v461_v55  ;;  %v424_v32 = vmul.f32 0.125, %v343_v30 }
 0x14c   :  { %v723_v44 = vpop.eup %722  ;;  %662 = vst.msk [vmem:[%s1591_s3 + $0x38] sm:$0xff] %vm53_vm0, %v623_v31  ;;  %v579_v14 = vmul.f32 %v1308_v48, %v533_v8  ;;  %v464_v13 = vadd.f32 1e-05, %v425_v38 }
 0x14d   :  { %v725_v56 = vpop.eup %724  ;;  %v626_v10 = vadd.f32 %v1314_v16, %v580_v20  ;;  %v536_v50 = vmul.f32 %v723_v44, %v1142_v35  ;;  %v463_v51 = vadd.f32 1e-05, %v424_v32  ;;  %v352_v34 = vpop.xlane.xlu1 %351 }
 0x14e   :  { %v349_v5 = vpop.xlane.xlu0 %348  ;;  %v625_v12 = vadd.f32 %v1314_v16, %v579_v14  ;;  %v535_v24 = vmul.f32 %v725_v56, %v1133_v17  ;;  %734 = vrsqrt.f32 %v464_v13  ;;  %v427_v39 = vmul.f32 0.125, %v352_v34 }
 0x14f   :  { %665 = vst.msk [vmem:[%s1591_s3 + $0x50] sm:$0xff] %vm53_vm0, %v626_v10  ;;  %v582_v36 = vmul.f32 %v1308_v48, %v536_v50  ;;  %736 = vrsqrt.f32 %v463_v51  ;;  %v426_v19 = vmul.f32 0.125, %v349_v5 }
 0x150   :  { %v727_v54 = vpop.eup %726  ;;  %664 = vst.msk [vmem:[%s1591_s3 + $0x48] sm:$0xff] %vm53_vm0, %v625_v12  ;;  %v581_v35 = vmul.f32 %v1308_v48, %v535_v24  ;;  %v466_v17 = vadd.f32 1e-05, %v427_v39 }
 0x151   :  { %v729_v60 = vpop.eup %728  ;;  %v628_v63 = vadd.f32 %v1314_v16, %v582_v36  ;;  %v538_v6 = vmul.f32 %v727_v54, %v1154_v1  ;;  %v465_v7 = vadd.f32 1e-05, %v426_v19  ;;  %v358_v28 = vpop.xlane.xlu1 %357 }
 0x152   :  { %v355_v40 = vpop.xlane.xlu0 %354  ;;  %v627_v0 = vadd.f32 %v1314_v16, %v581_v35  ;;  %v537_v9 = vmul.f32 %v729_v60, %v1145_v21  ;;  %738 = vrsqrt.f32 %v466_v17  ;;  %v429_v52 = vmul.f32 0.125, %v358_v28 }
 0x153   :  { %667 = vst.msk [vmem:[%s1591_s3 + $0x60] sm:$0xff] %vm53_vm0, %v628_v63  ;;  %v584_v26 = vmul.f32 %v1308_v48, %v538_v6  ;;  %740 = vrsqrt.f32 %v465_v7  ;;  %v428_v2 = vmul.f32 0.125, %v355_v40 }
 0x154   :  { %v731_v55 = vpop.eup %730  ;;  %666 = vst.msk [vmem:[%s1591_s3 + $0x58] sm:$0xff] %vm53_vm0, %v627_v0  ;;  %v583_v1 = vmul.f32 %v1308_v48, %v537_v9  ;;  %v468_v21 = vadd.f32 1e-05, %v429_v52 }
 0x155   :  { %v733_v3 = vpop.eup %732  ;;  %v630_v30 = vadd.f32 %v1314_v16, %v584_v26  ;;  %v540_v31 = vmul.f32 %v731_v55, %v1166_v15  ;;  %v467_v8 = vadd.f32 1e-05, %v428_v2  ;;  %v364_v38 = vpop.xlane.xlu1 %363 }
 0x156   :  { %v361_v20 = vpop.xlane.xlu0 %360  ;;  %v629_v32 = vadd.f32 %v1314_v16, %v583_v1  ;;  %v539_v44 = vmul.f32 %v733_v3, %v1157_v25  ;;  %742 = vrsqrt.f32 %v468_v21  ;;  %v431_v14 = vmul.f32 0.125, %v364_v38 }
 0x157   :  { %669 = vst.msk [vmem:[%s1591_s3 + $0x70] sm:$0xff] %vm53_vm0, %v630_v30  ;;  %v586_v13 = vmul.f32 %v1308_v48, %v540_v31  ;;  %744 = vrsqrt.f32 %v467_v8  ;;  %v430_v56 = vmul.f32 0.125, %v361_v20 }
 0x158   :  { %v735_v10 = vpop.eup %734  ;;  %668 = vst.msk [vmem:[%s1591_s3 + $0x68] sm:$0xff] %vm53_vm0, %v629_v32  ;;  %v585_v15 = vmul.f32 %v1308_v48, %v539_v44  ;;  %v470_v25 = vadd.f32 1e-05, %v431_v14 }
 0x159   :  { %v737_v50 = vpop.eup %736  ;;  %v632_v51 = vadd.f32 %v1314_v16, %v586_v13  ;;  %v542_v34 = vmul.f32 %v735_v10, %v1178_v42  ;;  %v469_v5 = vadd.f32 1e-05, %v430_v56  ;;  %v370_v12 = vpop.xlane.xlu1 %369 }
 0x15a   :  { %v367_v24 = vpop.xlane.xlu0 %366  ;;  %v631_v39 = vadd.f32 %v1314_v16, %v585_v15  ;;  %v541_v36 = vmul.f32 %v737_v50, %v1169_v29  ;;  %746 = vrsqrt.f32 %v470_v25  ;;  %v433_v19 = vmul.f32 0.125, %v370_v12 }
 0x15b   :  { %671 = vst.msk [vmem:[%s1591_s3 + $0x80] sm:$0xff] %vm53_vm0, %v632_v51  ;;  %v588_v54 = vmul.f32 %v1308_v48, %v542_v34  ;;  %748 = vrsqrt.f32 %v469_v5  ;;  %v432_v35 = vmul.f32 0.125, %v367_v24 }
 0x15c   :  { %v739_v17 = vpop.eup %738  ;;  %670 = vst.msk [vmem:[%s1591_s3 + $0x78] sm:$0xff] %vm53_vm0, %v631_v39  ;;  %v587_v42 = vmul.f32 %v1308_v48, %v541_v36  ;;  %v472_v29 = vadd.f32 1e-05, %v433_v19 }
 0x15d   :  { %v741_v60 = vpop.eup %740  ;;  %v634_v63 = vadd.f32 %v1314_v16, %v588_v54  ;;  %v544_v6 = vmul.f32 %v739_v17, %v1190_v58  ;;  %v471_v7 = vadd.f32 1e-05, %v432_v35  ;;  %v376_v28 = vpop.xlane.xlu1 %375 }
 0x15e   :  { %v373_v40 = vpop.xlane.xlu0 %372  ;;  %v633_v0 = vadd.f32 %v1314_v16, %v587_v42  ;;  %v543_v9 = vmul.f32 %v741_v60, %v1181_v33  ;;  %750 = vrsqrt.f32 %v472_v29  ;;  %v435_v52 = vmul.f32 0.125, %v376_v28 }
 0x15f   :  { %673 = vst.msk [vmem:[%s1591_s3 + $0x90] sm:$0xff] %vm53_vm0, %v634_v63  ;;  %v590_v26 = vmul.f32 %v1308_v48, %v544_v6  ;;  %752 = vrsqrt.f32 %v471_v7  ;;  %v434_v2 = vmul.f32 0.125, %v373_v40 }
 0x160   :  { %v743_v55 = vpop.eup %742  ;;  %672 = vst.msk [vmem:[%s1591_s3 + $0x88] sm:$0xff] %vm53_vm0, %v633_v0  ;;  %v589_v58 = vmul.f32 %v1308_v48, %v543_v9  ;;  %v474_v33 = vadd.f32 1e-05, %v435_v52 }
 0x161   :  { %v745_v1 = vpop.eup %744  ;;  %v636_v21 = vadd.f32 %v1314_v16, %v590_v26  ;;  %v546_v3 = vmul.f32 %v743_v55, %v1202_v22  ;;  %v473_v30 = vadd.f32 1e-05, %v434_v2  ;;  %v382_v31 = vpop.xlane.xlu1 %381 }
 0x162   :  { %v379_v8 = vpop.xlane.xlu0 %378  ;;  %v635_v38 = vadd.f32 %v1314_v16, %v589_v58  ;;  %v545_v20 = vmul.f32 %v745_v1, %v1193_v37  ;;  %754 = vrsqrt.f32 %v474_v33  ;;  %v437_v32 = vmul.f32 0.125, %v382_v31 }
 0x163   :  { %675 = vst.msk [vmem:[%s1591_s3 + $0xa0] sm:$0xff] %vm53_vm0, %v636_v21  ;;  %v592_v44 = vmul.f32 %v1308_v48, %v546_v3  ;;  %756 = vrsqrt.f32 %v473_v30  ;;  %v436_v14 = vmul.f32 0.125, %v379_v8 }
 0x164   :  { %v747_v13 = vpop.eup %746  ;;  %674 = vst.msk [vmem:[%s1591_s3 + $0x98] sm:$0xff] %vm53_vm0, %v635_v38  ;;  %v591_v22 = vmul.f32 %v1308_v48, %v545_v20  ;;  %v476_v37 = vadd.f32 1e-05, %v437_v32 }
 0x165   :  { %v749_v56 = vpop.eup %748  ;;  %v638_v10 = vadd.f32 %v1314_v16, %v592_v44  ;;  %v548_v15 = vmul.f32 %v747_v13, %v1214_v43  ;;  %v475_v25 = vadd.f32 1e-05, %v436_v14  ;;  %v388_v50 = vpop.xlane.xlu1 %387 }
 0x166   :  { %v385_v51 = vpop.xlane.xlu0 %384  ;;  %v637_v34 = vadd.f32 %v1314_v16, %v591_v22  ;;  %v547_v5 = vmul.f32 %v749_v56, %v1205_v41  ;;  %758 = vrsqrt.f32 %v476_v37  ;;  %v439_v12 = vmul.f32 0.125, %v388_v50 }
 0x167   :  { %677 = vst.msk [vmem:[%s1591_s3 + $0xb0] sm:$0xff] %vm53_vm0, %v638_v10  ;;  %v594_v24 = vmul.f32 %v1308_v48, %v548_v15  ;;  %760 = vrsqrt.f32 %v475_v25  ;;  %v438_v39 = vmul.f32 0.125, %v385_v51 }
 0x168   :  { %v751_v36 = vpop.eup %750  ;;  %676 = vst.msk [vmem:[%s1591_s3 + $0xa8] sm:$0xff] %vm53_vm0, %v637_v34  ;;  %v593_v43 = vmul.f32 %v1308_v48, %v547_v5  ;;  %v478_v41 = vadd.f32 1e-05, %v439_v12 }
 0x169   :  { %v753_v19 = vpop.eup %752  ;;  %v640_v54 = vadd.f32 %v1314_v16, %v594_v24  ;;  %v550_v35 = vmul.f32 %v751_v36, %v1226_v59  ;;  %v477_v17 = vadd.f32 1e-05, %v438_v39  ;;  %v394_v42 = vpop.xlane.xlu1 %393 }
 0x16a   :  { %v391_v29 = vpop.xlane.xlu0 %390  ;;  %v639_v60 = vadd.f32 %v1314_v16, %v593_v43  ;;  %v549_v63 = vmul.f32 %v753_v19, %v1217_v45  ;;  %762 = vrsqrt.f32 %v478_v41  ;;  %v441_v6 = vmul.f32 0.125, %v394_v42 }
 0x16b   :  { %679 = vst.msk [vmem:[%s1591_s3 + $0xc0] sm:$0xff] %vm53_vm0, %v640_v54  ;;  %v596_v7 = vmul.f32 %v1308_v48, %v550_v35  ;;  %764 = vrsqrt.f32 %v477_v17  ;;  %v440_v28 = vmul.f32 0.125, %v391_v29 }
 0x16c   :  { %v755_v40 = vpop.eup %754  ;;  %678 = vst.msk [vmem:[%s1591_s3 + $0xb8] sm:$0xff] %vm53_vm0, %v639_v60  ;;  %v595_v59 = vmul.f32 %v1308_v48, %v549_v63  ;;  %v480_v45 = vadd.f32 1e-05, %v441_v6 }
 0x16d   :  { %v757_v0 = vpop.eup %756  ;;  %v642_v9 = vadd.f32 %v1314_v16, %v596_v7  ;;  %v552_v52 = vmul.f32 %v755_v40, %v1238_v23  ;;  %v479_v26 = vadd.f32 1e-05, %v440_v28  ;;  %v400_v2 = vpop.xlane.xlu1 %399 }
 0x16e   :  { %v397_v55 = vpop.xlane.xlu0 %396  ;;  %v641_v58 = vadd.f32 %v1314_v16, %v595_v59  ;;  %v551_v33 = vmul.f32 %v757_v0, %v1229_v49  ;;  %766 = vrsqrt.f32 %v480_v45  ;;  %v443_v1 = vmul.f32 0.125, %v400_v2 }
 0x16f   :  { %681 = vst.msk [vmem:[%s1591_s3 + $0xd0] sm:$0xff] %vm53_vm0, %v642_v9  ;;  %v598_v21 = vmul.f32 %v1308_v48, %v552_v52  ;;  %768 = vrsqrt.f32 %v479_v26  ;;  %v442_v3 = vmul.f32 0.125, %v397_v55 }
 0x170   :  { %v759_v30 = vpop.eup %758  ;;  %680 = vst.msk [vmem:[%s1591_s3 + $0xc8] sm:$0xff] %vm53_vm0, %v641_v58  ;;  %v597_v23 = vmul.f32 %v1308_v48, %v551_v33  ;;  %v482_v49 = vadd.f32 1e-05, %v443_v1 }
 0x171   :  { %v761_v31 = vpop.eup %760  ;;  %v644_v8 = vadd.f32 %v1314_v16, %v598_v21  ;;  %v554_v38 = vmul.f32 %v759_v30, %v1250_v46  ;;  %v481_v20 = vadd.f32 1e-05, %v442_v3  ;;  %v406_v32 = vpop.xlane.xlu1 %405 }
 0x172   :  { %v403_v44 = vpop.xlane.xlu0 %402  ;;  %v643_v14 = vadd.f32 %v1314_v16, %v597_v23  ;;  %v553_v13 = vmul.f32 %v761_v31, %v1241_v53  ;;  %770 = vrsqrt.f32 %v482_v49  ;;  %v445_v22 = vmul.f32 0.125, %v406_v32 }
 0x173   :  { %683 = vst.msk [vmem:[%s1591_s3 + $0xe0] sm:$0xff] %vm53_vm0, %v644_v8  ;;  %v600_v37 = vmul.f32 %v1308_v48, %v554_v38  ;;  %772 = vrsqrt.f32 %v481_v20  ;;  %v444_v56 = vmul.f32 0.125, %v403_v44 }
 0x174   :  { %v763_v10 = vpop.eup %762  ;;  %682 = vst.msk [vmem:[%s1591_s3 + $0xd8] sm:$0xff] %vm53_vm0, %v643_v14  ;;  %v599_v46 = vmul.f32 %v1308_v48, %v553_v13  ;;  %v484_v53 = vadd.f32 1e-05, %v445_v22 }
 0x175   :  { %v765_v15 = vpop.eup %764  ;;  %v646_v25 = vadd.f32 %v1314_v16, %v600_v37  ;;  %v556_v50 = vmul.f32 %v763_v10, %v1262_v62  ;;  %v483_v51 = vadd.f32 1e-05, %v444_v56 }
 0x176   :  { %v645_v34 = vadd.f32 %v1314_v16, %v599_v46  ;;  %v555_v5 = vmul.f32 %v765_v15, %v1253_v57  ;;  %774 = vrsqrt.f32 %v484_v53 }
 0x177   :  { %685 = vst.msk [vmem:[%s1591_s3 + $0xf0] sm:$0xff] %vm53_vm0, %v646_v25  ;;  %v602_v12 = vmul.f32 %v1308_v48, %v556_v50  ;;  %776 = vrsqrt.f32 %v483_v51 }
 0x178   :  { %v767_v24 = vpop.eup %766  ;;  %684 = vst.msk [vmem:[%s1591_s3 + $0xe8] sm:$0xff] %vm53_vm0, %v645_v34  ;;  %v601_v62 = vmul.f32 %v1308_v48, %v555_v5 }
 0x179   :  { %v769_v39 = vpop.eup %768  ;;  %v648_v57 = vadd.f32 %v1314_v16, %v602_v12  ;;  %v558_v36 = vmul.f32 %v767_v24, %v1274_v27 }
 0x17a   :  { %v647_v43 = vadd.f32 %v1314_v16, %v601_v62  ;;  %v557_v41 = vmul.f32 %v769_v39, %v1265_v61 }
 0x17b   :  { %687 = vst.msk [vmem:[%s1591_s3 + $0x100] sm:$0xff] %vm53_vm0, %v648_v57  ;;  %v604_v19 = vmul.f32 %v1308_v48, %v558_v36 }
 0x17c   :  { %v771_v54 = vpop.eup %770  ;;  %686 = vst.msk [vmem:[%s1591_s3 + $0xf8] sm:$0xff] %vm53_vm0, %v647_v43  ;;  %v603_v35 = vmul.f32 %v1308_v48, %v557_v41 }
 0x17d   :  { %v773_v27 = vpop.eup %772  ;;  %v650_v17 = vadd.f32 %v1314_v16, %v604_v19  ;;  %v560_v61 = vmul.f32 %v771_v54, %v1286_v47 }
 0x17e   :  { %v649_v42 = vadd.f32 %v1314_v16, %v603_v35  ;;  %v559_v29 = vmul.f32 %v773_v27, %v1277_v4 }
 0x17f   :  { %689 = vst.msk [vmem:[%s1591_s3 + $0x110] sm:$0xff] %vm53_vm0, %v650_v17  ;;  %v606_v60 = vmul.f32 %v1308_v48, %v560_v61 }
 0x180   :  { %v775_v63 = vpop.eup %774  ;;  %688 = vst.msk [vmem:[%s1591_s3 + $0x108] sm:$0xff] %vm53_vm0, %v649_v42  ;;  %v605_v6 = vmul.f32 %v1308_v48, %v559_v29 }
 0x181   :  { %v777_v47 = vpop.eup %776  ;;  %v652_v7 = vadd.f32 %v1314_v16, %v606_v60  ;;  %v562_v4 = vmul.f32 %v775_v63, %v1298_v18 }
 0x182   :  { %v651_v28 = vadd.f32 %v1314_v16, %v605_v6  ;;  %v561_v40 = vmul.f32 %v777_v47, %v1289_v11 }
 0x183   :  { %691 = vst.msk [vmem:[%s1591_s3 + $0x120] sm:$0xff] %vm53_vm0, %v652_v7  ;;  %v608_v59 = vmul.f32 %v1308_v48, %v562_v4 }
 0x184   :  { %690 = vst.msk [vmem:[%s1591_s3 + $0x118] sm:$0xff] %vm53_vm0, %v651_v28  ;;  %v607_v45 = vmul.f32 %v1308_v48, %v561_v40 }
 0x185   :  { %v654_v18 = vadd.f32 %v1314_v16, %v608_v59 }
 0x186   :  { %v653_v0 = vadd.f32 %v1314_v16, %v607_v45 }
 0x187   :  { %693 = vst.msk [vmem:[%s1591_s3 + $0x130] sm:$0x3] %vm168_vm1, %v654_v18 }
 0x188   :  { %692 = vst.msk [vmem:[%s1591_s3 + $0x128] sm:$0xff] %vm53_vm0, %v653_v0 }

// kernel: whyv2_forward.30
= control target key start
LH: loop header
LB: loop body
LE: loop exit
PB: predicated region body
PF: predicated region fallthrough
CT: control target
= control target key end

     0   :  { %vm76_vm0 = vcmask 261120   ;;  %vm317_vm1 = vcmask 257024   ;;  %s706_s1 = inlined_call_operand.vmem [shape: f32[32,32], index: 1, kind: input, shape index: {}]   ;;  %s707_s0 = inlined_call_operand.vmem [shape: f32[252,32], index: 0, kind: input, shape index: {}]   ;;  %s708_s2 = inlined_call_operand.vmem [shape: f32[1,32], index: 2, kind: input, shape index: {}]   ;;  %s709_s3 = inlined_call_operand.vmem [shape: f32[252,32], index: 3, kind: output, shape index: {}]  }
   0x1   :  { %v63_v0 = vld [vmem:[%s706_s1] sm:$0xff]  ;;  %v64_v1 = vld [vmem:[%s706_s1 + $0x8] sm:$0xff]  ;;  %v65_v2 = vld [vmem:[%s706_s1 + $0x10] sm:$0xff] }
   0x2   :  { %v67_v3 = vpack.c.bf16 %v64_v1, %v63_v0  ;;  %v66_v4 = vld [vmem:[%s706_s1 + $0x18] sm:$0xff]  ;;  %v15_v5 = vld [vmem:[%s707_s0] sm:$0xff]  ;;  %v16_v6 = vld [vmem:[%s707_s0 + $0x8] sm:$0xff] }
   0x3   :  { %v68_v7 = vpack.c.bf16 %v66_v4, %v65_v2  ;;  %v47_v8 = vpack.c.bf16 %v16_v6, %v15_v5  ;;  %v31_v9 = vld [vmem:[%s707_s0 + $0x80] sm:$0xff]  ;;  %v32_v10 = vld [vmem:[%s707_s0 + $0x88] sm:$0xff]  ;;  %v17_v12 = vld [vmem:[%s707_s0 + $0x10] sm:$0xff] }
   0x4   :  { %358 = vmatprep.subr.bf16.mxu0 %v67_v3  ;;  %394 = vmatprep.subr.bf16.mxu1 %v67_v3  ;;  %v55_v11 = vpack.c.bf16 %v32_v10, %v31_v9  ;;  %v18_v13 = vld [vmem:[%s707_s0 + $0x18] sm:$0xff]  ;;  %v33_v14 = vld [vmem:[%s707_s0 + $0x90] sm:$0xff]  ;;  %v19_v16 = vld [vmem:[%s707_s0 + $0x20] sm:$0xff] }
   0x5   :  { %359 = vmatpush3.bf16.msra.mxu0 %v67_v3  ;;  %396 = vmatpush3.bf16.msra.mxu1 %v67_v3  ;;  %v34_v15 = vld [vmem:[%s707_s0 + $0x98] sm:$0xff]  ;;  %v20_v17 = vld [vmem:[%s707_s0 + $0x28] sm:$0xff]  ;;  %v35_v18 = vld [vmem:[%s707_s0 + $0xa0] sm:$0xff]  ;;  %v48_v20 = vpack.c.bf16 %v18_v13, %v17_v12 }
   0x6   :  { %360 = vmatprep.subr.bf16.mxu0 %v68_v7  ;;  %395 = vmatprep.subr.bf16.mxu1 %v68_v7  ;;  %v36_v19 = vld [vmem:[%s707_s0 + $0xa8] sm:$0xff]  ;;  %v56_v21 = vpack.c.bf16 %v34_v15, %v33_v14  ;;  %v49_v22 = vpack.c.bf16 %v20_v17, %v19_v16  ;;  %v21_v24 = vld [vmem:[%s707_s0 + $0x30] sm:$0xff]  ;;  %v22_v25 = vld [vmem:[%s707_s0 + $0x38] sm:$0xff] }
   0x7   :  { %362 = vmatprep.mubr.msk.bf16.mxu0 %vm76_vm0, %v47_v8  ;;  %378 = vmatprep.mubr.msk.bf16.mxu1 %vm76_vm0, %v55_v11  ;;  %v57_v23 = vpack.c.bf16 %v36_v19, %v35_v18  ;;  %v37_v26 = vld [vmem:[%s707_s0 + $0xb0] sm:$0xff]  ;;  %v38_v27 = vld [vmem:[%s707_s0 + $0xb8] sm:$0xff]  ;;  %v23_v28 = vld [vmem:[%s707_s0 + $0x40] sm:$0xff]  ;;  %v50_v32 = vpack.c.bf16 %v22_v25, %v21_v24 }
   0x8   :  { %v24_v29 = vld [vmem:[%s707_s0 + $0x48] sm:$0xff]  ;;  %v39_v30 = vld [vmem:[%s707_s0 + $0xc0] sm:$0xff]  ;;  %v58_v33 = vpack.c.bf16 %v38_v27, %v37_v26  ;;  %v25_v36 = vld [vmem:[%s707_s0 + $0x50] sm:$0xff] }
   0x9   :  { %361 = vmatpush3.bf16.msra.mxu0 %v68_v7  ;;  %397 = vmatpush3.bf16.msra.mxu1 %v68_v7  ;;  %v40_v31 = vld [vmem:[%s707_s0 + $0xc8] sm:$0xff]  ;;  %v51_v34 = vpack.c.bf16 %v24_v29, %v23_v28  ;;  %v26_v37 = vld [vmem:[%s707_s0 + $0x58] sm:$0xff]  ;;  %v41_v38 = vld [vmem:[%s707_s0 + $0xd0] sm:$0xff] }
   0xa   :  { %v59_v35 = vpack.c.bf16 %v40_v31, %v39_v30  ;;  %v42_v39 = vld [vmem:[%s707_s0 + $0xd8] sm:$0xff]  ;;  %v27_v40 = vld [vmem:[%s707_s0 + $0x60] sm:$0xff]  ;;  %v28_v41 = vld [vmem:[%s707_s0 + $0x68] sm:$0xff]  ;;  %v52_v44 = vpack.c.bf16 %v26_v37, %v25_v36 }
   0xb   :  { %v43_v42 = vld [vmem:[%s707_s0 + $0xe0] sm:$0xff]  ;;  %v44_v43 = vld [vmem:[%s707_s0 + $0xe8] sm:$0xff]  ;;  %v60_v45 = vpack.c.bf16 %v42_v39, %v41_v38  ;;  %v53_v46 = vpack.c.bf16 %v28_v41, %v27_v40  ;;  %v29_v48 = vld [vmem:[%s707_s0 + $0x70] sm:$0xff] }
   0xc   :  { %363 = vmatmul.mubr.msk.bf16.vlgmr.msra.gmra.mrb[0].mxu0 %vm76_vm0, %v48_v20  ;;  %379 = vmatmul.mubr.msk.bf16.vlgmr.msra.gmra.mrb[0].mxu1 %vm76_vm0, %v56_v21  ;;  %v61_v47 = vpack.c.bf16 %v44_v43, %v43_v42  ;;  %v30_v49 = vld [vmem:[%s707_s0 + $0x78] sm:$0xff]  ;;  %v45_v50 = vld [vmem:[%s707_s0 + $0xf0] sm:$0xff]  ;;  %v545_v54 = vld [vmem:[%s708_s2] ss:$0 sm:$0xff] }
   0xd   :  { %366 = vmatprep.mubr.msk.bf16.mxu0 %vm76_vm0, %v49_v22  ;;  %382 = vmatprep.mubr.msk.bf16.mxu1 %vm76_vm0, %v57_v23  ;;  %v46_v51 = vld [vmem:[%s707_s0 + $0xf8] sm:$0xf]  ;;  %v54_v52 = vpack.c.bf16 %v30_v49, %v29_v48 }
   0xe   :  { %v62_v53 = vpack.c.bf16 %v46_v51, %v45_v50 }
  0x14   :  { %367 = vmatmul.mubr.msk.bf16.gmra.mrb[4].mxu0 %vm76_vm0, %v50_v32  ;;  %383 = vmatmul.mubr.msk.bf16.gmra.mrb[4].mxu1 %vm76_vm0, %v58_v33 }
  0x15   :  { %370 = vmatprep.mubr.msk.bf16.mxu0 %vm76_vm0, %v51_v34  ;;  %386 = vmatprep.mubr.msk.bf16.mxu1 %vm76_vm0, %v59_v35 }
  0x1c   :  { %371 = vmatmul.mubr.msk.bf16.gmra.mrb[8].mxu0 %vm76_vm0, %v52_v44  ;;  %387 = vmatmul.mubr.msk.bf16.gmra.mrb[8].mxu1 %vm76_vm0, %v60_v45 }
  0x1d   :  { %374 = vmatprep.mubr.msk.bf16.mxu0 %vm76_vm0, %v53_v46  ;;  %390 = vmatprep.mubr.msk.bf16.mxu1 %vm76_vm0, %v61_v47 }
  0x24   :  { %375 = vmatmul.mubr.msk.bf16.gmra.mrb[12].mxu0 %vm76_vm0, %v54_v52  ;;  %391 = vmatmul.mubr.msk.bf16.gmra.mrb[12].mxu1 %vm76_vm0, %v62_v53 }
  0xdf   :  { %v364_v55 = vpop.f32.mrb[0].mxu0  ;;  %v380_v56 = vpop.f32.mrb[0].mxu1 }
  0xe0   :  { %v168_v57 = vadd.f32 %v364_v55, %v545_v54  ;;  %v232_v58 = vadd.f32 %v380_v56, %v545_v54  ;;  %v159_v59 = vpop.f32.mrb[1].mxu0  ;;  %v223_v60 = vpop.f32.mrb[1].mxu1 }
  0xe1   :  { %v160_v61 = vadd.f32 %v545_v54, %v159_v59  ;;  %v224_v62 = vadd.f32 %v545_v54, %v223_v60  ;;  %v365_v63 = vpop.f32.mrb[2].mxu0  ;;  %v381_v0 = vpop.f32.mrb[2].mxu1 }
  0xe2   :  { %288 = vst.msk [vmem:[%s709_s3 + $0x10] sm:$0xff] %vm76_vm0, %v168_v57  ;;  %304 = vst.msk [vmem:[%s709_s3 + $0x90] sm:$0xff] %vm76_vm0, %v232_v58  ;;  %v171_v1 = vadd.f32 %v365_v63, %v545_v54  ;;  %v235_v2 = vadd.f32 %v381_v0, %v545_v54  ;;  %v162_v3 = vpop.f32.mrb[3].mxu0  ;;  %v226_v4 = vpop.f32.mrb[3].mxu1 }
  0xe3   :  { %286 = vst.msk [vmem:[%s709_s3] sm:$0xff] %vm76_vm0, %v160_v61  ;;  %302 = vst.msk [vmem:[%s709_s3 + $0x80] sm:$0xff] %vm76_vm0, %v224_v62  ;;  %v163_v5 = vadd.f32 %v545_v54, %v162_v3  ;;  %v227_v6 = vadd.f32 %v545_v54, %v226_v4 }
  0xe4   :  { %289 = vst.msk [vmem:[%s709_s3 + $0x18] sm:$0xff] %vm76_vm0, %v171_v1  ;;  %305 = vst.msk [vmem:[%s709_s3 + $0x98] sm:$0xff] %vm76_vm0, %v235_v2 }
  0xe5   :  { %287 = vst.msk [vmem:[%s709_s3 + $0x8] sm:$0xff] %vm76_vm0, %v163_v5  ;;  %303 = vst.msk [vmem:[%s709_s3 + $0x88] sm:$0xff] %vm76_vm0, %v227_v6 }
  0xe7   :  { %v368_v7 = vpop.f32.mrb[4].mxu0  ;;  %v384_v8 = vpop.f32.mrb[4].mxu1 }
  0xe8   :  { %v184_v9 = vadd.f32 %v368_v7, %v545_v54  ;;  %v248_v10 = vadd.f32 %v384_v8, %v545_v54  ;;  %v175_v11 = vpop.f32.mrb[5].mxu0  ;;  %v239_v12 = vpop.f32.mrb[5].mxu1 }
  0xe9   :  { %v176_v13 = vadd.f32 %v545_v54, %v175_v11  ;;  %v240_v14 = vadd.f32 %v545_v54, %v239_v12  ;;  %v369_v15 = vpop.f32.mrb[6].mxu0  ;;  %v385_v16 = vpop.f32.mrb[6].mxu1 }
  0xea   :  { %292 = vst.msk [vmem:[%s709_s3 + $0x30] sm:$0xff] %vm76_vm0, %v184_v9  ;;  %308 = vst.msk [vmem:[%s709_s3 + $0xb0] sm:$0xff] %vm76_vm0, %v248_v10  ;;  %v187_v17 = vadd.f32 %v369_v15, %v545_v54  ;;  %v251_v18 = vadd.f32 %v385_v16, %v545_v54  ;;  %v178_v19 = vpop.f32.mrb[7].mxu0  ;;  %v242_v20 = vpop.f32.mrb[7].mxu1 }
  0xeb   :  { %290 = vst.msk [vmem:[%s709_s3 + $0x20] sm:$0xff] %vm76_vm0, %v176_v13  ;;  %306 = vst.msk [vmem:[%s709_s3 + $0xa0] sm:$0xff] %vm76_vm0, %v240_v14  ;;  %v179_v21 = vadd.f32 %v545_v54, %v178_v19  ;;  %v243_v22 = vadd.f32 %v545_v54, %v242_v20 }
  0xec   :  { %293 = vst.msk [vmem:[%s709_s3 + $0x38] sm:$0xff] %vm76_vm0, %v187_v17  ;;  %309 = vst.msk [vmem:[%s709_s3 + $0xb8] sm:$0xff] %vm76_vm0, %v251_v18 }
  0xed   :  { %291 = vst.msk [vmem:[%s709_s3 + $0x28] sm:$0xff] %vm76_vm0, %v179_v21  ;;  %307 = vst.msk [vmem:[%s709_s3 + $0xa8] sm:$0xff] %vm76_vm0, %v243_v22 }
  0xef   :  { %v372_v23 = vpop.f32.mrb[8].mxu0  ;;  %v388_v24 = vpop.f32.mrb[8].mxu1 }
  0xf0   :  { %v200_v25 = vadd.f32 %v372_v23, %v545_v54  ;;  %v264_v26 = vadd.f32 %v388_v24, %v545_v54  ;;  %v191_v27 = vpop.f32.mrb[9].mxu0  ;;  %v255_v28 = vpop.f32.mrb[9].mxu1 }
  0xf1   :  { %v192_v29 = vadd.f32 %v545_v54, %v191_v27  ;;  %v256_v30 = vadd.f32 %v545_v54, %v255_v28  ;;  %v373_v31 = vpop.f32.mrb[10].mxu0  ;;  %v389_v32 = vpop.f32.mrb[10].mxu1 }
  0xf2   :  { %296 = vst.msk [vmem:[%s709_s3 + $0x50] sm:$0xff] %vm76_vm0, %v200_v25  ;;  %312 = vst.msk [vmem:[%s709_s3 + $0xd0] sm:$0xff] %vm76_vm0, %v264_v26  ;;  %v203_v33 = vadd.f32 %v373_v31, %v545_v54  ;;  %v267_v34 = vadd.f32 %v389_v32, %v545_v54  ;;  %v194_v35 = vpop.f32.mrb[11].mxu0  ;;  %v258_v36 = vpop.f32.mrb[11].mxu1 }
  0xf3   :  { %294 = vst.msk [vmem:[%s709_s3 + $0x40] sm:$0xff] %vm76_vm0, %v192_v29  ;;  %310 = vst.msk [vmem:[%s709_s3 + $0xc0] sm:$0xff] %vm76_vm0, %v256_v30  ;;  %v195_v37 = vadd.f32 %v545_v54, %v194_v35  ;;  %v259_v38 = vadd.f32 %v545_v54, %v258_v36 }
  0xf4   :  { %297 = vst.msk [vmem:[%s709_s3 + $0x58] sm:$0xff] %vm76_vm0, %v203_v33  ;;  %313 = vst.msk [vmem:[%s709_s3 + $0xd8] sm:$0xff] %vm76_vm0, %v267_v34 }
  0xf5   :  { %295 = vst.msk [vmem:[%s709_s3 + $0x48] sm:$0xff] %vm76_vm0, %v195_v37  ;;  %311 = vst.msk [vmem:[%s709_s3 + $0xc8] sm:$0xff] %vm76_vm0, %v259_v38 }
  0xf7   :  { %v376_v39 = vpop.f32.mrb[12].mxu0  ;;  %v392_v40 = vpop.f32.mrb[12].mxu1 }
  0xf8   :  { %v216_v41 = vadd.f32 %v376_v39, %v545_v54  ;;  %v280_v42 = vadd.f32 %v392_v40, %v545_v54  ;;  %v207_v43 = vpop.f32.mrb[13].mxu0  ;;  %v271_v44 = vpop.f32.mrb[13].mxu1 }
  0xf9   :  { %v208_v45 = vadd.f32 %v545_v54, %v207_v43  ;;  %v272_v46 = vadd.f32 %v545_v54, %v271_v44  ;;  %v377_v47 = vpop.f32.mrb[14].mxu0  ;;  %v393_v48 = vpop.f32.mrb[14].mxu1 }
  0xfa   :  { %300 = vst.msk [vmem:[%s709_s3 + $0x70] sm:$0xff] %vm76_vm0, %v216_v41  ;;  %316 = vst.msk [vmem:[%s709_s3 + $0xf0] sm:$0xff] %vm76_vm0, %v280_v42  ;;  %v219_v49 = vadd.f32 %v377_v47, %v545_v54  ;;  %v283_v50 = vadd.f32 %v393_v48, %v545_v54  ;;  %v210_v51 = vpop.f32.mrb[15].mxu0  ;;  %v274_v52 = vpop.f32.mrb[15].mxu1 }
  0xfb   :  { %298 = vst.msk [vmem:[%s709_s3 + $0x60] sm:$0xff] %vm76_vm0, %v208_v45  ;;  %314 = vst.msk [vmem:[%s709_s3 + $0xe0] sm:$0xff] %vm76_vm0, %v272_v46  ;;  %v211_v53 = vadd.f32 %v545_v54, %v210_v51  ;;  %v275_v55 = vadd.f32 %v545_v54, %v274_v52 }
  0xfc   :  { %301 = vst.msk [vmem:[%s709_s3 + $0x78] sm:$0xff] %vm76_vm0, %v219_v49 }
  0xfd   :  { %318 = vst.msk [vmem:[%s709_s3 + $0xf8] sm:$0xf] %vm317_vm1, %v283_v50 }
  0xfe   :  { %299 = vst.msk [vmem:[%s709_s3 + $0x68] sm:$0xff] %vm76_vm0, %v211_v53  ;;  %315 = vst.msk [vmem:[%s709_s3 + $0xe8] sm:$0xff] %vm76_vm0, %v275_v55 }

// kernel: whyv2_forward.29
= control target key start
LH: loop header
LB: loop body
LE: loop exit
PB: predicated region body
PF: predicated region fallthrough
CT: control target
= control target key end

     0   :  { %v1374_v20 = vmov 0.0   ;;  %v1376_v21 = vmov 0.0   ;;  %v1378_v22 = vmov 0.0   ;;  %v1380_v23 = vmov 0.0   ;;  %s1904_s0 = inlined_call_operand.vmem [shape: f32[14,18,32], index: 0, kind: input, shape index: {}]   ;;  %s1905_s1 = inlined_call_operand.vmem [shape: f32[32,64], index: 1, kind: input, shape index: {}]   ;;  %s1906_s2 = inlined_call_operand.vmem [shape: f32[1,64], index: 2, kind: input, shape index: {}]   ;;  %s1907_s3 = inlined_call_operand.vmem [shape: f32[16,64], index: 3, kind: input, shape index: {}]   ;;  %s1908_s4 = inlined_call_operand.vmem [shape: f32[32,64], index: 4, kind: input, shape index: {}]   ;;  %s1909_s7 = inlined_call_operand.vmem [shape: f32[14,18,32], index: 7, kind: output, shape index: {}]   ;;  %s1910_s6 = inlined_call_operand.vmem [shape: f32[16,64], index: 6, kind: input, shape index: {}]   ;;  %s1911_s5 = inlined_call_operand.vmem [shape: f32[1,64], index: 5, kind: input, shape index: {}]  }
   0x1   :  { %v27_v0 = vld [vmem:[%s1905_s1] sm:$0xff]  ;;  %v28_v1 = vld [vmem:[%s1905_s1 + $0x8] sm:$0xff]  ;;  %v29_v2 = vld [vmem:[%s1905_s1 + $0x10] sm:$0xff]  ;;  %v1382_v24 = vmov 0.0   ;;  %v1384_v25 = vmov 0.0  }
   0x2   :  { %v30_v3 = vld [vmem:[%s1905_s1 + $0x18] sm:$0xff]  ;;  %v1328_v4 = vpack.c.bf16 %v28_v1, %v27_v0  ;;  %v33_v5 = vld [vmem:[%s1907_s3] sm:$0xff]  ;;  %v34_v6 = vld [vmem:[%s1907_s3 + $0x8] sm:$0xff] }
   0x3   :  { %v1336_v7 = vpack.c.bf16 %v30_v3, %v29_v2  ;;  %v1338_v8 = vpack.c.bf16 %v34_v6, %v33_v5  ;;  %v1343_v9 = vld [vmem:[%s1906_s2] ss:$0 sm:$0xff]  ;;  %v38_v11 = vld [vmem:[%s1908_s4 + $0x8] sm:$0xff]  ;;  %v39_v12 = vld [vmem:[%s1908_s4 + $0x10] sm:$0xff] }
   0x4   :  { %v37_v10 = vld [vmem:[%s1908_s4] sm:$0xff]  ;;  %v40_v13 = vld [vmem:[%s1908_s4 + $0x18] sm:$0xff]  ;;  %v44_v17 = vld [vmem:[%s1910_s6 + $0x8] sm:$0xff]  ;;  %s1386_s4 = smov 0  }
   0x5   :  { %v1357_v14 = vpack.c.bf16 %v38_v11, %v37_v10  ;;  %v43_v15 = vld [vmem:[%s1910_s6] sm:$0xff]  ;;  %v1362_v16 = vpack.c.bf16 %v40_v13, %v39_v12 }
   0x6   :  { %v1370_v18 = vld [vmem:[%s1911_s5] ss:$0 sm:$0xff]  ;;  %v1372_v19 = vpack.c.bf16 %v44_v17, %v43_v15 }
   0x7 LB: > { %946 = vmatprep.subr.bf16.mxu1 %v1328_v4  ;;  %954 = vmatprep.subr.bf16.mxu0 %v1338_v8  ;;  %v127_v26 = vpack.c.bf16 %v1229_v24, %v1233_v25  ;;  %s59_s5 = smul.u32 24, %s1237_s4  ;;  %s1267_s6 = smov 80   ;;  %v128_v27 = vpack.c.bf16 %v1225_v23, %v1225_v23  ;;  %vm72_vm0 = vcmask 261120   ;;  %vm135_vm1 = vcmask 130048   ;;  %s1237_s4 = sphi %s1386_s4, %s52_s4   ;;  %v1233_v25 = vphi %v1384_v25, %v262_v25   ;;  %v1229_v24 = vphi %v1382_v24, %v263_v24   ;;  %v1225_v23 = vphi %v1380_v23, %v264_v23   ;;  %v1221_v22 = vphi %v1378_v22, %v244_v22   ;;  %v1217_v21 = vphi %v1376_v21, %v245_v21   ;;  %v1213_v20 = vphi %v1374_v20, %v246_v20  }
   0x8   : > { %947 = vmatpush3.bf16.msra.mxu1 %v1328_v4  ;;  %955 = vmatpush3.bf16.msra.mxu0 %v1338_v8  ;;  %s1268_s29 = smov 96   ;;  %s1269_s30 = smov 16   ;;  %vm280_vm2 = vcmask 123904  }
   0x9   : > { %948 = vmatprep.subr.bf16.mxu1 %v1336_v7  ;;  %131 = vrot.lane.b32.xlu0 %v127_v26, %s1267_s6  ;;  %s60_s28 = scalar_lea.vmem %s1904_s0, %s59_s5  ;;  %s1270_s8 = smov 32  }
   0xa   : > { %v61_v28 = vld [vmem:[%s60_s28] sm:$0xff]  ;;  %v62_v29 = vld [vmem:[%s60_s28 + $0x8] sm:$0xff]  ;;  %v63_v30 = vld [vmem:[%s60_s28 + $0x10] sm:$0x3]  ;;  %s277_s9 = scalar_lea.vmem [#allocation2], %s59_s5  ;;  %s52_s4 = sadd.s32 1, %s1237_s4  }
   0xb   : > { %v64_v31 = vpack.c.bf16 %v62_v29, %v61_v28  ;;  %v65_v32 = vpack.c.bf16 %v63_v30, %v63_v30  ;;  %p49_p0 = scmp.ge.s32.totalorder %s52_s4, 14  }
   0xc   : > { %949 = vmatpush3.bf16.msra.mxu1 %v1336_v7  ;;  %s1462_s10 = smov (%p49_p0), 0  }
   0xd   : > { %133 = vrot.lane.b32.xlu0 %v128_v27, %s1267_s6  ;;  %950 = vmatprep.mubr.msk.bf16.mxu1 %vm72_vm0, %v64_v31 }
   0xf   : > { %951 = vmatmul.mubr.msk.bf16.vlgmr.msra.gmra.mrb[0].mxu1 %vm72_vm0, %v65_v32  ;;  %v1450_v32 = vmov (%p49_p0), 0.0  }
  0x7b   : > { %v132_v33 = vpop.permute.xlu0 %131 }
  0x7c   : > { %956 = vmatprep.mubr.msk.bf16.mxu0 %vm135_vm1, %v132_v33  ;;  %v1452_v33 = vmov (%p49_p0), 0.0  }
  0x7f   : > { %v134_v34 = vpop.permute.xlu0 %133 }
  0x80   : > { %957 = vmatmul.mubr.msk.bf16.vlgmr.msra.gmra.mrb[0].mxu0 %vm135_vm1, %v134_v34  ;;  %v1454_v34 = vmov (%p49_p0), 0.0  }
  0xe2   : > { %v952_v35 = vpop.f32.mrb[0].mxu1 }
  0xe3   : > { %v113_v36 = vpop.f32.mrb[1].mxu1  ;;  %v122_v39 = vadd.f32 %v952_v35, %v1343_v9  ;;  %v1456_v35 = vmov (%p49_p0), 0.0  }
  0xe4   : > { %v953_v37 = vpop.f32.mrb[2].mxu1  ;;  %v114_v40 = vadd.f32 %v1343_v9, %v113_v36  ;;  %v1458_v36 = vmov (%p49_p0), 0.0  }
  0xe5   : > { %v116_v38 = vpop.f32.mrb[3].mxu1  ;;  %v1460_v37 = vmov (%p49_p0), 0.0  }
  0xe6   : > { %v117_v44 = vadd.f32 %v1343_v9, %v116_v38 }
 0x153   : > { %v958_v41 = vpop.f32.mrb[0].mxu0 }
 0x154   : > { %v192_v42 = vadd.f32 %v958_v41, %v122_v39  ;;  %v176_v43 = vpop.f32.mrb[1].mxu0 }
 0x155   : > { %v190_v45 = vadd.f32 %v176_v43, %v114_v40  ;;  %v959_v46 = vpop.f32.mrb[2].mxu0 }
 0x156   : > { %1107 = vtanh.f32 %v192_v42  ;;  %v179_v47 = vpop.f32.mrb[3].mxu0  ;;  %v923_v53 = vmul.f32 -1.442695, %v192_v42 }
 0x157   : > { %1109 = vtanh.f32 %v190_v45  ;;  %v191_v48 = vadd.f32 %v179_v47, %v117_v44  ;;  %v921_v52 = vmul.f32 -1.442695, %v190_v45 }
 0x159   : > { %1111 = vtanh.f32 %v191_v48  ;;  %v922_v54 = vmul.f32 -1.442695, %v191_v48 }
 0x15a   : > { %1113 = vpow2.f32 %v921_v52 }
 0x15b   : > { %1115 = vpow2.f32 %v923_v53 }
 0x15c   : > { %1117 = vpow2.f32 %v922_v54 }
 0x160   : > { %v1108_v49 = vpop.eup %1107 }
 0x161   : > { %v1110_v50 = vpop.eup %1109  ;;  %224 = vrot.lane.b32.xlu0 %v1108_v49, %s1268_s29 }
 0x162   : > { %220 = vrot.lane.b32.xlu1 %v1110_v50, %s1268_s29 }
 0x163   : > { %v1112_v51 = vpop.eup %1111 }
 0x164   : > { %v1114_v55 = vpop.eup %1113 }
 0x165   : > { %v1116_v56 = vpop.eup %1115  ;;  %v202_v57 = vadd.f32 1.0, %v1114_v55 }
 0x166   : > { %222 = vrot.lane.b32.xlu1 %v1112_v51, %s1268_s29  ;;  %v1118_v58 = vpop.eup %1117  ;;  %v204_v59 = vadd.f32 1.0, %v1116_v56 }
 0x167   : > { %1119 = vrcp.f32 %v202_v57  ;;  %v203_v60 = vadd.f32 1.0, %v1118_v58 }
 0x168   : > { %1121 = vrcp.f32 %v204_v59 }
 0x169   : > { %1123 = vrcp.f32 %v203_v60 }
 0x171   : > { %v1120_v61 = vpop.eup %1119 }
 0x172   : > { %v1122_v1 = vpop.eup %1121  ;;  %v214_v10 = vmul.f32 %v1221_v22, %v1120_v61 }
 0x173   : > { %v1124_v2 = vpop.eup %1123  ;;  %v216_v12 = vmul.f32 %v1213_v20, %v1122_v1 }
 0x174   : > { %v215_v13 = vmul.f32 %v1217_v21, %v1124_v2 }
 0x1d3   : > { %v225_v0 = vpop.permute.xlu0 %224 }
 0x1d4   : > { %v221_v62 = vpop.permute.xlu1 %220  ;;  %v231_v5 = vmul.f32 %v1122_v1, %v225_v0 }
 0x1d5   : > { %v229_v63 = vmul.f32 %v1120_v61, %v221_v62 }
 0x1d7   : > { %235 = vrot.lane.b32.xlu1 %v229_v63, %s1269_s30 }
 0x1d8   : > { %v223_v3 = vpop.permute.xlu1 %222 }
 0x1d9   : > { %v230_v6 = vmul.f32 %v1124_v2, %v223_v3 }
 0x1db   : > { %239 = vrot.lane.b32.xlu1 %v231_v5, %s1269_s30  ;;  %237 = vrot.lane.b32.xlu0 %v230_v6, %s1269_s30 }
 0x249   : > { %v236_v11 = vpop.permute.xlu1 %235 }
 0x24a   : > { %v244_v22 = vadd.f32 %v236_v11, %v214_v10  }
 0x24c   : > { %1125 = vtanh.f32 %v244_v22 }
 0x24d   : > { %v240_v15 = vpop.permute.xlu1 %239  ;;  %v238_v17 = vpop.permute.xlu0 %237 }
 0x24e   : > { %v246_v20 = vadd.f32 %v240_v15, %v216_v12   ;;  %v245_v21 = vadd.f32 %v238_v17, %v215_v13  }
 0x250   : > { %1127 = vtanh.f32 %v246_v20 }
 0x251   : > { %1129 = vtanh.f32 %v245_v21 }
 0x256   : > { %v1126_v23 = vpop.eup %1125 }
 0x257   : > { %253 = vrot.lane.b32.xlu0 %v1126_v23, %s1270_s8 }
 0x25a   : > { %v1128_v24 = vpop.eup %1127 }
 0x25b   : > { %v1130_v25 = vpop.eup %1129  ;;  %257 = vrot.lane.b32.xlu0 %v1128_v24, %s1270_s8 }
 0x25c   : > { %255 = vrot.lane.b32.xlu1 %v1130_v25, %s1270_s8 }
 0x2c9   : > { %v254_v26 = vpop.permute.xlu0 %253 }
 0x2ca   : > { %v262_v25 = vmul.f32 %v1120_v61, %v254_v26  }
 0x2cc   : > { %268 = vrot.lane.b32.xlu1 %v262_v25, %s1267_s6 }
 0x2cd   : > { %v258_v27 = vpop.permute.xlu0 %257 }
 0x2ce   : > { %v256_v28 = vpop.permute.xlu1 %255  ;;  %v264_v23 = vmul.f32 %v1122_v1, %v258_v27  }
 0x2cf   : > { %v263_v24 = vmul.f32 %v1124_v2, %v256_v28  }
 0x2d0   : > { %272 = vrot.lane.b32.xlu1 %v264_v23, %s1267_s6 }
 0x2d1   : > { %270 = vrot.lane.b32.xlu0 %v263_v24, %s1267_s6 }
 0x33e   : > { %v269_v29 = vpop.permute.xlu1 %268  ;;  %51 = sbr.rel (!%p49_p0) target bundleno = 7 (0x7), region = 66 }
 0x33f   : > { %278 = vst.msk [vmem:[%s277_s9] sm:$0xff] %vm135_vm1, %v269_v29 }
 0x342   : > { %v273_v30 = vpop.permute.xlu1 %272 }
 0x343   : > { %281 = vst.msk [vmem:[%s277_s9 + $0x10] sm:$0x3] %vm280_vm2, %v273_v30  ;;  %v271_v31 = vpop.permute.xlu0 %270 }
 0x344   : > { %279 = vst.msk [vmem:[%s277_s9 + $0x8] sm:$0xff] %vm135_vm1, %v271_v31 }
 0x345 LB: > { %960 = vmatprep.subr.bf16.mxu1 %v1357_v14  ;;  %968 = vmatprep.subr.bf16.mxu0 %v1372_v19  ;;  %v363_v4 = vpack.c.bf16 %v1257_v36, %v1261_v37  ;;  %s294_s11 = ssub.s32 13, %s1265_s10  ;;  %s1271_s13 = smov 80   ;;  %v364_v7 = vpack.c.bf16 %v1253_v35, %v1253_v35  ;;  %s1265_s10 = sphi %s1462_s10, %s287_s10   ;;  %v1261_v37 = vphi %v1460_v37, %v498_v37   ;;  %v1257_v36 = vphi %v1458_v36, %v499_v36   ;;  %v1253_v35 = vphi %v1456_v35, %v500_v35   ;;  %v1249_v34 = vphi %v1454_v34, %v480_v34   ;;  %v1245_v33 = vphi %v1452_v33, %v481_v33   ;;  %v1241_v32 = vphi %v1450_v32, %v482_v32  }
 0x346   : > { %961 = vmatpush3.bf16.msra.mxu1 %v1357_v14  ;;  %969 = vmatpush3.bf16.msra.mxu0 %v1372_v19  ;;  %s1485_s12 = smul.u32 24, %s294_s11  ;;  %s1272_s16 = smov 96  }
 0x347   : > { %962 = vmatprep.subr.bf16.mxu1 %v1362_v16  ;;  %367 = vrot.lane.b32.xlu0 %v363_v4, %s1271_s13  ;;  %s1273_s17 = smov 16   ;;  %s1274_s18 = smov 32  }
 0x348   : > { %s296_s15 = scalar_lea.vmem %s1904_s0, %s1485_s12  ;;  %s513_s19 = scalar_lea.vmem [#allocation3], %s1485_s12 }
 0x349   : > { %v297_v8 = vld [vmem:[%s296_s15] sm:$0xff]  ;;  %v298_v9 = vld [vmem:[%s296_s15 + $0x8] sm:$0xff]  ;;  %v299_v20 = vld [vmem:[%s296_s15 + $0x10] sm:$0x3]  ;;  %s287_s10 = sadd.s32 1, %s1265_s10  }
 0x34a   : > { %963 = vmatpush3.bf16.msra.mxu1 %v1362_v16  ;;  %v300_v21 = vpack.c.bf16 %v298_v9, %v297_v8  ;;  %v301_v22 = vpack.c.bf16 %v299_v20, %v299_v20  ;;  %p284_p1 = scmp.ge.s32.totalorder %s287_s10, 14  }
 0x34b   : > { %369 = vrot.lane.b32.xlu0 %v364_v7, %s1271_s13  ;;  %s1275_s3 = smov (%p284_p1), 16   ;;  %v520_v19 = vld [vmem:[#allocation2 + $0x10] sm:$0x3] (%p284_p1)  ;;  %vm817_vm3 = vcmask (%p284_p1), 255104   ;;  %vm814_vm4 = vcmask (%p284_p1), 261248  }
 0x34c   : > { %964 = vmatprep.mubr.msk.bf16.mxu1 %vm72_vm0, %v300_v21  ;;  %564 = vst.msk [vmem:[%s1909_s7 + $0x10] sm:$0x3] (%p284_p1), %vm280_vm2, %v520_v19 }
 0x34d   : > { %965 = vmatmul.mubr.msk.bf16.vlgmr.msra.gmra.mrb[0].mxu1 %vm72_vm0, %v301_v22 }
 0x3b9   : > { %v368_v38 = vpop.permute.xlu0 %367 }
 0x3ba   : > { %970 = vmatprep.mubr.msk.bf16.mxu0 %vm135_vm1, %v368_v38 }
 0x3bd   : > { %v370_v39 = vpop.permute.xlu0 %369 }
 0x3be   : > { %971 = vmatmul.mubr.msk.bf16.vlgmr.msra.gmra.mrb[0].mxu0 %vm135_vm1, %v370_v39 }
 0x420   : > { %v966_v40 = vpop.f32.mrb[0].mxu1 }
 0x421   : > { %v349_v41 = vpop.f32.mrb[1].mxu1  ;;  %v358_v44 = vadd.f32 %v966_v40, %v1370_v18  ;;  %v523_v40 = vld [vmem:[#allocation2 + $0x28] sm:$0x3] (%p284_p1) }
 0x422   : > { %v967_v42 = vpop.f32.mrb[2].mxu1  ;;  %v350_v45 = vadd.f32 %v1370_v18, %v349_v41  ;;  %v522_v41 = vld [vmem:[#allocation2 + $0x20] sm:$0xff] (%p284_p1)  ;;  %567 = vst.msk [vmem:[%s1909_s7 + $0x28] sm:$0x3] (%p284_p1), %vm280_vm2, %v523_v40 }
 0x423   : > { %v352_v43 = vpop.f32.mrb[3].mxu1  ;;  %566 = vst.msk [vmem:[%s1909_s7 + $0x20] sm:$0xff] (%p284_p1), %vm135_vm1, %v522_v41 }
 0x424   : > { %v353_v49 = vadd.f32 %v1370_v18, %v352_v43 }
 0x491   : > { %v972_v46 = vpop.f32.mrb[0].mxu0 }
 0x492   : > { %v428_v47 = vadd.f32 %v972_v46, %v358_v44  ;;  %v412_v48 = vpop.f32.mrb[1].mxu0  ;;  %v525_v44 = vld [vmem:[#allocation2 + $0x38] sm:$0xff] (%p284_p1)  ;;  %v527_v46 = vld [vmem:[#allocation2 + $0x48] sm:$0xff] (%p284_p1) }
 0x493   : > { %v426_v50 = vadd.f32 %v412_v48, %v350_v45  ;;  %v973_v51 = vpop.f32.mrb[2].mxu0  ;;  %v524_v45 = vld [vmem:[#allocation2 + $0x30] sm:$0xff] (%p284_p1)  ;;  %569 = vst.msk [vmem:[%s1909_s7 + $0x38] sm:$0xff] (%p284_p1), %vm135_vm1, %v525_v44  ;;  %571 = vst.msk [vmem:[%s1909_s7 + $0x48] sm:$0xff] (%p284_p1), %vm135_vm1, %v527_v46  ;;  %v529_v48 = vld [vmem:[#allocation2 + $0x58] sm:$0x3] (%p284_p1) }
 0x494   : > { %1131 = vtanh.f32 %v428_v47  ;;  %v415_v52 = vpop.f32.mrb[3].mxu0  ;;  %v931_v58 = vmul.f32 -1.442695, %v428_v47  ;;  %568 = vst.msk [vmem:[%s1909_s7 + $0x30] sm:$0xff] (%p284_p1), %vm135_vm1, %v524_v45  ;;  %v526_v47 = vld [vmem:[#allocation2 + $0x40] sm:$0x3] (%p284_p1) }
 0x495   : > { %1133 = vtanh.f32 %v426_v50  ;;  %v427_v53 = vadd.f32 %v415_v52, %v353_v49  ;;  %v929_v57 = vmul.f32 -1.442695, %v426_v50  ;;  %v528_v49 = vld [vmem:[#allocation2 + $0x50] sm:$0xff] (%p284_p1)  ;;  %570 = vst.msk [vmem:[%s1909_s7 + $0x40] sm:$0x3] (%p284_p1), %vm280_vm2, %v526_v47  ;;  %v531_v50 = vld [vmem:[#allocation2 + $0x68] sm:$0xff] (%p284_p1) }
 0x496   :  { %573 = vst.msk [vmem:[%s1909_s7 + $0x58] sm:$0x3] (%p284_p1), %vm280_vm2, %v529_v48  ;;  %v530_v51 = vld [vmem:[#allocation2 + $0x60] sm:$0xff] (%p284_p1)  ;;  %v533_v52 = vld [vmem:[#allocation2 + $0x78] sm:$0xff] (%p284_p1) }
 0x497   : > { %1135 = vtanh.f32 %v427_v53  ;;  %v930_v59 = vmul.f32 -1.442695, %v427_v53  ;;  %572 = vst.msk [vmem:[%s1909_s7 + $0x50] sm:$0xff] (%p284_p1), %vm135_vm1, %v528_v49  ;;  %575 = vst.msk [vmem:[%s1909_s7 + $0x68] sm:$0xff] (%p284_p1), %vm135_vm1, %v531_v50  ;;  %v532_v53 = vld [vmem:[#allocation2 + $0x70] sm:$0x3] (%p284_p1) }
 0x498   : > { %1137 = vpow2.f32 %v929_v57  ;;  %574 = vst.msk [vmem:[%s1909_s7 + $0x60] sm:$0xff] (%p284_p1), %vm135_vm1, %v530_v51  ;;  %577 = vst.msk [vmem:[%s1909_s7 + $0x78] sm:$0xff] (%p284_p1), %vm135_vm1, %v533_v52 }
 0x499   : > { %1139 = vpow2.f32 %v931_v58  ;;  %576 = vst.msk [vmem:[%s1909_s7 + $0x70] sm:$0x3] (%p284_p1), %vm280_vm2, %v532_v53  ;;  %v537_v58 = vld [vmem:[#allocation2 + $0x98] sm:$0xff] (%p284_p1) }
 0x49a   : > { %1141 = vpow2.f32 %v930_v59  ;;  %v536_v59 = vld [vmem:[#allocation2 + $0x90] sm:$0xff] (%p284_p1)  ;;  %581 = vst.msk [vmem:[%s1909_s7 + $0x98] sm:$0xff] (%p284_p1), %vm135_vm1, %v537_v58 }
 0x49b   :  { %580 = vst.msk [vmem:[%s1909_s7 + $0x90] sm:$0xff] (%p284_p1), %vm135_vm1, %v536_v59 }
 0x49e   : > { %v1132_v54 = vpop.eup %1131 }
 0x49f   : > { %v1134_v55 = vpop.eup %1133  ;;  %460 = vrot.lane.b32.xlu0 %v1132_v54, %s1272_s16  ;;  %v535_v54 = vld [vmem:[#allocation2 + $0x88] sm:$0x3] (%p284_p1) }
 0x4a0   : > { %456 = vrot.lane.b32.xlu1 %v1134_v55, %s1272_s16  ;;  %v534_v55 = vld [vmem:[#allocation2 + $0x80] sm:$0xff] (%p284_p1)  ;;  %579 = vst.msk [vmem:[%s1909_s7 + $0x88] sm:$0x3] (%p284_p1), %vm280_vm2, %v535_v54 }
 0x4a1   : > { %v1136_v56 = vpop.eup %1135  ;;  %578 = vst.msk [vmem:[%s1909_s7 + $0x80] sm:$0xff] (%p284_p1), %vm135_vm1, %v534_v55 }
 0x4a2   : > { %v1138_v60 = vpop.eup %1137 }
 0x4a3   : > { %v1140_v61 = vpop.eup %1139  ;;  %v438_v62 = vadd.f32 1.0, %v1138_v60 }
 0x4a4   : > { %458 = vrot.lane.b32.xlu1 %v1136_v56, %s1272_s16  ;;  %v1142_v63 = vpop.eup %1141  ;;  %v440_v0 = vadd.f32 1.0, %v1140_v61 }
 0x4a5   : > { %1143 = vrcp.f32 %v438_v62  ;;  %v439_v1 = vadd.f32 1.0, %v1142_v63  ;;  %v539_v62 = vld [vmem:[#allocation2 + $0xa8] sm:$0xff] (%p284_p1)  ;;  %v538_v63 = vld [vmem:[#allocation2 + $0xa0] sm:$0x3] (%p284_p1) }
 0x4a6   : > { %1145 = vrcp.f32 %v440_v0  ;;  %583 = vst.msk [vmem:[%s1909_s7 + $0xa8] sm:$0xff] (%p284_p1), %vm135_vm1, %v539_v62 }
 0x4a7   : > { %1147 = vrcp.f32 %v439_v1  ;;  %582 = vst.msk [vmem:[%s1909_s7 + $0xa0] sm:$0x3] (%p284_p1), %vm280_vm2, %v538_v63 }
 0x4af   : > { %v1144_v2 = vpop.eup %1143 }
 0x4b0   : > { %v1146_v10 = vpop.eup %1145  ;;  %v450_v17 = vmul.f32 %v1249_v34, %v1144_v2 }
 0x4b1   : > { %v1148_v11 = vpop.eup %1147  ;;  %v452_v24 = vmul.f32 %v1241_v32, %v1146_v10 }
 0x4b2   : > { %v451_v25 = vmul.f32 %v1245_v33, %v1148_v11 }
 0x511   : > { %v461_v6 = vpop.permute.xlu0 %460 }
 0x512   : > { %v457_v3 = vpop.permute.xlu1 %456  ;;  %v467_v13 = vmul.f32 %v1146_v10, %v461_v6 }
 0x513   : > { %v465_v5 = vmul.f32 %v1144_v2, %v457_v3  ;;  %v540_v3 = vld [vmem:[#allocation2 + $0xb0] sm:$0xff] (%p284_p1) }
 0x514   :  { %584 = vst.msk [vmem:[%s1909_s7 + $0xb0] sm:$0xff] (%p284_p1), %vm135_vm1, %v540_v3 }
 0x515   : > { %471 = vrot.lane.b32.xlu1 %v465_v5, %s1273_s17 }
 0x516   : > { %v459_v12 = vpop.permute.xlu1 %458 }
 0x517   : > { %v466_v15 = vmul.f32 %v1148_v11, %v459_v12 }
 0x519   : > { %475 = vrot.lane.b32.xlu1 %v467_v13, %s1273_s17  ;;  %473 = vrot.lane.b32.xlu0 %v466_v15, %s1273_s17  ;;  %v545_v15 = vld [vmem:[#allocation2 + $0xd8] sm:$0xff] (%p284_p1) }
 0x51a   :  { %589 = vst.msk [vmem:[%s1909_s7 + $0xd8] sm:$0xff] (%p284_p1), %vm135_vm1, %v545_v15 }
 0x587   : > { %v472_v23 = vpop.permute.xlu1 %471 }
 0x588   : > { %v480_v34 = vadd.f32 %v472_v23, %v450_v17   ;;  %v544_v17 = vld [vmem:[#allocation2 + $0xd0] sm:$0x3] (%p284_p1) }
 0x589   :  { %588 = vst.msk [vmem:[%s1909_s7 + $0xd0] sm:$0x3] (%p284_p1), %vm280_vm2, %v544_v17 }
 0x58a   : > { %1149 = vtanh.f32 %v480_v34  ;;  %v519_v34 = vld [vmem:[#allocation2 + $0x8] sm:$0xff] (%p284_p1) }
 0x58b   : > { %v476_v26 = vpop.permute.xlu1 %475  ;;  %v474_v27 = vpop.permute.xlu0 %473  ;;  %562 = vst.msk [vmem:[%s1909_s7 + $0x8] sm:$0xff] (%p284_p1), %vm135_vm1, %v519_v34  ;;  %v558_v34 = vld [vmem:[#allocation2 + $0x140] sm:$0xff] (%p284_p1) }
 0x58c   : > { %v482_v32 = vadd.f32 %v476_v26, %v452_v24   ;;  %v481_v33 = vadd.f32 %v474_v27, %v451_v25   ;;  %v547_v25 = vld [vmem:[#allocation2 + $0xe8] sm:$0x3] (%p284_p1)  ;;  %v546_v26 = vld [vmem:[#allocation2 + $0xe0] sm:$0xff] (%p284_p1)  ;;  %602 = vst.msk [vmem:[%s1909_s7 + $0x140] sm:$0xff] (%p284_p1), %vm135_vm1, %v558_v34 }
 0x58d   :  { %591 = vst.msk [vmem:[%s1909_s7 + $0xe8] sm:$0x3] (%p284_p1), %vm280_vm2, %v547_v25 }
 0x58e   : > { %1151 = vtanh.f32 %v482_v32  ;;  %v518_v32 = vld [vmem:[#allocation2] sm:$0xff] (%p284_p1)  ;;  %590 = vst.msk [vmem:[%s1909_s7 + $0xe0] sm:$0xff] (%p284_p1), %vm135_vm1, %v546_v26 }
 0x58f   : > { %1153 = vtanh.f32 %v481_v33  ;;  %v521_v33 = vld [vmem:[#allocation2 + $0x18] sm:$0xff] (%p284_p1)  ;;  %561 = vst.msk [vmem:[%s1909_s7] sm:$0xff] (%p284_p1), %vm135_vm1, %v518_v32 }
 0x590   :  { %565 = vst.msk [vmem:[%s1909_s7 + $0x18] sm:$0xff] (%p284_p1), %vm135_vm1, %v521_v33  ;;  %v559_v33 = vld [vmem:[#allocation2 + $0x148] sm:$0x3] (%p284_p1) }
 0x591   :  { %603 = vst.msk [vmem:[%s1909_s7 + $0x148] sm:$0x3] (%p284_p1), %vm280_vm2, %v559_v33 }
 0x594   : > { %v1150_v28 = vpop.eup %1149 }
 0x595   : > { %489 = vrot.lane.b32.xlu0 %v1150_v28, %s1274_s18 }
 0x598   : > { %v1152_v29 = vpop.eup %1151 }
 0x599   : > { %v1154_v30 = vpop.eup %1153  ;;  %493 = vrot.lane.b32.xlu0 %v1152_v29, %s1274_s18  ;;  %v549_v29 = vld [vmem:[#allocation2 + $0xf8] sm:$0xff] (%p284_p1) }
 0x59a   : > { %491 = vrot.lane.b32.xlu1 %v1154_v30, %s1274_s18  ;;  %v548_v30 = vld [vmem:[#allocation2 + $0xf0] sm:$0xff] (%p284_p1)  ;;  %593 = vst.msk [vmem:[%s1909_s7 + $0xf8] sm:$0xff] (%p284_p1), %vm135_vm1, %v549_v29 }
 0x59b   :  { %592 = vst.msk [vmem:[%s1909_s7 + $0xf0] sm:$0xff] (%p284_p1), %vm135_vm1, %v548_v30 }
 0x607   : > { %v490_v31 = vpop.permute.xlu0 %489 }
 0x608   : > { %v498_v37 = vmul.f32 %v1144_v2, %v490_v31   ;;  %v541_v2 = vld [vmem:[#allocation2 + $0xb8] sm:$0x3] (%p284_p1) }
 0x609   :  { %585 = vst.msk [vmem:[%s1909_s7 + $0xb8] sm:$0x3] (%p284_p1), %vm280_vm2, %v541_v2 }
 0x60a   : > { %504 = vrot.lane.b32.xlu1 %v498_v37, %s1271_s13 }
 0x60b   : > { %v494_v35 = vpop.permute.xlu0 %493 }
 0x60c   : > { %v492_v36 = vpop.permute.xlu1 %491  ;;  %v500_v35 = vmul.f32 %v1146_v10, %v494_v35   ;;  %v543_v10 = vld [vmem:[#allocation2 + $0xc8] sm:$0xff] (%p284_p1) }
 0x60d   : > { %v499_v36 = vmul.f32 %v1148_v11, %v492_v36   ;;  %v542_v11 = vld [vmem:[#allocation2 + $0xc0] sm:$0xff] (%p284_p1)  ;;  %587 = vst.msk [vmem:[%s1909_s7 + $0xc8] sm:$0xff] (%p284_p1), %vm135_vm1, %v543_v10 }
 0x60e   : > { %508 = vrot.lane.b32.xlu1 %v500_v35, %s1271_s13  ;;  %586 = vst.msk [vmem:[%s1909_s7 + $0xc0] sm:$0xff] (%p284_p1), %vm135_vm1, %v542_v11 }
 0x60f   : > { %506 = vrot.lane.b32.xlu0 %v499_v36, %s1271_s13  ;;  %v551_v36 = vld [vmem:[#allocation2 + $0x108] sm:$0xff] (%p284_p1) }
 0x610   :  { %595 = vst.msk [vmem:[%s1909_s7 + $0x108] sm:$0xff] (%p284_p1), %vm135_vm1, %v551_v36 }
 0x67c   : > { %v505_v4 = vpop.permute.xlu1 %504  ;;  %286 = sbr.rel (!%p284_p1) target bundleno = 837 (0x345), region = 77 }
 0x67d   : > { %514 = vst.msk [vmem:[%s513_s19] sm:$0xff] %vm135_vm1, %v505_v4  ;;  %v550_v4 = vld [vmem:[#allocation2 + $0x100] sm:$0x3] (%p284_p1) }
 0x67e   :  { %594 = vst.msk [vmem:[%s1909_s7 + $0x100] sm:$0x3] (%p284_p1), %vm280_vm2, %v550_v4 }
 0x680   : > { %v509_v7 = vpop.permute.xlu1 %508 }
 0x681   : > { %517 = vst.msk [vmem:[%s513_s19 + $0x10] sm:$0x3] %vm280_vm2, %v509_v7  ;;  %v507_v8 = vpop.permute.xlu0 %506 }
 0x682   : > { %515 = vst.msk [vmem:[%s513_s19 + $0x8] sm:$0xff] %vm135_vm1, %v507_v8 }
 0x689   :  { %v606_v9 = vld [vmem:[#allocation3 + $0x10] sm:$0x3]  ;;  %v604_v20 = vld [vmem:[#allocation3] sm:$0xff]  ;;  %v607_v21 = vld [vmem:[#allocation3 + $0x18] sm:$0xff] }
 0x68a   :  { %692 = vrot.lane.b32.xlu1 %v606_v9, %s1275_s3  ;;  %688 = vrot.lane.b32.xlu0 %v604_v20, %s1275_s3  ;;  %v605_v22 = vld [vmem:[#allocation3 + $0x8] sm:$0xff]  ;;  %v608_v39 = vld [vmem:[#allocation3 + $0x20] sm:$0xff]  ;;  %v611_v37 = vld [vmem:[#allocation3 + $0x38] sm:$0xff] }
 0x68b   :  { %v609_v38 = vld [vmem:[#allocation3 + $0x28] sm:$0x3]  ;;  %v610_v14 = vld [vmem:[#allocation3 + $0x30] sm:$0xff]  ;;  %v612_v18 = vld [vmem:[#allocation3 + $0x40] sm:$0x3] }
 0x68c   :  { %v613_v16 = vld [vmem:[#allocation3 + $0x48] sm:$0xff]  ;;  %v615_v42 = vld [vmem:[#allocation3 + $0x58] sm:$0x3]  ;;  %v614_v43 = vld [vmem:[#allocation3 + $0x50] sm:$0xff] }
 0x68d   :  { %v617_v56 = vld [vmem:[#allocation3 + $0x68] sm:$0xff]  ;;  %v616_v57 = vld [vmem:[#allocation3 + $0x60] sm:$0xff]  ;;  %v619_v60 = vld [vmem:[#allocation3 + $0x78] sm:$0xff] }
 0x68e   :  { %694 = vrot.lane.b32.xlu1 %v607_v21, %s1275_s3  ;;  %690 = vrot.lane.b32.xlu0 %v605_v22, %s1275_s3  ;;  %v618_v61 = vld [vmem:[#allocation3 + $0x70] sm:$0x3]  ;;  %v621_v0 = vld [vmem:[#allocation3 + $0x88] sm:$0x3]  ;;  %v620_v1 = vld [vmem:[#allocation3 + $0x80] sm:$0xff] }
 0x68f   :  { %v623_v5 = vld [vmem:[#allocation3 + $0x98] sm:$0xff]  ;;  %v622_v6 = vld [vmem:[#allocation3 + $0x90] sm:$0xff]  ;;  %v625_v12 = vld [vmem:[#allocation3 + $0xa8] sm:$0xff] }
 0x690   :  { %v624_v13 = vld [vmem:[#allocation3 + $0xa0] sm:$0x3]  ;;  %v627_v23 = vld [vmem:[#allocation3 + $0xb8] sm:$0x3]  ;;  %v626_v24 = vld [vmem:[#allocation3 + $0xb0] sm:$0xff] }
 0x691   :  { %v629_v27 = vld [vmem:[#allocation3 + $0xc8] sm:$0xff]  ;;  %v628_v28 = vld [vmem:[#allocation3 + $0xc0] sm:$0xff]  ;;  %v631_v31 = vld [vmem:[#allocation3 + $0xd8] sm:$0xff] }
 0x692   :  { %698 = vrot.lane.b32.xlu1 %v609_v38, %s1275_s3  ;;  %696 = vrot.lane.b32.xlu0 %v608_v39, %s1275_s3  ;;  %v630_v35 = vld [vmem:[#allocation3 + $0xd0] sm:$0x3]  ;;  %v633_v7 = vld [vmem:[#allocation3 + $0xe8] sm:$0x3]  ;;  %v632_v8 = vld [vmem:[#allocation3 + $0xe0] sm:$0xff] }
 0x693   :  { %v553_v9 = vld [vmem:[#allocation2 + $0x118] sm:$0x3]  ;;  %v552_v20 = vld [vmem:[#allocation2 + $0x110] sm:$0xff]  ;;  %v635_v21 = vld [vmem:[#allocation3 + $0xf8] sm:$0xff] }
 0x694   :  { %597 = vst.msk [vmem:[%s1909_s7 + $0x118] sm:$0x3] %vm280_vm2, %v553_v9  ;;  %v634_v22 = vld [vmem:[#allocation3 + $0xf0] sm:$0xff]  ;;  %v555_v38 = vld [vmem:[#allocation2 + $0x128] sm:$0xff]  ;;  %v641_v40 = vld [vmem:[#allocation3 + $0x128] sm:$0xff] }
 0x695   :  { %596 = vst.msk [vmem:[%s1909_s7 + $0x110] sm:$0xff] %vm135_vm1, %v552_v20  ;;  %v554_v39 = vld [vmem:[#allocation2 + $0x120] sm:$0xff]  ;;  %599 = vst.msk [vmem:[%s1909_s7 + $0x128] sm:$0xff] %vm135_vm1, %v555_v38  ;;  %v639_v19 = vld [vmem:[#allocation3 + $0x118] sm:$0x3] }
 0x696   :  { %702 = vrot.lane.b32.xlu1 %v611_v37, %s1275_s3  ;;  %700 = vrot.lane.b32.xlu0 %v610_v14, %s1275_s3  ;;  %598 = vst.msk [vmem:[%s1909_s7 + $0x120] sm:$0xff] %vm135_vm1, %v554_v39  ;;  %v637_v37 = vld [vmem:[#allocation3 + $0x108] sm:$0xff]  ;;  %v636_v14 = vld [vmem:[#allocation3 + $0x100] sm:$0x3]  ;;  %v638_v32 = vld [vmem:[#allocation3 + $0x110] sm:$0xff] }
 0x697   :  { %v640_v41 = vld [vmem:[#allocation3 + $0x120] sm:$0xff]  ;;  %v645_v44 = vld [vmem:[#allocation3 + $0x148] sm:$0x3] }
 0x698   :  { %v644_v45 = vld [vmem:[#allocation3 + $0x140] sm:$0xff] }
 0x69a   :  { %706 = vrot.lane.b32.xlu1 %v613_v16, %s1275_s3  ;;  %704 = vrot.lane.b32.xlu0 %v612_v18, %s1275_s3  ;;  %v557_v16 = vld [vmem:[#allocation2 + $0x138] sm:$0xff]  ;;  %v556_v18 = vld [vmem:[#allocation2 + $0x130] sm:$0x3] }
 0x69b   :  { %601 = vst.msk [vmem:[%s1909_s7 + $0x138] sm:$0xff] %vm135_vm1, %v557_v16 }
 0x69c   :  { %600 = vst.msk [vmem:[%s1909_s7 + $0x130] sm:$0x3] %vm280_vm2, %v556_v18 }
 0x69e   :  { %710 = vrot.lane.b32.xlu1 %v615_v42, %s1275_s3  ;;  %708 = vrot.lane.b32.xlu0 %v614_v43, %s1275_s3  ;;  %v643_v42 = vld [vmem:[#allocation3 + $0x138] sm:$0xff]  ;;  %v642_v43 = vld [vmem:[#allocation3 + $0x130] sm:$0x3] }
 0x6a2   :  { %714 = vrot.lane.b32.xlu1 %v617_v56, %s1275_s3  ;;  %712 = vrot.lane.b32.xlu0 %v616_v57, %s1275_s3 }
 0x6a6   :  { %718 = vrot.lane.b32.xlu1 %v619_v60, %s1275_s3  ;;  %716 = vrot.lane.b32.xlu0 %v618_v61, %s1275_s3 }
 0x6aa   :  { %722 = vrot.lane.b32.xlu1 %v621_v0, %s1275_s3  ;;  %720 = vrot.lane.b32.xlu0 %v620_v1, %s1275_s3 }
 0x6ae   :  { %726 = vrot.lane.b32.xlu1 %v623_v5, %s1275_s3  ;;  %724 = vrot.lane.b32.xlu0 %v622_v6, %s1275_s3 }
 0x6b2   :  { %730 = vrot.lane.b32.xlu1 %v625_v12, %s1275_s3  ;;  %728 = vrot.lane.b32.xlu0 %v624_v13, %s1275_s3 }
 0x6b6   :  { %734 = vrot.lane.b32.xlu1 %v627_v23, %s1275_s3  ;;  %732 = vrot.lane.b32.xlu0 %v626_v24, %s1275_s3 }
 0x6ba   :  { %738 = vrot.lane.b32.xlu1 %v629_v27, %s1275_s3  ;;  %736 = vrot.lane.b32.xlu0 %v628_v28, %s1275_s3 }
 0x6be   :  { %742 = vrot.lane.b32.xlu1 %v631_v31, %s1275_s3  ;;  %740 = vrot.lane.b32.xlu0 %v630_v35, %s1275_s3 }
 0x6c2   :  { %746 = vrot.lane.b32.xlu1 %v633_v7, %s1275_s3  ;;  %744 = vrot.lane.b32.xlu0 %v632_v8, %s1275_s3 }
 0x6c6   :  { %750 = vrot.lane.b32.xlu1 %v635_v21, %s1275_s3  ;;  %748 = vrot.lane.b32.xlu0 %v634_v22, %s1275_s3 }
 0x6ca   :  { %754 = vrot.lane.b32.xlu1 %v637_v37, %s1275_s3  ;;  %752 = vrot.lane.b32.xlu0 %v636_v14, %s1275_s3 }
 0x6ce   :  { %758 = vrot.lane.b32.xlu1 %v639_v19, %s1275_s3  ;;  %756 = vrot.lane.b32.xlu0 %v638_v32, %s1275_s3 }
 0x6d2   :  { %762 = vrot.lane.b32.xlu1 %v641_v40, %s1275_s3  ;;  %760 = vrot.lane.b32.xlu0 %v640_v41, %s1275_s3 }
 0x6d6   :  { %766 = vrot.lane.b32.xlu1 %v643_v42, %s1275_s3  ;;  %764 = vrot.lane.b32.xlu0 %v642_v43, %s1275_s3 }
 0x6da   :  { %770 = vrot.lane.b32.xlu1 %v645_v44, %s1275_s3  ;;  %768 = vrot.lane.b32.xlu0 %v644_v45, %s1275_s3 }
 0x6fc   :  { %v693_v46 = vpop.permute.xlu1 %692  ;;  %v689_v47 = vpop.permute.xlu0 %688 }
 0x6fd   :  { %818 = vst.msk [vmem:[%s1909_s7 + $0x10] sm:$0x3] %vm817_vm3, %v693_v46 }
 0x6fe   :  { %815 = vst.msk [vmem:[%s1909_s7] sm:$0xff] %vm814_vm4, %v689_v47 }
 0x700   :  { %v695_v48 = vpop.permute.xlu1 %694  ;;  %v691_v49 = vpop.permute.xlu0 %690 }
 0x701   :  { %819 = vst.msk [vmem:[%s1909_s7 + $0x18] sm:$0xff] %vm814_vm4, %v695_v48  ;;  %816 = vst.msk [vmem:[%s1909_s7 + $0x8] sm:$0xff] %vm814_vm4, %v691_v49 }
 0x704   :  { %v699_v50 = vpop.permute.xlu1 %698  ;;  %v697_v51 = vpop.permute.xlu0 %696 }
 0x705   :  { %821 = vst.msk [vmem:[%s1909_s7 + $0x28] sm:$0x3] %vm817_vm3, %v699_v50 }
 0x706   :  { %820 = vst.msk [vmem:[%s1909_s7 + $0x20] sm:$0xff] %vm814_vm4, %v697_v51 }
 0x708   :  { %v703_v52 = vpop.permute.xlu1 %702  ;;  %v701_v53 = vpop.permute.xlu0 %700 }
 0x709   :  { %823 = vst.msk [vmem:[%s1909_s7 + $0x38] sm:$0xff] %vm814_vm4, %v703_v52  ;;  %822 = vst.msk [vmem:[%s1909_s7 + $0x30] sm:$0xff] %vm814_vm4, %v701_v53 }
 0x70c   :  { %v707_v54 = vpop.permute.xlu1 %706  ;;  %v705_v55 = vpop.permute.xlu0 %704 }
 0x70d   :  { %825 = vst.msk [vmem:[%s1909_s7 + $0x48] sm:$0xff] %vm814_vm4, %v707_v54 }
 0x70e   :  { %824 = vst.msk [vmem:[%s1909_s7 + $0x40] sm:$0x3] %vm817_vm3, %v705_v55 }
 0x710   :  { %v711_v56 = vpop.permute.xlu1 %710  ;;  %v709_v57 = vpop.permute.xlu0 %708 }
 0x711   :  { %827 = vst.msk [vmem:[%s1909_s7 + $0x58] sm:$0x3] %vm817_vm3, %v711_v56 }
 0x712   :  { %826 = vst.msk [vmem:[%s1909_s7 + $0x50] sm:$0xff] %vm814_vm4, %v709_v57 }
 0x714   :  { %v715_v58 = vpop.permute.xlu1 %714  ;;  %v713_v59 = vpop.permute.xlu0 %712 }
 0x715   :  { %829 = vst.msk [vmem:[%s1909_s7 + $0x68] sm:$0xff] %vm814_vm4, %v715_v58  ;;  %828 = vst.msk [vmem:[%s1909_s7 + $0x60] sm:$0xff] %vm814_vm4, %v713_v59 }
 0x718   :  { %v719_v60 = vpop.permute.xlu1 %718  ;;  %v717_v61 = vpop.permute.xlu0 %716 }
 0x719   :  { %831 = vst.msk [vmem:[%s1909_s7 + $0x78] sm:$0xff] %vm814_vm4, %v719_v60 }
 0x71a   :  { %830 = vst.msk [vmem:[%s1909_s7 + $0x70] sm:$0x3] %vm817_vm3, %v717_v61 }
 0x71c   :  { %v723_v62 = vpop.permute.xlu1 %722  ;;  %v721_v63 = vpop.permute.xlu0 %720 }
 0x71d   :  { %833 = vst.msk [vmem:[%s1909_s7 + $0x88] sm:$0x3] %vm817_vm3, %v723_v62 }
 0x71e   :  { %832 = vst.msk [vmem:[%s1909_s7 + $0x80] sm:$0xff] %vm814_vm4, %v721_v63 }
 0x720   :  { %v727_v0 = vpop.permute.xlu1 %726  ;;  %v725_v1 = vpop.permute.xlu0 %724 }
 0x721   :  { %835 = vst.msk [vmem:[%s1909_s7 + $0x98] sm:$0xff] %vm814_vm4, %v727_v0  ;;  %834 = vst.msk [vmem:[%s1909_s7 + $0x90] sm:$0xff] %vm814_vm4, %v725_v1 }
 0x724   :  { %v731_v2 = vpop.permute.xlu1 %730  ;;  %v729_v3 = vpop.permute.xlu0 %728 }
 0x725   :  { %837 = vst.msk [vmem:[%s1909_s7 + $0xa8] sm:$0xff] %vm814_vm4, %v731_v2 }
 0x726   :  { %836 = vst.msk [vmem:[%s1909_s7 + $0xa0] sm:$0x3] %vm817_vm3, %v729_v3 }
 0x728   :  { %v735_v5 = vpop.permute.xlu1 %734  ;;  %v733_v6 = vpop.permute.xlu0 %732 }
 0x729   :  { %839 = vst.msk [vmem:[%s1909_s7 + $0xb8] sm:$0x3] %vm817_vm3, %v735_v5 }
 0x72a   :  { %838 = vst.msk [vmem:[%s1909_s7 + $0xb0] sm:$0xff] %vm814_vm4, %v733_v6 }
 0x72c   :  { %v739_v10 = vpop.permute.xlu1 %738  ;;  %v737_v11 = vpop.permute.xlu0 %736 }
 0x72d   :  { %841 = vst.msk [vmem:[%s1909_s7 + $0xc8] sm:$0xff] %vm814_vm4, %v739_v10  ;;  %840 = vst.msk [vmem:[%s1909_s7 + $0xc0] sm:$0xff] %vm814_vm4, %v737_v11 }
 0x730   :  { %v743_v12 = vpop.permute.xlu1 %742  ;;  %v741_v13 = vpop.permute.xlu0 %740 }
 0x731   :  { %843 = vst.msk [vmem:[%s1909_s7 + $0xd8] sm:$0xff] %vm814_vm4, %v743_v12 }
 0x732   :  { %842 = vst.msk [vmem:[%s1909_s7 + $0xd0] sm:$0x3] %vm817_vm3, %v741_v13 }
 0x734   :  { %v747_v15 = vpop.permute.xlu1 %746  ;;  %v745_v17 = vpop.permute.xlu0 %744 }
 0x735   :  { %845 = vst.msk [vmem:[%s1909_s7 + $0xe8] sm:$0x3] %vm817_vm3, %v747_v15 }
 0x736   :  { %844 = vst.msk [vmem:[%s1909_s7 + $0xe0] sm:$0xff] %vm814_vm4, %v745_v17 }
 0x738   :  { %v751_v23 = vpop.permute.xlu1 %750  ;;  %v749_v24 = vpop.permute.xlu0 %748 }
 0x739   :  { %847 = vst.msk [vmem:[%s1909_s7 + $0xf8] sm:$0xff] %vm814_vm4, %v751_v23  ;;  %846 = vst.msk [vmem:[%s1909_s7 + $0xf0] sm:$0xff] %vm814_vm4, %v749_v24 }
 0x73c   :  { %v755_v25 = vpop.permute.xlu1 %754  ;;  %v753_v26 = vpop.permute.xlu0 %752 }
 0x73d   :  { %849 = vst.msk [vmem:[%s1909_s7 + $0x108] sm:$0xff] %vm814_vm4, %v755_v25 }
 0x73e   :  { %848 = vst.msk [vmem:[%s1909_s7 + $0x100] sm:$0x3] %vm817_vm3, %v753_v26 }
 0x740   :  { %v759_v27 = vpop.permute.xlu1 %758  ;;  %v757_v28 = vpop.permute.xlu0 %756 }
 0x741   :  { %851 = vst.msk [vmem:[%s1909_s7 + $0x118] sm:$0x3] %vm817_vm3, %v759_v27 }
 0x742   :  { %850 = vst.msk [vmem:[%s1909_s7 + $0x110] sm:$0xff] %vm814_vm4, %v757_v28 }
 0x744   :  { %v763_v29 = vpop.permute.xlu1 %762  ;;  %v761_v30 = vpop.permute.xlu0 %760 }
 0x745   :  { %853 = vst.msk [vmem:[%s1909_s7 + $0x128] sm:$0xff] %vm814_vm4, %v763_v29  ;;  %852 = vst.msk [vmem:[%s1909_s7 + $0x120] sm:$0xff] %vm814_vm4, %v761_v30 }
 0x748   :  { %v767_v31 = vpop.permute.xlu1 %766  ;;  %v765_v35 = vpop.permute.xlu0 %764 }
 0x749   :  { %855 = vst.msk [vmem:[%s1909_s7 + $0x138] sm:$0xff] %vm814_vm4, %v767_v31 }
 0x74a   :  { %854 = vst.msk [vmem:[%s1909_s7 + $0x130] sm:$0x3] %vm817_vm3, %v765_v35 }
 0x74c   :  { %v771_v36 = vpop.permute.xlu1 %770  ;;  %v769_v4 = vpop.permute.xlu0 %768 }
 0x74d   :  { %857 = vst.msk [vmem:[%s1909_s7 + $0x148] sm:$0x3] %vm817_vm3, %v771_v36 }
 0x74e   :  { %856 = vst.msk [vmem:[%s1909_s7 + $0x140] sm:$0xff] %vm814_vm4, %v769_v4 }

// kernel: whyv2_forward.32
= control target key start
LH: loop header
LB: loop body
LE: loop exit
PB: predicated region body
PF: predicated region fallthrough
CT: control target
= control target key end

     0   :  { %v754_v10 = vmov 0.0   ;;  %v756_v11 = vmov 0.0   ;;  %v758_v12 = vmov 0.0   ;;  %v760_v13 = vmov 0.0   ;;  %s873_s0 = inlined_call_operand.vmem [shape: f32[6,34,32], index: 0, kind: input, shape index: {}]   ;;  %s874_s1 = inlined_call_operand.vmem [shape: f32[32,64], index: 1, kind: input, shape index: {}]   ;;  %s875_s2 = inlined_call_operand.vmem [shape: f32[1,64], index: 2, kind: input, shape index: {}]   ;;  %s876_s3 = inlined_call_operand.vmem [shape: f32[16,64], index: 3, kind: input, shape index: {}]   ;;  %s877_s4 = inlined_call_operand.vmem [shape: f32[6,34,16], index: 4, kind: output, shape index: {}]  }
   0x1   :  { %v716_v0 = vld [vmem:[%s874_s1] sm:$0xff]  ;;  %v721_v1 = vld [vmem:[%s874_s1 + $0x8] sm:$0xff]  ;;  %v726_v2 = vld [vmem:[%s874_s1 + $0x10] sm:$0xff]  ;;  %v762_v14 = vmov 0.0   ;;  %v764_v15 = vmov 0.0   ;;  %v766_v16 = vmov 0.0  }
   0x2   :  { %v731_v3 = vld [vmem:[%s874_s1 + $0x18] sm:$0xff]  ;;  %v22_v4 = vpack.c.bf16 %v721_v1, %v716_v0  ;;  %v738_v5 = vld [vmem:[%s876_s3] sm:$0xff]  ;;  %v743_v6 = vld [vmem:[%s876_s3 + $0x8] sm:$0xff]  ;;  %v768_v17 = vmov 0.0   ;;  %v770_v18 = vmov 0.0   ;;  %v772_v19 = vmov 0.0  }
   0x3   :  { %v23_v7 = vpack.c.bf16 %v731_v3, %v726_v2  ;;  %v26_v8 = vpack.c.bf16 %v743_v6, %v738_v5  ;;  %v752_v9 = vld [vmem:[%s875_s2] ss:$0 sm:$0xff]  ;;  %s774_s2 = smov 0  }
   0x4 LB: > { %v126_v20 = vpack.c.bf16 %v672_v18, %v676_v19  ;;  %s44_s3 = smul.u32 40, %s680_s2  ;;  %v682_v21 = vmov 0.0   ;;  %s683_s28 = smov 80   ;;  %v127_v22 = vpack.c.bf16 %v664_v16, %v668_v17  ;;  %v128_v23 = vpack.c.bf16 %v660_v15, %v660_v15  ;;  %s680_s2 = sphi %s774_s2, %s33_s2   ;;  %v676_v19 = vphi %v772_v19, %v324_v19   ;;  %v672_v18 = vphi %v770_v18, %v325_v18   ;;  %v668_v17 = vphi %v768_v17, %v326_v17   ;;  %v664_v16 = vphi %v766_v16, %v327_v16   ;;  %v660_v15 = vphi %v764_v15, %v328_v15   ;;  %v656_v14 = vphi %v762_v14, %v294_v14   ;;  %v652_v13 = vphi %v760_v13, %v295_v13   ;;  %v648_v12 = vphi %v758_v12, %v296_v12   ;;  %v644_v11 = vphi %v756_v11, %v297_v11   ;;  %v640_v10 = vphi %v754_v10, %v298_v10  }
   0x5   : > { %420 = vmatprep.subr.bf16.mxu1 %v682_v21  ;;  %436 = vmatprep.subr.bf16.mxu0 %v682_v21  ;;  %vm684_vm0 = vmmov 0   ;;  %vm60_vm1 = vcmask 261120   ;;  %vm138_vm2 = vcmask 130048   ;;  %s685_s6 = smov 96   ;;  %s686_s7 = smov 16   ;;  %vm354_vm3 = vcmask 123904  }
   0x6   : > { %132 = vrot.lane.b32.xlu0 %v126_v20, %s683_s28  ;;  %421 = vmatpush3.bf16.msra.mxu1 %v22_v4  ;;  %s45_s5 = scalar_lea.vmem %s873_s0, %s44_s3  ;;  %s687_s8 = smov 32  }
   0x7   : > { %422 = vmatprep.subr.bf16.mxu1 %v682_v21  ;;  %424 = vmatprep.mubr.msk.bf16.mxu1 %vm684_vm0, %v682_v21  ;;  %v46_v24 = vld [vmem:[%s45_s5] sm:$0xff]  ;;  %v47_v25 = vld [vmem:[%s45_s5 + $0x8] sm:$0xff]  ;;  %v48_v27 = vld [vmem:[%s45_s5 + $0x10] sm:$0xff]  ;;  %s349_s11 = scalar_lea.vmem %s877_s4, %s44_s3  ;;  %s33_s2 = sadd.s32 1, %s680_s2  }
   0x8   : > { %136 = vrot.lane.b32.xlu1 %v128_v23, %s683_s28  ;;  %437 = vmatpush3.bf16.msra.mxu0 %v26_v8  ;;  %v51_v26 = vpack.c.bf16 %v47_v25, %v46_v24  ;;  %v49_v28 = vld [vmem:[%s45_s5 + $0x18] sm:$0xff]  ;;  %v50_v30 = vld [vmem:[%s45_s5 + $0x20] sm:$0x3]  ;;  %p30_p0 = scmp.ge.s32.totalorder %s33_s2, 6  }
   0x9   : > { %438 = vmatprep.mubr.msk.bf16.mxu0 %vm684_vm0, %v682_v21  ;;  %v52_v29 = vpack.c.bf16 %v49_v28, %v48_v27  ;;  %v53_v31 = vpack.c.bf16 %v50_v30, %v50_v30 }
   0xa   : > { %134 = vrot.lane.b32.xlu0 %v127_v22, %s683_s28  ;;  %423 = vmatpush3.bf16.msra.mxu1 %v23_v7 }
   0xd   : > { %425 = vmatmul.mubr.msk.bf16.vlgmr.msra.gmra.mrb[0].mxu1 %vm60_vm1, %v51_v26 }
   0xe   : > { %428 = vmatprep.mubr.msk.bf16.mxu1 %vm684_vm0, %v682_v21 }
  0x15   : > { %429 = vmatmul.mubr.msk.bf16.gmra.mrb[4].mxu1 %vm60_vm1, %v52_v29 }
  0x16   : > { %432 = vmatprep.mubr.msk.bf16.mxu1 %vm684_vm0, %v682_v21 }
  0x1d   : > { %433 = vmatmul.mubr.msk.bf16.gmra.mrb[8].mxu1 %vm60_vm1, %v53_v31 }
  0x78   : > { %v133_v32 = vpop.permute.xlu0 %132 }
  0x79   : > { %439 = vmatmul.mubr.msk.bf16.vlgmr.msra.gmra.mrb[0].mxu0 %vm138_vm2, %v133_v32 }
  0x7a   : > { %442 = vmatprep.mubr.msk.bf16.mxu0 %vm684_vm0, %v682_v21  ;;  %v137_v34 = vpop.permute.xlu1 %136 }
  0x7c   : > { %v135_v33 = vpop.permute.xlu0 %134 }
  0x81   : > { %443 = vmatmul.mubr.msk.bf16.gmra.mrb[4].mxu0 %vm138_vm2, %v135_v33 }
  0x82   : > { %446 = vmatprep.mubr.msk.bf16.mxu0 %vm684_vm0, %v682_v21 }
  0x89   : > { %447 = vmatmul.mubr.msk.bf16.gmra.mrb[8].mxu0 %vm138_vm2, %v137_v34 }
  0xe0   : > { %v104_v35 = vpop.f32.mrb[0].mxu1 }
  0xe1   : > { %v426_v36 = vpop.f32.mrb[1].mxu1  ;;  %v105_v47 = vadd.f32 %v752_v9, %v104_v35 }
  0xe2   : > { %v107_v37 = vpop.f32.mrb[2].mxu1 }
  0xe3   : > { %v427_v38 = vpop.f32.mrb[3].mxu1  ;;  %v108_v49 = vadd.f32 %v752_v9, %v107_v37 }
  0xe8   : > { %v112_v39 = vpop.f32.mrb[4].mxu1 }
  0xe9   : > { %v430_v40 = vpop.f32.mrb[5].mxu1  ;;  %v113_v55 = vadd.f32 %v752_v9, %v112_v39 }
  0xea   : > { %v115_v41 = vpop.f32.mrb[6].mxu1 }
  0xeb   : > { %v431_v42 = vpop.f32.mrb[7].mxu1  ;;  %v116_v57 = vadd.f32 %v752_v9, %v115_v41 }
  0xf0   : > { %v120_v43 = vpop.f32.mrb[8].mxu1 }
  0xf1   : > { %v434_v44 = vpop.f32.mrb[9].mxu1  ;;  %v121_v15 = vadd.f32 %v752_v9, %v120_v43 }
  0xf2   : > { %v123_v45 = vpop.f32.mrb[10].mxu1 }
  0xf3   : > { %v435_v46 = vpop.f32.mrb[11].mxu1 }
 0x14c   : > { %v182_v48 = vpop.f32.mrb[0].mxu0 }
 0x14d   : > { %v204_v50 = vadd.f32 %v182_v48, %v105_v47  ;;  %v440_v51 = vpop.f32.mrb[1].mxu0 }
 0x14e   : > { %v185_v52 = vpop.f32.mrb[2].mxu0 }
 0x14f   : > { %554 = vtanh.f32 %v204_v50  ;;  %v205_v53 = vadd.f32 %v185_v52, %v108_v49  ;;  %v441_v54 = vpop.f32.mrb[3].mxu0  ;;  %v406_v25 = vmul.f32 -1.442695, %v204_v50 }
 0x151   : > { %556 = vtanh.f32 %v205_v53  ;;  %v407_v26 = vmul.f32 -1.442695, %v205_v53 }
 0x154   : > { %v190_v56 = vpop.f32.mrb[4].mxu0 }
 0x155   : > { %v206_v58 = vadd.f32 %v190_v56, %v113_v55  ;;  %v444_v59 = vpop.f32.mrb[5].mxu0 }
 0x156   : > { %v193_v60 = vpop.f32.mrb[6].mxu0 }
 0x157   : > { %558 = vtanh.f32 %v206_v58  ;;  %v207_v61 = vadd.f32 %v193_v60, %v116_v57  ;;  %v445_v62 = vpop.f32.mrb[7].mxu0  ;;  %v408_v27 = vmul.f32 -1.442695, %v206_v58 }
 0x159   : > { %v555_v63 = vpop.eup %554  ;;  %560 = vtanh.f32 %v207_v61  ;;  %v409_v28 = vmul.f32 -1.442695, %v207_v61 }
 0x15a   : > { %254 = vrot.lane.b32.xlu1 %v555_v63, %s685_s6 }
 0x15b   : > { %v557_v16 = vpop.eup %556 }
 0x15c   : > { %v198_v17 = vpop.f32.mrb[8].mxu0  ;;  %256 = vrot.lane.b32.xlu0 %v557_v16, %s685_s6 }
 0x15d   : > { %v208_v18 = vadd.f32 %v198_v17, %v121_v15  ;;  %v448_v19 = vpop.f32.mrb[9].mxu0 }
 0x15e   : > { %v201_v20 = vpop.f32.mrb[10].mxu0 }
 0x15f   : > { %562 = vtanh.f32 %v208_v18  ;;  %v449_v21 = vpop.f32.mrb[11].mxu0  ;;  %v410_v30 = vmul.f32 -1.442695, %v208_v18 }
 0x160   : > { %564 = vpow2.f32 %v406_v25 }
 0x161   : > { %v559_v22 = vpop.eup %558  ;;  %566 = vpow2.f32 %v407_v26 }
 0x162   : > { %258 = vrot.lane.b32.xlu1 %v559_v22, %s685_s6  ;;  %568 = vpow2.f32 %v408_v27 }
 0x163   : > { %v561_v23 = vpop.eup %560  ;;  %570 = vpow2.f32 %v409_v28 }
 0x164   : > { %260 = vrot.lane.b32.xlu0 %v561_v23, %s685_s6  ;;  %572 = vpow2.f32 %v410_v30 }
 0x169   : > { %v563_v24 = vpop.eup %562 }
 0x16a   : > { %262 = vrot.lane.b32.xlu1 %v563_v24, %s685_s6  ;;  %v565_v29 = vpop.eup %564 }
 0x16b   : > { %v567_v31 = vpop.eup %566  ;;  %v224_v32 = vadd.f32 1.0, %v565_v29 }
 0x16c   : > { %v225_v33 = vadd.f32 1.0, %v567_v31  ;;  %v569_v34 = vpop.eup %568 }
 0x16d   : > { %574 = vrcp.f32 %v224_v32  ;;  %v571_v35 = vpop.eup %570  ;;  %v226_v36 = vadd.f32 1.0, %v569_v34 }
 0x16e   : > { %576 = vrcp.f32 %v225_v33  ;;  %v227_v37 = vadd.f32 1.0, %v571_v35  ;;  %v573_v38 = vpop.eup %572 }
 0x16f   : > { %578 = vrcp.f32 %v226_v36  ;;  %v228_v42 = vadd.f32 1.0, %v573_v38 }
 0x170   : > { %580 = vrcp.f32 %v227_v37 }
 0x171   : > { %582 = vrcp.f32 %v228_v42 }
 0x177   : > { %v575_v39 = vpop.eup %574 }
 0x178   : > { %v577_v43 = vpop.eup %576  ;;  %v244_v55 = vmul.f32 %v656_v14, %v575_v39 }
 0x179   : > { %v579_v46 = vpop.eup %578  ;;  %v245_v57 = vmul.f32 %v652_v13, %v577_v43 }
 0x17a   : > { %v581_v49 = vpop.eup %580  ;;  %v246_v59 = vmul.f32 %v648_v12, %v579_v46 }
 0x17b   : > { %v583_v52 = vpop.eup %582  ;;  %v247_v61 = vmul.f32 %v644_v11, %v581_v49 }
 0x17c   : > { %v248_v15 = vmul.f32 %v640_v10, %v583_v52 }
 0x1cc   : > { %v255_v40 = vpop.permute.xlu1 %254 }
 0x1cd   : > { %v269_v41 = vmul.f32 %v575_v39, %v255_v40 }
 0x1ce   : > { %v257_v44 = vpop.permute.xlu0 %256 }
 0x1cf   : > { %279 = vrot.lane.b32.xlu0 %v269_v41, %s686_s7  ;;  %v270_v45 = vmul.f32 %v577_v43, %v257_v44 }
 0x1d1   : > { %281 = vrot.lane.b32.xlu1 %v270_v45, %s686_s7 }
 0x1d4   : > { %v259_v47 = vpop.permute.xlu1 %258 }
 0x1d5   : > { %v271_v48 = vmul.f32 %v579_v46, %v259_v47 }
 0x1d6   : > { %v261_v50 = vpop.permute.xlu0 %260 }
 0x1d7   : > { %283 = vrot.lane.b32.xlu0 %v271_v48, %s686_s7  ;;  %v272_v51 = vmul.f32 %v581_v49, %v261_v50 }
 0x1d9   : > { %285 = vrot.lane.b32.xlu1 %v272_v51, %s686_s7 }
 0x1dc   : > { %v263_v53 = vpop.permute.xlu1 %262 }
 0x1dd   : > { %v273_v54 = vmul.f32 %v583_v52, %v263_v53 }
 0x1df   : > { %287 = vrot.lane.b32.xlu0 %v273_v54, %s686_s7 }
 0x241   : > { %v280_v56 = vpop.permute.xlu0 %279 }
 0x242   : > { %v294_v14 = vadd.f32 %v280_v56, %v244_v55  }
 0x243   : > { %v282_v58 = vpop.permute.xlu1 %281 }
 0x244   : > { %584 = vtanh.f32 %v294_v14  ;;  %v295_v13 = vadd.f32 %v282_v58, %v245_v57  }
 0x246   : > { %586 = vtanh.f32 %v295_v13 }
 0x249   : > { %v284_v60 = vpop.permute.xlu0 %283 }
 0x24a   : > { %v296_v12 = vadd.f32 %v284_v60, %v246_v59  }
 0x24b   : > { %v286_v62 = vpop.permute.xlu1 %285 }
 0x24c   : > { %588 = vtanh.f32 %v296_v12  ;;  %v297_v11 = vadd.f32 %v286_v62, %v247_v61  }
 0x24e   : > { %v585_v63 = vpop.eup %584  ;;  %590 = vtanh.f32 %v297_v11 }
 0x24f   : > { %309 = vrot.lane.b32.xlu1 %v585_v63, %s687_s8 }
 0x250   : > { %v587_v16 = vpop.eup %586 }
 0x251   : > { %v288_v17 = vpop.permute.xlu0 %287  ;;  %311 = vrot.lane.b32.xlu0 %v587_v16, %s687_s8 }
 0x252   : > { %v298_v10 = vadd.f32 %v288_v17, %v248_v15  }
 0x254   : > { %592 = vtanh.f32 %v298_v10 }
 0x256   : > { %v589_v18 = vpop.eup %588 }
 0x257   : > { %313 = vrot.lane.b32.xlu1 %v589_v18, %s687_s8 }
 0x258   : > { %v591_v19 = vpop.eup %590 }
 0x259   : > { %315 = vrot.lane.b32.xlu0 %v591_v19, %s687_s8 }
 0x25e   : > { %v593_v20 = vpop.eup %592 }
 0x25f   : > { %317 = vrot.lane.b32.xlu1 %v593_v20, %s687_s8 }
 0x2c1   : > { %v310_v21 = vpop.permute.xlu1 %309 }
 0x2c2   : > { %v324_v19 = vmul.f32 %v575_v39, %v310_v21  }
 0x2c3   : > { %v312_v22 = vpop.permute.xlu0 %311 }
 0x2c4   : > { %334 = vrot.lane.b32.xlu0 %v324_v19, %s683_s28  ;;  %v325_v18 = vmul.f32 %v577_v43, %v312_v22  }
 0x2c6   : > { %336 = vrot.lane.b32.xlu1 %v325_v18, %s683_s28 }
 0x2c9   : > { %v314_v23 = vpop.permute.xlu1 %313 }
 0x2ca   : > { %v326_v17 = vmul.f32 %v579_v46, %v314_v23  }
 0x2cb   : > { %v316_v24 = vpop.permute.xlu0 %315 }
 0x2cc   : > { %338 = vrot.lane.b32.xlu0 %v326_v17, %s683_s28  ;;  %v327_v16 = vmul.f32 %v581_v49, %v316_v24  }
 0x2ce   : > { %340 = vrot.lane.b32.xlu1 %v327_v16, %s683_s28 }
 0x2d1   : > { %v318_v25 = vpop.permute.xlu1 %317 }
 0x2d2   : > { %v328_v15 = vmul.f32 %v583_v52, %v318_v25  }
 0x2d4   : > { %342 = vrot.lane.b32.xlu0 %v328_v15, %s683_s28 }
 0x336   : > { %v335_v26 = vpop.permute.xlu0 %334 }
 0x337   : > { %350 = vst.msk [vmem:[%s349_s11] sm:$0xff] %vm138_vm2, %v335_v26 }
 0x338   : > { %v337_v27 = vpop.permute.xlu1 %336 }
 0x339   : > { %351 = vst.msk [vmem:[%s349_s11 + $0x8] sm:$0xff] %vm138_vm2, %v337_v27 }
 0x33e   : > { %v339_v28 = vpop.permute.xlu0 %338 }
 0x33f   : > { %352 = vst.msk [vmem:[%s349_s11 + $0x10] sm:$0xff] %vm138_vm2, %v339_v28 }
 0x340   : > { %v341_v29 = vpop.permute.xlu1 %340 }
 0x341   : > { %353 = vst.msk [vmem:[%s349_s11 + $0x18] sm:$0xff] %vm138_vm2, %v341_v29  ;;  %32 = sbr.rel (!%p30_p0) target bundleno = 4 (0x4), region = 45 }
 0x346   : > { %v343_v30 = vpop.permute.xlu0 %342 }
 0x347   : > { %355 = vst.msk [vmem:[%s349_s11 + $0x20] sm:$0x3] %vm354_vm3, %v343_v30 }

// kernel: whyv2_forward.33
= control target key start
LH: loop header
LB: loop body
LE: loop exit
PB: predicated region body
PF: predicated region fallthrough
CT: control target
= control target key end

     0   :  { %v359_v0 = vmov 0.0   ;;  %vm360_vm0 = vmmov 0   ;;  %vm64_vm1 = vcmask 130048   ;;  %vm241_vm2 = vcmask 261120   ;;  %s640_s1 = inlined_call_operand.vmem [shape: f32[16,32], index: 1, kind: input, shape index: {}]   ;;  %s641_s0 = inlined_call_operand.vmem [shape: f32[204,16], index: 0, kind: input, shape index: {}]   ;;  %s642_s2 = inlined_call_operand.vmem [shape: f32[1,32], index: 2, kind: input, shape index: {}]   ;;  %s643_s3 = inlined_call_operand.vmem [shape: f32[204,32], index: 3, kind: output, shape index: {}]  }
   0x1   :  { %301 = vmatprep.subr.bf16.mxu0 %v359_v0  ;;  %v54_v1 = vld [vmem:[%s640_s1] sm:$0xff]  ;;  %v55_v2 = vld [vmem:[%s640_s1 + $0x8] sm:$0xff]  ;;  %303 = vmatprep.mubr.msk.bf16.mxu0 %vm360_vm0, %v359_v0  ;;  %v29_v6 = vld [vmem:[%s641_s0 + $0x70] sm:$0xff]  ;;  %vm267_vm3 = vcmask 257024  }
   0x2   :  { %v15_v3 = vld [vmem:[%s641_s0] sm:$0xff]  ;;  %v56_v4 = vpack.c.bf16 %v55_v2, %v54_v1  ;;  %v16_v5 = vld [vmem:[%s641_s0 + $0x8] sm:$0xff]  ;;  %355 = vmatprep.subr.bf16.mxu1 %v359_v0  ;;  %331 = vmatprep.mubr.msk.bf16.mxu1 %vm360_vm0, %v359_v0  ;;  %v30_v7 = vld [vmem:[%s641_s0 + $0x78] sm:$0xff] }
   0x3   :  { %v41_v8 = vpack.c.bf16 %v16_v5, %v15_v3  ;;  %v48_v9 = vpack.c.bf16 %v30_v7, %v29_v6  ;;  %v17_v10 = vld [vmem:[%s641_s0 + $0x10] sm:$0xff]  ;;  %v18_v11 = vld [vmem:[%s641_s0 + $0x18] sm:$0xff]  ;;  %v31_v12 = vld [vmem:[%s641_s0 + $0x80] sm:$0xff] }
   0x4   :  { %302 = vmatpush3.bf16.msra.mxu0 %v56_v4  ;;  %356 = vmatpush3.bf16.msra.mxu1 %v56_v4  ;;  %v32_v13 = vld [vmem:[%s641_s0 + $0x88] sm:$0xff]  ;;  %v42_v14 = vpack.c.bf16 %v18_v11, %v17_v10  ;;  %v19_v16 = vld [vmem:[%s641_s0 + $0x20] sm:$0xff]  ;;  %v33_v18 = vld [vmem:[%s641_s0 + $0x90] sm:$0xff] }
   0x5   :  { %v49_v15 = vpack.c.bf16 %v32_v13, %v31_v12  ;;  %v20_v17 = vld [vmem:[%s641_s0 + $0x28] sm:$0xff]  ;;  %v34_v19 = vld [vmem:[%s641_s0 + $0x98] sm:$0xff]  ;;  %v21_v22 = vld [vmem:[%s641_s0 + $0x30] sm:$0xff] }
   0x6   :  { %v43_v20 = vpack.c.bf16 %v20_v17, %v19_v16  ;;  %v50_v21 = vpack.c.bf16 %v34_v19, %v33_v18  ;;  %v22_v23 = vld [vmem:[%s641_s0 + $0x38] sm:$0xff]  ;;  %v35_v24 = vld [vmem:[%s641_s0 + $0xa0] sm:$0xff]  ;;  %v36_v25 = vld [vmem:[%s641_s0 + $0xa8] sm:$0xff] }
   0x7   :  { %304 = vmatmul.mubr.msk.bf16.vlgmr.msra.gmra.mrb[0].mxu0 %vm64_vm1, %v41_v8  ;;  %332 = vmatmul.mubr.msk.bf16.vlgmr.msra.gmra.mrb[0].mxu1 %vm64_vm1, %v48_v9  ;;  %v44_v26 = vpack.c.bf16 %v22_v23, %v21_v22  ;;  %v51_v27 = vpack.c.bf16 %v36_v25, %v35_v24  ;;  %v23_v28 = vld [vmem:[%s641_s0 + $0x40] sm:$0xff]  ;;  %v24_v29 = vld [vmem:[%s641_s0 + $0x48] sm:$0xff]  ;;  %v37_v30 = vld [vmem:[%s641_s0 + $0xb0] sm:$0xff] }
   0x8   :  { %307 = vmatprep.mubr.msk.bf16.mxu0 %vm360_vm0, %v359_v0  ;;  %335 = vmatprep.mubr.msk.bf16.mxu1 %vm360_vm0, %v359_v0  ;;  %v38_v31 = vld [vmem:[%s641_s0 + $0xb8] sm:$0xff]  ;;  %v45_v32 = vpack.c.bf16 %v24_v29, %v23_v28  ;;  %v25_v34 = vld [vmem:[%s641_s0 + $0x50] sm:$0xff]  ;;  %v39_v36 = vld [vmem:[%s641_s0 + $0xc0] sm:$0xff] }
   0x9   :  { %v52_v33 = vpack.c.bf16 %v38_v31, %v37_v30  ;;  %v26_v35 = vld [vmem:[%s641_s0 + $0x58] sm:$0xff]  ;;  %v40_v37 = vld [vmem:[%s641_s0 + $0xc8] sm:$0xf]  ;;  %v27_v40 = vld [vmem:[%s641_s0 + $0x60] sm:$0xff] }
   0xa   :  { %v46_v38 = vpack.c.bf16 %v26_v35, %v25_v34  ;;  %v53_v39 = vpack.c.bf16 %v40_v37, %v39_v36  ;;  %v28_v41 = vld [vmem:[%s641_s0 + $0x68] sm:$0xff]  ;;  %v509_v43 = vld [vmem:[%s642_s2] ss:$0 sm:$0xff] }
   0xb   :  { %v47_v42 = vpack.c.bf16 %v28_v41, %v27_v40 }
   0xf   :  { %308 = vmatmul.mubr.msk.bf16.gmra.mrb[4].mxu0 %vm64_vm1, %v42_v14  ;;  %336 = vmatmul.mubr.msk.bf16.gmra.mrb[4].mxu1 %vm64_vm1, %v49_v15 }
  0x10   :  { %311 = vmatprep.mubr.msk.bf16.mxu0 %vm360_vm0, %v359_v0  ;;  %339 = vmatprep.mubr.msk.bf16.mxu1 %vm360_vm0, %v359_v0 }
  0x17   :  { %312 = vmatmul.mubr.msk.bf16.gmra.mrb[8].mxu0 %vm64_vm1, %v43_v20  ;;  %340 = vmatmul.mubr.msk.bf16.gmra.mrb[8].mxu1 %vm64_vm1, %v50_v21 }
  0x18   :  { %315 = vmatprep.mubr.msk.bf16.mxu0 %vm360_vm0, %v359_v0  ;;  %343 = vmatprep.mubr.msk.bf16.mxu1 %vm360_vm0, %v359_v0 }
  0x1f   :  { %316 = vmatmul.mubr.msk.bf16.gmra.mrb[12].mxu0 %vm64_vm1, %v44_v26  ;;  %344 = vmatmul.mubr.msk.bf16.gmra.mrb[12].mxu1 %vm64_vm1, %v51_v27 }
  0x20   :  { %319 = vmatprep.mubr.msk.bf16.mxu0 %vm360_vm0, %v359_v0  ;;  %347 = vmatprep.mubr.msk.bf16.mxu1 %vm360_vm0, %v359_v0 }
  0x27   :  { %320 = vmatmul.mubr.msk.bf16.gmra.mrb[16].mxu0 %vm64_vm1, %v45_v32  ;;  %348 = vmatmul.mubr.msk.bf16.gmra.mrb[16].mxu1 %vm64_vm1, %v52_v33 }
  0x28   :  { %323 = vmatprep.mubr.msk.bf16.mxu0 %vm360_vm0, %v359_v0  ;;  %351 = vmatprep.mubr.msk.bf16.mxu1 %vm360_vm0, %v359_v0 }
  0x2f   :  { %324 = vmatmul.mubr.msk.bf16.gmra.mrb[20].mxu0 %vm64_vm1, %v46_v38  ;;  %352 = vmatmul.mubr.msk.bf16.gmra.mrb[20].mxu1 %vm64_vm1, %v53_v39 }
  0x30   :  { %327 = vmatprep.mubr.msk.bf16.mxu0 %vm360_vm0, %v359_v0 }
  0x37   :  { %328 = vmatmul.mubr.msk.bf16.gmra.mrb[24].mxu0 %vm64_vm1, %v47_v42 }
  0xda   :  { %v138_v44 = vpop.f32.mrb[0].mxu0  ;;  %v194_v45 = vpop.f32.mrb[0].mxu1 }
  0xdb   :  { %v139_v46 = vadd.f32 %v509_v43, %v138_v44  ;;  %v305_v47 = vpop.f32.mrb[1].mxu0  ;;  %v195_v48 = vadd.f32 %v509_v43, %v194_v45  ;;  %v333_v49 = vpop.f32.mrb[1].mxu1 }
  0xdc   :  { %v141_v50 = vpop.f32.mrb[2].mxu0  ;;  %v197_v51 = vpop.f32.mrb[2].mxu1 }
  0xdd   :  { %242 = vst.msk [vmem:[%s643_s3] sm:$0xff] %vm241_vm2, %v139_v46  ;;  %v142_v52 = vadd.f32 %v509_v43, %v141_v50  ;;  %v306_v53 = vpop.f32.mrb[3].mxu0  ;;  %256 = vst.msk [vmem:[%s643_s3 + $0x70] sm:$0xff] %vm241_vm2, %v195_v48  ;;  %v198_v54 = vadd.f32 %v509_v43, %v197_v51  ;;  %v334_v55 = vpop.f32.mrb[3].mxu1 }
  0xdf   :  { %243 = vst.msk [vmem:[%s643_s3 + $0x8] sm:$0xff] %vm241_vm2, %v142_v52  ;;  %257 = vst.msk [vmem:[%s643_s3 + $0x78] sm:$0xff] %vm241_vm2, %v198_v54 }
  0xe2   :  { %v146_v56 = vpop.f32.mrb[4].mxu0  ;;  %v202_v57 = vpop.f32.mrb[4].mxu1 }
  0xe3   :  { %v147_v58 = vadd.f32 %v509_v43, %v146_v56  ;;  %v309_v59 = vpop.f32.mrb[5].mxu0  ;;  %v203_v60 = vadd.f32 %v509_v43, %v202_v57  ;;  %v337_v61 = vpop.f32.mrb[5].mxu1 }
  0xe4   :  { %v149_v62 = vpop.f32.mrb[6].mxu0  ;;  %v205_v63 = vpop.f32.mrb[6].mxu1 }
  0xe5   :  { %244 = vst.msk [vmem:[%s643_s3 + $0x10] sm:$0xff] %vm241_vm2, %v147_v58  ;;  %v150_v0 = vadd.f32 %v509_v43, %v149_v62  ;;  %v310_v1 = vpop.f32.mrb[7].mxu0  ;;  %258 = vst.msk [vmem:[%s643_s3 + $0x80] sm:$0xff] %vm241_vm2, %v203_v60  ;;  %v206_v2 = vadd.f32 %v509_v43, %v205_v63  ;;  %v338_v3 = vpop.f32.mrb[7].mxu1 }
  0xe7   :  { %245 = vst.msk [vmem:[%s643_s3 + $0x18] sm:$0xff] %vm241_vm2, %v150_v0  ;;  %259 = vst.msk [vmem:[%s643_s3 + $0x88] sm:$0xff] %vm241_vm2, %v206_v2 }
  0xea   :  { %v154_v4 = vpop.f32.mrb[8].mxu0  ;;  %v210_v5 = vpop.f32.mrb[8].mxu1 }
  0xeb   :  { %v155_v6 = vadd.f32 %v509_v43, %v154_v4  ;;  %v313_v7 = vpop.f32.mrb[9].mxu0  ;;  %v211_v8 = vadd.f32 %v509_v43, %v210_v5  ;;  %v341_v9 = vpop.f32.mrb[9].mxu1 }
  0xec   :  { %v157_v10 = vpop.f32.mrb[10].mxu0  ;;  %v213_v11 = vpop.f32.mrb[10].mxu1 }
  0xed   :  { %246 = vst.msk [vmem:[%s643_s3 + $0x20] sm:$0xff] %vm241_vm2, %v155_v6  ;;  %v158_v12 = vadd.f32 %v509_v43, %v157_v10  ;;  %v314_v13 = vpop.f32.mrb[11].mxu0  ;;  %260 = vst.msk [vmem:[%s643_s3 + $0x90] sm:$0xff] %vm241_vm2, %v211_v8  ;;  %v214_v14 = vadd.f32 %v509_v43, %v213_v11  ;;  %v342_v15 = vpop.f32.mrb[11].mxu1 }
  0xef   :  { %247 = vst.msk [vmem:[%s643_s3 + $0x28] sm:$0xff] %vm241_vm2, %v158_v12  ;;  %261 = vst.msk [vmem:[%s643_s3 + $0x98] sm:$0xff] %vm241_vm2, %v214_v14 }
  0xf2   :  { %v162_v16 = vpop.f32.mrb[12].mxu0  ;;  %v218_v17 = vpop.f32.mrb[12].mxu1 }
  0xf3   :  { %v163_v18 = vadd.f32 %v509_v43, %v162_v16  ;;  %v317_v19 = vpop.f32.mrb[13].mxu0  ;;  %v219_v20 = vadd.f32 %v509_v43, %v218_v17  ;;  %v345_v21 = vpop.f32.mrb[13].mxu1 }
  0xf4   :  { %v165_v22 = vpop.f32.mrb[14].mxu0  ;;  %v221_v23 = vpop.f32.mrb[14].mxu1 }
  0xf5   :  { %248 = vst.msk [vmem:[%s643_s3 + $0x30] sm:$0xff] %vm241_vm2, %v163_v18  ;;  %v166_v24 = vadd.f32 %v509_v43, %v165_v22  ;;  %v318_v25 = vpop.f32.mrb[15].mxu0  ;;  %262 = vst.msk [vmem:[%s643_s3 + $0xa0] sm:$0xff] %vm241_vm2, %v219_v20  ;;  %v222_v26 = vadd.f32 %v509_v43, %v221_v23  ;;  %v346_v27 = vpop.f32.mrb[15].mxu1 }
  0xf7   :  { %249 = vst.msk [vmem:[%s643_s3 + $0x38] sm:$0xff] %vm241_vm2, %v166_v24  ;;  %263 = vst.msk [vmem:[%s643_s3 + $0xa8] sm:$0xff] %vm241_vm2, %v222_v26 }
  0xfa   :  { %v170_v28 = vpop.f32.mrb[16].mxu0  ;;  %v226_v29 = vpop.f32.mrb[16].mxu1 }
  0xfb   :  { %v171_v30 = vadd.f32 %v509_v43, %v170_v28  ;;  %v321_v31 = vpop.f32.mrb[17].mxu0  ;;  %v227_v32 = vadd.f32 %v509_v43, %v226_v29  ;;  %v349_v33 = vpop.f32.mrb[17].mxu1 }
  0xfc   :  { %v173_v34 = vpop.f32.mrb[18].mxu0  ;;  %v229_v35 = vpop.f32.mrb[18].mxu1 }
  0xfd   :  { %250 = vst.msk [vmem:[%s643_s3 + $0x40] sm:$0xff] %vm241_vm2, %v171_v30  ;;  %v174_v36 = vadd.f32 %v509_v43, %v173_v34  ;;  %v322_v37 = vpop.f32.mrb[19].mxu0  ;;  %264 = vst.msk [vmem:[%s643_s3 + $0xb0] sm:$0xff] %vm241_vm2, %v227_v32  ;;  %v230_v38 = vadd.f32 %v509_v43, %v229_v35  ;;  %v350_v39 = vpop.f32.mrb[19].mxu1 }
  0xff   :  { %251 = vst.msk [vmem:[%s643_s3 + $0x48] sm:$0xff] %vm241_vm2, %v174_v36  ;;  %265 = vst.msk [vmem:[%s643_s3 + $0xb8] sm:$0xff] %vm241_vm2, %v230_v38 }
 0x102   :  { %v178_v40 = vpop.f32.mrb[20].mxu0  ;;  %v234_v41 = vpop.f32.mrb[20].mxu1 }
 0x103   :  { %v179_v42 = vadd.f32 %v509_v43, %v178_v40  ;;  %v325_v44 = vpop.f32.mrb[21].mxu0  ;;  %v235_v45 = vadd.f32 %v509_v43, %v234_v41  ;;  %v353_v46 = vpop.f32.mrb[21].mxu1 }
 0x104   :  { %v181_v47 = vpop.f32.mrb[22].mxu0  ;;  %v237_v48 = vpop.f32.mrb[22].mxu1 }
 0x105   :  { %252 = vst.msk [vmem:[%s643_s3 + $0x50] sm:$0xff] %vm241_vm2, %v179_v42  ;;  %v182_v49 = vadd.f32 %v509_v43, %v181_v47  ;;  %v326_v50 = vpop.f32.mrb[23].mxu0  ;;  %266 = vst.msk [vmem:[%s643_s3 + $0xc0] sm:$0xff] %vm241_vm2, %v235_v45  ;;  %v238_v51 = vadd.f32 %v509_v43, %v237_v48  ;;  %v354_v52 = vpop.f32.mrb[23].mxu1 }
 0x107   :  { %253 = vst.msk [vmem:[%s643_s3 + $0x58] sm:$0xff] %vm241_vm2, %v182_v49 }
 0x108   :  { %268 = vst.msk [vmem:[%s643_s3 + $0xc8] sm:$0xf] %vm267_vm3, %v238_v51 }
 0x10a   :  { %v186_v53 = vpop.f32.mrb[24].mxu0 }
 0x10b   :  { %v187_v54 = vadd.f32 %v509_v43, %v186_v53  ;;  %v329_v55 = vpop.f32.mrb[25].mxu0 }
 0x10c   :  { %v189_v56 = vpop.f32.mrb[26].mxu0 }
 0x10d   :  { %254 = vst.msk [vmem:[%s643_s3 + $0x60] sm:$0xff] %vm241_vm2, %v187_v54  ;;  %v190_v57 = vadd.f32 %v509_v43, %v189_v56  ;;  %v330_v58 = vpop.f32.mrb[27].mxu0 }
 0x10f   :  { %255 = vst.msk [vmem:[%s643_s3 + $0x68] sm:$0xff] %vm241_vm2, %v190_v57 }

// kernel: whyv2_forward.36
= control target key start
LH: loop header
LB: loop body
LE: loop exit
PB: predicated region body
PF: predicated region fallthrough
CT: control target
= control target key end

     0   :  { %s940_s21 = smov 0   ;;  %s1040_s0 = inlined_call_operand.vmem [shape: f32[8,9,32], index: 0, kind: input, shape index: {}]   ;;  %s1041_s1 = inlined_call_operand.vmem [shape: f32[32,112], index: 1, kind: input, shape index: {}]   ;;  %s1042_s2 = inlined_call_operand.vmem [shape: f32[16,16], index: 2, kind: input, shape index: {}]   ;;  %s1043_s3 = inlined_call_operand.vmem [shape: f32[1,16], index: 3, kind: input, shape index: {}]   ;;  %s1044_s4 = inlined_call_operand.vmem [shape: f32[1,32], index: 4, kind: input, shape index: {}]   ;;  %s1045_s5 = inlined_call_operand.vmem [shape: f32[32,32], index: 5, kind: input, shape index: {}]   ;;  %s1046_s6 = inlined_call_operand.vmem [shape: f32[8,9,32], index: 6, kind: output, shape index: {}]  }
   0x1 LB: > { %s727_s22 = sadd.s32 4294967295, %s882_s21   ;;  %p731_p0 = scmp.ge.s32.totalorder %s882_s21, 1  ;;  %s882_s21 = sphi %s940_s21, %s16_s21  }
   0x2   : > { %p212_p1 = scmp.lt.s32.totalorder %s882_s21, 9 }
   0x4   : > { %p213_p2 = pnand %p731_p0, %p212_p1 }
   0x5   : > { %v256_v0 = vld [vmem:[%s1041_s1] sm:$0xff] (!%p213_p2)  ;;  %v257_v1 = vld [vmem:[%s1041_s1 + $0x8] sm:$0xff] (!%p213_p2)  ;;  %v258_v2 = vld [vmem:[%s1041_s1 + $0x10] sm:$0xff] (!%p213_p2)  ;;  %p242_p3 = scmp.lt.s32.totalorder (!%p213_p2), %s727_s22, 7  ;;  %v896_v3 = vmov (!%p213_p2), 0.0   ;;  %vm897_vm0 = vmmov (!%p213_p2), 0  }
   0x6   : > { %216 = sbr.rel (%p213_p2) target bundleno = 1359 (0x54f), region = 44  ;;  %761 = vmatprep.subr.bf16.mxu0 (!%p213_p2), %v896_v3  ;;  %v260_v4 = vpack.c.bf16 (!%p213_p2), %v257_v1, %v256_v0  ;;  %v259_v5 = vld [vmem:[%s1041_s1 + $0x18] sm:$0xff] (!%p213_p2)  ;;  %765 = vmatprep.mubr.msk.bf16.mxu0 (!%p213_p2), %vm897_vm0, %v896_v3  ;;  %vm262_vm1 = vcmask (!%p213_p2), 261120   ;;  %v339_v10 = vld [vmem:[%s1042_s2] sm:$0xff] (!%p213_p2)  ;;  %v340_v11 = vld [vmem:[%s1042_s2 + $0x8] sm:$0xff] (!%p213_p2)  ;;  %vm307_vm2 = vcmask (!%p213_p2), 130048  }
   0x7   : > { %769 = vmatprep.subr.bf16.mxu1 (!%p213_p2), %v896_v3  ;;  %771 = vmatprep.mubr.msk.bf16.mxu1 (!%p213_p2), %vm897_vm0, %v896_v3  ;;  %v261_v6 = vpack.c.bf16 (!%p213_p2), %v259_v5, %v258_v2  ;;  %v341_v12 = vpack.c.bf16 (!%p213_p2), %v340_v11, %v339_v10  ;;  %vm309_vm3 = vcmask (!%p213_p2), 122880   ;;  %s898_s18 = smov (!%p213_p2), 112   ;;  %s899_s19 = smov (!%p213_p2), 32   ;;  %vm328_vm4 = vcmask (!%p213_p2), 253952   ;;  %v737_v25 = vld [vmem:[%s1043_s3] ss:$0 sm:$0xff] (!%p213_p2) }
   0x8   : > { %762 = vmatpush3.bf16.msra.mxu0 (!%p213_p2), %v260_v4  ;;  %s900_s20 = smov (!%p213_p2), 96   ;;  %v884_v62 = vmov (!%p213_p2), 0.0   ;;  %v888_v63 = vmov (!%p213_p2), 0.0   ;;  %s996_s25 = smov (!%p213_p2), 0  }
   0x9   : > { %763 = vmatprep.subr.bf16.mxu0 (!%p213_p2), %v896_v3  ;;  %770 = vmatpush3.bf16.msra.mxu1 (!%p213_p2), %v341_v12 }
   0xc   : > { %764 = vmatpush3.bf16.msra.mxu0 (!%p213_p2), %v261_v6 }
   0xd   : > { %s1048_s22 = smov (!%p242_p3, %s727_s22), 7 }
   0xe   : > { %s748_s7 = sshll.u32 %s1048_s22, 4  ;;  %s901_s22 = smov 64  }
   0xf   : > { %s246_s10 = scalar_lea.vmem %s1040_s0, %s748_s7  ;;  %s973_s13 = scalar_lea.vmem %s1046_s6, %s748_s7 }
  0x10   : > { %v253_v7 = vld [vmem:[%s246_s10] sm:$0xff]  ;;  %v254_v8 = vld [vmem:[%s246_s10 + $0x8] sm:$0x1] }
  0x11   : > { %v255_v9 = vpack.c.bf16 %v254_v8, %v253_v7 }
  0x13   : > { %766 = vmatmul.mubr.msk.bf16.vlgmr.msra.gmra.mrb[0].mxu0 %vm262_vm1, %v255_v9 }
  0xe6   : > { %v300_v13 = vpop.f32.mrb[0].mxu0 }
  0xe7   : > { %v767_v14 = vpop.f32.mrb[1].mxu0  ;;  %308 = vst.msk [vmem:[#allocation2] sm:$0xff] %vm307_vm2, %v300_v13 }
  0xe8   : > { %v303_v15 = vpop.f32.mrb[2].mxu0 }
  0xe9   : > { %315 = vrot.lane.b32.xlu1 %v303_v15, %s898_s18  ;;  %v768_v16 = vpop.f32.mrb[3].mxu0  ;;  %v338_v17 = vpack.c.bf16 %v303_v15, %v300_v13  ;;  %310 = vst.msk [vmem:[#allocation2 + $0x8] sm:$0x1] %vm309_vm3, %v303_v15 }
  0xeb   : > { %350 = vrot.lane.b32.xlu0 %v338_v17, %s899_s19 }
  0xed   : > { %321 = vrot.lane.b32.xlu1 %v300_v13, %s900_s20 }
  0xef   : > { %313 = vrot.lane.b32.xlu0 %v300_v13, %s898_s18 }
  0xf1   : > { %330 = vrot.lane.b32.xlu1 %v300_v13, %s901_s22 }
  0xf3   : > { %323 = vrot.lane.b32.xlu0 %v303_v15, %s900_s20 }
  0xf7   : > { %332 = vrot.lane.b32.xlu0 %v303_v15, %s901_s22 }
 0x15b   : > { %v316_v18 = vpop.permute.xlu1 %315 }
 0x15c   : > { %320 = vst.msk [vmem:[#allocation3 + $0x8] sm:$0x1] %vm309_vm3, %v316_v18 }
 0x15d   : > { %v351_v19 = vpop.permute.xlu0 %350 }
 0x15e   : > { %772 = vmatmul.mubr.msk.bf16.vlgmr.msra.gmra.mrb[0].mxu1 %vm307_vm2, %v351_v19 }
 0x15f   : > { %v322_v20 = vpop.permute.xlu1 %321 }
 0x160   : > { %327 = vst.msk [vmem:[#allocation4] sm:$0xff] %vm262_vm1, %v322_v20 }
 0x161   : > { %v314_v21 = vpop.permute.xlu0 %313 }
 0x162   : > { %319 = vst.msk [vmem:[#allocation3] sm:$0xff] %vm307_vm2, %v314_v21 }
 0x163   : > { %v331_v22 = vpop.permute.xlu1 %330 }
 0x164   : > { %336 = vst.msk [vmem:[#allocation5] sm:$0xff] %vm262_vm1, %v331_v22 }
 0x165   : > { %v324_v23 = vpop.permute.xlu0 %323 }
 0x166   : > { %329 = vst.msk [vmem:[#allocation4 + $0x8] sm:$0x1] %vm328_vm4, %v324_v23 }
 0x169   : > { %v333_v24 = vpop.permute.xlu0 %332 }
 0x16a   : > { %337 = vst.msk [vmem:[#allocation5 + $0x8] sm:$0x1] %vm328_vm4, %v333_v24 }
 0x231   : > { %v389_v26 = vpop.f32.mrb[0].mxu1 }
 0x232   : > { %v390_v27 = vadd.f32 %v737_v25, %v389_v26  ;;  %v773_v28 = vpop.f32.mrb[1].mxu1 }
 0x233   : > { %v392_v29 = vpop.f32.mrb[2].mxu1 }
 0x234   : > { %v398_v30 = vsub.f32 0.0, %v390_v27  ;;  %v412_v31 = vmul.f32 1.442695, %v390_v27  ;;  %v393_v32 = vadd.f32 %v737_v25, %v392_v29  ;;  %v774_v33 = vpop.f32.mrb[3].mxu1  ;;  %vm396_vm5 = vcmp.ge.f32.partialorder %v390_v27, 0.0 }
 0x236   : > { %v400_v34 = vmul.f32 1.442695, %v398_v30  ;;  %834 = vpow2.f32 %v412_v31  ;;  %v399_v35 = vsub.f32 0.0, %v393_v32  ;;  %v414_v36 = vmul.f32 1.442695, %v393_v32 }
 0x237   : > { %vm397_vm6 = vcmp.ge.f32.partialorder %v393_v32, 0.0 }
 0x238   : > { %836 = vpow2.f32 %v400_v34  ;;  %v402_v37 = vmul.f32 1.442695, %v399_v35 }
 0x239   : > { %838 = vpow2.f32 %v414_v36 }
 0x23a   : > { %840 = vpow2.f32 %v402_v37 }
 0x240   : > { %v835_v38 = vpop.eup %834 }
 0x241   : > { %v416_v39 = vadd.f32 1.0, %v835_v38 }
 0x242   : > { %v837_v40 = vpop.eup %836 }
 0x243   : > { %v839_v41 = vpop.eup %838  ;;  %v404_v42 = vadd.f32 1.0, %v837_v40  ;;  %842 = vlog2.f32 %v416_v39 }
 0x244   : > { %v841_v43 = vpop.eup %840  ;;  %v417_v44 = vadd.f32 1.0, %v839_v41 }
 0x245   : > { %844 = vlog2.f32 %v404_v42  ;;  %v405_v45 = vadd.f32 1.0, %v841_v43 }
 0x246   : > { %846 = vlog2.f32 %v417_v44 }
 0x247   : > { %848 = vlog2.f32 %v405_v45 }
 0x24d   : > { %v843_v46 = vpop.eup %842 }
 0x24e   : > { %v419_v47 = vmul.f32 0.6931472, %v843_v46 }
 0x24f   : > { %v845_v48 = vpop.eup %844 }
 0x250   : > { %v847_v49 = vpop.eup %846  ;;  %v407_v50 = vmul.f32 0.6931472, %v845_v48  ;;  %v422_v54 = vsub.f32 %v390_v27, %v419_v47 }
 0x251   : > { %v849_v51 = vpop.eup %848  ;;  %v421_v52 = vmul.f32 0.6931472, %v847_v49 }
 0x252   : > { %v410_v53 = vsub.f32 0.0, %v407_v50  ;;  %v409_v55 = vmul.f32 0.6931472, %v849_v51 }
 0x253   : > { %v423_v58 = vsub.f32 %v393_v32, %v421_v52 }
 0x254   : > { %v424_v56 = vsel %vm396_vm5, %v410_v53, %v422_v54  ;;  %v411_v57 = vsub.f32 0.0, %v409_v55 }
 0x255   : > { %v427_v59 = vmul.f32 0.0625, %v424_v56 }
 0x256   : > { %v425_v60 = vsel %vm397_vm6, %v411_v57, %v423_v58 }
 0x257   : > { %429 = vst.msk [vmem:[#allocation6] sm:$0xff] %vm307_vm2, %v427_v59  ;;  %v428_v61 = vmul.f32 0.0625, %v425_v60 }
 0x259   : > { %430 = vst.msk [vmem:[#allocation6 + $0x8] sm:$0x1] %vm309_vm3, %v428_v61 }
 0x25a LB: >> { %s446_s26 = scalar_lea.vmem [#allocation6], %s894_s25  ;;  %s439_s27 = scalar_lea.vmem [#allocation3], %s894_s25  ;;  %v450_v4 = vlaneseq  ;;  %v902_v7 = vmov 0.0|0.0   ;;  %vm903_vm7 = vmmov 0   ;;  %v904_v10 = vmov 0.0   ;;  %s894_s25 = sphi %s996_s25, %s436_s25   ;;  %v890_v63 = vphi %v888_v63, %v480_v63   ;;  %v886_v62 = vphi %v884_v62, %v481_v62  }
 0x25b   : >> { %v739_v1 = vld [vmem:[%s439_s27] ss:$0 sm:$0xff]  ;;  %790 = vmatprep.subr.bf16.mxu0 %v902_v7  ;;  %779 = vmatprep.mubr.msk.f32.mxu0 %vm903_vm7, %v904_v10  ;;  %s441_s28 = scalar_lea.vmem [#allocation4], %s894_s25  ;;  %s443_s29 = scalar_lea.vmem [#allocation2], %s894_s25 }
 0x25c   : >> { %468 = vbcast.lane.b32.xlu1 %v739_v1, 256  ;;  %v451_v5 = vshrl.u32 %v450_v4, 7  ;;  %v740_v13 = vld [vmem:[%s441_s28] ss:$0 sm:$0xff]  ;;  %s555_s30 = scalar_lea.vmem [#allocation7], %s894_s25  ;;  %s436_s25 = sadd.s32 1, %s894_s25  }
 0x25d   : >> { %v444_v20 = vld [vmem:[%s443_s29] sm:$0x1]  ;;  %p433_p4 = scmp.ge.s32.totalorder %s436_s25, 9  }
 0x25e   : >> { %v452_v6 = vsub.s32 0, %v451_v5  ;;  %v445_v22 = vmul.f32 0.25, %v444_v20  ;;  %v604_v31 = vld [vmem:[%s1045_s5] sm:$0xff] (%p433_p4)  ;;  %v605_v32 = vld [vmem:[%s1045_s5 + $0x8] sm:$0xff] (%p433_p4)  ;;  %v606_v33 = vld [vmem:[%s1045_s5 + $0x10] sm:$0xff] (%p433_p4) }
 0x25f   : > { %v608_v34 = vpack.c.bf16 (%p433_p4), %v605_v32, %v604_v31  ;;  %v607_v35 = vld [vmem:[%s1045_s5 + $0x18] sm:$0xff] (%p433_p4)  ;;  %v559_v37 = vld [vmem:[#allocation5] sm:$0xff] (%p433_p4)  ;;  %v742_v54 = vld [vmem:[%s1044_s4] ss:$0 sm:$0xff] (%p433_p4) }
 0x260   : >> { %v447_v0 = vld [vmem:[%s446_s26] sm:$0x1]  ;;  %472 = vbcast.lane.b32.xlu1 %v739_v1, 264  ;;  %v609_v36 = vpack.c.bf16 (%p433_p4), %v607_v35, %v606_v33  ;;  %v560_v38 = vld [vmem:[#allocation5 + $0x8] sm:$0x1] (%p433_p4) }
 0x261   : >> { %v448_v2 = vmul.f32 1.442695, %v447_v0  ;;  %v743_v39 = vmul.f32 (%p433_p4), -1.442695, %v559_v37  ;;  %v744_v40 = vmul.f32 (%p433_p4), -1.442695, %v560_v38 }
 0x263   : >> { %850 = vpow2.f32 %v448_v2 }
 0x264   : > { %852 = vpow2.f32 (%p433_p4), %v743_v39 }
 0x265   : > { %854 = vpow2.f32 (%p433_p4), %v744_v40 }
 0x26d   : >> { %v851_v8 = vpop.eup %850 }
 0x26e   : >> { %v453_v9 = vrot.slane %v851_v8, %v452_v6  ;;  %v853_v41 = vpop.eup (%p433_p4), %852 }
 0x26f   : > { %v855_v42 = vpop.eup (%p433_p4), %854  ;;  %v593_v45 = vadd.f32 (%p433_p4), 1.0, %v853_v41 }
 0x270   : >> { %455 = vbcast.lane.b32.xlu0 %v453_v9, 256  ;;  %v594_v47 = vadd.f32 (%p433_p4), 1.0, %v855_v42 }
 0x274   : >> { %459 = vbcast.lane.b32.xlu0 %v453_v9, 264 }
 0x2ce   : >> { %v469_v11 = vpop.permute.xlu1 %468 }
 0x2cf   : >> { %v478_v16 = vmul.f32 %v740_v13, %v469_v11 }
 0x2d2   : >> { %v473_v14 = vpop.permute.xlu1 %472 }
 0x2d3   : >> { %v479_v17 = vmul.f32 %v740_v13, %v473_v14 }
 0x2e2   : >> { %v456_v12 = vpop.permute.xlu0 %455 }
 0x2e3   : >> { %v461_v15 = vmul.f32 %v890_v63, %v456_v12 }
 0x2e5   : >> { %v480_v63 = vadd.f32 %v478_v16, %v461_v15  }
 0x2e6   : >> { %v460_v18 = vpop.permute.xlu0 %459 }
 0x2e7   : >> { %v462_v19 = vmul.f32 %v886_v62, %v460_v18 }
 0x2e9   : >> { %v481_v62 = vadd.f32 %v479_v17, %v462_v19  }
 0x2eb   : >> { %v791_v21 = vpack.c.bf16 %v481_v62, %v480_v63 }
 0x2ed   : >> { %792 = vmatpush3.bf16.msra.mxu0 %v791_v21 }
 0x2ee   : > { %782 = vmatprep.subr.bf16.mxu0 (%p433_p4), %v896_v3 }
 0x2f0   : >> { %780 = vmatmul.mubr.msk.f32.vlgmr.msra.gmra.mrb[0].mxu0 %vm307_vm2, %v445_v22 }
 0x2f1   : > { %786 = vmatprep.mubr.msk.bf16.mxu0 (%p433_p4), %vm897_vm0, %v896_v3  ;;  %783 = vmatpush3.bf16.msra.mxu0 (%p433_p4), %v608_v34 }
 0x2f2   : > { %784 = vmatprep.subr.bf16.mxu0 (%p433_p4), %v896_v3 }
 0x2f5   : > { %785 = vmatpush3.bf16.msra.mxu0 (%p433_p4), %v609_v36 }
 0x3be   : > { %435 = sbr.rel (!%p433_p4) target bundleno = 602 (0x25a), region = 86 }
 0x3c3   : >> { %v551_v23 = vpop.f32.mrb[0].mxu0 }
 0x3c4   : >> { %556 = vst.msk [vmem:[%s555_s30] sm:$0x1] %vm328_vm4, %v551_v23  ;;  %v781_v24 = vpop.f32.mrb[1].mxu0 }
 0x3cb   : > { %v557_v25 = vld [vmem:[#allocation7] sm:$0xff]  ;;  %v558_v26 = vld [vmem:[#allocation7 + $0x8] sm:$0x1] }
 0x3cc   : > { %v561_v27 = vmul.f32 %v557_v25, %v557_v25  ;;  %v562_v28 = vmul.f32 %v558_v26, %v558_v26 }
 0x3ce   : > { %v563_v29 = vsel %vm262_vm1, %v561_v27, 0.0  ;;  %v566_v30 = vsel %vm328_vm4, %v562_v28, 0.0 }
 0x3cf   : > { %564 = vadd.xlane.f32.xlu0 %v563_v29 }
 0x3d3   : > { %567 = vadd.xlane.f32.xlu0 %v566_v30 }
 0x45c   : > { %v565_v43 = vpop.xlane.xlu0 %564 }
 0x45d   : > { %v570_v44 = vmul.f32 0.03125, %v565_v43 }
 0x45f   : > { %v572_v46 = vadd.f32 1e-05, %v570_v44 }
 0x460   : > { %v568_v48 = vpop.xlane.xlu0 %567 }
 0x461   : > { %856 = vrsqrt.f32 %v572_v46  ;;  %v571_v49 = vmul.f32 0.03125, %v568_v48 }
 0x462   : > { %858 = vrcp.f32 %v593_v45 }
 0x463   : > { %v573_v50 = vadd.f32 1e-05, %v571_v49  ;;  %860 = vrcp.f32 %v594_v47 }
 0x465   : > { %862 = vrsqrt.f32 %v573_v50 }
 0x46b   : > { %v857_v3 = vpop.eup %856 }
 0x46c   : > { %v859_v51 = vpop.eup %858  ;;  %v576_v52 = vmul.f32 %v857_v3, %v557_v25 }
 0x46d   : > { %v861_v53 = vpop.eup %860  ;;  %v599_v58 = vmul.f32 %v859_v51, %v559_v37 }
 0x46e   : > { %v585_v57 = vmul.f32 %v742_v54, %v576_v52  ;;  %v600_v59 = vmul.f32 %v861_v53, %v560_v38 }
 0x46f   : > { %v863_v55 = vpop.eup %862 }
 0x470   : > { %v577_v56 = vmul.f32 %v863_v55, %v558_v26  ;;  %v601_v61 = vmul.f32 %v599_v58, %v585_v57 }
 0x472   : > { %v586_v60 = vmul.f32 %v742_v54, %v577_v56 }
 0x474   : > { %v602_v62 = vmul.f32 %v600_v59, %v586_v60 }
 0x476   : > { %v603_v63 = vpack.c.bf16 %v602_v62, %v601_v61 }
 0x478   : > { %787 = vmatmul.mubr.msk.bf16.vlgmr.msra.gmra.mrb[0].mxu0 %vm262_vm1, %v603_v63 }
 0x54b   : > { %v647_v0 = vpop.f32.mrb[0].mxu0 }
 0x54c   : > { %654 = vst.msk [vmem:[%s973_s13] sm:$0xff] %vm262_vm1, %v647_v0  ;;  %v788_v1 = vpop.f32.mrb[1].mxu0 }
 0x54d   : > { %v650_v2 = vpop.f32.mrb[2].mxu0 }
 0x54e   : > { %655 = vst.msk [vmem:[%s973_s13 + $0x8] sm:$0x1] %vm328_vm4, %v650_v2  ;;  %v789_v4 = vpop.f32.mrb[3].mxu0 }
 0x54f PF: > { %s16_s21 = sadd.s32 1, %s882_s21  }
 0x550   : > { %p13_p5 = scmp.ge.s32.totalorder %s16_s21, 10  }
 0x552   :  { %15 = sbr.rel (!%p13_p5) target bundleno = 1 (0x1), region = 97 }

// kernel: whyv2_forward.35
= control target key start
LH: loop header
LB: loop body
LE: loop exit
PB: predicated region body
PF: predicated region fallthrough
CT: control target
= control target key end

     0   :  { %v198_v0 = vmov 0.0   ;;  %vm199_vm0 = vmmov 0   ;;  %vm60_vm1 = vcmask 1040384   ;;  %vm44_vm2 = vcmask 277504   ;;  %s311_s1 = inlined_call_operand.vmem [shape: f32[34,32], index: 1, kind: input, shape index: {}]   ;;  %s312_s0 = inlined_call_operand.vmem [shape: f32[72,34], index: 0, kind: input, shape index: {}]   ;;  %s313_s2 = inlined_call_operand.vmem [shape: f32[1,32], index: 2, kind: input, shape index: {}]   ;;  %s314_s3 = inlined_call_operand.vmem [shape: f32[72,32], index: 3, kind: output, shape index: {}]  }
   0x1   :  { %164 = vmatprep.subr.bf16.mxu0 %v198_v0  ;;  %v29_v1 = vld [vmem:[%s311_s1] sm:$0xff]  ;;  %v30_v2 = vld [vmem:[%s311_s1 + $0x8] sm:$0xff]  ;;  %v31_v3 = vld [vmem:[%s311_s1 + $0x10] sm:$0xff]  ;;  %190 = vmatprep.subr.bf16.mxu1 %v198_v0  ;;  %vm136_vm3 = vcmask 261120  }
   0x2   :  { %v34_v4 = vpack.c.bf16 %v30_v2, %v29_v1  ;;  %v32_v5 = vld [vmem:[%s311_s1 + $0x18] sm:$0xff]  ;;  %v33_v6 = vld [vmem:[%s311_s1 + $0x20] sm:$0x3]  ;;  %170 = vmatprep.mubr.msk.bf16.mxu0 %vm199_vm0, %v198_v0  ;;  %182 = vmatprep.mubr.msk.bf16.mxu1 %vm199_vm0, %v198_v0  ;;  %v16_v10 = vld [vmem:[%s312_s0 + $0x8] sm:$0xff] }
   0x3   :  { %v35_v7 = vpack.c.bf16 %v32_v5, %v31_v3  ;;  %v36_v8 = vpack.c.bf16 %v33_v6, %v33_v6  ;;  %v15_v9 = vld [vmem:[%s312_s0] sm:$0xff]  ;;  %v21_v11 = vld [vmem:[%s312_s0 + $0x30] sm:$0xff]  ;;  %v22_v12 = vld [vmem:[%s312_s0 + $0x38] sm:$0xff] }
   0x4   :  { %165 = vmatpush3.bf16.msra.mxu0 %v34_v4  ;;  %193 = vmatpush3.bf16.msra.mxu1 %v34_v4  ;;  %v24_v14 = vpack.c.bf16 %v16_v10, %v15_v9  ;;  %v27_v15 = vpack.c.bf16 %v22_v12, %v21_v11  ;;  %v17_v16 = vld [vmem:[%s312_s0 + $0x10] sm:$0xff]  ;;  %v18_v17 = vld [vmem:[%s312_s0 + $0x18] sm:$0xff]  ;;  %v23_v18 = vld [vmem:[%s312_s0 + $0x40] sm:$0xff] }
   0x5   :  { %166 = vmatprep.subr.bf16.mxu0 %v198_v0  ;;  %191 = vmatprep.subr.bf16.mxu1 %v198_v0  ;;  %v62_v13 = vsel %vm60_vm1, %v36_v8, 0  ;;  %v25_v19 = vpack.c.bf16 %v18_v17, %v17_v16  ;;  %v28_v20 = vpack.c.bf16 %v23_v18, %v23_v18  ;;  %v19_v21 = vld [vmem:[%s312_s0 + $0x20] sm:$0xff]  ;;  %v20_v22 = vld [vmem:[%s312_s0 + $0x28] sm:$0xff] }
   0x6   :  { %v26_v23 = vpack.c.bf16 %v20_v22, %v19_v21  ;;  %v150_v24 = vld [vmem:[%s313_s2] ss:$0 sm:$0xff] }
   0x8   :  { %167 = vmatpush3.bf16.msra.mxu0 %v35_v7  ;;  %194 = vmatpush3.bf16.msra.mxu1 %v35_v7 }
   0x9   :  { %168 = vmatprep.subr.bf16.mxu0 %v198_v0  ;;  %192 = vmatprep.subr.bf16.mxu1 %v198_v0 }
   0xc   :  { %169 = vmatpush3.bf16.msra.mxu0 %v62_v13  ;;  %195 = vmatpush3.bf16.msra.mxu1 %v62_v13 }
   0xf   :  { %171 = vmatmul.mubr.msk.bf16.vlgmr.msra.gmra.mrb[0].mxu0 %vm44_vm2, %v24_v14  ;;  %183 = vmatmul.mubr.msk.bf16.vlgmr.msra.gmra.mrb[0].mxu1 %vm44_vm2, %v27_v15 }
  0x10   :  { %174 = vmatprep.mubr.msk.bf16.mxu0 %vm199_vm0, %v198_v0  ;;  %186 = vmatprep.mubr.msk.bf16.mxu1 %vm199_vm0, %v198_v0 }
  0x17   :  { %175 = vmatmul.mubr.msk.bf16.gmra.mrb[4].mxu0 %vm44_vm2, %v25_v19  ;;  %187 = vmatmul.mubr.msk.bf16.gmra.mrb[4].mxu1 %vm44_vm2, %v28_v20 }
  0x18   :  { %178 = vmatprep.mubr.msk.bf16.mxu0 %vm199_vm0, %v198_v0 }
  0x1f   :  { %179 = vmatmul.mubr.msk.bf16.gmra.mrb[8].mxu0 %vm44_vm2, %v26_v23 }
  0xe2   :  { %v98_v25 = vpop.f32.mrb[0].mxu0  ;;  %v122_v26 = vpop.f32.mrb[0].mxu1 }
  0xe3   :  { %v99_v27 = vadd.f32 %v150_v24, %v98_v25  ;;  %v172_v28 = vpop.f32.mrb[1].mxu0  ;;  %v123_v29 = vadd.f32 %v150_v24, %v122_v26  ;;  %v184_v30 = vpop.f32.mrb[1].mxu1 }
  0xe4   :  { %v101_v31 = vpop.f32.mrb[2].mxu0  ;;  %v125_v32 = vpop.f32.mrb[2].mxu1 }
  0xe5   :  { %137 = vst.msk [vmem:[%s314_s3] sm:$0xff] %vm136_vm3, %v99_v27  ;;  %v102_v33 = vadd.f32 %v150_v24, %v101_v31  ;;  %v173_v34 = vpop.f32.mrb[3].mxu0  ;;  %143 = vst.msk [vmem:[%s314_s3 + $0x30] sm:$0xff] %vm136_vm3, %v123_v29  ;;  %v126_v35 = vadd.f32 %v150_v24, %v125_v32  ;;  %v185_v36 = vpop.f32.mrb[3].mxu1 }
  0xe7   :  { %138 = vst.msk [vmem:[%s314_s3 + $0x8] sm:$0xff] %vm136_vm3, %v102_v33  ;;  %144 = vst.msk [vmem:[%s314_s3 + $0x38] sm:$0xff] %vm136_vm3, %v126_v35 }
  0xea   :  { %v106_v37 = vpop.f32.mrb[4].mxu0  ;;  %v130_v38 = vpop.f32.mrb[4].mxu1 }
  0xeb   :  { %v107_v39 = vadd.f32 %v150_v24, %v106_v37  ;;  %v176_v40 = vpop.f32.mrb[5].mxu0  ;;  %v131_v41 = vadd.f32 %v150_v24, %v130_v38  ;;  %v188_v42 = vpop.f32.mrb[5].mxu1 }
  0xec   :  { %v109_v43 = vpop.f32.mrb[6].mxu0  ;;  %v133_v44 = vpop.f32.mrb[6].mxu1 }
  0xed   :  { %139 = vst.msk [vmem:[%s314_s3 + $0x10] sm:$0xff] %vm136_vm3, %v107_v39  ;;  %v110_v45 = vadd.f32 %v150_v24, %v109_v43  ;;  %v177_v46 = vpop.f32.mrb[7].mxu0  ;;  %145 = vst.msk [vmem:[%s314_s3 + $0x40] sm:$0xff] %vm136_vm3, %v131_v41  ;;  %v189_v47 = vpop.f32.mrb[7].mxu1 }
  0xef   :  { %140 = vst.msk [vmem:[%s314_s3 + $0x18] sm:$0xff] %vm136_vm3, %v110_v45 }
  0xf2   :  { %v114_v48 = vpop.f32.mrb[8].mxu0 }
  0xf3   :  { %v115_v49 = vadd.f32 %v150_v24, %v114_v48  ;;  %v180_v50 = vpop.f32.mrb[9].mxu0 }
  0xf4   :  { %v117_v51 = vpop.f32.mrb[10].mxu0 }
  0xf5   :  { %141 = vst.msk [vmem:[%s314_s3 + $0x20] sm:$0xff] %vm136_vm3, %v115_v49  ;;  %v118_v52 = vadd.f32 %v150_v24, %v117_v51  ;;  %v181_v53 = vpop.f32.mrb[11].mxu0 }
  0xf7   :  { %142 = vst.msk [vmem:[%s314_s3 + $0x28] sm:$0xff] %vm136_vm3, %v118_v52 }

// kernel: whyv2_forward.34
= control target key start
LH: loop header
LB: loop body
LE: loop exit
PB: predicated region body
PF: predicated region fallthrough
CT: control target
= control target key end

     0   :  { %vm156_vm0 = vcmask 1043456   ;;  %vm95_vm1 = vcmask 64512   ;;  %v2207_v12 = vmov 0.0   ;;  %vm2208_vm2 = vmmov 0   ;;  %s3348_s1 = inlined_call_operand.vmem [shape: f32[8,8], index: 1, kind: input, shape index: {}]   ;;  %s3349_s0 = inlined_call_operand.vmem [shape: f32[306,8], index: 0, kind: input, shape index: {}]   ;;  %s3350_s4 = inlined_call_operand.vmem [shape: f32[8,8], index: 4, kind: input, shape index: {}]   ;;  %s3351_s2 = inlined_call_operand.vmem [shape: f32[1,8], index: 2, kind: input, shape index: {}]   ;;  %s3352_s3 = inlined_call_operand.vmem [shape: f32[1,8], index: 3, kind: input, shape index: {}]   ;;  %s3353_s5 = inlined_call_operand.vmem [shape: f32[1,8], index: 5, kind: input, shape index: {}]   ;;  %s3354_s6 = inlined_call_operand.vmem [shape: f32[1,8], index: 6, kind: input, shape index: {}]   ;;  %s3355_s7 = inlined_call_operand.vmem [shape: f32[306,8], index: 7, kind: output, shape index: {}]  }
   0x1   :  { %v86_v0 = vld [vmem:[%s3348_s1] sm:$0xff]  ;;  %v28_v2 = vld [vmem:[%s3349_s0 + $0x8] sm:$0xff]  ;;  %v29_v5 = vld [vmem:[%s3349_s0 + $0x10] sm:$0xff] }
   0x2   :  { %v27_v1 = vld [vmem:[%s3349_s0] sm:$0xff]  ;;  %v87_v3 = vpack.c.bf16 %v86_v0, %v86_v0  ;;  %v30_v6 = vld [vmem:[%s3349_s0 + $0x18] sm:$0xff]  ;;  %v32_v8 = vld [vmem:[%s3349_s0 + $0x28] sm:$0xff] }
   0x3   :  { %v66_v4 = vpack.c.bf16 %v28_v2, %v27_v1  ;;  %v31_v7 = vld [vmem:[%s3349_s0 + $0x20] sm:$0xff]  ;;  %v67_v10 = vpack.c.bf16 %v30_v6, %v29_v5  ;;  %v33_v13 = vld [vmem:[%s3349_s0 + $0x30] sm:$0xff]  ;;  %v34_v14 = vld [vmem:[%s3349_s0 + $0x38] sm:$0xff] }
   0x4   :  { %2125 = vmatprep.subr.msk.bf16.mxu0 %vm156_vm0, %v87_v3  ;;  %v158_v9 = vsel %vm156_vm0, %v87_v3, 0  ;;  %v68_v11 = vpack.c.bf16 %v32_v8, %v31_v7  ;;  %2126 = vmatprep.subr.msk.bf16.mxu1 %vm156_vm0, %v87_v3  ;;  %v47_v15 = vld [vmem:[%s3349_s0 + $0xa0] sm:$0xff]  ;;  %v48_v16 = vld [vmem:[%s3349_s0 + $0xa8] sm:$0xff]  ;;  %v49_v17 = vld [vmem:[%s3349_s0 + $0xb0] sm:$0xff]  ;;  %v69_v26 = vpack.c.bf16 %v34_v14, %v33_v13 }
   0x5   :  { %1845 = vmatprep.mubr.msk.bf16.mxu0 %vm95_vm1, %v66_v4  ;;  %1844 = vmatpush3.bf16.msra.mxu0 %v158_v9  ;;  %v76_v18 = vpack.c.bf16 %v48_v16, %v47_v15  ;;  %v50_v19 = vld [vmem:[%s3349_s0 + $0xb8] sm:$0xff]  ;;  %v51_v20 = vld [vmem:[%s3349_s0 + $0xc0] sm:$0xff]  ;;  %v52_v21 = vld [vmem:[%s3349_s0 + $0xc8] sm:$0xff] }
   0x6   :  { %2124 = vmatpush3.bf16.msra.mxu1 %v158_v9  ;;  %2004 = vmatprep.subr.mxu0 %v2207_v12  ;;  %v35_v22 = vld [vmem:[%s3349_s0 + $0x40] sm:$0xff]  ;;  %v36_v23 = vld [vmem:[%s3349_s0 + $0x48] sm:$0xff]  ;;  %v77_v24 = vpack.c.bf16 %v50_v19, %v49_v17  ;;  %v78_v25 = vpack.c.bf16 %v52_v21, %v51_v20  ;;  %v53_v28 = vld [vmem:[%s3349_s0 + $0xd0] sm:$0xff] }
   0x7   :  { %1885 = vmatprep.subr.mxu1 %v2207_v12  ;;  %1865 = vmatprep.mubr.msk.bf16.mxu1 %vm95_vm1, %v76_v18  ;;  %v70_v27 = vpack.c.bf16 %v36_v23, %v35_v22  ;;  %v54_v29 = vld [vmem:[%s3349_s0 + $0xd8] sm:$0xff]  ;;  %v55_v30 = vld [vmem:[%s3349_s0 + $0xe0] sm:$0xff]  ;;  %v56_v31 = vld [vmem:[%s3349_s0 + $0xe8] sm:$0xff] }
   0x8   :  { %1846 = vmatmul.mubr.msk.bf16.vlgmr.msra.gmra.mrb[0].mxu0 %vm95_vm1, %v67_v10  ;;  %v476_v32 = vld [vmem:[%s3350_s4] sm:$0xff]  ;;  %v79_v33 = vpack.c.bf16 %v54_v29, %v53_v28  ;;  %v37_v34 = vld [vmem:[%s3349_s0 + $0x50] sm:$0xff]  ;;  %v38_v35 = vld [vmem:[%s3349_s0 + $0x58] sm:$0xff]  ;;  %v80_v36 = vpack.c.bf16 %v56_v31, %v55_v30 }
   0x9   :  { %1849 = vmatprep.mubr.msk.bf16.mxu0 %vm95_vm1, %v68_v11  ;;  %1866 = vmatmul.mubr.msk.bf16.vlgmr.msra.gmra.mrb[0].mxu1 %vm95_vm1, %v77_v24  ;;  %v39_v37 = vld [vmem:[%s3349_s0 + $0x60] sm:$0xff]  ;;  %v40_v38 = vld [vmem:[%s3349_s0 + $0x68] sm:$0xff]  ;;  %v71_v39 = vpack.c.bf16 %v38_v35, %v37_v34  ;;  %v57_v41 = vld [vmem:[%s3349_s0 + $0xf0] sm:$0xff] }
   0xa   :  { %1869 = vmatprep.mubr.msk.bf16.mxu1 %vm95_vm1, %v78_v25  ;;  %1886 = vmatpush3.msra.mxu1 %v476_v32  ;;  %v72_v40 = vpack.c.bf16 %v40_v38, %v39_v37  ;;  %v58_v42 = vld [vmem:[%s3349_s0 + $0xf8] sm:$0xff]  ;;  %v59_v43 = vld [vmem:[%s3349_s0 + $0x100] sm:$0xff]  ;;  %v60_v44 = vld [vmem:[%s3349_s0 + $0x108] sm:$0xff] }
   0xb   :  { %2005 = vmatpush3.msra.mxu0 %v476_v32  ;;  %v81_v45 = vpack.c.bf16 %v58_v42, %v57_v41  ;;  %v41_v46 = vld [vmem:[%s3349_s0 + $0x70] sm:$0xff]  ;;  %v42_v47 = vld [vmem:[%s3349_s0 + $0x78] sm:$0xff]  ;;  %v82_v48 = vpack.c.bf16 %v60_v44, %v59_v43  ;;  %v43_v49 = vld [vmem:[%s3349_s0 + $0x80] sm:$0xff] }
   0xc   :  { %v44_v50 = vld [vmem:[%s3349_s0 + $0x88] sm:$0xff]  ;;  %v73_v51 = vpack.c.bf16 %v42_v47, %v41_v46  ;;  %v61_v53 = vld [vmem:[%s3349_s0 + $0x110] sm:$0xff]  ;;  %v62_v54 = vld [vmem:[%s3349_s0 + $0x118] sm:$0xff] }
   0xd   :  { %v74_v52 = vpack.c.bf16 %v44_v50, %v43_v49  ;;  %v63_v55 = vld [vmem:[%s3349_s0 + $0x120] sm:$0xff]  ;;  %v64_v56 = vld [vmem:[%s3349_s0 + $0x128] sm:$0xff]  ;;  %v83_v57 = vpack.c.bf16 %v62_v54, %v61_v53  ;;  %v45_v58 = vld [vmem:[%s3349_s0 + $0x90] sm:$0xff] }
   0xe   :  { %v46_v59 = vld [vmem:[%s3349_s0 + $0x98] sm:$0xff]  ;;  %v84_v60 = vpack.c.bf16 %v64_v56, %v63_v55  ;;  %v65_v62 = vld [vmem:[%s3349_s0 + $0x130] sm:$0x3]  ;;  %v2404_v0 = vld [vmem:[%s3351_s2] ss:$0 sm:$0xff] }
   0xf   :  { %v75_v61 = vpack.c.bf16 %v46_v59, %v45_v58  ;;  %v85_v63 = vpack.c.bf16 %v65_v62, %v65_v62  ;;  %v2409_v2 = vld [vmem:[%s3352_s3] ss:$0 sm:$0xff] }
  0x10   :  { %1850 = vmatmul.mubr.msk.bf16.gmra.mrb[4].mxu0 %vm95_vm1, %v69_v26 }
  0x11   :  { %1853 = vmatprep.mubr.msk.bf16.mxu0 %vm95_vm1, %v70_v27  ;;  %1870 = vmatmul.mubr.msk.bf16.gmra.mrb[4].mxu1 %vm95_vm1, %v79_v33 }
  0x12   :  { %1873 = vmatprep.mubr.msk.bf16.mxu1 %vm95_vm1, %v80_v36 }
  0x18   :  { %1854 = vmatmul.mubr.msk.bf16.gmra.mrb[8].mxu0 %vm95_vm1, %v71_v39 }
  0x19   :  { %1857 = vmatprep.mubr.msk.bf16.mxu0 %vm95_vm1, %v72_v40  ;;  %1874 = vmatmul.mubr.msk.bf16.gmra.mrb[8].mxu1 %vm95_vm1, %v81_v45 }
  0x1a   :  { %1877 = vmatprep.mubr.msk.bf16.mxu1 %vm95_vm1, %v82_v48 }
  0x20   :  { %1858 = vmatmul.mubr.msk.bf16.gmra.mrb[12].mxu0 %vm95_vm1, %v73_v51 }
  0x21   :  { %1861 = vmatprep.mubr.msk.bf16.mxu0 %vm95_vm1, %v74_v52  ;;  %1878 = vmatmul.mubr.msk.bf16.gmra.mrb[12].mxu1 %vm95_vm1, %v83_v57 }
  0x22   :  { %1881 = vmatprep.mubr.msk.bf16.mxu1 %vm95_vm1, %v84_v60 }
  0x28   :  { %1862 = vmatmul.mubr.msk.bf16.gmra.mrb[16].mxu0 %vm95_vm1, %v75_v61 }
  0x29   :  { %1882 = vmatmul.mubr.msk.bf16.gmra.mrb[16].mxu1 %vm95_vm1, %v85_v63  ;;  %2006 = vmatprep.mubr.msk.f32.mxu0 %vm2208_vm2, %v2207_v12 }
  0x2a   :  { %1887 = vmatprep.mubr.msk.f32.mxu1 %vm2208_vm2, %v2207_v12 }
  0xdb   :  { %v1847_v1 = vpop.f32.mrb[0].mxu0 }
  0xdc   :  { %v194_v3 = vpop.f32.mrb[1].mxu0  ;;  %v1867_v9 = vpop.f32.mrb[0].mxu1  ;;  %v203_v10 = vadd.f32 %v1847_v1, %v2404_v0 }
  0xdd   :  { %v195_v4 = vadd.f32 %v2404_v0, %v194_v3  ;;  %v1848_v5 = vpop.f32.mrb[2].mxu0  ;;  %v283_v11 = vadd.f32 %v1867_v9, %v2404_v0  ;;  %v274_v13 = vpop.f32.mrb[1].mxu1 }
  0xde   :  { %v197_v6 = vpop.f32.mrb[3].mxu0  ;;  %v206_v15 = vadd.f32 %v1848_v5, %v2404_v0  ;;  %v275_v17 = vadd.f32 %v2404_v0, %v274_v13  ;;  %v1868_v18 = vpop.f32.mrb[2].mxu1  ;;  %v400_v25 = vmul.f32 %v2409_v2, %v203_v10  ;;  %vm354_vm9 = vcmp.ge.f32.partialorder %v203_v10, 0.0 }
  0xdf   :  { %vm352_vm3 = vcmp.ge.f32.partialorder %v195_v4, 0.0  ;;  %v398_v7 = vmul.f32 %v2409_v2, %v195_v4  ;;  %v198_v8 = vadd.f32 %v2404_v0, %v197_v6  ;;  %vm374_vm5 = vcmp.ge.f32.partialorder %v283_v11, 0.0  ;;  %v277_v21 = vpop.f32.mrb[3].mxu1 }
  0xe0   :  { %v420_v19 = vmul.f32 %v2409_v2, %v283_v11  ;;  %v286_v20 = vadd.f32 %v1868_v18, %v2404_v0  ;;  %vm372_vm6 = vcmp.ge.f32.partialorder %v275_v17, 0.0  ;;  %v418_v23 = vmul.f32 %v2409_v2, %v275_v17 }
  0xe1   :  { %v2416_v14 = vsel %vm352_vm3, %v195_v4, %v398_v7  ;;  %v399_v16 = vmul.f32 %v2409_v2, %v198_v8  ;;  %vm353_vm4 = vcmp.ge.f32.partialorder %v198_v8, 0.0  ;;  %v278_v24 = vadd.f32 %v2404_v0, %v277_v21 }
  0xe2   :  { %1888 = vmatmul.mubr.msk.f32.vlgmr.msra.gmra.mrb[20].mxu1 %vm95_vm1, %v2416_v14  ;;  %vm375_vm7 = vcmp.ge.f32.partialorder %v286_v20, 0.0  ;;  %v421_v27 = vmul.f32 %v2409_v2, %v286_v20  ;;  %v2431_v28 = vsel %vm374_vm5, %v283_v11, %v420_v19  ;;  %v2437_v32 = vsel %vm372_vm6, %v275_v17, %v418_v23 }
  0xe3   :  { %1890 = vmatprep.mubr.msk.f32.mxu1 %vm2208_vm2, %v2207_v12  ;;  %v1851_v22 = vpop.f32.mrb[4].mxu0  ;;  %v2434_v29 = vsel %vm353_vm4, %v198_v8, %v399_v16  ;;  %vm373_vm8 = vcmp.ge.f32.partialorder %v278_v24, 0.0  ;;  %v419_v31 = vmul.f32 %v2409_v2, %v278_v24  ;;  %v401_v33 = vmul.f32 %v2409_v2, %v206_v15 }
  0xe4   :  { %v210_v26 = vpop.f32.mrb[5].mxu0  ;;  %v2442_v35 = vsel %vm375_vm7, %v286_v20, %v421_v27  ;;  %vm355_vm10 = vcmp.ge.f32.partialorder %v206_v15, 0.0  ;;  %v1871_v36 = vpop.f32.mrb[4].mxu1  ;;  %v2450_v41 = vsel %vm354_vm9, %v203_v10, %v400_v25  ;;  %v2460_v48 = vadd.f32 %v1851_v22, %v2404_v0 }
  0xe5   :  { %v1852_v30 = vpop.f32.mrb[6].mxu0  ;;  %v2446_v37 = vsel %vm373_vm8, %v278_v24, %v419_v31  ;;  %v211_v38 = vadd.f32 %v2404_v0, %v210_v26  ;;  %v299_v39 = vadd.f32 %v1871_v36, %v2404_v0  ;;  %v290_v40 = vpop.f32.mrb[5].mxu1  ;;  %v2455_v44 = vsel %vm355_vm10, %v206_v15, %v401_v33 }
  0xe6   :  { %1891 = vmatmul.mubr.msk.f32.gmra.mrb[22].mxu1 %vm95_vm1, %v2434_v29  ;;  %v213_v34 = vpop.f32.mrb[7].mxu0  ;;  %v291_v42 = vadd.f32 %v2404_v0, %v290_v40  ;;  %v1872_v43 = vpop.f32.mrb[6].mxu1  ;;  %v222_v1 = vadd.f32 %v1852_v30, %v2404_v0  ;;  %v404_v5 = vmul.f32 %v2409_v2, %v2460_v48  ;;  %vm358_vm7 = vcmp.ge.f32.partialorder %v2460_v48, 0.0 }
  0xe7   :  { %1893 = vmatprep.mubr.msk.f32.mxu1 %vm2208_vm2, %v2207_v12  ;;  %vm378_vm11 = vcmp.ge.f32.partialorder %v299_v39, 0.0  ;;  %v424_v45 = vmul.f32 %v2409_v2, %v299_v39  ;;  %v302_v46 = vadd.f32 %v1872_v43, %v2404_v0  ;;  %v293_v47 = vpop.f32.mrb[7].mxu1  ;;  %v402_v52 = vmul.f32 %v2409_v2, %v211_v38 }
  0xe8   :  { %vm376_vm12 = vcmp.ge.f32.partialorder %v291_v42, 0.0  ;;  %v422_v50 = vmul.f32 %v2409_v2, %v291_v42  ;;  %v294_v51 = vadd.f32 %v2404_v0, %v293_v47  ;;  %v214_v56 = vadd.f32 %v2404_v0, %v213_v34 }
  0xe9   :  { %vm379_vm13 = vcmp.ge.f32.partialorder %v302_v46, 0.0  ;;  %v425_v54 = vmul.f32 %v2409_v2, %v302_v46  ;;  %v2470_v55 = vsel %vm378_vm11, %v299_v39, %v424_v45  ;;  %vm356_vm15 = vcmp.ge.f32.partialorder %v211_v38, 0.0 }
  0xea   :  { %1894 = vmatmul.mubr.msk.f32.gmra.mrb[24].mxu1 %vm95_vm1, %v2450_v41  ;;  %vm377_vm14 = vcmp.ge.f32.partialorder %v294_v51, 0.0  ;;  %v423_v58 = vmul.f32 %v2409_v2, %v294_v51  ;;  %v2476_v59 = vsel %vm376_vm12, %v291_v42, %v422_v50  ;;  %v403_v6 = vmul.f32 %v2409_v2, %v214_v56 }
  0xeb   :  { %1896 = vmatprep.mubr.msk.f32.mxu1 %vm2208_vm2, %v2207_v12  ;;  %v2464_v49 = vpop.f32.mrb[8].mxu0  ;;  %v2480_v61 = vsel %vm379_vm13, %v302_v46, %v425_v54  ;;  %v2491_v7 = vsel %vm356_vm15, %v211_v38, %v402_v52  ;;  %vm357_vm0 = vcmp.ge.f32.partialorder %v214_v56, 0.0  ;;  %v405_v19 = vmul.f32 %v2409_v2, %v222_v1 }
  0xec   :  { %v226_v53 = vpop.f32.mrb[9].mxu0  ;;  %v1875_v62 = vpop.f32.mrb[8].mxu1  ;;  %v2484_v63 = vsel %vm377_vm14, %v294_v51, %v423_v58  ;;  %v2512_v23 = vsel %vm357_vm0, %v214_v56, %v403_v6  ;;  %vm359_vm8 = vcmp.ge.f32.partialorder %v222_v1, 0.0  ;;  %v2537_v40 = vadd.f32 %v2464_v49, %v2404_v0 }
  0xed   :  { %v2473_v57 = vpop.f32.mrb[10].mxu0  ;;  %v315_v3 = vadd.f32 %v1875_v62, %v2404_v0  ;;  %v306_v4 = vpop.f32.mrb[9].mxu1  ;;  %v227_v15 = vadd.f32 %v2404_v0, %v226_v53  ;;  %v2540_v42 = vsel %vm358_vm7, %v2460_v48, %v404_v5  ;;  %v2542_v43 = vsel %vm359_vm8, %v222_v1, %v405_v19 }
  0xee   :  { %1897 = vmatmul.mubr.msk.f32.gmra.mrb[26].mxu1 %vm95_vm1, %v2455_v44  ;;  %v229_v60 = vpop.f32.mrb[11].mxu0  ;;  %v307_v8 = vadd.f32 %v2404_v0, %v306_v4  ;;  %v1876_v9 = vpop.f32.mrb[10].mxu1  ;;  %vm362_vm8 = vcmp.ge.f32.partialorder %v2537_v40, 0.0 }
  0xef   :  { %1899 = vmatprep.mubr.msk.f32.mxu1 %vm2208_vm2, %v2207_v12  ;;  %vm382_vm3 = vcmp.ge.f32.partialorder %v315_v3, 0.0  ;;  %v428_v10 = vmul.f32 %v2409_v2, %v315_v3  ;;  %v318_v11 = vadd.f32 %v1876_v9, %v2404_v0  ;;  %v309_v13 = vpop.f32.mrb[11].mxu1  ;;  %v2523_v27 = vadd.f32 %v2404_v0, %v229_v60 }
  0xf0   :  { %vm380_vm4 = vcmp.ge.f32.partialorder %v307_v8, 0.0  ;;  %v426_v17 = vmul.f32 %v2409_v2, %v307_v8  ;;  %v310_v18 = vadd.f32 %v2404_v0, %v309_v13  ;;  %v406_v33 = vmul.f32 %v2409_v2, %v227_v15 }
  0xf1   :  { %vm383_vm5 = vcmp.ge.f32.partialorder %v318_v11, 0.0  ;;  %v429_v21 = vmul.f32 %v2409_v2, %v318_v11  ;;  %v2509_v22 = vsel %vm382_vm3, %v315_v3, %v428_v10  ;;  %vm360_vm9 = vcmp.ge.f32.partialorder %v227_v15, 0.0 }
  0xf2   :  { %1900 = vmatmul.mubr.msk.f32.gmra.mrb[28].mxu1 %vm95_vm1, %v2491_v7  ;;  %vm381_vm6 = vcmp.ge.f32.partialorder %v310_v18, 0.0  ;;  %v427_v25 = vmul.f32 %v2409_v2, %v310_v18  ;;  %v2517_v26 = vsel %vm380_vm4, %v307_v8, %v426_v17  ;;  %v407_v47 = vmul.f32 %v2409_v2, %v2523_v27 }
  0xf3   :  { %1902 = vmatprep.mubr.msk.f32.mxu1 %vm2208_vm2, %v2207_v12  ;;  %v2501_v16 = vpop.f32.mrb[12].mxu0  ;;  %v2527_v31 = vsel %vm383_vm5, %v318_v11, %v429_v21  ;;  %v2553_v48 = vsel %vm360_vm9, %v227_v15, %v406_v33  ;;  %vm361_vm4 = vcmp.ge.f32.partialorder %v2523_v27, 0.0 }
  0xf4   :  { %v2506_v20 = vpop.f32.mrb[13].mxu0  ;;  %v1879_v34 = vpop.f32.mrb[12].mxu1  ;;  %v2532_v36 = vsel %vm381_vm6, %v310_v18, %v427_v25 }
  0xf5   :  { %v2514_v24 = vpop.f32.mrb[14].mxu0  ;;  %v331_v38 = vadd.f32 %v1879_v34, %v2404_v0  ;;  %v322_v39 = vpop.f32.mrb[13].mxu1 }
  0xf6   :  { %1903 = vmatmul.mubr.msk.f32.gmra.mrb[30].mxu1 %vm95_vm1, %v2512_v23  ;;  %v2525_v30 = vpop.f32.mrb[15].mxu0  ;;  %v323_v45 = vadd.f32 %v2404_v0, %v322_v39  ;;  %v1880_v46 = vpop.f32.mrb[14].mxu1 }
  0xf7   :  { %1905 = vmatprep.mubr.msk.f32.mxu1 %vm2208_vm2, %v2207_v12  ;;  %vm386_vm10 = vcmp.ge.f32.partialorder %v331_v38, 0.0  ;;  %v432_v50 = vmul.f32 %v2409_v2, %v331_v38  ;;  %v334_v49 = vadd.f32 %v1880_v46, %v2404_v0  ;;  %v325_v51 = vpop.f32.mrb[15].mxu1 }
  0xf8   :  { %vm384_vm11 = vcmp.ge.f32.partialorder %v323_v45, 0.0  ;;  %v430_v53 = vmul.f32 %v2409_v2, %v323_v45  ;;  %v326_v54 = vadd.f32 %v2404_v0, %v325_v51 }
  0xf9   :  { %vm387_vm12 = vcmp.ge.f32.partialorder %v334_v49, 0.0  ;;  %v433_v60 = vmul.f32 %v2409_v2, %v334_v49  ;;  %v2559_v62 = vsel %vm386_vm10, %v331_v38, %v432_v50 }
  0xfa   :  { %1906 = vmatmul.mubr.msk.f32.gmra.mrb[32].mxu1 %vm95_vm1, %v2540_v42  ;;  %vm385_vm13 = vcmp.ge.f32.partialorder %v326_v54, 0.0  ;;  %v431_v4 = vmul.f32 %v2409_v2, %v326_v54  ;;  %v2563_v5 = vsel %vm384_vm11, %v323_v45, %v430_v53  ;;  %v408_v53 = vmul.f32 %v2409_v2, %v2537_v40 }
  0xfb   :  { %1908 = vmatprep.mubr.msk.f32.mxu1 %vm2208_vm2, %v2207_v12  ;;  %v1863_v52 = vpop.f32.mrb[16].mxu0  ;;  %v2569_v10 = vsel %vm387_vm12, %v334_v49, %v433_v60 }
  0xfc   :  { %v267_v56 = vadd.f32 %v1863_v52, %v2404_v0  ;;  %v258_v58 = vpop.f32.mrb[17].mxu0  ;;  %v1883_v15 = vpop.f32.mrb[16].mxu1  ;;  %v2575_v17 = vsel %vm385_vm13, %v326_v54, %v431_v4  ;;  %v238_v54 = vadd.f32 %v2473_v57, %v2404_v0 }
  0xfd   :  { %v259_v1 = vadd.f32 %v2404_v0, %v258_v58  ;;  %v1864_v3 = vpop.f32.mrb[18].mxu0  ;;  %v347_v21 = vadd.f32 %v1883_v15, %v2404_v0  ;;  %v338_v25 = vpop.f32.mrb[17].mxu1  ;;  %v2604_v58 = vsel %vm361_vm4, %v2523_v27, %v407_v47  ;;  %v243_v27 = vadd.f32 %v2404_v0, %v2506_v20 }
  0xfe   :  { %1909 = vmatmul.mubr.msk.f32.gmra.mrb[34].mxu1 %vm95_vm1, %v2542_v43  ;;  %vm370_vm14 = vcmp.ge.f32.partialorder %v267_v56, 0.0  ;;  %v416_v6 = vmul.f32 %v2409_v2, %v267_v56  ;;  %v270_v8 = vadd.f32 %v1864_v3, %v2404_v0  ;;  %v261_v9 = vpop.f32.mrb[19].mxu0  ;;  %v339_v38 = vadd.f32 %v2404_v0, %v338_v25  ;;  %v1884_v39 = vpop.f32.mrb[18].mxu1 }
  0xff   :  { %1911 = vmatprep.mubr.msk.f32.mxu1 %vm2208_vm2, %v2207_v12  ;;  %vm368_vm15 = vcmp.ge.f32.partialorder %v259_v1, 0.0  ;;  %v414_v11 = vmul.f32 %v2409_v2, %v259_v1  ;;  %v262_v13 = vadd.f32 %v2404_v0, %v261_v9  ;;  %vm390_vm5 = vcmp.ge.f32.partialorder %v347_v21, 0.0  ;;  %v341_v50 = vpop.f32.mrb[19].mxu1 }
 0x100   :  { %vm371_vm0 = vcmp.ge.f32.partialorder %v270_v8, 0.0  ;;  %v417_v18 = vmul.f32 %v2409_v2, %v270_v8  ;;  %v2578_v19 = vsel %vm370_vm14, %v267_v56, %v416_v6  ;;  %v436_v46 = vmul.f32 %v2409_v2, %v347_v21 }
 0x101   :  { %vm369_vm3 = vcmp.ge.f32.partialorder %v262_v13, 0.0  ;;  %v415_v33 = vmul.f32 %v2409_v2, %v262_v13  ;;  %v2582_v34 = vsel %vm368_vm15, %v259_v1, %v414_v11  ;;  %vm388_vm6 = vcmp.ge.f32.partialorder %v339_v38, 0.0 }
 0x102   :  { %1912 = vmatmul.mubr.msk.f32.gmra.mrb[36].mxu1 %vm95_vm1, %v2553_v48  ;;  %v2588_v45 = vsel %vm371_vm0, %v270_v8, %v417_v18  ;;  %v434_v51 = vmul.f32 %v2409_v2, %v339_v38  ;;  %v342_v52 = vadd.f32 %v2404_v0, %v341_v50  ;;  %v2601_v56 = vsel %vm390_vm5, %v347_v21, %v436_v46 }
 0x103   :  { %1914 = vmatprep.mubr.msk.f32.mxu1 %vm2208_vm2, %v2207_v12  ;;  %v2593_v49 = vsel %vm369_vm3, %v262_v13, %v415_v33  ;;  %v409_v57 = vmul.f32 %v2409_v2, %v238_v54  ;;  %v2620_v47 = vsel %vm362_vm8, %v2537_v40, %v408_v53  ;;  %vm363_vm9 = vcmp.ge.f32.partialorder %v238_v54, 0.0 }
 0x104   :  { %vm389_vm7 = vcmp.ge.f32.partialorder %v342_v52, 0.0  ;;  %v435_v60 = vmul.f32 %v2409_v2, %v342_v52  ;;  %v2607_v1 = vsel %vm388_vm6, %v339_v38, %v434_v51  ;;  %v410_v4 = vmul.f32 %v2409_v2, %v243_v27 }
 0x105   :  { %v246_v6 = vadd.f32 %v2404_v0, %v2525_v30  ;;  %v2629_v8 = vsel %vm363_vm9, %v238_v54, %v409_v57  ;;  %vm364_vm10 = vcmp.ge.f32.partialorder %v243_v27, 0.0  ;;  %v251_v20 = vadd.f32 %v2501_v16, %v2404_v0 }
 0x106   :  { %1915 = vmatmul.mubr.msk.f32.gmra.mrb[38].mxu1 %vm95_vm1, %v2604_v58  ;;  %v2614_v3 = vsel %vm389_vm7, %v342_v52, %v435_v60  ;;  %v2638_v9 = vsel %vm364_vm10, %v243_v27, %v410_v4  ;;  %v254_v11 = vadd.f32 %v2514_v24, %v2404_v0 }
 0x107   :  { %1917 = vmatprep.mubr.msk.f32.mxu1 %vm2208_vm2, %v2207_v12  ;;  %v411_v40 = vmul.f32 %v2409_v2, %v246_v6  ;;  %vm365_vm11 = vcmp.ge.f32.partialorder %v246_v6, 0.0  ;;  %v412_v30 = vmul.f32 %v2409_v2, %v251_v20  ;;  %vm366_vm12 = vcmp.ge.f32.partialorder %v251_v20, 0.0 }
 0x108   :  { %v413_v16 = vmul.f32 %v2409_v2, %v254_v11  ;;  %vm367_vm13 = vcmp.ge.f32.partialorder %v254_v11, 0.0 }
 0x109   :  { %v2647_v13 = vsel %vm365_vm11, %v246_v6, %v411_v40  ;;  %v2654_v15 = vsel %vm366_vm12, %v251_v20, %v412_v30 }
 0x10a   :  { %1918 = vmatmul.mubr.msk.f32.gmra.mrb[40].mxu1 %vm95_vm1, %v2620_v47  ;;  %v2660_v0 = vsel %vm367_vm13, %v254_v11, %v413_v16 }
 0x10b   :  { %1920 = vmatprep.mubr.msk.f32.mxu1 %vm2208_vm2, %v2207_v12 }
 0x10e   :  { %1921 = vmatmul.mubr.msk.f32.gmra.mrb[42].mxu1 %vm95_vm1, %v2629_v8 }
 0x10f   :  { %1923 = vmatprep.mubr.msk.f32.mxu1 %vm2208_vm2, %v2207_v12 }
 0x112   :  { %1924 = vmatmul.mubr.msk.f32.gmra.mrb[44].mxu1 %vm95_vm1, %v2638_v9 }
 0x113   :  { %1926 = vmatprep.mubr.msk.f32.mxu1 %vm2208_vm2, %v2207_v12 }
 0x116   :  { %1927 = vmatmul.mubr.msk.f32.gmra.mrb[46].mxu1 %vm95_vm1, %v2647_v13 }
 0x117   :  { %1929 = vmatprep.mubr.msk.f32.mxu1 %vm2208_vm2, %v2207_v12 }
 0x11a   :  { %1930 = vmatmul.mubr.msk.f32.gmra.mrb[48].mxu1 %vm95_vm1, %v2654_v15 }
 0x11b   :  { %1932 = vmatprep.mubr.msk.f32.mxu1 %vm2208_vm2, %v2207_v12 }
 0x11e   :  { %1933 = vmatmul.mubr.msk.f32.gmra.mrb[50].mxu1 %vm95_vm1, %v2660_v0 }
 0x11f   :  { %1935 = vmatprep.mubr.msk.f32.mxu1 %vm2208_vm2, %v2207_v12 }
 0x122   :  { %1936 = vmatmul.mubr.msk.f32.gmra.mrb[52].mxu1 %vm95_vm1, %v2582_v34 }
 0x123   :  { %1938 = vmatprep.mubr.msk.f32.mxu1 %vm2208_vm2, %v2207_v12 }
 0x126   :  { %1939 = vmatmul.mubr.msk.f32.gmra.mrb[54].mxu1 %vm95_vm1, %v2593_v49 }
 0x127   :  { %1941 = vmatprep.mubr.msk.f32.mxu1 %vm2208_vm2, %v2207_v12 }
 0x12a   :  { %1942 = vmatmul.mubr.msk.f32.gmra.mrb[56].mxu1 %vm95_vm1, %v2578_v19 }
 0x12b   :  { %1944 = vmatprep.mubr.msk.f32.mxu1 %vm2208_vm2, %v2207_v12 }
 0x12e   :  { %1945 = vmatmul.mubr.msk.f32.gmra.mrb[58].mxu1 %vm95_vm1, %v2588_v45 }
 0x12f   :  { %1947 = vmatprep.mubr.msk.f32.mxu1 %vm2208_vm2, %v2207_v12 }
 0x132   :  { %1948 = vmatmul.mubr.msk.f32.gmra.mrb[60].mxu1 %vm95_vm1, %v2437_v32 }
 0x133   :  { %1950 = vmatprep.mubr.msk.f32.mxu1 %vm2208_vm2, %v2207_v12 }
 0x136   :  { %1951 = vmatmul.mubr.msk.f32.gmra.mrb[62].mxu1 %vm95_vm1, %v2446_v37 }
 0x137   :  { %1953 = vmatprep.mubr.msk.f32.mxu1 %vm2208_vm2, %v2207_v12 }
 0x13a   :  { %1954 = vmatmul.mubr.msk.f32.gmra.mrb[64].mxu1 %vm95_vm1, %v2431_v28 }
 0x13b   :  { %1956 = vmatprep.mubr.msk.f32.mxu1 %vm2208_vm2, %v2207_v12 }
 0x13e   :  { %1957 = vmatmul.mubr.msk.f32.gmra.mrb[66].mxu1 %vm95_vm1, %v2442_v35 }
 0x13f   :  { %1959 = vmatprep.mubr.msk.f32.mxu1 %vm2208_vm2, %v2207_v12 }
 0x142   :  { %1960 = vmatmul.mubr.msk.f32.gmra.mrb[68].mxu1 %vm95_vm1, %v2476_v59 }
 0x143   :  { %1962 = vmatprep.mubr.msk.f32.mxu1 %vm2208_vm2, %v2207_v12 }
 0x146   :  { %1963 = vmatmul.mubr.msk.f32.gmra.mrb[70].mxu1 %vm95_vm1, %v2484_v63 }
 0x147   :  { %1965 = vmatprep.mubr.msk.f32.mxu1 %vm2208_vm2, %v2207_v12 }
 0x14a   :  { %1966 = vmatmul.mubr.msk.f32.gmra.mrb[72].mxu1 %vm95_vm1, %v2470_v55 }
 0x14b   :  { %1968 = vmatprep.mubr.msk.f32.mxu1 %vm2208_vm2, %v2207_v12 }
 0x14e   :  { %1969 = vmatmul.mubr.msk.f32.gmra.mrb[74].mxu1 %vm95_vm1, %v2480_v61 }
 0x14f   :  { %1971 = vmatprep.mubr.msk.f32.mxu1 %vm2208_vm2, %v2207_v12 }
 0x152   :  { %1972 = vmatmul.mubr.msk.f32.gmra.mrb[76].mxu1 %vm95_vm1, %v2517_v26 }
 0x153   :  { %1974 = vmatprep.mubr.msk.f32.mxu1 %vm2208_vm2, %v2207_v12 }
 0x156   :  { %1975 = vmatmul.mubr.msk.f32.gmra.mrb[78].mxu1 %vm95_vm1, %v2532_v36 }
 0x157   :  { %1977 = vmatprep.mubr.msk.f32.mxu1 %vm2208_vm2, %v2207_v12 }
 0x15a   :  { %1978 = vmatmul.mubr.msk.f32.gmra.mrb[80].mxu1 %vm95_vm1, %v2509_v22 }
 0x15b   :  { %1980 = vmatprep.mubr.msk.f32.mxu1 %vm2208_vm2, %v2207_v12 }
 0x15e   :  { %1981 = vmatmul.mubr.msk.f32.gmra.mrb[82].mxu1 %vm95_vm1, %v2527_v31 }
 0x15f   :  { %1983 = vmatprep.mubr.msk.f32.mxu1 %vm2208_vm2, %v2207_v12 }
 0x162   :  { %1984 = vmatmul.mubr.msk.f32.gmra.mrb[84].mxu1 %vm95_vm1, %v2563_v5 }
 0x163   :  { %1986 = vmatprep.mubr.msk.f32.mxu1 %vm2208_vm2, %v2207_v12 }
 0x166   :  { %1987 = vmatmul.mubr.msk.f32.gmra.mrb[86].mxu1 %vm95_vm1, %v2575_v17 }
 0x167   :  { %1989 = vmatprep.mubr.msk.f32.mxu1 %vm2208_vm2, %v2207_v12 }
 0x16a   :  { %1990 = vmatmul.mubr.msk.f32.gmra.mrb[88].mxu1 %vm95_vm1, %v2559_v62 }
 0x16b   :  { %1992 = vmatprep.mubr.msk.f32.mxu1 %vm2208_vm2, %v2207_v12 }
 0x16e   :  { %1993 = vmatmul.mubr.msk.f32.gmra.mrb[90].mxu1 %vm95_vm1, %v2569_v10 }
 0x16f   :  { %1995 = vmatprep.mubr.msk.f32.mxu1 %vm2208_vm2, %v2207_v12 }
 0x172   :  { %1996 = vmatmul.mubr.msk.f32.gmra.mrb[92].mxu1 %vm95_vm1, %v2607_v1 }
 0x173   :  { %1998 = vmatprep.mubr.msk.f32.mxu1 %vm2208_vm2, %v2207_v12 }
 0x176   :  { %1999 = vmatmul.mubr.msk.f32.gmra.mrb[94].mxu1 %vm95_vm1, %v2614_v3 }
 0x177   :  { %2001 = vmatprep.mubr.msk.f32.mxu1 %vm2208_vm2, %v2207_v12 }
 0x17a   :  { %2002 = vmatmul.mubr.msk.f32.gmra.mrb[96].mxu1 %vm95_vm1, %v2601_v56 }
 0x1b5   :  { %v660_v2 = vpop.f32.mrb[20].mxu1 }
 0x1b6   :  { %v854_v24 = vmul.f32 0.5, %v660_v2  ;;  %v1889_v18 = vpop.f32.mrb[21].mxu1 }
 0x1b8   :  { %v2757_v21 = vsub.f32 %v2416_v14, %v854_v24 }
 0x1b9   :  { %v665_v25 = vpop.f32.mrb[22].mxu1 }
 0x1ba   :  { %v932_v33 = vmul.f32 %v2757_v21, %v2757_v21  ;;  %v855_v38 = vmul.f32 0.5, %v665_v25  ;;  %v1892_v39 = vpop.f32.mrb[23].mxu1 }
 0x1bc   :  { %v2762_v46 = vsub.f32 %v2434_v29, %v855_v38  ;;  %2007 = vmatmul.mubr.msk.f32.vlgmr.msra.gmra.mrb[20].mxu0 %vm95_vm1, %v932_v33 }
 0x1bd   :  { %v670_v50 = vpop.f32.mrb[24].mxu1  ;;  %2009 = vmatprep.mubr.msk.f32.mxu0 %vm2208_vm2, %v2207_v12 }
 0x1be   :  { %v933_v51 = vmul.f32 %v2762_v46, %v2762_v46  ;;  %v856_v14 = vmul.f32 0.5, %v670_v50  ;;  %v1895_v52 = vpop.f32.mrb[25].mxu1 }
 0x1c0   :  { %v2770_v53 = vsub.f32 %v2450_v41, %v856_v14  ;;  %2010 = vmatmul.mubr.msk.f32.gmra.mrb[22].mxu0 %vm95_vm1, %v933_v51 }
 0x1c1   :  { %v675_v54 = vpop.f32.mrb[26].mxu1  ;;  %2012 = vmatprep.mubr.msk.f32.mxu0 %vm2208_vm2, %v2207_v12 }
 0x1c2   :  { %v934_v29 = vmul.f32 %v2770_v53, %v2770_v53  ;;  %v857_v60 = vmul.f32 0.5, %v675_v54  ;;  %v1898_v57 = vpop.f32.mrb[27].mxu1 }
 0x1c4   :  { %v2778_v27 = vsub.f32 %v2455_v44, %v857_v60  ;;  %2013 = vmatmul.mubr.msk.f32.gmra.mrb[24].mxu0 %vm95_vm1, %v934_v29 }
 0x1c5   :  { %v680_v4 = vpop.f32.mrb[28].mxu1  ;;  %2015 = vmatprep.mubr.msk.f32.mxu0 %vm2208_vm2, %v2207_v12 }
 0x1c6   :  { %v935_v41 = vmul.f32 %v2778_v27, %v2778_v27  ;;  %v858_v6 = vmul.f32 0.5, %v680_v4  ;;  %v1901_v20 = vpop.f32.mrb[29].mxu1 }
 0x1c8   :  { %v2786_v40 = vsub.f32 %v2491_v7, %v858_v6  ;;  %2016 = vmatmul.mubr.msk.f32.gmra.mrb[26].mxu0 %vm95_vm1, %v935_v41 }
 0x1c9   :  { %v685_v30 = vpop.f32.mrb[30].mxu1  ;;  %2018 = vmatprep.mubr.msk.f32.mxu0 %vm2208_vm2, %v2207_v12 }
 0x1ca   :  { %v936_v44 = vmul.f32 %v2786_v40, %v2786_v40  ;;  %v859_v11 = vmul.f32 0.5, %v685_v30  ;;  %v1904_v16 = vpop.f32.mrb[31].mxu1 }
 0x1cc   :  { %v2794_v2 = vsub.f32 %v2512_v23, %v859_v11  ;;  %2019 = vmatmul.mubr.msk.f32.gmra.mrb[28].mxu0 %vm95_vm1, %v936_v44 }
 0x1cd   :  { %v690_v24 = vpop.f32.mrb[32].mxu1  ;;  %2021 = vmatprep.mubr.msk.f32.mxu0 %vm2208_vm2, %v2207_v12 }
 0x1ce   :  { %v937_v7 = vmul.f32 %v2794_v2, %v2794_v2  ;;  %v860_v18 = vmul.f32 0.5, %v690_v24  ;;  %v1907_v25 = vpop.f32.mrb[33].mxu1 }
 0x1d0   :  { %v2802_v33 = vsub.f32 %v2540_v42, %v860_v18  ;;  %2022 = vmatmul.mubr.msk.f32.gmra.mrb[30].mxu0 %vm95_vm1, %v937_v7 }
 0x1d1   :  { %v695_v38 = vpop.f32.mrb[34].mxu1  ;;  %2024 = vmatprep.mubr.msk.f32.mxu0 %vm2208_vm2, %v2207_v12 }
 0x1d2   :  { %v938_v23 = vmul.f32 %v2802_v33, %v2802_v33  ;;  %v861_v39 = vmul.f32 0.5, %v695_v38  ;;  %v1910_v50 = vpop.f32.mrb[35].mxu1 }
 0x1d4   :  { %v2810_v51 = vsub.f32 %v2542_v43, %v861_v39  ;;  %2025 = vmatmul.mubr.msk.f32.gmra.mrb[32].mxu0 %vm95_vm1, %v938_v23 }
 0x1d5   :  { %v700_v14 = vpop.f32.mrb[36].mxu1  ;;  %2027 = vmatprep.mubr.msk.f32.mxu0 %vm2208_vm2, %v2207_v12 }
 0x1d6   :  { %v939_v42 = vmul.f32 %v2810_v51, %v2810_v51  ;;  %v862_v52 = vmul.f32 0.5, %v700_v14  ;;  %v1913_v54 = vpop.f32.mrb[37].mxu1 }
 0x1d8   :  { %v2818_v29 = vsub.f32 %v2553_v48, %v862_v52  ;;  %2028 = vmatmul.mubr.msk.f32.gmra.mrb[34].mxu0 %vm95_vm1, %v939_v42 }
 0x1d9   :  { %v705_v60 = vpop.f32.mrb[38].mxu1  ;;  %2030 = vmatprep.mubr.msk.f32.mxu0 %vm2208_vm2, %v2207_v12 }
 0x1da   :  { %v940_v43 = vmul.f32 %v2818_v29, %v2818_v29  ;;  %v863_v57 = vmul.f32 0.5, %v705_v60  ;;  %v1916_v4 = vpop.f32.mrb[39].mxu1 }
 0x1dc   :  { %v2826_v41 = vsub.f32 %v2604_v58, %v863_v57  ;;  %2031 = vmatmul.mubr.msk.f32.gmra.mrb[36].mxu0 %vm95_vm1, %v940_v43 }
 0x1dd   :  { %v710_v6 = vpop.f32.mrb[40].mxu1  ;;  %2033 = vmatprep.mubr.msk.f32.mxu0 %vm2208_vm2, %v2207_v12 }
 0x1de   :  { %v941_v48 = vmul.f32 %v2826_v41, %v2826_v41  ;;  %v864_v20 = vmul.f32 0.5, %v710_v6  ;;  %v1919_v30 = vpop.f32.mrb[41].mxu1 }
 0x1e0   :  { %v2834_v44 = vsub.f32 %v2620_v47, %v864_v20  ;;  %2034 = vmatmul.mubr.msk.f32.gmra.mrb[38].mxu0 %vm95_vm1, %v941_v48 }
 0x1e1   :  { %v715_v11 = vpop.f32.mrb[42].mxu1  ;;  %2036 = vmatprep.mubr.msk.f32.mxu0 %vm2208_vm2, %v2207_v12 }
 0x1e2   :  { %v942_v58 = vmul.f32 %v2834_v44, %v2834_v44  ;;  %v865_v16 = vmul.f32 0.5, %v715_v11  ;;  %v1922_v24 = vpop.f32.mrb[43].mxu1 }
 0x1e4   :  { %v2842_v7 = vsub.f32 %v2629_v8, %v865_v16  ;;  %2037 = vmatmul.mubr.msk.f32.gmra.mrb[40].mxu0 %vm95_vm1, %v942_v58 }
 0x1e5   :  { %v720_v18 = vpop.f32.mrb[44].mxu1  ;;  %2039 = vmatprep.mubr.msk.f32.mxu0 %vm2208_vm2, %v2207_v12 }
 0x1e6   :  { %v943_v47 = vmul.f32 %v2842_v7, %v2842_v7  ;;  %v866_v25 = vmul.f32 0.5, %v720_v18  ;;  %v1925_v38 = vpop.f32.mrb[45].mxu1 }
 0x1e8   :  { %v2850_v23 = vsub.f32 %v2638_v9, %v866_v25  ;;  %2040 = vmatmul.mubr.msk.f32.gmra.mrb[42].mxu0 %vm95_vm1, %v943_v47 }
 0x1e9   :  { %v725_v39 = vpop.f32.mrb[46].mxu1  ;;  %2042 = vmatprep.mubr.msk.f32.mxu0 %vm2208_vm2, %v2207_v12 }
 0x1ea   :  { %v944_v8 = vmul.f32 %v2850_v23, %v2850_v23  ;;  %v867_v50 = vmul.f32 0.5, %v725_v39  ;;  %v1928_v14 = vpop.f32.mrb[47].mxu1 }
 0x1ec   :  { %v2858_v42 = vsub.f32 %v2647_v13, %v867_v50  ;;  %2043 = vmatmul.mubr.msk.f32.gmra.mrb[44].mxu0 %vm95_vm1, %v944_v8 }
 0x1ed   :  { %v730_v52 = vpop.f32.mrb[48].mxu1  ;;  %2045 = vmatprep.mubr.msk.f32.mxu0 %vm2208_vm2, %v2207_v12 }
 0x1ee   :  { %v945_v9 = vmul.f32 %v2858_v42, %v2858_v42  ;;  %v868_v54 = vmul.f32 0.5, %v730_v52  ;;  %v1931_v60 = vpop.f32.mrb[49].mxu1 }
 0x1f0   :  { %v2866_v43 = vsub.f32 %v2654_v15, %v868_v54  ;;  %2046 = vmatmul.mubr.msk.f32.gmra.mrb[46].mxu0 %vm95_vm1, %v945_v9 }
 0x1f1   :  { %v735_v57 = vpop.f32.mrb[50].mxu1  ;;  %2048 = vmatprep.mubr.msk.f32.mxu0 %vm2208_vm2, %v2207_v12 }
 0x1f2   :  { %v946_v13 = vmul.f32 %v2866_v43, %v2866_v43  ;;  %v869_v4 = vmul.f32 0.5, %v735_v57  ;;  %v1934_v6 = vpop.f32.mrb[51].mxu1 }
 0x1f4   :  { %v2874_v48 = vsub.f32 %v2660_v0, %v869_v4  ;;  %2049 = vmatmul.mubr.msk.f32.gmra.mrb[48].mxu0 %vm95_vm1, %v946_v13 }
 0x1f5   :  { %v740_v20 = vpop.f32.mrb[52].mxu1  ;;  %2051 = vmatprep.mubr.msk.f32.mxu0 %vm2208_vm2, %v2207_v12 }
 0x1f6   :  { %v947_v15 = vmul.f32 %v2874_v48, %v2874_v48  ;;  %v870_v30 = vmul.f32 0.5, %v740_v20  ;;  %v1937_v11 = vpop.f32.mrb[53].mxu1 }
 0x1f8   :  { %v2882_v58 = vsub.f32 %v2582_v34, %v870_v30  ;;  %2052 = vmatmul.mubr.msk.f32.gmra.mrb[50].mxu0 %vm95_vm1, %v947_v15 }
 0x1f9   :  { %v745_v16 = vpop.f32.mrb[54].mxu1  ;;  %2054 = vmatprep.mubr.msk.f32.mxu0 %vm2208_vm2, %v2207_v12 }
 0x1fa   :  { %v948_v0 = vmul.f32 %v2882_v58, %v2882_v58  ;;  %v871_v24 = vmul.f32 0.5, %v745_v16  ;;  %v1940_v18 = vpop.f32.mrb[55].mxu1 }
 0x1fc   :  { %v2890_v47 = vsub.f32 %v2593_v49, %v871_v24  ;;  %2055 = vmatmul.mubr.msk.f32.gmra.mrb[52].mxu0 %vm95_vm1, %v948_v0 }
 0x1fd   :  { %v750_v25 = vpop.f32.mrb[56].mxu1  ;;  %2057 = vmatprep.mubr.msk.f32.mxu0 %vm2208_vm2, %v2207_v12 }
 0x1fe   :  { %v949_v34 = vmul.f32 %v2890_v47, %v2890_v47  ;;  %v872_v38 = vmul.f32 0.5, %v750_v25  ;;  %v1943_v39 = vpop.f32.mrb[57].mxu1 }
 0x200   :  { %v2898_v8 = vsub.f32 %v2578_v19, %v872_v38  ;;  %2058 = vmatmul.mubr.msk.f32.gmra.mrb[54].mxu0 %vm95_vm1, %v949_v34 }
 0x201   :  { %v755_v50 = vpop.f32.mrb[58].mxu1  ;;  %2060 = vmatprep.mubr.msk.f32.mxu0 %vm2208_vm2, %v2207_v12 }
 0x202   :  { %v950_v49 = vmul.f32 %v2898_v8, %v2898_v8  ;;  %v873_v14 = vmul.f32 0.5, %v755_v50  ;;  %v1946_v52 = vpop.f32.mrb[59].mxu1 }
 0x204   :  { %v2906_v9 = vsub.f32 %v2588_v45, %v873_v14  ;;  %2061 = vmatmul.mubr.msk.f32.gmra.mrb[56].mxu0 %vm95_vm1, %v950_v49 }
 0x205   :  { %v760_v54 = vpop.f32.mrb[60].mxu1  ;;  %2063 = vmatprep.mubr.msk.f32.mxu0 %vm2208_vm2, %v2207_v12 }
 0x206   :  { %v951_v19 = vmul.f32 %v2906_v9, %v2906_v9  ;;  %v874_v60 = vmul.f32 0.5, %v760_v54  ;;  %v1949_v57 = vpop.f32.mrb[61].mxu1 }
 0x208   :  { %v2914_v13 = vsub.f32 %v2437_v32, %v874_v60  ;;  %2064 = vmatmul.mubr.msk.f32.gmra.mrb[58].mxu0 %vm95_vm1, %v951_v19 }
 0x209   :  { %v765_v4 = vpop.f32.mrb[62].mxu1  ;;  %2066 = vmatprep.mubr.msk.f32.mxu0 %vm2208_vm2, %v2207_v12 }
 0x20a   :  { %v952_v45 = vmul.f32 %v2914_v13, %v2914_v13  ;;  %v875_v6 = vmul.f32 0.5, %v765_v4  ;;  %v1952_v20 = vpop.f32.mrb[63].mxu1 }
 0x20c   :  { %v2922_v15 = vsub.f32 %v2446_v37, %v875_v6  ;;  %2067 = vmatmul.mubr.msk.f32.gmra.mrb[60].mxu0 %vm95_vm1, %v952_v45 }
 0x20d   :  { %v770_v30 = vpop.f32.mrb[64].mxu1  ;;  %2069 = vmatprep.mubr.msk.f32.mxu0 %vm2208_vm2, %v2207_v12 }
 0x20e   :  { %v953_v32 = vmul.f32 %v2922_v15, %v2922_v15  ;;  %v876_v11 = vmul.f32 0.5, %v770_v30  ;;  %v1955_v16 = vpop.f32.mrb[65].mxu1 }
 0x210   :  { %v2930_v0 = vsub.f32 %v2431_v28, %v876_v11  ;;  %2070 = vmatmul.mubr.msk.f32.gmra.mrb[62].mxu0 %vm95_vm1, %v953_v32 }
 0x211   :  { %v775_v24 = vpop.f32.mrb[66].mxu1  ;;  %2072 = vmatprep.mubr.msk.f32.mxu0 %vm2208_vm2, %v2207_v12 }
 0x212   :  { %v954_v37 = vmul.f32 %v2930_v0, %v2930_v0  ;;  %v877_v18 = vmul.f32 0.5, %v775_v24  ;;  %v1958_v25 = vpop.f32.mrb[67].mxu1 }
 0x214   :  { %v2938_v34 = vsub.f32 %v2442_v35, %v877_v18  ;;  %2073 = vmatmul.mubr.msk.f32.gmra.mrb[64].mxu0 %vm95_vm1, %v954_v37 }
 0x215   :  { %v780_v38 = vpop.f32.mrb[68].mxu1  ;;  %2075 = vmatprep.mubr.msk.f32.mxu0 %vm2208_vm2, %v2207_v12 }
 0x216   :  { %v955_v28 = vmul.f32 %v2938_v34, %v2938_v34  ;;  %v878_v39 = vmul.f32 0.5, %v780_v38  ;;  %v1961_v50 = vpop.f32.mrb[69].mxu1 }
 0x218   :  { %v2946_v49 = vsub.f32 %v2476_v59, %v878_v39  ;;  %2076 = vmatmul.mubr.msk.f32.gmra.mrb[66].mxu0 %vm95_vm1, %v955_v28 }
 0x219   :  { %v785_v14 = vpop.f32.mrb[70].mxu1  ;;  %2078 = vmatprep.mubr.msk.f32.mxu0 %vm2208_vm2, %v2207_v12 }
 0x21a   :  { %v956_v35 = vmul.f32 %v2946_v49, %v2946_v49  ;;  %v879_v52 = vmul.f32 0.5, %v785_v14  ;;  %v1964_v54 = vpop.f32.mrb[71].mxu1 }
 0x21c   :  { %v2954_v19 = vsub.f32 %v2484_v63, %v879_v52  ;;  %2079 = vmatmul.mubr.msk.f32.gmra.mrb[68].mxu0 %vm95_vm1, %v956_v35 }
 0x21d   :  { %v790_v60 = vpop.f32.mrb[72].mxu1  ;;  %2081 = vmatprep.mubr.msk.f32.mxu0 %vm2208_vm2, %v2207_v12 }
 0x21e   :  { %v957_v59 = vmul.f32 %v2954_v19, %v2954_v19  ;;  %v880_v57 = vmul.f32 0.5, %v790_v60  ;;  %v1967_v4 = vpop.f32.mrb[73].mxu1 }
 0x220   :  { %v2962_v45 = vsub.f32 %v2470_v55, %v880_v57  ;;  %2082 = vmatmul.mubr.msk.f32.gmra.mrb[70].mxu0 %vm95_vm1, %v957_v59 }
 0x221   :  { %v795_v6 = vpop.f32.mrb[74].mxu1  ;;  %2084 = vmatprep.mubr.msk.f32.mxu0 %vm2208_vm2, %v2207_v12 }
 0x222   :  { %v958_v63 = vmul.f32 %v2962_v45, %v2962_v45  ;;  %v881_v20 = vmul.f32 0.5, %v795_v6  ;;  %v1970_v30 = vpop.f32.mrb[75].mxu1 }
 0x224   :  { %v2970_v32 = vsub.f32 %v2480_v61, %v881_v20  ;;  %2085 = vmatmul.mubr.msk.f32.gmra.mrb[72].mxu0 %vm95_vm1, %v958_v63 }
 0x225   :  { %v800_v11 = vpop.f32.mrb[76].mxu1  ;;  %2087 = vmatprep.mubr.msk.f32.mxu0 %vm2208_vm2, %v2207_v12 }
 0x226   :  { %v959_v55 = vmul.f32 %v2970_v32, %v2970_v32  ;;  %v882_v16 = vmul.f32 0.5, %v800_v11  ;;  %v1973_v24 = vpop.f32.mrb[77].mxu1 }
 0x228   :  { %v2978_v37 = vsub.f32 %v2517_v26, %v882_v16  ;;  %2088 = vmatmul.mubr.msk.f32.gmra.mrb[74].mxu0 %vm95_vm1, %v959_v55 }
 0x229   :  { %v805_v18 = vpop.f32.mrb[78].mxu1  ;;  %2090 = vmatprep.mubr.msk.f32.mxu0 %vm2208_vm2, %v2207_v12 }
 0x22a   :  { %v960_v61 = vmul.f32 %v2978_v37, %v2978_v37  ;;  %v883_v25 = vmul.f32 0.5, %v805_v18  ;;  %v1976_v38 = vpop.f32.mrb[79].mxu1 }
 0x22c   :  { %v2986_v28 = vsub.f32 %v2532_v36, %v883_v25  ;;  %2091 = vmatmul.mubr.msk.f32.gmra.mrb[76].mxu0 %vm95_vm1, %v960_v61 }
 0x22d   :  { %v810_v39 = vpop.f32.mrb[80].mxu1  ;;  %2093 = vmatprep.mubr.msk.f32.mxu0 %vm2208_vm2, %v2207_v12 }
 0x22e   :  { %v961_v26 = vmul.f32 %v2986_v28, %v2986_v28  ;;  %v884_v50 = vmul.f32 0.5, %v810_v39  ;;  %v1979_v14 = vpop.f32.mrb[81].mxu1 }
 0x230   :  { %v2994_v35 = vsub.f32 %v2509_v22, %v884_v50  ;;  %2094 = vmatmul.mubr.msk.f32.gmra.mrb[78].mxu0 %vm95_vm1, %v961_v26 }
 0x231   :  { %v815_v52 = vpop.f32.mrb[82].mxu1  ;;  %2096 = vmatprep.mubr.msk.f32.mxu0 %vm2208_vm2, %v2207_v12 }
 0x232   :  { %v962_v36 = vmul.f32 %v2994_v35, %v2994_v35  ;;  %v885_v54 = vmul.f32 0.5, %v815_v52  ;;  %v1982_v60 = vpop.f32.mrb[83].mxu1 }
 0x234   :  { %v3002_v59 = vsub.f32 %v2527_v31, %v885_v54  ;;  %2097 = vmatmul.mubr.msk.f32.gmra.mrb[80].mxu0 %vm95_vm1, %v962_v36 }
 0x235   :  { %v820_v57 = vpop.f32.mrb[84].mxu1  ;;  %2099 = vmatprep.mubr.msk.f32.mxu0 %vm2208_vm2, %v2207_v12 }
 0x236   :  { %v963_v22 = vmul.f32 %v3002_v59, %v3002_v59  ;;  %v886_v4 = vmul.f32 0.5, %v820_v57  ;;  %v1985_v6 = vpop.f32.mrb[85].mxu1 }
 0x238   :  { %v3010_v63 = vsub.f32 %v2563_v5, %v886_v4  ;;  %2100 = vmatmul.mubr.msk.f32.gmra.mrb[82].mxu0 %vm95_vm1, %v963_v22 }
 0x239   :  { %v825_v20 = vpop.f32.mrb[86].mxu1  ;;  %2102 = vmatprep.mubr.msk.f32.mxu0 %vm2208_vm2, %v2207_v12 }
 0x23a   :  { %v964_v31 = vmul.f32 %v3010_v63, %v3010_v63  ;;  %v887_v30 = vmul.f32 0.5, %v825_v20  ;;  %v1988_v11 = vpop.f32.mrb[87].mxu1 }
 0x23c   :  { %v3018_v55 = vsub.f32 %v2575_v17, %v887_v30  ;;  %2103 = vmatmul.mubr.msk.f32.gmra.mrb[84].mxu0 %vm95_vm1, %v964_v31 }
 0x23d   :  { %v830_v16 = vpop.f32.mrb[88].mxu1  ;;  %2105 = vmatprep.mubr.msk.f32.mxu0 %vm2208_vm2, %v2207_v12 }
 0x23e   :  { %v965_v5 = vmul.f32 %v3018_v55, %v3018_v55  ;;  %v888_v24 = vmul.f32 0.5, %v830_v16  ;;  %v1991_v18 = vpop.f32.mrb[89].mxu1 }
 0x240   :  { %v3026_v61 = vsub.f32 %v2559_v62, %v888_v24  ;;  %2106 = vmatmul.mubr.msk.f32.gmra.mrb[86].mxu0 %vm95_vm1, %v965_v5 }
 0x241   :  { %v835_v25 = vpop.f32.mrb[90].mxu1  ;;  %2108 = vmatprep.mubr.msk.f32.mxu0 %vm2208_vm2, %v2207_v12 }
 0x242   :  { %v966_v17 = vmul.f32 %v3026_v61, %v3026_v61  ;;  %v889_v38 = vmul.f32 0.5, %v835_v25  ;;  %v1994_v39 = vpop.f32.mrb[91].mxu1 }
 0x244   :  { %v3034_v26 = vsub.f32 %v2569_v10, %v889_v38  ;;  %2109 = vmatmul.mubr.msk.f32.gmra.mrb[88].mxu0 %vm95_vm1, %v966_v17 }
 0x245   :  { %v840_v50 = vpop.f32.mrb[92].mxu1  ;;  %2111 = vmatprep.mubr.msk.f32.mxu0 %vm2208_vm2, %v2207_v12 }
 0x246   :  { %v967_v62 = vmul.f32 %v3034_v26, %v3034_v26  ;;  %v890_v14 = vmul.f32 0.5, %v840_v50  ;;  %v1997_v52 = vpop.f32.mrb[93].mxu1 }
 0x248   :  { %v3042_v36 = vsub.f32 %v2607_v1, %v890_v14  ;;  %2112 = vmatmul.mubr.msk.f32.gmra.mrb[90].mxu0 %vm95_vm1, %v967_v62 }
 0x249   :  { %v845_v54 = vpop.f32.mrb[94].mxu1  ;;  %2114 = vmatprep.mubr.msk.f32.mxu0 %vm2208_vm2, %v2207_v12 }
 0x24a   :  { %v968_v10 = vmul.f32 %v3042_v36, %v3042_v36  ;;  %v891_v60 = vmul.f32 0.5, %v845_v54  ;;  %v2000_v57 = vpop.f32.mrb[95].mxu1  ;;  %v3069_v54 = vld [vmem:[%s3353_s5] ss:$0 sm:$0xff] }
 0x24c   :  { %v3050_v22 = vsub.f32 %v2614_v3, %v891_v60  ;;  %2115 = vmatmul.mubr.msk.f32.gmra.mrb[92].mxu0 %vm95_vm1, %v968_v10 }
 0x24d   :  { %v850_v4 = vpop.f32.mrb[96].mxu1  ;;  %2117 = vmatprep.mubr.msk.f32.mxu0 %vm2208_vm2, %v2207_v12 }
 0x24e   :  { %v969_v1 = vmul.f32 %v3050_v22, %v3050_v22  ;;  %v892_v6 = vmul.f32 0.5, %v850_v4  ;;  %v2003_v20 = vpop.f32.mrb[97].mxu1  ;;  %v3075_v4 = vld [vmem:[%s3354_s6] ss:$0 sm:$0xff] }
 0x250   :  { %v3058_v31 = vsub.f32 %v2601_v56, %v892_v6  ;;  %2118 = vmatmul.mubr.msk.f32.gmra.mrb[94].mxu0 %vm95_vm1, %v969_v1 }
 0x251   :  { %2120 = vmatprep.mubr.msk.f32.mxu0 %vm2208_vm2, %v2207_v12  ;;  %vm1634_vm2 = vcmask 58368  }
 0x252   :  { %v970_v3 = vmul.f32 %v3058_v31, %v3058_v31 }
 0x254   :  { %2121 = vmatmul.mubr.msk.f32.gmra.mrb[96].mxu0 %vm95_vm1, %v970_v3 }
 0x28f   :  { %v1154_v30 = vpop.f32.mrb[20].mxu0 }
 0x290   :  { %v1348_v11 = vmul.f32 0.5, %v1154_v30  ;;  %v2008_v16 = vpop.f32.mrb[21].mxu0 }
 0x292   :  { %v1387_v5 = vadd.f32 1e-05, %v1348_v11 }
 0x293   :  { %v1159_v24 = vpop.f32.mrb[22].mxu0 }
 0x294   :  { %2129 = vrsqrt.f32 %v1387_v5  ;;  %v1349_v18 = vmul.f32 0.5, %v1159_v24  ;;  %v2011_v25 = vpop.f32.mrb[23].mxu0 }
 0x296   :  { %v1388_v56 = vadd.f32 1e-05, %v1349_v18 }
 0x297   :  { %v1164_v17 = vpop.f32.mrb[24].mxu0 }
 0x298   :  { %2131 = vrsqrt.f32 %v1388_v56  ;;  %v1350_v38 = vmul.f32 0.5, %v1164_v17  ;;  %v2014_v39 = vpop.f32.mrb[25].mxu0 }
 0x29a   :  { %v1389_v50 = vadd.f32 1e-05, %v1350_v38 }
 0x29b   :  { %v1169_v12 = vpop.f32.mrb[26].mxu0 }
 0x29c   :  { %2133 = vrsqrt.f32 %v1389_v50  ;;  %v1351_v62 = vmul.f32 0.5, %v1169_v12  ;;  %v2017_v14 = vpop.f32.mrb[27].mxu0 }
 0x29e   :  { %v2130_v52 = vpop.eup %2129  ;;  %v1390_v10 = vadd.f32 1e-05, %v1351_v62 }
 0x29f   :  { %v1465_v60 = vmul.f32 %v2130_v52, %v2757_v21  ;;  %v1174_v57 = vpop.f32.mrb[28].mxu0 }
 0x2a0   :  { %2135 = vrsqrt.f32 %v1390_v10  ;;  %v1352_v1 = vmul.f32 0.5, %v1174_v57  ;;  %v2020_v6 = vpop.f32.mrb[29].mxu0 }
 0x2a1   :  { %v1511_v20 = vmul.f32 %v3069_v54, %v1465_v60 }
 0x2a2   :  { %v2132_v3 = vpop.eup %2131  ;;  %v1391_v30 = vadd.f32 1e-05, %v1352_v1 }
 0x2a3   :  { %v1557_v11 = vadd.f32 %v3075_v4, %v1511_v20  ;;  %v1466_v16 = vmul.f32 %v2132_v3, %v2762_v46  ;;  %v1179_v5 = vpop.f32.mrb[30].mxu0 }
 0x2a4   :  { %2137 = vrsqrt.f32 %v1391_v30  ;;  %v1353_v21 = vmul.f32 0.5, %v1179_v5  ;;  %v2023_v24 = vpop.f32.mrb[31].mxu0 }
 0x2a5   :  { %1596 = vst.msk [vmem:[%s3355_s7] sm:$0xff] %vm95_vm1, %v1557_v11  ;;  %v1512_v18 = vmul.f32 %v3069_v54, %v1466_v16 }
 0x2a6   :  { %v2134_v25 = vpop.eup %2133  ;;  %v1392_v56 = vadd.f32 1e-05, %v1353_v21 }
 0x2a7   :  { %v1558_v17 = vadd.f32 %v3075_v4, %v1512_v18  ;;  %v1467_v38 = vmul.f32 %v2134_v25, %v2770_v53  ;;  %v1184_v39 = vpop.f32.mrb[32].mxu0 }
 0x2a8   :  { %2139 = vrsqrt.f32 %v1392_v56  ;;  %v1354_v46 = vmul.f32 0.5, %v1184_v39  ;;  %v2026_v50 = vpop.f32.mrb[33].mxu0 }
 0x2a9   :  { %1597 = vst.msk [vmem:[%s3355_s7 + $0x8] sm:$0xff] %vm95_vm1, %v1558_v17  ;;  %v1513_v12 = vmul.f32 %v3069_v54, %v1467_v38 }
 0x2aa   :  { %v2136_v62 = vpop.eup %2135  ;;  %v1393_v14 = vadd.f32 1e-05, %v1354_v46 }
 0x2ab   :  { %v1559_v52 = vadd.f32 %v3075_v4, %v1513_v12  ;;  %v1468_v10 = vmul.f32 %v2136_v62, %v2778_v27  ;;  %v1189_v60 = vpop.f32.mrb[34].mxu0 }
 0x2ac   :  { %2141 = vrsqrt.f32 %v1393_v14  ;;  %v1355_v53 = vmul.f32 0.5, %v1189_v60  ;;  %v2029_v57 = vpop.f32.mrb[35].mxu0 }
 0x2ad   :  { %1598 = vst.msk [vmem:[%s3355_s7 + $0x10] sm:$0xff] %vm95_vm1, %v1559_v52  ;;  %v1514_v1 = vmul.f32 %v3069_v54, %v1468_v10 }
 0x2ae   :  { %v2138_v6 = vpop.eup %2137  ;;  %v1394_v20 = vadd.f32 1e-05, %v1355_v53 }
 0x2af   :  { %v1560_v3 = vadd.f32 %v3075_v4, %v1514_v1  ;;  %v1469_v30 = vmul.f32 %v2138_v6, %v2786_v40  ;;  %v1194_v11 = vpop.f32.mrb[36].mxu0 }
 0x2b0   :  { %2143 = vrsqrt.f32 %v1394_v20  ;;  %v1356_v27 = vmul.f32 0.5, %v1194_v11  ;;  %v2032_v16 = vpop.f32.mrb[37].mxu0 }
 0x2b1   :  { %1599 = vst.msk [vmem:[%s3355_s7 + $0x18] sm:$0xff] %vm95_vm1, %v1560_v3  ;;  %v1515_v5 = vmul.f32 %v3069_v54, %v1469_v30 }
 0x2b2   :  { %v2140_v21 = vpop.eup %2139  ;;  %v1395_v24 = vadd.f32 1e-05, %v1356_v27 }
 0x2b3   :  { %v1561_v18 = vadd.f32 %v3075_v4, %v1515_v5  ;;  %v1470_v25 = vmul.f32 %v2140_v21, %v2794_v2  ;;  %v1199_v56 = vpop.f32.mrb[38].mxu0 }
 0x2b4   :  { %2145 = vrsqrt.f32 %v1395_v24  ;;  %v1357_v40 = vmul.f32 0.5, %v1199_v56  ;;  %v2035_v17 = vpop.f32.mrb[39].mxu0 }
 0x2b5   :  { %1600 = vst.msk [vmem:[%s3355_s7 + $0x20] sm:$0xff] %vm95_vm1, %v1561_v18  ;;  %v1516_v38 = vmul.f32 %v3069_v54, %v1470_v25 }
 0x2b6   :  { %v2142_v39 = vpop.eup %2141  ;;  %v1396_v46 = vadd.f32 1e-05, %v1357_v40 }
 0x2b7   :  { %v1562_v50 = vadd.f32 %v3075_v4, %v1516_v38  ;;  %v1471_v12 = vmul.f32 %v2142_v39, %v2802_v33  ;;  %v1204_v62 = vpop.f32.mrb[40].mxu0 }
 0x2b8   :  { %2147 = vrsqrt.f32 %v1396_v46  ;;  %v1358_v2 = vmul.f32 0.5, %v1204_v62  ;;  %v2038_v14 = vpop.f32.mrb[41].mxu0 }
 0x2b9   :  { %1601 = vst.msk [vmem:[%s3355_s7 + $0x28] sm:$0xff] %vm95_vm1, %v1562_v50  ;;  %v1517_v52 = vmul.f32 %v3069_v54, %v1471_v12 }
 0x2ba   :  { %v2144_v10 = vpop.eup %2143  ;;  %v1397_v60 = vadd.f32 1e-05, %v1358_v2 }
 0x2bb   :  { %v1563_v53 = vadd.f32 %v3075_v4, %v1517_v52  ;;  %v1472_v57 = vmul.f32 %v2144_v10, %v2810_v51  ;;  %v1209_v1 = vpop.f32.mrb[42].mxu0 }
 0x2bc   :  { %2149 = vrsqrt.f32 %v1397_v60  ;;  %v1359_v33 = vmul.f32 0.5, %v1209_v1  ;;  %v2041_v6 = vpop.f32.mrb[43].mxu0 }
 0x2bd   :  { %1602 = vst.msk [vmem:[%s3355_s7 + $0x30] sm:$0xff] %vm95_vm1, %v1563_v53  ;;  %v1518_v20 = vmul.f32 %v3069_v54, %v1472_v57 }
 0x2be   :  { %v2146_v3 = vpop.eup %2145  ;;  %v1398_v30 = vadd.f32 1e-05, %v1359_v33 }
 0x2bf   :  { %v1564_v11 = vadd.f32 %v3075_v4, %v1518_v20  ;;  %v1473_v27 = vmul.f32 %v2146_v3, %v2818_v29  ;;  %v1214_v16 = vpop.f32.mrb[44].mxu0 }
 0x2c0   :  { %2151 = vrsqrt.f32 %v1398_v30  ;;  %v1360_v51 = vmul.f32 0.5, %v1214_v16  ;;  %v2044_v5 = vpop.f32.mrb[45].mxu0 }
 0x2c1   :  { %1603 = vst.msk [vmem:[%s3355_s7 + $0x38] sm:$0xff] %vm95_vm1, %v1564_v11  ;;  %v1519_v21 = vmul.f32 %v3069_v54, %v1473_v27 }
 0x2c2   :  { %v2148_v24 = vpop.eup %2147  ;;  %v1399_v18 = vadd.f32 1e-05, %v1360_v51 }
 0x2c3   :  { %v1565_v25 = vadd.f32 %v3075_v4, %v1519_v21  ;;  %v1474_v56 = vmul.f32 %v2148_v24, %v2826_v41  ;;  %v1219_v40 = vpop.f32.mrb[46].mxu0 }
 0x2c4   :  { %2153 = vrsqrt.f32 %v1399_v18  ;;  %v1361_v29 = vmul.f32 0.5, %v1219_v40  ;;  %v2047_v17 = vpop.f32.mrb[47].mxu0 }
 0x2c5   :  { %1604 = vst.msk [vmem:[%s3355_s7 + $0x40] sm:$0xff] %vm95_vm1, %v1565_v25  ;;  %v1520_v38 = vmul.f32 %v3069_v54, %v1474_v56 }
 0x2c6   :  { %v2150_v39 = vpop.eup %2149  ;;  %v1400_v46 = vadd.f32 1e-05, %v1361_v29 }
 0x2c7   :  { %v1566_v50 = vadd.f32 %v3075_v4, %v1520_v38  ;;  %v1475_v12 = vmul.f32 %v2150_v39, %v2834_v44  ;;  %v1224_v62 = vpop.f32.mrb[48].mxu0 }
 0x2c8   :  { %2155 = vrsqrt.f32 %v1400_v46  ;;  %v1362_v41 = vmul.f32 0.5, %v1224_v62  ;;  %v2050_v2 = vpop.f32.mrb[49].mxu0 }
 0x2c9   :  { %1605 = vst.msk [vmem:[%s3355_s7 + $0x48] sm:$0xff] %vm95_vm1, %v1566_v50  ;;  %v1521_v14 = vmul.f32 %v3069_v54, %v1475_v12 }
 0x2ca   :  { %v2152_v52 = vpop.eup %2151  ;;  %v1401_v10 = vadd.f32 1e-05, %v1362_v41 }
 0x2cb   :  { %v1567_v60 = vadd.f32 %v3075_v4, %v1521_v14  ;;  %v1476_v53 = vmul.f32 %v2152_v52, %v2842_v7  ;;  %v1229_v57 = vpop.f32.mrb[50].mxu0 }
 0x2cc   :  { %2157 = vrsqrt.f32 %v1401_v10  ;;  %v1363_v44 = vmul.f32 0.5, %v1229_v57  ;;  %v2053_v1 = vpop.f32.mrb[51].mxu0 }
 0x2cd   :  { %1606 = vst.msk [vmem:[%s3355_s7 + $0x50] sm:$0xff] %vm95_vm1, %v1567_v60  ;;  %v1522_v33 = vmul.f32 %v3069_v54, %v1476_v53 }
 0x2ce   :  { %v2154_v6 = vpop.eup %2153  ;;  %v1402_v20 = vadd.f32 1e-05, %v1363_v44 }
 0x2cf   :  { %v1568_v3 = vadd.f32 %v3075_v4, %v1522_v33  ;;  %v1477_v30 = vmul.f32 %v2154_v6, %v2850_v23  ;;  %v1234_v11 = vpop.f32.mrb[52].mxu0 }
 0x2d0   :  { %2159 = vrsqrt.f32 %v1402_v20  ;;  %v1364_v7 = vmul.f32 0.5, %v1234_v11  ;;  %v2056_v27 = vpop.f32.mrb[53].mxu0 }
 0x2d1   :  { %1607 = vst.msk [vmem:[%s3355_s7 + $0x58] sm:$0xff] %vm95_vm1, %v1568_v3  ;;  %v1523_v16 = vmul.f32 %v3069_v54, %v1477_v30 }
 0x2d2   :  { %v2156_v51 = vpop.eup %2155  ;;  %v1403_v5 = vadd.f32 1e-05, %v1364_v7 }
 0x2d3   :  { %v1569_v21 = vadd.f32 %v3075_v4, %v1523_v16  ;;  %v1478_v24 = vmul.f32 %v2156_v51, %v2858_v42  ;;  %v1239_v18 = vpop.f32.mrb[54].mxu0 }
 0x2d4   :  { %2161 = vrsqrt.f32 %v1403_v5  ;;  %v1365_v23 = vmul.f32 0.5, %v1239_v18  ;;  %v2059_v25 = vpop.f32.mrb[55].mxu0 }
 0x2d5   :  { %1608 = vst.msk [vmem:[%s3355_s7 + $0x60] sm:$0xff] %vm95_vm1, %v1569_v21  ;;  %v1524_v56 = vmul.f32 %v3069_v54, %v1478_v24 }
 0x2d6   :  { %v2158_v40 = vpop.eup %2157  ;;  %v1404_v29 = vadd.f32 1e-05, %v1365_v23 }
 0x2d7   :  { %v1570_v17 = vadd.f32 %v3075_v4, %v1524_v56  ;;  %v1479_v38 = vmul.f32 %v2158_v40, %v2866_v43  ;;  %v1244_v39 = vpop.f32.mrb[56].mxu0 }
 0x2d8   :  { %2163 = vrsqrt.f32 %v1404_v29  ;;  %v1366_v42 = vmul.f32 0.5, %v1244_v39  ;;  %v2062_v46 = vpop.f32.mrb[57].mxu0 }
 0x2d9   :  { %1609 = vst.msk [vmem:[%s3355_s7 + $0x68] sm:$0xff] %vm95_vm1, %v1570_v17  ;;  %v1525_v50 = vmul.f32 %v3069_v54, %v1479_v38 }
 0x2da   :  { %v2160_v12 = vpop.eup %2159  ;;  %v1405_v62 = vadd.f32 1e-05, %v1366_v42 }
 0x2db   :  { %v1571_v41 = vadd.f32 %v3075_v4, %v1525_v50  ;;  %v1480_v2 = vmul.f32 %v2160_v12, %v2874_v48  ;;  %v1249_v14 = vpop.f32.mrb[58].mxu0 }
 0x2dc   :  { %2165 = vrsqrt.f32 %v1405_v62  ;;  %v1367_v43 = vmul.f32 0.5, %v1249_v14  ;;  %v2065_v52 = vpop.f32.mrb[59].mxu0 }
 0x2dd   :  { %1610 = vst.msk [vmem:[%s3355_s7 + $0x70] sm:$0xff] %vm95_vm1, %v1571_v41  ;;  %v1526_v10 = vmul.f32 %v3069_v54, %v1480_v2 }
 0x2de   :  { %v2162_v60 = vpop.eup %2161  ;;  %v1406_v53 = vadd.f32 1e-05, %v1367_v43 }
 0x2df   :  { %v1572_v57 = vadd.f32 %v3075_v4, %v1526_v10  ;;  %v1481_v44 = vmul.f32 %v2162_v60, %v2882_v58  ;;  %v1254_v1 = vpop.f32.mrb[60].mxu0 }
 0x2e0   :  { %2167 = vrsqrt.f32 %v1406_v53  ;;  %v1368_v48 = vmul.f32 0.5, %v1254_v1  ;;  %v2068_v33 = vpop.f32.mrb[61].mxu0 }
 0x2e1   :  { %1611 = vst.msk [vmem:[%s3355_s7 + $0x78] sm:$0xff] %vm95_vm1, %v1572_v57  ;;  %v1527_v6 = vmul.f32 %v3069_v54, %v1481_v44 }
 0x2e2   :  { %v2164_v20 = vpop.eup %2163  ;;  %v1407_v3 = vadd.f32 1e-05, %v1368_v48 }
 0x2e3   :  { %v1573_v30 = vadd.f32 %v3075_v4, %v1527_v6  ;;  %v1482_v11 = vmul.f32 %v2164_v20, %v2890_v47  ;;  %v1259_v7 = vpop.f32.mrb[62].mxu0 }
 0x2e4   :  { %2169 = vrsqrt.f32 %v1407_v3  ;;  %v1369_v58 = vmul.f32 0.5, %v1259_v7  ;;  %v2071_v27 = vpop.f32.mrb[63].mxu0 }
 0x2e5   :  { %1612 = vst.msk [vmem:[%s3355_s7 + $0x80] sm:$0xff] %vm95_vm1, %v1573_v30  ;;  %v1528_v16 = vmul.f32 %v3069_v54, %v1482_v11 }
 0x2e6   :  { %v2166_v51 = vpop.eup %2165  ;;  %v1408_v5 = vadd.f32 1e-05, %v1369_v58 }
 0x2e7   :  { %v1574_v21 = vadd.f32 %v3075_v4, %v1528_v16  ;;  %v1483_v24 = vmul.f32 %v2166_v51, %v2898_v8  ;;  %v1264_v18 = vpop.f32.mrb[64].mxu0 }
 0x2e8   :  { %2171 = vrsqrt.f32 %v1408_v5  ;;  %v1370_v47 = vmul.f32 0.5, %v1264_v18  ;;  %v2074_v23 = vpop.f32.mrb[65].mxu0 }
 0x2e9   :  { %1613 = vst.msk [vmem:[%s3355_s7 + $0x88] sm:$0xff] %vm95_vm1, %v1574_v21  ;;  %v1529_v25 = vmul.f32 %v3069_v54, %v1483_v24 }
 0x2ea   :  { %v2168_v56 = vpop.eup %2167  ;;  %v1409_v40 = vadd.f32 1e-05, %v1370_v47 }
 0x2eb   :  { %v1575_v29 = vadd.f32 %v3075_v4, %v1529_v25  ;;  %v1484_v17 = vmul.f32 %v2168_v56, %v2906_v9  ;;  %v1269_v38 = vpop.f32.mrb[66].mxu0 }
 0x2ec   :  { %2173 = vrsqrt.f32 %v1409_v40  ;;  %v1371_v8 = vmul.f32 0.5, %v1269_v38  ;;  %v2077_v39 = vpop.f32.mrb[67].mxu0 }
 0x2ed   :  { %1614 = vst.msk [vmem:[%s3355_s7 + $0x90] sm:$0xff] %vm95_vm1, %v1575_v29  ;;  %v1530_v42 = vmul.f32 %v3069_v54, %v1484_v17 }
 0x2ee   :  { %v2170_v46 = vpop.eup %2169  ;;  %v1410_v50 = vadd.f32 1e-05, %v1371_v8 }
 0x2ef   :  { %v1576_v12 = vadd.f32 %v3075_v4, %v1530_v42  ;;  %v1485_v62 = vmul.f32 %v2170_v46, %v2914_v13  ;;  %v1274_v41 = vpop.f32.mrb[68].mxu0 }
 0x2f0   :  { %2175 = vrsqrt.f32 %v1410_v50  ;;  %v1372_v9 = vmul.f32 0.5, %v1274_v41  ;;  %v2080_v2 = vpop.f32.mrb[69].mxu0 }
 0x2f1   :  { %1615 = vst.msk [vmem:[%s3355_s7 + $0x98] sm:$0xff] %vm95_vm1, %v1576_v12  ;;  %v1531_v14 = vmul.f32 %v3069_v54, %v1485_v62 }
 0x2f2   :  { %v2172_v43 = vpop.eup %2171  ;;  %v1411_v52 = vadd.f32 1e-05, %v1372_v9 }
 0x2f3   :  { %v1577_v10 = vadd.f32 %v3075_v4, %v1531_v14  ;;  %v1486_v60 = vmul.f32 %v2172_v43, %v2922_v15  ;;  %v1279_v53 = vpop.f32.mrb[70].mxu0 }
 0x2f4   :  { %2177 = vrsqrt.f32 %v1411_v52  ;;  %v1373_v13 = vmul.f32 0.5, %v1279_v53  ;;  %v2083_v57 = vpop.f32.mrb[71].mxu0 }
 0x2f5   :  { %1616 = vst.msk [vmem:[%s3355_s7 + $0xa0] sm:$0xff] %vm95_vm1, %v1577_v10  ;;  %v1532_v44 = vmul.f32 %v3069_v54, %v1486_v60 }
 0x2f6   :  { %v2174_v1 = vpop.eup %2173  ;;  %v1412_v48 = vadd.f32 1e-05, %v1373_v13 }
 0x2f7   :  { %v1578_v33 = vadd.f32 %v3075_v4, %v1532_v44  ;;  %v1487_v6 = vmul.f32 %v2174_v1, %v2930_v0  ;;  %v1284_v20 = vpop.f32.mrb[72].mxu0 }
 0x2f8   :  { %2179 = vrsqrt.f32 %v1412_v48  ;;  %v1374_v15 = vmul.f32 0.5, %v1284_v20  ;;  %v2086_v3 = vpop.f32.mrb[73].mxu0 }
 0x2f9   :  { %1617 = vst.msk [vmem:[%s3355_s7 + $0xa8] sm:$0xff] %vm95_vm1, %v1578_v33  ;;  %v1533_v30 = vmul.f32 %v3069_v54, %v1487_v6 }
 0x2fa   :  { %v2176_v11 = vpop.eup %2175  ;;  %v1413_v7 = vadd.f32 1e-05, %v1374_v15 }
 0x2fb   :  { %v1579_v58 = vadd.f32 %v3075_v4, %v1533_v30  ;;  %v1488_v27 = vmul.f32 %v2176_v11, %v2938_v34  ;;  %v1289_v16 = vpop.f32.mrb[74].mxu0 }
 0x2fc   :  { %2181 = vrsqrt.f32 %v1413_v7  ;;  %v1375_v0 = vmul.f32 0.5, %v1289_v16  ;;  %v2089_v51 = vpop.f32.mrb[75].mxu0 }
 0x2fd   :  { %1618 = vst.msk [vmem:[%s3355_s7 + $0xb0] sm:$0xff] %vm95_vm1, %v1579_v58  ;;  %v1534_v5 = vmul.f32 %v3069_v54, %v1488_v27 }
 0x2fe   :  { %v2178_v21 = vpop.eup %2177  ;;  %v1414_v24 = vadd.f32 1e-05, %v1375_v0 }
 0x2ff   :  { %v1580_v18 = vadd.f32 %v3075_v4, %v1534_v5  ;;  %v1489_v47 = vmul.f32 %v2178_v21, %v2946_v49  ;;  %v1294_v23 = vpop.f32.mrb[76].mxu0 }
 0x300   :  { %2183 = vrsqrt.f32 %v1414_v24  ;;  %v1376_v34 = vmul.f32 0.5, %v1294_v23  ;;  %v2092_v25 = vpop.f32.mrb[77].mxu0 }
 0x301   :  { %1619 = vst.msk [vmem:[%s3355_s7 + $0xb8] sm:$0xff] %vm95_vm1, %v1580_v18  ;;  %v1535_v56 = vmul.f32 %v3069_v54, %v1489_v47 }
 0x302   :  { %v2180_v40 = vpop.eup %2179  ;;  %v1415_v29 = vadd.f32 1e-05, %v1376_v34 }
 0x303   :  { %v1581_v17 = vadd.f32 %v3075_v4, %v1535_v56  ;;  %v1490_v38 = vmul.f32 %v2180_v40, %v2954_v19  ;;  %v1299_v8 = vpop.f32.mrb[78].mxu0 }
 0x304   :  { %2185 = vrsqrt.f32 %v1415_v29  ;;  %v1377_v49 = vmul.f32 0.5, %v1299_v8  ;;  %v2095_v39 = vpop.f32.mrb[79].mxu0 }
 0x305   :  { %1620 = vst.msk [vmem:[%s3355_s7 + $0xc0] sm:$0xff] %vm95_vm1, %v1581_v17  ;;  %v1536_v42 = vmul.f32 %v3069_v54, %v1490_v38 }
 0x306   :  { %v2182_v46 = vpop.eup %2181  ;;  %v1416_v50 = vadd.f32 1e-05, %v1377_v49 }
 0x307   :  { %v1582_v12 = vadd.f32 %v3075_v4, %v1536_v42  ;;  %v1491_v62 = vmul.f32 %v2182_v46, %v2962_v45  ;;  %v1304_v41 = vpop.f32.mrb[80].mxu0 }
 0x308   :  { %2187 = vrsqrt.f32 %v1416_v50  ;;  %v1378_v19 = vmul.f32 0.5, %v1304_v41  ;;  %v2098_v9 = vpop.f32.mrb[81].mxu0 }
 0x309   :  { %1621 = vst.msk [vmem:[%s3355_s7 + $0xc8] sm:$0xff] %vm95_vm1, %v1582_v12  ;;  %v1537_v2 = vmul.f32 %v3069_v54, %v1491_v62 }
 0x30a   :  { %v2184_v14 = vpop.eup %2183  ;;  %v1417_v43 = vadd.f32 1e-05, %v1378_v19 }
 0x30b   :  { %v1583_v52 = vadd.f32 %v3075_v4, %v1537_v2  ;;  %v1492_v10 = vmul.f32 %v2184_v14, %v2970_v32  ;;  %v1309_v60 = vpop.f32.mrb[82].mxu0 }
 0x30c   :  { %2189 = vrsqrt.f32 %v1417_v43  ;;  %v1379_v45 = vmul.f32 0.5, %v1309_v60  ;;  %v2101_v53 = vpop.f32.mrb[83].mxu0 }
 0x30d   :  { %1622 = vst.msk [vmem:[%s3355_s7 + $0xd0] sm:$0xff] %vm95_vm1, %v1583_v52  ;;  %v1538_v13 = vmul.f32 %v3069_v54, %v1492_v10 }
 0x30e   :  { %v2186_v57 = vpop.eup %2185  ;;  %v1418_v44 = vadd.f32 1e-05, %v1379_v45 }
 0x30f   :  { %v1584_v1 = vadd.f32 %v3075_v4, %v1538_v13  ;;  %v1493_v48 = vmul.f32 %v2186_v57, %v2978_v37  ;;  %v1314_v33 = vpop.f32.mrb[84].mxu0 }
 0x310   :  { %2191 = vrsqrt.f32 %v1418_v44  ;;  %v1380_v32 = vmul.f32 0.5, %v1314_v33  ;;  %v2104_v6 = vpop.f32.mrb[85].mxu0 }
 0x311   :  { %1623 = vst.msk [vmem:[%s3355_s7 + $0xd8] sm:$0xff] %vm95_vm1, %v1584_v1  ;;  %v1539_v20 = vmul.f32 %v3069_v54, %v1493_v48 }
 0x312   :  { %v2188_v15 = vpop.eup %2187  ;;  %v1419_v3 = vadd.f32 1e-05, %v1380_v32 }
 0x313   :  { %v1585_v30 = vadd.f32 %v3075_v4, %v1539_v20  ;;  %v1494_v11 = vmul.f32 %v2188_v15, %v2986_v28  ;;  %v1319_v7 = vpop.f32.mrb[86].mxu0 }
 0x314   :  { %2193 = vrsqrt.f32 %v1419_v3  ;;  %v1381_v37 = vmul.f32 0.5, %v1319_v7  ;;  %v2107_v58 = vpop.f32.mrb[87].mxu0 }
 0x315   :  { %1624 = vst.msk [vmem:[%s3355_s7 + $0xe0] sm:$0xff] %vm95_vm1, %v1585_v30  ;;  %v1540_v27 = vmul.f32 %v3069_v54, %v1494_v11 }
 0x316   :  { %v2190_v16 = vpop.eup %2189  ;;  %v1420_v0 = vadd.f32 1e-05, %v1381_v37 }
 0x317   :  { %v1586_v51 = vadd.f32 %v3075_v4, %v1540_v27  ;;  %v1495_v5 = vmul.f32 %v2190_v16, %v2994_v35  ;;  %v1324_v21 = vpop.f32.mrb[88].mxu0 }
 0x318   :  { %2195 = vrsqrt.f32 %v1420_v0  ;;  %v1382_v28 = vmul.f32 0.5, %v1324_v21  ;;  %v2110_v24 = vpop.f32.mrb[89].mxu0 }
 0x319   :  { %1625 = vst.msk [vmem:[%s3355_s7 + $0xe8] sm:$0xff] %vm95_vm1, %v1586_v51  ;;  %v1541_v18 = vmul.f32 %v3069_v54, %v1495_v5 }
 0x31a   :  { %v2192_v47 = vpop.eup %2191  ;;  %v1421_v23 = vadd.f32 1e-05, %v1382_v28 }
 0x31b   :  { %v1587_v34 = vadd.f32 %v3075_v4, %v1541_v18  ;;  %v1496_v25 = vmul.f32 %v2192_v47, %v3002_v59  ;;  %v1329_v56 = vpop.f32.mrb[90].mxu0 }
 0x31c   :  { %2197 = vrsqrt.f32 %v1421_v23  ;;  %v1383_v35 = vmul.f32 0.5, %v1329_v56  ;;  %v2113_v40 = vpop.f32.mrb[91].mxu0 }
 0x31d   :  { %1626 = vst.msk [vmem:[%s3355_s7 + $0xf0] sm:$0xff] %vm95_vm1, %v1587_v34  ;;  %v1542_v29 = vmul.f32 %v3069_v54, %v1496_v25 }
 0x31e   :  { %v2194_v17 = vpop.eup %2193  ;;  %v1422_v38 = vadd.f32 1e-05, %v1383_v35 }
 0x31f   :  { %v1588_v8 = vadd.f32 %v3075_v4, %v1542_v29  ;;  %v1497_v49 = vmul.f32 %v2194_v17, %v3010_v63  ;;  %v1334_v39 = vpop.f32.mrb[92].mxu0 }
 0x320   :  { %2199 = vrsqrt.f32 %v1422_v38  ;;  %v1384_v59 = vmul.f32 0.5, %v1334_v39  ;;  %v2116_v42 = vpop.f32.mrb[93].mxu0 }
 0x321   :  { %1627 = vst.msk [vmem:[%s3355_s7 + $0xf8] sm:$0xff] %vm95_vm1, %v1588_v8  ;;  %v1543_v46 = vmul.f32 %v3069_v54, %v1497_v49 }
 0x322   :  { %v2196_v50 = vpop.eup %2195  ;;  %v1423_v12 = vadd.f32 1e-05, %v1384_v59 }
 0x323   :  { %v1589_v62 = vadd.f32 %v3075_v4, %v1543_v46  ;;  %v1498_v41 = vmul.f32 %v2196_v50, %v3018_v55  ;;  %v1339_v19 = vpop.f32.mrb[94].mxu0 }
 0x324   :  { %2201 = vrsqrt.f32 %v1423_v12  ;;  %v1385_v63 = vmul.f32 0.5, %v1339_v19  ;;  %v2119_v9 = vpop.f32.mrb[95].mxu0 }
 0x325   :  { %1628 = vst.msk [vmem:[%s3355_s7 + $0x100] sm:$0xff] %vm95_vm1, %v1589_v62  ;;  %v1544_v2 = vmul.f32 %v3069_v54, %v1498_v41 }
 0x326   :  { %v2198_v14 = vpop.eup %2197  ;;  %v1424_v43 = vadd.f32 1e-05, %v1385_v63 }
 0x327   :  { %v1590_v52 = vadd.f32 %v3075_v4, %v1544_v2  ;;  %v1499_v10 = vmul.f32 %v2198_v14, %v3026_v61  ;;  %v1344_v60 = vpop.f32.mrb[96].mxu0 }
 0x328   :  { %2203 = vrsqrt.f32 %v1424_v43  ;;  %v1386_v55 = vmul.f32 0.5, %v1344_v60  ;;  %v2122_v45 = vpop.f32.mrb[97].mxu0 }
 0x329   :  { %1629 = vst.msk [vmem:[%s3355_s7 + $0x108] sm:$0xff] %vm95_vm1, %v1590_v52  ;;  %v1545_v53 = vmul.f32 %v3069_v54, %v1499_v10 }
 0x32a   :  { %v2200_v13 = vpop.eup %2199  ;;  %v1425_v57 = vadd.f32 1e-05, %v1386_v55 }
 0x32b   :  { %v1591_v44 = vadd.f32 %v3075_v4, %v1545_v53  ;;  %v1500_v1 = vmul.f32 %v2200_v13, %v3034_v26 }
 0x32c   :  { %2205 = vrsqrt.f32 %v1425_v57 }
 0x32d   :  { %1630 = vst.msk [vmem:[%s3355_s7 + $0x110] sm:$0xff] %vm95_vm1, %v1591_v44  ;;  %v1546_v61 = vmul.f32 %v3069_v54, %v1500_v1 }
 0x32e   :  { %v2202_v48 = vpop.eup %2201 }
 0x32f   :  { %v1592_v33 = vadd.f32 %v3075_v4, %v1546_v61  ;;  %v1501_v32 = vmul.f32 %v2202_v48, %v3042_v36 }
 0x331   :  { %1631 = vst.msk [vmem:[%s3355_s7 + $0x118] sm:$0xff] %vm95_vm1, %v1592_v33  ;;  %v1547_v26 = vmul.f32 %v3069_v54, %v1501_v32 }
 0x332   :  { %v2204_v6 = vpop.eup %2203 }
 0x333   :  { %v1593_v20 = vadd.f32 %v3075_v4, %v1547_v26  ;;  %v1502_v15 = vmul.f32 %v2204_v6, %v3050_v22 }
 0x335   :  { %1632 = vst.msk [vmem:[%s3355_s7 + $0x120] sm:$0xff] %vm95_vm1, %v1593_v20  ;;  %v1548_v3 = vmul.f32 %v3069_v54, %v1502_v15 }
 0x336   :  { %v2206_v36 = vpop.eup %2205 }
 0x337   :  { %v1594_v30 = vadd.f32 %v3075_v4, %v1548_v3  ;;  %v1503_v11 = vmul.f32 %v2206_v36, %v3058_v31 }
 0x339   :  { %1633 = vst.msk [vmem:[%s3355_s7 + $0x128] sm:$0xff] %vm95_vm1, %v1594_v30  ;;  %v1549_v7 = vmul.f32 %v3069_v54, %v1503_v11 }
 0x33b   :  { %v1595_v22 = vadd.f32 %v3075_v4, %v1549_v7 }
 0x33d   :  { %1635 = vst.msk [vmem:[%s3355_s7 + $0x130] sm:$0x3] %vm1634_vm2, %v1595_v22 }

// kernel: whyv2_forward.37
= control target key start
LH: loop header
LB: loop body
LE: loop exit
PB: predicated region body
PF: predicated region fallthrough
CT: control target
= control target key end

     0   :  { %v187_v0 = vmov 0.0   ;;  %vm188_vm0 = vmmov 0   ;;  %vm42_vm1 = vcmask 261120   ;;  %vm130_vm2 = vcmask 277504   ;;  %s297_s1 = inlined_call_operand.vmem [shape: f32[32,34], index: 1, kind: input, shape index: {}]   ;;  %s298_s0 = inlined_call_operand.vmem [shape: f32[72,32], index: 0, kind: input, shape index: {}]   ;;  %s299_s2 = inlined_call_operand.vmem [shape: f32[1,34], index: 2, kind: input, shape index: {}]   ;;  %s300_s3 = inlined_call_operand.vmem [shape: f32[72,34], index: 3, kind: output, shape index: {}]  }
   0x1   :  { %157 = vmatprep.subr.bf16.mxu0 %v187_v0  ;;  %v29_v1 = vld [vmem:[%s297_s1] sm:$0xff]  ;;  %v30_v2 = vld [vmem:[%s297_s1 + $0x8] sm:$0xff]  ;;  %v31_v3 = vld [vmem:[%s297_s1 + $0x10] sm:$0xff]  ;;  %181 = vmatprep.subr.bf16.mxu1 %v187_v0 }
   0x2   :  { %v33_v4 = vpack.c.bf16 %v30_v2, %v29_v1  ;;  %v32_v5 = vld [vmem:[%s297_s1 + $0x18] sm:$0xff]  ;;  %161 = vmatprep.mubr.msk.bf16.mxu0 %vm188_vm0, %v187_v0  ;;  %173 = vmatprep.mubr.msk.bf16.mxu1 %vm188_vm0, %v187_v0  ;;  %v15_v6 = vld [vmem:[%s298_s0] sm:$0xff]  ;;  %v16_v8 = vld [vmem:[%s298_s0 + $0x8] sm:$0xff] }
   0x3   :  { %v34_v7 = vpack.c.bf16 %v32_v5, %v31_v3  ;;  %v21_v9 = vld [vmem:[%s298_s0 + $0x30] sm:$0xff]  ;;  %v22_v10 = vld [vmem:[%s298_s0 + $0x38] sm:$0xff]  ;;  %v24_v11 = vpack.c.bf16 %v16_v8, %v15_v6  ;;  %v23_v15 = vld [vmem:[%s298_s0 + $0x40] sm:$0xff] }
   0x4   :  { %158 = vmatpush3.bf16.msra.mxu0 %v33_v4  ;;  %183 = vmatpush3.bf16.msra.mxu1 %v33_v4  ;;  %v27_v12 = vpack.c.bf16 %v22_v10, %v21_v9  ;;  %v17_v13 = vld [vmem:[%s298_s0 + $0x10] sm:$0xff]  ;;  %v18_v14 = vld [vmem:[%s298_s0 + $0x18] sm:$0xff]  ;;  %v28_v17 = vpack.c.bf16 %v23_v15, %v23_v15  ;;  %v19_v18 = vld [vmem:[%s298_s0 + $0x20] sm:$0xff] }
   0x5   :  { %159 = vmatprep.subr.bf16.mxu0 %v187_v0  ;;  %182 = vmatprep.subr.bf16.mxu1 %v187_v0  ;;  %v25_v16 = vpack.c.bf16 %v18_v14, %v17_v13  ;;  %v20_v19 = vld [vmem:[%s298_s0 + $0x28] sm:$0xff]  ;;  %v144_v21 = vld [vmem:[%s299_s2] ss:$0 sm:$0xff] }
   0x6   :  { %v26_v20 = vpack.c.bf16 %v20_v19, %v19_v18 }
   0x8   :  { %160 = vmatpush3.bf16.msra.mxu0 %v34_v7  ;;  %184 = vmatpush3.bf16.msra.mxu1 %v34_v7 }
   0xb   :  { %162 = vmatmul.mubr.msk.bf16.vlgmr.msra.gmra.mrb[0].mxu0 %vm42_vm1, %v24_v11  ;;  %174 = vmatmul.mubr.msk.bf16.vlgmr.msra.gmra.mrb[0].mxu1 %vm42_vm1, %v27_v12 }
   0xc   :  { %165 = vmatprep.mubr.msk.bf16.mxu0 %vm188_vm0, %v187_v0  ;;  %177 = vmatprep.mubr.msk.bf16.mxu1 %vm188_vm0, %v187_v0 }
  0x13   :  { %166 = vmatmul.mubr.msk.bf16.gmra.mrb[4].mxu0 %vm42_vm1, %v25_v16  ;;  %178 = vmatmul.mubr.msk.bf16.gmra.mrb[4].mxu1 %vm42_vm1, %v28_v17 }
  0x14   :  { %169 = vmatprep.mubr.msk.bf16.mxu0 %vm188_vm0, %v187_v0 }
  0x1b   :  { %170 = vmatmul.mubr.msk.bf16.gmra.mrb[8].mxu0 %vm42_vm1, %v26_v20 }
  0xde   :  { %v92_v22 = vpop.f32.mrb[0].mxu0  ;;  %v116_v23 = vpop.f32.mrb[0].mxu1 }
  0xdf   :  { %v93_v24 = vadd.f32 %v144_v21, %v92_v22  ;;  %v163_v25 = vpop.f32.mrb[1].mxu0  ;;  %v117_v26 = vadd.f32 %v144_v21, %v116_v23  ;;  %v175_v27 = vpop.f32.mrb[1].mxu1 }
  0xe0   :  { %v95_v28 = vpop.f32.mrb[2].mxu0  ;;  %v119_v29 = vpop.f32.mrb[2].mxu1 }
  0xe1   :  { %131 = vst.msk [vmem:[%s300_s3] sm:$0xff] %vm130_vm2, %v93_v24  ;;  %v96_v30 = vadd.f32 %v144_v21, %v95_v28  ;;  %v164_v31 = vpop.f32.mrb[3].mxu0  ;;  %137 = vst.msk [vmem:[%s300_s3 + $0x30] sm:$0xff] %vm130_vm2, %v117_v26  ;;  %v120_v32 = vadd.f32 %v144_v21, %v119_v29  ;;  %v176_v33 = vpop.f32.mrb[3].mxu1 }
  0xe3   :  { %132 = vst.msk [vmem:[%s300_s3 + $0x8] sm:$0xff] %vm130_vm2, %v96_v30  ;;  %138 = vst.msk [vmem:[%s300_s3 + $0x38] sm:$0xff] %vm130_vm2, %v120_v32 }
  0xe6   :  { %v100_v34 = vpop.f32.mrb[4].mxu0  ;;  %v124_v35 = vpop.f32.mrb[4].mxu1 }
  0xe7   :  { %v101_v36 = vadd.f32 %v144_v21, %v100_v34  ;;  %v167_v37 = vpop.f32.mrb[5].mxu0  ;;  %v125_v38 = vadd.f32 %v144_v21, %v124_v35  ;;  %v179_v39 = vpop.f32.mrb[5].mxu1 }
  0xe8   :  { %v103_v40 = vpop.f32.mrb[6].mxu0  ;;  %v127_v41 = vpop.f32.mrb[6].mxu1 }
  0xe9   :  { %133 = vst.msk [vmem:[%s300_s3 + $0x10] sm:$0xff] %vm130_vm2, %v101_v36  ;;  %v104_v42 = vadd.f32 %v144_v21, %v103_v40  ;;  %v168_v43 = vpop.f32.mrb[7].mxu0  ;;  %139 = vst.msk [vmem:[%s300_s3 + $0x40] sm:$0xff] %vm130_vm2, %v125_v38  ;;  %v180_v44 = vpop.f32.mrb[7].mxu1 }
  0xeb   :  { %134 = vst.msk [vmem:[%s300_s3 + $0x18] sm:$0xff] %vm130_vm2, %v104_v42 }
  0xee   :  { %v108_v45 = vpop.f32.mrb[8].mxu0 }
  0xef   :  { %v109_v46 = vadd.f32 %v144_v21, %v108_v45  ;;  %v171_v47 = vpop.f32.mrb[9].mxu0 }
  0xf0   :  { %v111_v48 = vpop.f32.mrb[10].mxu0 }
  0xf1   :  { %135 = vst.msk [vmem:[%s300_s3 + $0x20] sm:$0xff] %vm130_vm2, %v109_v46  ;;  %v112_v49 = vadd.f32 %v144_v21, %v111_v48  ;;  %v172_v50 = vpop.f32.mrb[11].mxu0 }
  0xf3   :  { %136 = vst.msk [vmem:[%s300_s3 + $0x28] sm:$0xff] %vm130_vm2, %v112_v49 }

// kernel: whyv2_forward.38
= control target key start
LH: loop header
LB: loop body
LE: loop exit
PB: predicated region body
PF: predicated region fallthrough
CT: control target
= control target key end

     0   :  { %v172_v2 = vmov 0.0   ;;  %v173_v4 = vmov 0   ;;  %vm174_vm0 = vmmov 0   ;;  %vm43_vm1 = vcmask 130048   ;;  %s223_s1 = inlined_call_operand.vmem [shape: f32[16,272], index: 1, kind: input, shape index: {}]   ;;  %s224_s0 = inlined_call_operand.vmem [shape: f32[2,16], index: 0, kind: input, shape index: {}]   ;;  %s225_s2 = inlined_call_operand.vmem [shape: f32[1,272], index: 2, kind: input, shape index: {}]   ;;  %s226_s3 = inlined_call_operand.vmem [shape: f32[2,272], index: 3, kind: output, shape index: {}]  }
   0x1   :  { %v18_v0 = vld [vmem:[%s223_s1 + $0x8] sm:$0xff]  ;;  %v21_v1 = vld [vmem:[%s223_s1 + $0x20] sm:$0xff]  ;;  %162 = vmatprep.subr.bf16.mxu1 %v172_v2  ;;  %79 = vmatprep.mubr.bf16.mxu0 %v173_v4  ;;  %v20_v6 = vld [vmem:[%s223_s1 + $0x18] sm:$0xff]  ;;  %v28_v13 = vlaneseq  ;;  %v175_v15 = vmov 1983009808   ;;  %vm148_vm2 = vcmask 1041408  }
   0x2   :  { %v17_v3 = vld [vmem:[%s223_s1] sm:$0xff]  ;;  %v24_v5 = vpack.c.bf16 %v21_v1, %v18_v0  ;;  %v19_v7 = vld [vmem:[%s223_s1 + $0x10] sm:$0xff]  ;;  %v22_v8 = vld [vmem:[%s223_s1 + $0x28] sm:$0xff]  ;;  %164 = vmatprep.mubr.msk.bf16.mxu1 %vm174_vm0, %v172_v2  ;;  %v133_v16 = vunpack.c.l.s4 %v175_v15  ;;  %vm149_vm3 = vcmask 1043458   ;;  %vm151_vm5 = vcmask 128004  }
   0x3   :  { %v23_v9 = vpack.c.bf16 %v20_v6, %v17_v3  ;;  %v25_v10 = vpack.c.bf16 %v22_v8, %v19_v7  ;;  %v15_v11 = vld [vmem:[%s224_s0] sm:$0x3]  ;;  %v29_v14 = vshrl.u32 %v28_v13, 7  ;;  %vm150_vm4 = vmor %vm149_vm3, %vm148_vm2 }
   0x4   :  { %47 = vmatprep.subr.bf16.mxu0 %v24_v5  ;;  %v16_v12 = vpack.c.bf16 %v15_v11, %v15_v11  ;;  %v26_v19 = vld [vmem:[%s225_s2] sm:$0x7]  ;;  %v134_v21 = vunpack.c.0.s8 %v133_v16  ;;  %vm152_vm6 = vmor %vm151_vm5, %vm150_vm4 }
   0x5   :  { %48 = vmatpush1.bf16.msra.mxu0 %v23_v9  ;;  %163 = vmatpush3.bf16.msra.mxu1 %v25_v10  ;;  %v30_v17 = vsub.s32 0, %v29_v14  ;;  %v38_v18 = vsub.s32 2, %v29_v14  ;;  %v34_v20 = vsub.s32 1, %v29_v14 }
   0x6   :  { %v137_v27 = vsub.s32 %v134_v21, %v29_v14 }
   0x7   :  { %v31_v22 = vrot.slane %v26_v19, %v30_v17  ;;  %v39_v23 = vrot.slane %v26_v19, %v38_v18  ;;  %v35_v24 = vrot.slane %v26_v19, %v34_v20 }
   0x8   :  { %158 = vmatmul.mubr.msk.bf16.vlgmr.msra.gmra.mrb[0].mxu0 %vm43_vm1, %v16_v12  ;;  %165 = vmatmul.mubr.msk.bf16.vlgmr.msra.gmra.mrb[0].mxu1 %vm43_vm1, %v16_v12 }
  0xdb   :  { %v81_v25 = vpop.f32.mrb[0].mxu0  ;;  %v122_v26 = vpop.f32.mrb[0].mxu1 }
  0xdc   :  { %v82_v28 = vadd.f32 %v81_v25, %v31_v22  ;;  %v123_v29 = vadd.f32 %v122_v26, %v39_v23  ;;  %v83_v30 = vpop.f32.mrb[1].mxu0  ;;  %v166_v31 = vpop.f32.mrb[1].mxu1 }
  0xdd   :  { %v84_v32 = vadd.f32 %v83_v30, %v35_v24  ;;  %v85_v33 = vpop.f32.mrb[2].mxu0  ;;  %v125_v34 = vpop.f32.mrb[2].mxu1 }
  0xde   :  { %v86_v35 = vpop.f32.mrb[3].mxu0  ;;  %v167_v36 = vpop.f32.mrb[3].mxu1  ;;  %v145_v37 = vrot.slane %v123_v29, %v137_v27 }
  0xdf   :  { %v131_v38 = vcombine.low %v82_v28, %v84_v32 }
  0xe1   :  { %v138_v39 = vrot.slane %v131_v38, %v137_v27 }
  0xe3   :  { %v146_v40 = vcombine.low %v138_v39, %v145_v37 }
  0xe5   :  { %153 = vst.msk [vmem:[%s226_s3] sm:$0x3f] %vm152_vm6, %v146_v40 }

// kernel: whyv2_forward.39
= control target key start
LH: loop header
LB: loop body
LE: loop exit
PB: predicated region body
PF: predicated region fallthrough
CT: control target
= control target key end

     0   :  { %vm164_vm0 = vcmask 1043456   ;;  %v1967_v3 = vmov 0   ;;  %vm103_vm1 = vcmask 64512   ;;  %s3470_s4 = inlined_call_operand.vmem [shape: f32[8,8], index: 4, kind: input, shape index: {}]   ;;  %s3471_s0 = inlined_call_operand.vmem [shape: f32[306,8], index: 0, kind: input, shape index: {}]   ;;  %s3472_s6 = inlined_call_operand.<no memory space> [shape: f32[1,1], index: 6, kind: input, shape index: {}]   ;;  %s3473_s5 = inlined_call_operand.vmem [shape: f32[1,8], index: 5, kind: input, shape index: {}]   ;;  %s3474_s2 = inlined_call_operand.vmem [shape: f32[306,8], index: 2, kind: input, shape index: {}]   ;;  %s3475_s7 = inlined_call_operand.vmem [shape: f32[1,8], index: 7, kind: input, shape index: {}]   ;;  %s3476_s8 = inlined_call_operand.vmem [shape: f32[1,8], index: 8, kind: input, shape index: {}]   ;;  %s3477_s1 = inlined_call_operand.vmem [shape: f32[306,8], index: 1, kind: input, shape index: {}]   ;;  %s3478_s3 = inlined_call_operand.vmem [shape: f32[306,8], index: 3, kind: input, shape index: {}]   ;;  %s3479_s9 = inlined_call_operand.vmem [shape: f32[306,8], index: 9, kind: output, shape index: {}]  }
   0x1   :  { %v94_v0 = vld [vmem:[%s3470_s4] sm:$0xff]  ;;  %v36_v2 = vld [vmem:[%s3471_s0 + $0x8] sm:$0xff]  ;;  %1730 = vset.pattern.permute.xlu0 %v1967_v3  ;;  %v14_v4 = vstv %s3472_s6  ;;  %v37_v9 = vld [vmem:[%s3471_s0 + $0x10] sm:$0xff] }
   0x2   :  { %v35_v1 = vld [vmem:[%s3471_s0] sm:$0xff]  ;;  %v95_v5 = vpack.c.bf16 %v94_v0, %v94_v0  ;;  %v56_v8 = vld [vmem:[%s3471_s0 + $0xa8] sm:$0xff]  ;;  %15 = vst [vmem:[#allocation2] sm:$0x1] %v14_v4  ;;  %v38_v11 = vld [vmem:[%s3471_s0 + $0x18] sm:$0xff] }
   0x3   :  { %v74_v6 = vpack.c.bf16 %v36_v2, %v35_v1  ;;  %v55_v7 = vld [vmem:[%s3471_s0 + $0xa0] sm:$0xff]  ;;  %v57_v12 = vld [vmem:[%s3471_s0 + $0xb0] sm:$0xff]  ;;  %v58_v13 = vld [vmem:[%s3471_s0 + $0xb8] sm:$0xff]  ;;  %v75_v15 = vpack.c.bf16 %v38_v11, %v37_v9 }
   0x4   :  { %v84_v10 = vpack.c.bf16 %v56_v8, %v55_v7  ;;  %1727 = vmatprep.subr.msk.bf16.mxu0 %vm164_vm0, %v95_v5  ;;  %1728 = vmatprep.subr.msk.bf16.mxu1 %vm164_vm0, %v95_v5  ;;  %v166_v14 = vsel %vm164_vm0, %v95_v5, 0  ;;  %v85_v16 = vpack.c.bf16 %v58_v13, %v57_v12  ;;  %v39_v17 = vld [vmem:[%s3471_s0 + $0x20] sm:$0xff]  ;;  %v40_v18 = vld [vmem:[%s3471_s0 + $0x28] sm:$0xff]  ;;  %v41_v23 = vld [vmem:[%s3471_s0 + $0x30] sm:$0xff] }
   0x5   :  { %v59_v19 = vld [vmem:[%s3471_s0 + $0xc0] sm:$0xff]  ;;  %1684 = vmatpush3.bf16.msra.mxu0 %v166_v14  ;;  %1726 = vmatpush3.bf16.msra.mxu1 %v166_v14  ;;  %v76_v20 = vpack.c.bf16 %v40_v18, %v39_v17  ;;  %v60_v21 = vld [vmem:[%s3471_s0 + $0xc8] sm:$0xff]  ;;  %v42_v24 = vld [vmem:[%s3471_s0 + $0x38] sm:$0xff] }
   0x6   :  { %1685 = vmatprep.mubr.msk.bf16.mxu0 %vm103_vm1, %v74_v6  ;;  %1705 = vmatprep.mubr.msk.bf16.mxu1 %vm103_vm1, %v84_v10  ;;  %v86_v22 = vpack.c.bf16 %v60_v21, %v59_v19  ;;  %v61_v25 = vld [vmem:[%s3471_s0 + $0xd0] sm:$0xff]  ;;  %v62_v26 = vld [vmem:[%s3471_s0 + $0xd8] sm:$0xff]  ;;  %v43_v27 = vld [vmem:[%s3471_s0 + $0x40] sm:$0xff]  ;;  %v77_v31 = vpack.c.bf16 %v42_v24, %v41_v23 }
   0x7   :  { %v44_v28 = vld [vmem:[%s3471_s0 + $0x48] sm:$0xff]  ;;  %v63_v29 = vld [vmem:[%s3471_s0 + $0xe0] sm:$0xff]  ;;  %v87_v32 = vpack.c.bf16 %v62_v26, %v61_v25  ;;  %v45_v36 = vld [vmem:[%s3471_s0 + $0x50] sm:$0xff] }
   0x8   :  { %1686 = vmatmul.mubr.msk.bf16.vlgmr.msra.gmra.mrb[0].mxu0 %vm103_vm1, %v75_v15  ;;  %1706 = vmatmul.mubr.msk.bf16.vlgmr.msra.gmra.mrb[0].mxu1 %vm103_vm1, %v85_v16  ;;  %v64_v30 = vld [vmem:[%s3471_s0 + $0xe8] sm:$0xff]  ;;  %v78_v33 = vpack.c.bf16 %v44_v28, %v43_v27  ;;  %v46_v37 = vld [vmem:[%s3471_s0 + $0x58] sm:$0xff]  ;;  %v65_v38 = vld [vmem:[%s3471_s0 + $0xf0] sm:$0xff] }
   0x9   :  { %1689 = vmatprep.mubr.msk.bf16.mxu0 %vm103_vm1, %v76_v20  ;;  %1709 = vmatprep.mubr.msk.bf16.mxu1 %vm103_vm1, %v86_v22  ;;  %v88_v34 = vpack.c.bf16 %v64_v30, %v63_v29  ;;  %v1620_v35 = vld [vmem:[#allocation2] ss:$0 sm:$0xff]  ;;  %v66_v39 = vld [vmem:[%s3471_s0 + $0xf8] sm:$0xff]  ;;  %v48_v41 = vld [vmem:[%s3471_s0 + $0x68] sm:$0xff]  ;;  %v79_v44 = vpack.c.bf16 %v46_v37, %v45_v36 }
   0xa   :  { %406 = vperm.xlu0 %1730, %v1620_v35   ;;  %v47_v40 = vld [vmem:[%s3471_s0 + $0x60] sm:$0xff]  ;;  %v68_v43 = vld [vmem:[%s3471_s0 + $0x108] sm:$0xff]  ;;  %v89_v45 = vpack.c.bf16 %v66_v39, %v65_v38  ;;  %v49_v48 = vld [vmem:[%s3471_s0 + $0x70] sm:$0xff] }
   0xb   :  { %v67_v42 = vld [vmem:[%s3471_s0 + $0x100] sm:$0xff]  ;;  %v80_v46 = vpack.c.bf16 %v48_v41, %v47_v40  ;;  %v50_v49 = vld [vmem:[%s3471_s0 + $0x78] sm:$0xff]  ;;  %v69_v50 = vld [vmem:[%s3471_s0 + $0x110] sm:$0xff] }
   0xc   :  { %v90_v47 = vpack.c.bf16 %v68_v43, %v67_v42  ;;  %v70_v51 = vld [vmem:[%s3471_s0 + $0x118] sm:$0xff]  ;;  %v51_v52 = vld [vmem:[%s3471_s0 + $0x80] sm:$0xff]  ;;  %v52_v53 = vld [vmem:[%s3471_s0 + $0x88] sm:$0xff]  ;;  %v81_v56 = vpack.c.bf16 %v50_v49, %v49_v48 }
   0xd   :  { %v71_v54 = vld [vmem:[%s3471_s0 + $0x120] sm:$0xff]  ;;  %v72_v55 = vld [vmem:[%s3471_s0 + $0x128] sm:$0xff]  ;;  %v91_v57 = vpack.c.bf16 %v70_v51, %v69_v50  ;;  %v82_v58 = vpack.c.bf16 %v52_v53, %v51_v52  ;;  %v53_v60 = vld [vmem:[%s3471_s0 + $0x90] sm:$0xff] }
   0xe   :  { %v92_v59 = vpack.c.bf16 %v72_v55, %v71_v54  ;;  %v54_v61 = vld [vmem:[%s3471_s0 + $0x98] sm:$0xff]  ;;  %v73_v62 = vld [vmem:[%s3471_s0 + $0x130] sm:$0x3]  ;;  %v2167_v1 = vld [vmem:[%s3473_s5] ss:$0 sm:$0xff] }
   0xf   :  { %v83_v63 = vpack.c.bf16 %v54_v61, %v53_v60  ;;  %v93_v0 = vpack.c.bf16 %v73_v62, %v73_v62 }
  0x10   :  { %1690 = vmatmul.mubr.msk.bf16.gmra.mrb[4].mxu0 %vm103_vm1, %v77_v31  ;;  %1710 = vmatmul.mubr.msk.bf16.gmra.mrb[4].mxu1 %vm103_vm1, %v87_v32 }
  0x11   :  { %1693 = vmatprep.mubr.msk.bf16.mxu0 %vm103_vm1, %v78_v33  ;;  %1713 = vmatprep.mubr.msk.bf16.mxu1 %vm103_vm1, %v88_v34 }
  0x18   :  { %1694 = vmatmul.mubr.msk.bf16.gmra.mrb[8].mxu0 %vm103_vm1, %v79_v44  ;;  %1714 = vmatmul.mubr.msk.bf16.gmra.mrb[8].mxu1 %vm103_vm1, %v89_v45 }
  0x19   :  { %1697 = vmatprep.mubr.msk.bf16.mxu0 %vm103_vm1, %v80_v46  ;;  %1717 = vmatprep.mubr.msk.bf16.mxu1 %vm103_vm1, %v90_v47 }
  0x20   :  { %1698 = vmatmul.mubr.msk.bf16.gmra.mrb[12].mxu0 %vm103_vm1, %v81_v56  ;;  %1718 = vmatmul.mubr.msk.bf16.gmra.mrb[12].mxu1 %vm103_vm1, %v91_v57 }
  0x21   :  { %1701 = vmatprep.mubr.msk.bf16.mxu0 %vm103_vm1, %v82_v58  ;;  %1721 = vmatprep.mubr.msk.bf16.mxu1 %vm103_vm1, %v92_v59 }
  0x28   :  { %1702 = vmatmul.mubr.msk.bf16.gmra.mrb[16].mxu0 %vm103_vm1, %v83_v63  ;;  %1722 = vmatmul.mubr.msk.bf16.gmra.mrb[16].mxu1 %vm103_vm1, %v93_v0 }
  0x89   :  { %v2169_v2 = vpop.permute.xlu0 %406 }
  0xdb   :  { %v1687_v3 = vpop.f32.mrb[0].mxu0  ;;  %v1707_v4 = vpop.f32.mrb[0].mxu1 }
  0xdc   :  { %v211_v5 = vadd.f32 %v1687_v3, %v2167_v1  ;;  %v291_v6 = vadd.f32 %v1707_v4, %v2167_v1  ;;  %v202_v7 = vpop.f32.mrb[1].mxu0  ;;  %v282_v8 = vpop.f32.mrb[1].mxu1 }
  0xdd   :  { %v1688_v9 = vpop.f32.mrb[2].mxu0  ;;  %v1708_v10 = vpop.f32.mrb[2].mxu1  ;;  %v203_v11 = vadd.f32 %v2167_v1, %v202_v7  ;;  %v283_v18 = vadd.f32 %v2167_v1, %v282_v8 }
  0xde   :  { %v214_v12 = vadd.f32 %v1688_v9, %v2167_v1  ;;  %v205_v13 = vpop.f32.mrb[3].mxu0  ;;  %v285_v14 = vpop.f32.mrb[3].mxu1  ;;  %vm382_vm2 = vcmp.ge.f32.partialorder %v291_v6, 0.0  ;;  %v431_v15 = vmul.f32 %v2169_v2, %v291_v6  ;;  %v294_v16 = vadd.f32 %v1708_v10, %v2167_v1 }
  0xdf   :  { %vm362_vm3 = vcmp.ge.f32.partialorder %v211_v5, 0.0  ;;  %v411_v17 = vmul.f32 %v2169_v2, %v211_v5  ;;  %v206_v23 = vadd.f32 %v2167_v1, %v205_v13  ;;  %vm360_vm5 = vcmp.ge.f32.partialorder %v203_v11, 0.0 }
  0xe0   :  { %v412_v19 = vmul.f32 %v2169_v2, %v214_v12  ;;  %v2180_v20 = vsel %vm382_vm2, %v291_v6, %v431_v15  ;;  %vm363_vm4 = vcmp.ge.f32.partialorder %v214_v12, 0.0  ;;  %v409_v25 = vmul.f32 %v2169_v2, %v203_v11 }
  0xe1   :  { %v553_v21 = vsel %vm103_vm1, %v2180_v20, 0.0  ;;  %v2184_v22 = vsel %vm362_vm3, %v211_v5, %v411_v17  ;;  %v432_v26 = vmul.f32 %v2169_v2, %v294_v16  ;;  %vm383_vm6 = vcmp.ge.f32.partialorder %v294_v16, 0.0 }
  0xe2   :  { %554 = vadd.xlane.f32.xlu0 %v553_v21  ;;  %v493_v24 = vsel %vm103_vm1, %v2184_v22, 0.0  ;;  %v2191_v29 = vsel %vm363_vm4, %v214_v12, %v412_v19  ;;  %v2194_v33 = vsel %vm360_vm5, %v203_v11, %v409_v25  ;;  %v429_v34 = vmul.f32 %v2169_v2, %v283_v18 }
  0xe3   :  { %494 = vadd.xlane.f32.xlu1 %v493_v24  ;;  %v1691_v27 = vpop.f32.mrb[4].mxu0  ;;  %v1711_v28 = vpop.f32.mrb[4].mxu1  ;;  %v286_v35 = vadd.f32 %v2167_v1, %v285_v14  ;;  %v487_v38 = vsel %vm103_vm1, %v2194_v33, 0.0  ;;  %vm380_vm7 = vcmp.ge.f32.partialorder %v283_v18, 0.0  ;;  %v410_v39 = vmul.f32 %v2169_v2, %v206_v23 }
  0xe4   :  { %v307_v30 = vadd.f32 %v1711_v28, %v2167_v1  ;;  %v218_v31 = vpop.f32.mrb[5].mxu0  ;;  %v298_v32 = vpop.f32.mrb[5].mxu1  ;;  %v496_v42 = vsel %vm103_vm1, %v2191_v29, 0.0  ;;  %v2209_v45 = vsel %vm383_vm6, %v294_v16, %v432_v26  ;;  %v2211_v46 = vsel %vm380_vm7, %v283_v18, %v429_v34 }
  0xe5   :  { %v1692_v36 = vpop.f32.mrb[6].mxu0  ;;  %v1712_v37 = vpop.f32.mrb[6].mxu1  ;;  %v299_v40 = vadd.f32 %v2167_v1, %v298_v32  ;;  %vm361_vm8 = vcmp.ge.f32.partialorder %v206_v23, 0.0  ;;  %v430_v47 = vmul.f32 %v2169_v2, %v286_v35  ;;  %v227_v48 = vadd.f32 %v1691_v27, %v2167_v1 }
  0xe6   :  { %v2202_v41 = vpop.f32.mrb[7].mxu1  ;;  %v2206_v43 = vpop.f32.mrb[7].mxu0  ;;  %488 = vadd.xlane.f32.xlu0 %v487_v38  ;;  %v435_v44 = vmul.f32 %v2169_v2, %v307_v30  ;;  %v547_v49 = vsel %vm103_vm1, %v2211_v46, 0.0  ;;  %v556_v51 = vsel %vm103_vm1, %v2209_v45, 0.0  ;;  %v2220_v52 = vsel %vm361_vm8, %v206_v23, %v410_v39 }
  0xe7   :  { %497 = vadd.xlane.f32.xlu1 %v496_v42  ;;  %v433_v50 = vmul.f32 %v2169_v2, %v299_v40  ;;  %vm386_vm9 = vcmp.ge.f32.partialorder %v307_v30, 0.0  ;;  %vm381_vm10 = vcmp.ge.f32.partialorder %v286_v35, 0.0  ;;  %vm384_vm11 = vcmp.ge.f32.partialorder %v299_v40, 0.0 }
  0xe8   :  { %v2222_v55 = vsel %vm386_vm9, %v307_v30, %v435_v44  ;;  %v415_v59 = vmul.f32 %v2169_v2, %v227_v48  ;;  %v219_v60 = vadd.f32 %v2167_v1, %v218_v31  ;;  %v490_v63 = vsel %vm103_vm1, %v2220_v52, 0.0 }
  0xe9   :  { %v565_v0 = vsel %vm103_vm1, %v2222_v55, 0.0  ;;  %v2244_v7 = vsel %vm381_vm10, %v286_v35, %v430_v47  ;;  %v2247_v8 = vsel %vm384_vm11, %v299_v40, %v433_v50  ;;  %vm366_vm12 = vcmp.ge.f32.partialorder %v227_v48, 0.0 }
  0xea   :  { %548 = vadd.xlane.f32.xlu0 %v547_v49  ;;  %v230_v9 = vadd.f32 %v1692_v36, %v2167_v1  ;;  %v413_v10 = vmul.f32 %v2169_v2, %v219_v60  ;;  %v550_v12 = vsel %vm103_vm1, %v2244_v7, 0.0  ;;  %v559_v13 = vsel %vm103_vm1, %v2247_v8, 0.0 }
  0xeb   :  { %557 = vadd.xlane.f32.xlu1 %v556_v51  ;;  %v1695_v53 = vpop.f32.mrb[8].mxu0  ;;  %v1715_v54 = vpop.f32.mrb[8].mxu1  ;;  %v2257_v15 = vsel %vm366_vm12, %v227_v48, %v415_v59  ;;  %vm364_vm14 = vcmp.ge.f32.partialorder %v219_v60, 0.0  ;;  %v310_v21 = vadd.f32 %v1712_v37, %v2167_v1  ;;  %v222_v42 = vadd.f32 %v2167_v1, %v2206_v43 }
  0xec   :  { %v243_v56 = vadd.f32 %v1695_v53, %v2167_v1  ;;  %v2225_v57 = vpop.f32.mrb[9].mxu0  ;;  %v314_v58 = vpop.f32.mrb[9].mxu1  ;;  %v323_v4 = vadd.f32 %v1715_v54, %v2167_v1  ;;  %v416_v19 = vmul.f32 %v2169_v2, %v230_v9  ;;  %v505_v28 = vsel %vm103_vm1, %v2257_v15, 0.0 }
  0xed   :  { %v2229_v61 = vpop.f32.mrb[10].mxu0  ;;  %v2231_v62 = vpop.f32.mrb[10].mxu1  ;;  %v315_v11 = vadd.f32 %v2167_v1, %v314_v58  ;;  %v2268_v31 = vsel %vm364_vm14, %v219_v60, %v413_v10  ;;  %vm367_vm0 = vcmp.ge.f32.partialorder %v230_v9, 0.0  ;;  %v436_v53 = vmul.f32 %v2169_v2, %v310_v21 }
  0xee   :  { %v419_v3 = vmul.f32 %v2169_v2, %v243_v56  ;;  %v2239_v5 = vpop.f32.mrb[11].mxu0  ;;  %v2241_v6 = vpop.f32.mrb[11].mxu1  ;;  %566 = vadd.xlane.f32.xlu0 %v565_v0  ;;  %vm370_vm13 = vcmp.ge.f32.partialorder %v243_v56, 0.0  ;;  %v439_v14 = vmul.f32 %v2169_v2, %v323_v4  ;;  %vm390_vm15 = vcmp.ge.f32.partialorder %v323_v4, 0.0 }
  0xef   :  { %491 = vadd.xlane.f32.xlu1 %v490_v63  ;;  %v437_v25 = vmul.f32 %v2169_v2, %v315_v11  ;;  %vm388_vm2 = vcmp.ge.f32.partialorder %v315_v11, 0.0  ;;  %v499_v44 = vsel %vm103_vm1, %v2268_v31, 0.0  ;;  %v2294_v50 = vsel %vm367_vm0, %v230_v9, %v416_v19 }
  0xf0   :  { %v2259_v16 = vsel %vm370_vm13, %v243_v56, %v419_v3  ;;  %v2278_v38 = vsel %vm390_vm15, %v323_v4, %v439_v14  ;;  %vm387_vm4 = vcmp.ge.f32.partialorder %v310_v21, 0.0  ;;  %v302_v59 = vadd.f32 %v2167_v1, %v2202_v41 }
  0xf1   :  { %v517_v30 = vsel %vm103_vm1, %v2259_v16, 0.0  ;;  %v577_v47 = vsel %vm103_vm1, %v2278_v38, 0.0  ;;  %v2296_v51 = vsel %vm388_vm2, %v315_v11, %v437_v25  ;;  %v414_v60 = vmul.f32 %v2169_v2, %v222_v42 }
  0xf2   :  { %560 = vadd.xlane.f32.xlu0 %v559_v13  ;;  %v508_v3 = vsel %vm103_vm1, %v2294_v50, 0.0  ;;  %v571_v4 = vsel %vm103_vm1, %v2296_v51, 0.0  ;;  %vm365_vm6 = vcmp.ge.f32.partialorder %v222_v42, 0.0  ;;  %vm385_vm8 = vcmp.ge.f32.partialorder %v302_v59, 0.0 }
  0xf3   :  { %551 = vadd.xlane.f32.xlu1 %v550_v12  ;;  %v1699_v17 = vpop.f32.mrb[12].mxu0  ;;  %v1719_v18 = vpop.f32.mrb[12].mxu1 }
  0xf4   :  { %v250_v23 = vpop.f32.mrb[13].mxu0  ;;  %v330_v24 = vpop.f32.mrb[13].mxu1  ;;  %v259_v32 = vadd.f32 %v1699_v17, %v2167_v1  ;;  %v339_v49 = vadd.f32 %v1719_v18, %v2167_v1  ;;  %v2323_v18 = vsel %vm387_vm4, %v310_v21, %v436_v53  ;;  %v235_v21 = vadd.f32 %v2167_v1, %v2225_v57 }
  0xf5   :  { %v1700_v26 = vpop.f32.mrb[14].mxu0  ;;  %v1720_v27 = vpop.f32.mrb[14].mxu1  ;;  %v251_v10 = vadd.f32 %v2167_v1, %v250_v23  ;;  %v331_v25 = vadd.f32 %v2167_v1, %v330_v24  ;;  %vm601_vm4 = vcmask 58368  }
  0xf6   :  { %v2272_v34 = vadd.f32 %v1700_v26, %v2167_v1  ;;  %v2275_v35 = vadd.f32 %v1720_v27, %v2167_v1  ;;  %v253_v36 = vpop.f32.mrb[15].mxu0  ;;  %v333_v37 = vpop.f32.mrb[15].mxu1  ;;  %518 = vadd.xlane.f32.xlu0 %v517_v30  ;;  %v423_v48 = vmul.f32 %v2169_v2, %v259_v32  ;;  %vm374_vm3 = vcmp.ge.f32.partialorder %v259_v32, 0.0 }
  0xf7   :  { %v2281_v39 = vadd.f32 %v2167_v1, %v253_v36  ;;  %v2284_v40 = vadd.f32 %v2167_v1, %v333_v37  ;;  %506 = vadd.xlane.f32.xlu1 %v505_v28  ;;  %v443_v9 = vmul.f32 %v2169_v2, %v339_v49  ;;  %vm394_vm5 = vcmp.ge.f32.partialorder %v339_v49, 0.0 }
  0xf8   :  { %v2314_v41 = vsel %vm374_vm3, %v259_v32, %v423_v48  ;;  %v421_v23 = vmul.f32 %v2169_v2, %v251_v10  ;;  %v568_v26 = vsel %vm103_vm1, %v2323_v18, 0.0  ;;  %v434_v28 = vmul.f32 %v2169_v2, %v302_v59 }
  0xf9   :  { %v529_v19 = vsel %vm103_vm1, %v2314_v41, 0.0  ;;  %v2331_v27 = vsel %vm394_vm5, %v339_v49, %v443_v9  ;;  %v2336_v30 = vsel %vm365_vm6, %v222_v42, %v414_v60  ;;  %vm372_vm7 = vcmp.ge.f32.partialorder %v251_v10, 0.0 }
  0xfa   :  { %578 = vadd.xlane.f32.xlu0 %v577_v47  ;;  %v589_v32 = vsel %vm103_vm1, %v2331_v27, 0.0  ;;  %v441_v24 = vmul.f32 %v2169_v2, %v331_v25  ;;  %v502_v37 = vsel %vm103_vm1, %v2336_v30, 0.0  ;;  %v417_v57 = vmul.f32 %v2169_v2, %v235_v21 }
  0xfb   :  { %500 = vadd.xlane.f32.xlu1 %v499_v44  ;;  %v1703_v54 = vpop.f32.mrb[16].mxu0  ;;  %v2299_v43 = vpop.f32.mrb[16].mxu1  ;;  %v2344_v44 = vsel %vm372_vm7, %v251_v10, %v421_v23  ;;  %v246_v42 = vadd.f32 %v2229_v61, %v2167_v1  ;;  %v2349_v47 = vsel %vm385_vm8, %v302_v59, %v434_v28  ;;  %vm392_vm9 = vcmp.ge.f32.partialorder %v331_v25, 0.0 }
  0xfc   :  { %v266_v56 = vpop.f32.mrb[17].mxu0  ;;  %v346_v58 = vpop.f32.mrb[17].mxu1  ;;  %v275_v36 = vadd.f32 %v1703_v54, %v2167_v1  ;;  %vm368_vm10 = vcmp.ge.f32.partialorder %v235_v21, 0.0  ;;  %v523_v48 = vsel %vm103_vm1, %v2344_v44, 0.0  ;;  %v562_v54 = vsel %vm103_vm1, %v2349_v47, 0.0 }
  0xfd   :  { %v1704_v63 = vpop.f32.mrb[18].mxu0  ;;  %v1724_v0 = vpop.f32.mrb[18].mxu1  ;;  %v267_v53 = vadd.f32 %v2167_v1, %v266_v56  ;;  %v2357_v60 = vsel %vm392_vm9, %v331_v25, %v441_v24  ;;  %v420_v61 = vmul.f32 %v2169_v2, %v246_v42  ;;  %v326_v59 = vadd.f32 %v2231_v62, %v2167_v1 }
  0xfe   :  { %v2311_v11 = vadd.f32 %v1704_v63, %v2167_v1  ;;  %v269_v12 = vpop.f32.mrb[19].mxu0  ;;  %v349_v13 = vpop.f32.mrb[19].mxu1  ;;  %572 = vadd.xlane.f32.xlu0 %v571_v4  ;;  %v427_v49 = vmul.f32 %v2169_v2, %v275_v36  ;;  %v2362_v63 = vsel %vm368_vm10, %v235_v21, %v417_v57  ;;  %vm378_vm11 = vcmp.ge.f32.partialorder %v275_v36, 0.0 }
  0xff   :  { %v2317_v14 = vadd.f32 %v2167_v1, %v269_v12  ;;  %v2320_v17 = vadd.f32 %v2167_v1, %v349_v13  ;;  %509 = vadd.xlane.f32.xlu1 %v508_v3  ;;  %vm371_vm12 = vcmp.ge.f32.partialorder %v246_v42, 0.0  ;;  %v583_v0 = vsel %vm103_vm1, %v2357_v60, 0.0 }
 0x100   :  { %v425_v56 = vmul.f32 %v2169_v2, %v267_v53  ;;  %v347_v3 = vadd.f32 %v2167_v1, %v346_v58  ;;  %v511_v4 = vsel %vm103_vm1, %v2362_v63, 0.0  ;;  %v2370_v9 = vsel %vm378_vm11, %v275_v36, %v427_v49 }
 0x101   :  { %v440_v62 = vmul.f32 %v2169_v2, %v326_v59  ;;  %v238_v10 = vadd.f32 %v2167_v1, %v2239_v5  ;;  %v2375_v12 = vsel %vm371_vm12, %v246_v42, %v420_v61  ;;  %vm376_vm13 = vcmp.ge.f32.partialorder %v267_v53, 0.0 }
 0x102   :  { %530 = vadd.xlane.f32.xlu0 %v529_v19  ;;  %vm391_vm14 = vcmp.ge.f32.partialorder %v326_v59, 0.0  ;;  %v541_v13 = vsel %vm103_vm1, %v2370_v9, 0.0  ;;  %v355_v58 = vadd.f32 %v2299_v43, %v2167_v1  ;;  %v445_v19 = vmul.f32 %v2169_v2, %v347_v3 }
 0x103   :  { %569 = vadd.xlane.f32.xlu1 %v568_v26  ;;  %v520_v23 = vsel %vm103_vm1, %v2375_v12, 0.0  ;;  %v2384_v25 = vsel %vm376_vm13, %v267_v53, %v425_v56  ;;  %v418_v5 = vmul.f32 %v2169_v2, %v238_v10  ;;  %v318_v26 = vadd.f32 %v2167_v1, %v2241_v6 }
 0x104   :  { %v2389_v28 = vsel %vm391_vm14, %v326_v59, %v440_v62  ;;  %vm396_vm15 = vcmp.ge.f32.partialorder %v347_v3, 0.0  ;;  %vm369_vm0 = vcmp.ge.f32.partialorder %v238_v10, 0.0  ;;  %v535_v43 = vsel %vm103_vm1, %v2384_v25, 0.0 }
 0x105   :  { %v447_v21 = vmul.f32 %v2169_v2, %v355_v58  ;;  %v2396_v24 = vsel %vm396_vm15, %v347_v3, %v445_v19  ;;  %v438_v36 = vmul.f32 %v2169_v2, %v318_v26  ;;  %v2399_v1 = vsel %vm369_vm0, %v238_v10, %v418_v5 }
 0x106   :  { %590 = vadd.xlane.f32.xlu0 %v589_v32  ;;  %v580_v32 = vsel %vm103_vm1, %v2389_v28, 0.0  ;;  %vm398_vm2 = vcmp.ge.f32.partialorder %v355_v58, 0.0  ;;  %vm389_vm3 = vcmp.ge.f32.partialorder %v318_v26, 0.0  ;;  %v595_v6 = vsel %vm103_vm1, %v2396_v24, 0.0 }
 0x107   :  { %503 = vadd.xlane.f32.xlu1 %v502_v37  ;;  %v514_v37 = vsel %vm103_vm1, %v2399_v1, 0.0  ;;  %v2405_v57 = vsel %vm398_vm2, %v355_v58, %v447_v21  ;;  %v424_v42 = vmul.f32 %v2169_v2, %v2272_v34  ;;  %vm375_vm5 = vcmp.ge.f32.partialorder %v2272_v34, 0.0 }
 0x108   :  { %v602_v49 = vsel %vm601_vm4, %v2405_v57, 0.0  ;;  %vm395_vm6 = vcmp.ge.f32.partialorder %v2275_v35, 0.0  ;;  %vm373_vm7 = vcmp.ge.f32.partialorder %v2281_v39, 0.0  ;;  %vm393_vm8 = vcmp.ge.f32.partialorder %v2284_v40, 0.0 }
 0x109   :  { %v2419_v61 = vsel %vm375_vm5, %v2272_v34, %v424_v42  ;;  %v442_v34 = vmul.f32 %v2169_v2, %v2284_v40  ;;  %vm379_vm9 = vcmp.ge.f32.partialorder %v2311_v11, 0.0  ;;  %vm377_vm10 = vcmp.ge.f32.partialorder %v2317_v14, 0.0 }
 0x10a   :  { %524 = vadd.xlane.f32.xlu0 %v523_v48  ;;  %v2409_v48 = vsel %vm389_vm3, %v318_v26, %v438_v36  ;;  %v532_v59 = vsel %vm103_vm1, %v2419_v61, 0.0  ;;  %vm397_vm11 = vcmp.ge.f32.partialorder %v2320_v17, 0.0 }
 0x10b   :  { %563 = vadd.xlane.f32.xlu1 %v562_v54  ;;  %v574_v53 = vsel %vm103_vm1, %v2409_v48, 0.0  ;;  %v444_v54 = vmul.f32 %v2169_v2, %v2275_v35  ;;  %v2443_v10 = vsel %vm393_vm8, %v2284_v40, %v442_v34  ;;  %v446_v40 = vmul.f32 %v2169_v2, %v2320_v17 }
 0x10d   :  { %v2427_v56 = vsel %vm395_vm6, %v2275_v35, %v444_v54  ;;  %v428_v35 = vmul.f32 %v2169_v2, %v2311_v11 }
 0x10e   :  { %584 = vadd.xlane.f32.xlu0 %v583_v0  ;;  %v422_v0 = vmul.f32 %v2169_v2, %v2281_v39  ;;  %v592_v3 = vsel %vm103_vm1, %v2427_v56, 0.0 }
 0x10f   :  { %512 = vadd.xlane.f32.xlu1 %v511_v4  ;;  %v2451_v58 = vsel %vm379_vm9, %v2311_v11, %v428_v35  ;;  %v2465_v11 = vsel %vm397_vm11, %v2320_v17, %v446_v40 }
 0x110   :  { %v2435_v4 = vsel %vm373_vm7, %v2281_v39, %v422_v0  ;;  %v426_v39 = vmul.f32 %v2169_v2, %v2317_v14  ;;  %v544_v19 = vsel %vm103_vm1, %v2451_v58, 0.0  ;;  %v598_v26 = vsel %vm103_vm1, %v2465_v11, 0.0 }
 0x111   :  { %v526_v62 = vsel %vm103_vm1, %v2435_v4, 0.0 }
 0x112   :  { %542 = vadd.xlane.f32.xlu0 %v541_v13  ;;  %v586_v13 = vsel %vm103_vm1, %v2443_v10, 0.0 }
 0x113   :  { %521 = vadd.xlane.f32.xlu1 %v520_v23  ;;  %v2459_v23 = vsel %vm377_vm10, %v2317_v14, %v426_v39 }
 0x114   :  { %v538_v5 = vsel %vm103_vm1, %v2459_v23, 0.0 }
 0x116   :  { %536 = vadd.xlane.f32.xlu0 %v535_v43 }
 0x117   :  { %581 = vadd.xlane.f32.xlu1 %v580_v32 }
 0x11a   :  { %596 = vadd.xlane.f32.xlu0 %v595_v6 }
 0x11b   :  { %515 = vadd.xlane.f32.xlu1 %v514_v37 }
 0x11e   :  { %603 = vadd.xlane.f32.xlu0 %v602_v49 }
 0x11f   :  { %575 = vadd.xlane.f32.xlu1 %v574_v53 }
 0x123   :  { %533 = vadd.xlane.f32.xlu1 %v532_v59 }
 0x127   :  { %593 = vadd.xlane.f32.xlu1 %v592_v3 }
 0x12b   :  { %527 = vadd.xlane.f32.xlu1 %v526_v62 }
 0x12f   :  { %587 = vadd.xlane.f32.xlu1 %v586_v13 }
 0x133   :  { %545 = vadd.xlane.f32.xlu1 %v544_v19 }
 0x137   :  { %539 = vadd.xlane.f32.xlu1 %v538_v5 }
 0x13b   :  { %599 = vadd.xlane.f32.xlu1 %v598_v26 }
 0x16f   :  { %v555_v43 = vpop.xlane.xlu0 %554 }
 0x170   :  { %v628_v21 = vmul.f32 0.125, %v555_v43  ;;  %v495_v2 = vpop.xlane.xlu1 %494 }
 0x171   :  { %v608_v32 = vmul.f32 0.125, %v495_v2 }
 0x172   :  { %v2470_v14 = vsub.f32 %v2180_v20, %v628_v21 }
 0x173   :  { %v2473_v36 = vsub.f32 %v2184_v22, %v608_v32  ;;  %v489_v6 = vpop.xlane.xlu0 %488 }
 0x174   :  { %v498_v37 = vpop.xlane.xlu1 %497  ;;  %v606_v42 = vmul.f32 0.125, %v489_v6  ;;  %v706_v53 = vmul.f32 %v2470_v14, %v2470_v14 }
 0x175   :  { %v609_v49 = vmul.f32 0.125, %v498_v37  ;;  %v686_v17 = vmul.f32 %v2473_v36, %v2473_v36 }
 0x176   :  { %v2483_v59 = vsub.f32 %v2194_v33, %v606_v42  ;;  %v789_v35 = vsel %vm103_vm1, %v706_v53, 0.0 }
 0x177   :  { %v2480_v54 = vsub.f32 %v2191_v29, %v609_v49  ;;  %v729_v20 = vsel %vm103_vm1, %v686_v17, 0.0  ;;  %v549_v22 = vpop.xlane.xlu0 %548 }
 0x178   :  { %v558_v0 = vpop.xlane.xlu1 %557  ;;  %730 = vadd.xlane.f32.xlu1 %v729_v20  ;;  %v626_v3 = vmul.f32 0.125, %v549_v22  ;;  %v684_v19 = vmul.f32 %v2483_v59, %v2483_v59 }
 0x179   :  { %v629_v34 = vmul.f32 0.125, %v558_v0  ;;  %v687_v62 = vmul.f32 %v2480_v54, %v2480_v54 }
 0x17a   :  { %v2493_v29 = vsub.f32 %v2211_v46, %v626_v3  ;;  %v723_v46 = vsel %vm103_vm1, %v684_v19, 0.0 }
 0x17b   :  { %v2490_v13 = vsub.f32 %v2209_v45, %v629_v34  ;;  %v732_v33 = vsel %vm103_vm1, %v687_v62, 0.0  ;;  %v567_v39 = vpop.xlane.xlu0 %566 }
 0x17c   :  { %790 = vadd.xlane.f32.xlu1 %v789_v35  ;;  %v492_v40 = vpop.xlane.xlu1 %491  ;;  %733 = vadd.xlane.f32.xlu0 %v732_v33  ;;  %v704_v2 = vmul.f32 %v2493_v29, %v2493_v29  ;;  %v632_v42 = vmul.f32 0.125, %v567_v39 }
 0x17d   :  { %v607_v5 = vmul.f32 0.125, %v492_v40  ;;  %v707_v26 = vmul.f32 %v2490_v13, %v2490_v13 }
 0x17e   :  { %v783_v17 = vsel %vm103_vm1, %v704_v2, 0.0  ;;  %v2517_v3 = vsub.f32 %v2222_v55, %v632_v42 }
 0x17f   :  { %v2501_v43 = vsub.f32 %v2220_v52, %v607_v5  ;;  %v792_v45 = vsel %vm103_vm1, %v707_v26, 0.0  ;;  %v561_v21 = vpop.xlane.xlu0 %560 }
 0x180   :  { %v552_v32 = vpop.xlane.xlu1 %551  ;;  %793 = vadd.xlane.f32.xlu0 %v792_v45  ;;  %724 = vadd.xlane.f32.xlu1 %v723_v46  ;;  %v630_v19 = vmul.f32 0.125, %v561_v21 }
 0x181   :  { %v627_v6 = vmul.f32 0.125, %v552_v32  ;;  %v685_v37 = vmul.f32 %v2501_v43, %v2501_v43 }
 0x182   :  { %v2532_v46 = vsub.f32 %v2247_v8, %v630_v19 }
 0x183   :  { %v2510_v49 = vsub.f32 %v2244_v7, %v627_v6  ;;  %v726_v52 = vsel %vm103_vm1, %v685_v37, 0.0  ;;  %v519_v53 = vpop.xlane.xlu0 %518 }
 0x184   :  { %v507_v20 = vpop.xlane.xlu1 %506  ;;  %727 = vadd.xlane.f32.xlu0 %v726_v52  ;;  %784 = vadd.xlane.f32.xlu1 %v783_v17  ;;  %v616_v2 = vmul.f32 0.125, %v519_v53  ;;  %v708_v8 = vmul.f32 %v2532_v46, %v2532_v46 }
 0x185   :  { %v612_v22 = vmul.f32 0.125, %v507_v20  ;;  %v705_v0 = vmul.f32 %v2510_v49, %v2510_v49 }
 0x186   :  { %v2543_v17 = vsub.f32 %v2259_v16, %v616_v2  ;;  %v795_v19 = vsel %vm103_vm1, %v708_v8, 0.0 }
 0x187   :  { %v2520_v34 = vsub.f32 %v2257_v15, %v612_v22  ;;  %v786_v7 = vsel %vm103_vm1, %v705_v0, 0.0  ;;  %v579_v62 = vpop.xlane.xlu0 %578  ;;  %v710_v15 = vmul.f32 %v2517_v3, %v2517_v3 }
 0x188   :  { %v501_v35 = vpop.xlane.xlu1 %500  ;;  %787 = vadd.xlane.f32.xlu0 %v786_v7 }
 0x189   :  { %v610_v33 = vmul.f32 0.125, %v501_v35  ;;  %v690_v39 = vmul.f32 %v2520_v34, %v2520_v34  ;;  %v801_v21 = vsel %vm103_vm1, %v710_v15, 0.0 }
 0x18b   :  { %v2526_v40 = vsub.f32 %v2268_v31, %v610_v33  ;;  %v741_v5 = vsel %vm103_vm1, %v690_v39, 0.0  ;;  %v573_v55 = vpop.xlane.xlu0 %572  ;;  %v694_v33 = vmul.f32 %v2543_v17, %v2543_v17 }
 0x18c   :  { %v510_v26 = vpop.xlane.xlu1 %509  ;;  %742 = vadd.xlane.f32.xlu1 %v741_v5 }
 0x18d   :  { %v613_v45 = vmul.f32 0.125, %v510_v26  ;;  %v688_v6 = vmul.f32 %v2526_v40, %v2526_v40  ;;  %v753_v2 = vsel %vm103_vm1, %v694_v33, 0.0 }
 0x18f   :  { %v2535_v32 = vsub.f32 %v2294_v50, %v613_v45  ;;  %v531_v31 = vpop.xlane.xlu0 %530  ;;  %v636_v50 = vmul.f32 0.125, %v579_v62  ;;  %v735_v22 = vsel %vm103_vm1, %v688_v6, 0.0 }
 0x190   :  { %v570_v37 = vpop.xlane.xlu1 %569  ;;  %802 = vadd.xlane.f32.xlu1 %v801_v21  ;;  %v634_v21 = vmul.f32 0.125, %v573_v55  ;;  %v620_v8 = vmul.f32 0.125, %v531_v31 }
 0x191   :  { %v633_v42 = vmul.f32 0.125, %v570_v37  ;;  %v691_v52 = vmul.f32 %v2535_v32, %v2535_v32  ;;  %v2557_v62 = vsub.f32 %v2278_v38, %v636_v50 }
 0x192   :  { %v2576_v50 = vsub.f32 %v2296_v51, %v634_v21  ;;  %v2586_v31 = vsub.f32 %v2314_v41, %v620_v8 }
 0x193   :  { %v2548_v53 = vsub.f32 %v2323_v18, %v633_v42  ;;  %v744_v20 = vsel %vm103_vm1, %v691_v52, 0.0  ;;  %v591_v7 = vpop.xlane.xlu0 %590  ;;  %v714_v6 = vmul.f32 %v2557_v62, %v2557_v62 }
 0x194   :  { %v504_v0 = vpop.xlane.xlu1 %503  ;;  %745 = vadd.xlane.f32.xlu0 %v744_v20  ;;  %736 = vadd.xlane.f32.xlu1 %v735_v22  ;;  %3498 = vst [vmem:[#allocation3_spill] sm:$0xff] %v2586_v31  ;;  %v640_v51 = vmul.f32 0.125, %v591_v7  ;;  %v698_v7 = vmul.f32 %v2586_v31, %v2586_v31 }
 0x195   :  { %v611_v35 = vmul.f32 0.125, %v504_v0  ;;  %v711_v16 = vmul.f32 %v2548_v53, %v2548_v53  ;;  %v813_v20 = vsel %vm103_vm1, %v714_v6, 0.0 }
 0x197   :  { %v2560_v18 = vsub.f32 %v2336_v30, %v611_v35  ;;  %v804_v39 = vsel %vm103_vm1, %v711_v16, 0.0  ;;  %v525_v45 = vpop.xlane.xlu0 %524 }
 0x198   :  { %v564_v5 = vpop.xlane.xlu1 %563  ;;  %805 = vadd.xlane.f32.xlu0 %v804_v39  ;;  %796 = vadd.xlane.f32.xlu1 %v795_v19  ;;  %v712_v39 = vmul.f32 %v2576_v50, %v2576_v50 }
 0x199   :  { %v631_v15 = vmul.f32 0.125, %v564_v5  ;;  %v689_v26 = vmul.f32 %v2560_v18, %v2560_v18 }
 0x19b   :  { %v2568_v38 = vsub.f32 %v2349_v47, %v631_v15  ;;  %v738_v30 = vsel %vm103_vm1, %v689_v26, 0.0  ;;  %v585_v22 = vpop.xlane.xlu0 %584  ;;  %v2597_v26 = vsub.f32 %v2331_v27, %v640_v51 }
 0x19c   :  { %v513_v37 = vpop.xlane.xlu1 %512  ;;  %739 = vadd.xlane.f32.xlu0 %v738_v30  ;;  %754 = vadd.xlane.f32.xlu1 %v753_v2  ;;  %v807_v30 = vsel %vm103_vm1, %v712_v39, 0.0 }
 0x19d   :  { %v614_v42 = vmul.f32 0.125, %v513_v37  ;;  %v709_v52 = vmul.f32 %v2568_v38, %v2568_v38  ;;  %3499 = vst [vmem:[#allocation4_spill] sm:$0xff] %v2597_v26 }
 0x19f   :  { %v2579_v55 = vsub.f32 %v2362_v63, %v614_v42  ;;  %v798_v47 = vsel %vm103_vm1, %v709_v52, 0.0  ;;  %v543_v41 = vpop.xlane.xlu0 %542  ;;  %v765_v42 = vsel %vm103_vm1, %v698_v7, 0.0  ;;  %v718_v52 = vmul.f32 %v2597_v26, %v2597_v26 }
 0x1a0   :  { %v522_v0 = vpop.xlane.xlu1 %521  ;;  %799 = vadd.xlane.f32.xlu0 %v798_v47  ;;  %814 = vadd.xlane.f32.xlu1 %v813_v20  ;;  %v624_v51 = vmul.f32 0.125, %v543_v41 }
 0x1a1   :  { %v617_v35 = vmul.f32 0.125, %v522_v0  ;;  %v692_v16 = vmul.f32 %v2579_v55, %v2579_v55 }
 0x1a2   :  { %v2633_v41 = vsub.f32 %v2370_v9, %v624_v51 }
 0x1a3   :  { %v2589_v33 = vsub.f32 %v2375_v12, %v617_v35  ;;  %v747_v63 = vsel %vm103_vm1, %v692_v16, 0.0  ;;  %v618_v12 = vmul.f32 0.125, %v525_v45  ;;  %v537_v20 = vpop.xlane.xlu0 %536 }
 0x1a4   :  { %v582_v19 = vpop.xlane.xlu1 %581  ;;  %748 = vadd.xlane.f32.xlu1 %v747_v63  ;;  %v825_v63 = vsel %vm103_vm1, %v718_v52, 0.0  ;;  %3505 = vst [vmem:[#allocation10_spill] sm:$0xff] %v2633_v41 }
 0x1a5   :  { %v637_v5 = vmul.f32 0.125, %v582_v19  ;;  %v695_v15 = vmul.f32 %v2589_v33, %v2589_v33  ;;  %v2612_v45 = vsub.f32 %v2344_v44, %v618_v12 }
 0x1a7   :  { %v2602_v2 = vsub.f32 %v2389_v28, %v637_v5  ;;  %v756_v21 = vsel %vm103_vm1, %v695_v15, 0.0  ;;  %3501 = vst [vmem:[#allocation6_spill] sm:$0xff] %v2612_v45  ;;  %v638_v28 = vmul.f32 0.125, %v585_v22  ;;  %v696_v39 = vmul.f32 %v2612_v45, %v2612_v45  ;;  %v597_v7 = vpop.xlane.xlu0 %596 }
 0x1a8   :  { %v516_v6 = vpop.xlane.xlu1 %515  ;;  %757 = vadd.xlane.f32.xlu0 %v756_v21  ;;  %808 = vadd.xlane.f32.xlu1 %v807_v30 }
 0x1a9   :  { %3500 = vst [vmem:[#allocation5_spill] sm:$0xff] %v2602_v2  ;;  %v615_v37 = vmul.f32 0.125, %v516_v6  ;;  %v715_v27 = vmul.f32 %v2602_v2, %v2602_v2  ;;  %v2622_v44 = vsub.f32 %v2357_v60, %v638_v28  ;;  %v622_v60 = vmul.f32 0.125, %v537_v20 }
 0x1aa   :  { %v759_v21 = vsel %vm103_vm1, %v696_v39, 0.0 }
 0x1ab   :  { %v2615_v8 = vsub.f32 %v2399_v1, %v615_v37  ;;  %v816_v47 = vsel %vm103_vm1, %v715_v27, 0.0  ;;  %3503 = vst [vmem:[#allocation8_spill] sm:$0xff] %v2622_v44  ;;  %v716_v30 = vmul.f32 %v2622_v44, %v2622_v44  ;;  %v2645_v27 = vsub.f32 %v2384_v25, %v622_v60  ;;  %v604_v20 = vpop.xlane.xlu0 %603 }
 0x1ac   :  { %v576_v0 = vpop.xlane.xlu1 %575  ;;  %817 = vadd.xlane.f32.xlu0 %v816_v47  ;;  %766 = vadd.xlane.f32.xlu1 %v765_v42  ;;  %v642_v42 = vmul.f32 0.125, %v597_v7 }
 0x1ad   :  { %3502 = vst [vmem:[#allocation7_spill] sm:$0xff] %v2615_v8  ;;  %v635_v35 = vmul.f32 0.125, %v576_v0  ;;  %v693_v16 = vmul.f32 %v2615_v8, %v2615_v8  ;;  %3507 = vst [vmem:[#allocation12_spill] sm:$0xff] %v2645_v27  ;;  %v819_v47 = vsel %vm103_vm1, %v716_v30, 0.0  ;;  %v700_v51 = vmul.f32 %v2645_v27, %v2645_v27  ;;  %v1199_v8 = vld [vmem:[%s3474_s2 + $0x108] sm:$0xff] }
 0x1af   :  { %v2625_v22 = vsub.f32 %v2409_v48, %v635_v35  ;;  %v750_v1 = vsel %vm103_vm1, %v693_v16, 0.0  ;;  %v771_v60 = vsel %vm103_vm1, %v700_v51, 0.0 }
 0x1b0   :  { %v534_v19 = vpop.xlane.xlu1 %533  ;;  %751 = vadd.xlane.f32.xlu0 %v750_v1  ;;  %826 = vadd.xlane.f32.xlu1 %v825_v63  ;;  %v644_v63 = vmul.f32 0.125, %v604_v20 }
 0x1b1   :  { %3504 = vst [vmem:[#allocation9_spill] sm:$0xff] %v2625_v22  ;;  %v621_v5 = vmul.f32 0.125, %v534_v19  ;;  %v713_v15 = vmul.f32 %v2625_v22, %v2625_v22 }
 0x1b2   :  { %v2670_v7 = vsub.f32 %v2405_v57, %v644_v63  ;;  %v1166_v63 = vld [vmem:[%s3474_s2] sm:$0xff] }
 0x1b3   :  { %v2636_v48 = vsub.f32 %v2419_v61, %v621_v5  ;;  %v810_v12 = vsel %vm103_vm1, %v713_v15, 0.0  ;;  %v702_v61 = vmul.f32 %v2633_v41, %v2633_v41 }
 0x1b4   :  { %v594_v6 = vpop.xlane.xlu1 %593  ;;  %811 = vadd.xlane.f32.xlu0 %v810_v12  ;;  %760 = vadd.xlane.f32.xlu1 %v759_v21  ;;  %3511 = vst [vmem:[#allocation16_spill] sm:$0xff] %v2670_v7 }
 0x1b5   :  { %3506 = vst [vmem:[#allocation11_spill] sm:$0xff] %v2636_v48  ;;  %v641_v37 = vmul.f32 0.125, %v594_v6  ;;  %v699_v9 = vmul.f32 %v2636_v48, %v2636_v48  ;;  %v777_v16 = vsel %vm103_vm1, %v702_v61, 0.0  ;;  %v1168_v61 = vld [vmem:[%s3474_s2 + $0x10] sm:$0xff] }
 0x1b6   :  { %v1625_v20 = vmul.f32 -1.442695, %v1168_v61 }
 0x1b7   :  { %v2650_v52 = vsub.f32 %v2427_v56, %v641_v37  ;;  %v768_v28 = vsel %vm103_vm1, %v699_v9, 0.0  ;;  %v2660_v56 = vsub.f32 %v2396_v24, %v642_v42  ;;  %v722_v9 = vmul.f32 %v2670_v7, %v2670_v7 }
 0x1b8   :  { %v528_v0 = vpop.xlane.xlu1 %527  ;;  %769 = vadd.xlane.f32.xlu0 %v768_v28  ;;  %820 = vadd.xlane.f32.xlu1 %v819_v47  ;;  %v1188_v28 = vld [vmem:[%s3474_s2 + $0xb0] sm:$0xff]  ;;  %1731 = vpow2.f32 %v1625_v20 }
 0x1b9   :  { %3508 = vst [vmem:[#allocation13_spill] sm:$0xff] %v2650_v52  ;;  %v619_v35 = vmul.f32 0.125, %v528_v0  ;;  %v719_v25 = vmul.f32 %v2650_v52, %v2650_v52  ;;  %3509 = vst [vmem:[#allocation14_spill] sm:$0xff] %v2660_v56  ;;  %v720_v12 = vmul.f32 %v2660_v56, %v2660_v56  ;;  %v1169_v0 = vld [vmem:[%s3474_s2 + $0x18] sm:$0xff]  ;;  %v1645_v51 = vmul.f32 -1.442695, %v1188_v28 }
 0x1ba   :  { %v1172_v28 = vld [vmem:[%s3474_s2 + $0x30] sm:$0xff] }
 0x1bb   :  { %v2663_v1 = vsub.f32 %v2435_v4, %v619_v35  ;;  %v828_v39 = vsel %vm103_vm1, %v719_v25, 0.0  ;;  %1733 = vpow2.f32 %v1645_v51  ;;  %v1629_v20 = vmul.f32 -1.442695, %v1172_v28 }
 0x1bc   :  { %v588_v19 = vpop.xlane.xlu1 %587  ;;  %829 = vadd.xlane.f32.xlu0 %v828_v39  ;;  %778 = vadd.xlane.f32.xlu1 %v777_v16  ;;  %v837_v16 = vsel %vm601_vm4, %v722_v9, 0.0  ;;  %v1187_v9 = vld [vmem:[%s3474_s2 + $0xa8] sm:$0xff] }
 0x1bd   :  { %3510 = vst [vmem:[#allocation15_spill] sm:$0xff] %v2663_v1  ;;  %v639_v5 = vmul.f32 0.125, %v588_v19  ;;  %v697_v15 = vmul.f32 %v2663_v1, %v2663_v1 }
 0x1bf   :  { %v2673_v24 = vsub.f32 %v2443_v10, %v639_v5  ;;  %v762_v4 = vsel %vm103_vm1, %v697_v15, 0.0  ;;  %v831_v10 = vsel %vm103_vm1, %v720_v12, 0.0  ;;  %v1626_v15 = vmul.f32 -1.442695, %v1169_v0  ;;  %v1192_v0 = vld [vmem:[%s3474_s2 + $0xd0] sm:$0xff] }
 0x1c0   :  { %v546_v21 = vpop.xlane.xlu1 %545  ;;  %763 = vadd.xlane.f32.xlu0 %v762_v4  ;;  %772 = vadd.xlane.f32.xlu1 %v771_v60  ;;  %v1623_v60 = vmul.f32 -1.442695, %v1166_v63 }
 0x1c1   :  { %3512 = vst [vmem:[#allocation17_spill] sm:$0xff] %v2673_v24  ;;  %v625_v30 = vmul.f32 0.125, %v546_v21  ;;  %v717_v6 = vmul.f32 %v2673_v24, %v2673_v24  ;;  %v1186_v21 = vld [vmem:[%s3474_s2 + $0xa0] sm:$0xff]  ;;  %1735 = vpow2.f32 %v1626_v15 }
 0x1c2   :  { %1737 = vpow2.f32 %v1623_v60  ;;  %v1173_v60 = vld [vmem:[%s3474_s2 + $0x38] sm:$0xff] }
 0x1c3   :  { %v2681_v37 = vsub.f32 %v2451_v58, %v625_v30  ;;  %v822_v57 = vsel %vm103_vm1, %v717_v6, 0.0 }
 0x1c4   :  { %v540_v42 = vpop.xlane.xlu1 %539  ;;  %823 = vadd.xlane.f32.xlu0 %v822_v57  ;;  %832 = vadd.xlane.f32.xlu1 %v831_v10  ;;  %v1167_v57 = vld [vmem:[%s3474_s2 + $0x8] sm:$0xff] }
 0x1c5   :  { %3513 = vst [vmem:[#allocation18_spill] sm:$0xff] %v2681_v37  ;;  %v623_v58 = vmul.f32 0.125, %v540_v42  ;;  %v703_v47 = vmul.f32 %v2681_v37, %v2681_v37  ;;  %v1624_v61 = vmul.f32 -1.442695, %v1167_v57  ;;  %v1644_v42 = vmul.f32 -1.442695, %v1187_v9 }
 0x1c6   :  { %v1193_v9 = vld [vmem:[%s3474_s2 + $0xd8] sm:$0xff] }
 0x1c7   :  { %v2699_v35 = vsub.f32 %v2459_v23, %v623_v58  ;;  %v780_v25 = vsel %vm103_vm1, %v703_v47, 0.0  ;;  %v1189_v23 = vld [vmem:[%s3474_s2 + $0xb8] sm:$0xff]  ;;  %v1732_v58 = vpop.eup %1731 }
 0x1c8   :  { %v600_v39 = vpop.xlane.xlu1 %599  ;;  %781 = vadd.xlane.f32.xlu0 %v780_v25  ;;  %838 = vadd.xlane.f32.xlu1 %v837_v16  ;;  %v1646_v30 = vmul.f32 -1.442695, %v1189_v23  ;;  %v1734_v47 = vpop.eup %1733  ;;  %v1324_v16 = vadd.f32 1.0, %v1732_v58  ;;  %v1176_v58 = vld [vmem:[%s3474_s2 + $0x50] sm:$0xff] }
 0x1c9   :  { %3514 = vst [vmem:[#allocation19_spill] sm:$0xff] %v2699_v35  ;;  %v643_v19 = vmul.f32 0.125, %v600_v39  ;;  %v701_v5 = vmul.f32 %v2699_v35, %v2699_v35  ;;  %v1344_v63 = vadd.f32 1.0, %v1734_v47  ;;  %v1649_v39 = vmul.f32 -1.442695, %v1192_v0 }
 0x1ca   :  { %1739 = vpow2.f32 %v1646_v30  ;;  %v1650_v47 = vmul.f32 -1.442695, %v1193_v9 }
 0x1cb   :  { %v2712_v4 = vsub.f32 %v2465_v11, %v643_v19  ;;  %v774_v12 = vsel %vm103_vm1, %v701_v5, 0.0  ;;  %v1643_v11 = vmul.f32 -1.442695, %v1186_v21  ;;  %v1736_v25 = vpop.eup %1735  ;;  %v1170_v19 = vld [vmem:[%s3474_s2 + $0x20] sm:$0xff] }
 0x1cc   :  { %775 = vadd.xlane.f32.xlu0 %v774_v12  ;;  %v1738_v51 = vpop.eup %1737  ;;  %v1325_v15 = vadd.f32 1.0, %v1736_v25  ;;  %v1627_v21 = vmul.f32 -1.442695, %v1170_v19  ;;  %v1191_v19 = vld [vmem:[%s3474_s2 + $0xc8] sm:$0xff] }
 0x1cd   :  { %3515 = vst [vmem:[#allocation20_spill] sm:$0xff] %v2712_v4  ;;  %v721_v6 = vmul.f32 %v2712_v4, %v2712_v4  ;;  %1741 = vpow2.f32 %v1643_v11  ;;  %v1322_v23 = vadd.f32 1.0, %v1738_v51  ;;  %v1630_v11 = vmul.f32 -1.442695, %v1173_v60  ;;  %v1196_v51 = vld [vmem:[%s3474_s2 + $0xf0] sm:$0xff] }
 0x1ce   :  { %1743 = vpow2.f32 %v1624_v61 }
 0x1cf   :  { %v834_v10 = vsel %vm103_vm1, %v721_v6, 0.0  ;;  %1745 = vpow2.f32 %v1644_v42  ;;  %v1190_v6 = vld [vmem:[%s3474_s2 + $0xc0] sm:$0xff] }
 0x1d0   :  { %835 = vadd.xlane.f32.xlu0 %v834_v10  ;;  %1747 = vpow2.f32 %v1629_v20  ;;  %v1647_v42 = vmul.f32 -1.442695, %v1190_v6  ;;  %v1171_v20 = vld [vmem:[%s3474_s2 + $0x28] sm:$0xff]  ;;  %v1194_v6 = vld [vmem:[%s3474_s2 + $0xe0] sm:$0xff] }
 0x1d1   :  { %1749 = vrcp.f32 %v1324_v16  ;;  %v1633_v16 = vmul.f32 -1.442695, %v1176_v58  ;;  %v1180_v58 = vld [vmem:[%s3474_s2 + $0x70] sm:$0xff] }
 0x1d2   :  { %1751 = vrcp.f32 %v1344_v63 }
 0x1d3   :  { %1753 = vpow2.f32 %v1649_v39  ;;  %v1628_v39 = vmul.f32 -1.442695, %v1171_v20 }
 0x1d4   :  { %v1740_v5 = vpop.eup %1739  ;;  %1755 = vrcp.f32 %v1325_v15 }
 0x1d5   :  { %v1345_v30 = vadd.f32 1.0, %v1740_v5  ;;  %1757 = vrcp.f32 %v1322_v23  ;;  %v1174_v23 = vld [vmem:[%s3474_s2 + $0x40] sm:$0xff] }
 0x1d6   :  { %1759 = vpow2.f32 %v1627_v21 }
 0x1d7   :  { %v1742_v12 = vpop.eup %1741  ;;  %1761 = vrcp.f32 %v1345_v30  ;;  %v1648_v30 = vmul.f32 -1.442695, %v1191_v19 }
 0x1d8   :  { %v1744_v57 = vpop.eup %1743  ;;  %v1342_v10 = vadd.f32 1.0, %v1742_v12  ;;  %1763 = vpow2.f32 %v1630_v11  ;;  %v1653_v12 = vmul.f32 -1.442695, %v1196_v51  ;;  %v1631_v11 = vmul.f32 -1.442695, %v1174_v23  ;;  %v1200_v23 = vld [vmem:[%s3474_s2 + $0x110] sm:$0xff] }
 0x1d9   :  { %v1746_v61 = vpop.eup %1745  ;;  %v1323_v28 = vadd.f32 1.0, %v1744_v57 }
 0x1da   :  { %v1748_v0 = vpop.eup %1747  ;;  %1765 = vrcp.f32 %v1342_v10  ;;  %v1343_v25 = vadd.f32 1.0, %v1746_v61  ;;  %v1177_v10 = vld [vmem:[%s3474_s2 + $0x58] sm:$0xff] }
 0x1db   :  { %1767 = vpow2.f32 %v1647_v42  ;;  %v2754_v63 = vpop.eup %1749  ;;  %v1328_v15 = vadd.f32 1.0, %v1748_v0  ;;  %v1634_v20 = vmul.f32 -1.442695, %v1177_v10 }
 0x1dc   :  { %1769 = vrcp.f32 %v1323_v28  ;;  %v2759_v5 = vpop.eup %1751  ;;  %v1651_v28 = vmul.f32 -1.442695, %v1194_v6 }
 0x1dd   :  { %1771 = vpow2.f32 %v1650_v47  ;;  %v1754_v60 = vpop.eup %1753 }
 0x1de   :  { %1773 = vrcp.f32 %v1343_v25  ;;  %v2764_v21 = vpop.eup %1755  ;;  %v1348_v61 = vadd.f32 1.0, %v1754_v60 }
 0x1df   :  { %1775 = vpow2.f32 %v1633_v16  ;;  %v2769_v57 = vpop.eup %1757  ;;  %v1197_v16 = vld [vmem:[%s3474_s2 + $0xf8] sm:$0xff] }
 0x1e0   :  { %1777 = vpow2.f32 %v1628_v39  ;;  %v1760_v9 = vpop.eup %1759  ;;  %v1637_v39 = vmul.f32 -1.442695, %v1180_v58 }
 0x1e1   :  { %1779 = vrcp.f32 %v1328_v15  ;;  %v2774_v42 = vpop.eup %1761  ;;  %v1326_v25 = vadd.f32 1.0, %v1760_v9  ;;  %v1657_v9 = vmul.f32 -1.442695, %v1200_v23 }
 0x1e2   :  { %1781 = vpow2.f32 %v1653_v12  ;;  %v1764_v47 = vpop.eup %1763  ;;  %v1654_v12 = vmul.f32 -1.442695, %v1197_v16 }
 0x1e3   :  { %1783 = vpow2.f32 %v1648_v30  ;;  %v1329_v15 = vadd.f32 1.0, %v1764_v47 }
 0x1e4   :  { %v2779_v0 = vpop.eup %1765  ;;  %1785 = vpow2.f32 %v1631_v11  ;;  %v1175_v11 = vld [vmem:[%s3474_s2 + $0x48] sm:$0xff] }
 0x1e5   :  { %v1768_v51 = vpop.eup %1767  ;;  %1787 = vrcp.f32 %v1348_v61  ;;  %v1632_v47 = vmul.f32 -1.442695, %v1175_v11 }
 0x1e6   :  { %v2784_v19 = vpop.eup %1769  ;;  %1789 = vpow2.f32 %v1651_v28  ;;  %v1346_v6 = vadd.f32 1.0, %v1768_v51 }
 0x1e7   :  { %v1772_v60 = vpop.eup %1771  ;;  %1791 = vpow2.f32 %v1634_v20  ;;  %v1178_v20 = vld [vmem:[%s3474_s2 + $0x60] sm:$0xff] }
 0x1e8   :  { %v2789_v30 = vpop.eup %1773  ;;  %1793 = vrcp.f32 %v1326_v25  ;;  %v1349_v28 = vadd.f32 1.0, %v1772_v60  ;;  %v1195_v60 = vld [vmem:[%s3474_s2 + $0xe8] sm:$0xff] }
 0x1e9   :  { %v1776_v10 = vpop.eup %1775  ;;  %1795 = vpow2.f32 %v1637_v39  ;;  %v1635_v39 = vmul.f32 -1.442695, %v1178_v20 }
 0x1ea   :  { %v1778_v61 = vpop.eup %1777  ;;  %1797 = vrcp.f32 %v1329_v15  ;;  %v1332_v16 = vadd.f32 1.0, %v1776_v10 }
 0x1eb   :  { %v2794_v58 = vpop.eup %1779  ;;  %1799 = vpow2.f32 %v1654_v12  ;;  %v1327_v4 = vadd.f32 1.0, %v1778_v61  ;;  %v1198_v61 = vld [vmem:[%s3474_s2 + $0x100] sm:$0xff] }
 0x1ec   :  { %v1782_v25 = vpop.eup %1781  ;;  %1801 = vrcp.f32 %v1346_v6 }
 0x1ed   :  { %v1784_v51 = vpop.eup %1783  ;;  %1803 = vpow2.f32 %v1657_v9  ;;  %v1352_v15 = vadd.f32 1.0, %v1782_v25  ;;  %v1652_v9 = vmul.f32 -1.442695, %v1195_v60 }
 0x1ee   :  { %v1786_v35 = vpop.eup %1785  ;;  %1805 = vrcp.f32 %v1349_v28  ;;  %v1347_v11 = vadd.f32 1.0, %v1784_v51 }
 0x1ef   :  { %v2799_v23 = vpop.eup %1787  ;;  %1807 = vpow2.f32 %v1632_v47  ;;  %v1330_v6 = vadd.f32 1.0, %v1786_v35 }
 0x1f0   :  { %v1790_v12 = vpop.eup %1789  ;;  %1809 = vrcp.f32 %v1332_v16  ;;  %v1655_v16 = vmul.f32 -1.442695, %v1198_v61 }
 0x1f1   :  { %v1792_v37 = vpop.eup %1791  ;;  %1811 = vrcp.f32 %v1327_v4  ;;  %v1350_v47 = vadd.f32 1.0, %v1790_v12  ;;  %v1181_v4 = vld [vmem:[%s3474_s2 + $0x78] sm:$0xff] }
 0x1f2   :  { %v2804_v10 = vpop.eup %1793  ;;  %1813 = vpow2.f32 %v1635_v39  ;;  %v1333_v25 = vadd.f32 1.0, %v1792_v37  ;;  %v1638_v12 = vmul.f32 -1.442695, %v1181_v4 }
 0x1f3   :  { %v1796_v28 = vpop.eup %1795  ;;  %1815 = vrcp.f32 %v1352_v15  ;;  %v1184_v15 = vld [vmem:[%s3474_s2 + $0x90] sm:$0xff] }
 0x1f4   :  { %v2809_v20 = vpop.eup %1797  ;;  %1817 = vrcp.f32 %v1347_v11  ;;  %v1336_v39 = vadd.f32 1.0, %v1796_v28  ;;  %v1641_v7 = vmul.f32 -1.442695, %v1184_v15 }
 0x1f5   :  { %v1800_v35 = vpop.eup %1799  ;;  %1819 = vrcp.f32 %v1330_v6  ;;  %v1201_v6 = vld [vmem:[%s3474_s2 + $0x118] sm:$0xff] }
 0x1f6   :  { %v2814_v51 = vpop.eup %1801  ;;  %1821 = vpow2.f32 %v1652_v9  ;;  %v1353_v37 = vadd.f32 1.0, %v1800_v35 }
 0x1f7   :  { %v1804_v60 = vpop.eup %1803  ;;  %1823 = vrcp.f32 %v1350_v47  ;;  %v1658_v47 = vmul.f32 -1.442695, %v1201_v6 }
 0x1f8   :  { %v2819_v11 = vpop.eup %1805  ;;  %1825 = vrcp.f32 %v1333_v25  ;;  %v1356_v9 = vadd.f32 1.0, %v1804_v60  ;;  %v1182_v25 = vld [vmem:[%s3474_s2 + $0x80] sm:$0xff] }
 0x1f9   :  { %v1808_v61 = vpop.eup %1807  ;;  %1827 = vpow2.f32 %v1655_v16  ;;  %v1639_v60 = vmul.f32 -1.442695, %v1182_v25 }
 0x1fa   :  { %v2824_v28 = vpop.eup %1809  ;;  %1829 = vrcp.f32 %v1336_v39  ;;  %v1331_v56 = vadd.f32 1.0, %v1808_v61  ;;  %v1179_v39 = vld [vmem:[%s3474_s2 + $0x68] sm:$0xff] }
 0x1fb   :  { %v2826_v24 = vpop.eup %1811  ;;  %1831 = vpow2.f32 %v1638_v12  ;;  %v1636_v41 = vmul.f32 -1.442695, %v1179_v39 }
 0x1fc   :  { %v1814_v4 = vpop.eup %1813  ;;  %1833 = vrcp.f32 %v1353_v37 }
 0x1fd   :  { %v2831_v1 = vpop.eup %1815  ;;  %1835 = vpow2.f32 %v1641_v7  ;;  %v1334_v27 = vadd.f32 1.0, %v1814_v4 }
 0x1fe   :  { %v2836_v15 = vpop.eup %1817  ;;  %1837 = vrcp.f32 %v1356_v9  ;;  %v1202_v9 = vld [vmem:[%s3474_s2 + $0x120] sm:$0xff] }
 0x1ff   :  { %v2838_v12 = vpop.eup %1819  ;;  %1839 = vpow2.f32 %v1658_v47 }
 0x200   :  { %3516 = vst [vmem:[#allocation21_spill] sm:$0xff] %v2838_v12  ;;  %v1822_v52 = vpop.eup %1821  ;;  %1841 = vrcp.f32 %v1331_v56 }
 0x201   :  { %v1351_v44 = vadd.f32 1.0, %v1822_v52 }
 0x205   :  { %v731_v35 = vpop.xlane.xlu1 %730 }
 0x206   :  { %v842_v16 = vmul.f32 0.125, %v731_v35  ;;  %v2840_v35 = vpop.eup %1823 }
 0x207   :  { %3517 = vst [vmem:[#allocation22_spill] sm:$0xff] %v2840_v35  ;;  %v2845_v25 = vpop.eup %1825 }
 0x208   :  { %v881_v6 = vadd.f32 1e-05, %v842_v16  ;;  %3518 = vst [vmem:[#allocation23_spill] sm:$0xff] %v2845_v25  ;;  %v1828_v16 = vpop.eup %1827 }
 0x209   :  { %v791_v37 = vpop.xlane.xlu1 %790  ;;  %v734_v61 = vpop.xlane.xlu0 %733 }
 0x20a   :  { %1843 = vrsqrt.f32 %v881_v6  ;;  %v862_v7 = vmul.f32 0.125, %v791_v37  ;;  %v843_v48 = vmul.f32 0.125, %v734_v61  ;;  %v2847_v22 = vpop.eup %1829  ;;  %v1659_v6 = vmul.f32 -1.442695, %v1202_v9 }
 0x20b   :  { %1845 = vpow2.f32 %v1639_v60  ;;  %3519 = vst [vmem:[#allocation24_spill] sm:$0xff] %v2847_v22  ;;  %v1832_v37 = vpop.eup %1831 }
 0x20c   :  { %v901_v4 = vadd.f32 1e-05, %v862_v7  ;;  %v882_v47 = vadd.f32 1e-05, %v843_v48  ;;  %1847 = vrcp.f32 %v1334_v27  ;;  %v2852_v60 = vpop.eup %1833  ;;  %v1354_v7 = vadd.f32 1.0, %v1828_v16 }
 0x20d   :  { %v725_v56 = vpop.xlane.xlu1 %724  ;;  %v794_v39 = vpop.xlane.xlu0 %793  ;;  %1849 = vpow2.f32 %v1636_v41  ;;  %3520 = vst [vmem:[#allocation25_spill] sm:$0xff] %v2852_v60  ;;  %v1204_v60 = vld [vmem:[%s3474_s2 + $0x130] sm:$0x3] }
 0x20e   :  { %1851 = vrsqrt.f32 %v901_v4  ;;  %v840_v61 = vmul.f32 0.125, %v725_v56  ;;  %v863_v45 = vmul.f32 0.125, %v794_v39  ;;  %v1836_v48 = vpop.eup %1835  ;;  %v1656_v4 = vmul.f32 -1.442695, %v1199_v8 }
 0x20f   :  { %1853 = vrsqrt.f32 %v882_v47  ;;  %v2854_v22 = vpop.eup %1837  ;;  %v1337_v8 = vadd.f32 1.0, %v1832_v37 }
 0x210   :  { %v879_v27 = vadd.f32 1e-05, %v840_v61  ;;  %v902_v52 = vadd.f32 1e-05, %v863_v45  ;;  %1855 = vrcp.f32 %v1351_v44  ;;  %3521 = vst [vmem:[#allocation26_spill] sm:$0xff] %v2854_v22  ;;  %v1840_v56 = vpop.eup %1839 }
 0x211   :  { %v785_v41 = vpop.xlane.xlu1 %784  ;;  %v728_v9 = vpop.xlane.xlu0 %727  ;;  %1857 = vpow2.f32 %v1659_v6  ;;  %v2864_v45 = vld [vmem:[%s3475_s7] ss:$0 sm:$0xff] }
 0x212   :  { %1859 = vrsqrt.f32 %v879_v27  ;;  %v860_v39 = vmul.f32 0.125, %v785_v41  ;;  %v841_v26 = vmul.f32 0.125, %v728_v9  ;;  %v2859_v47 = vpop.eup %1841  ;;  %v1661_v9 = vmul.f32 -1.442695, %v1204_v60 }
 0x213   :  { %3522 = vst [vmem:[#allocation27_spill] sm:$0xff] %v2859_v47  ;;  %1861 = vrsqrt.f32 %v902_v52  ;;  %v1185_v47 = vld [vmem:[%s3474_s2 + $0x98] sm:$0xff]  ;;  %v2875_v52 = vld [vmem:[%s3476_s8] ss:$0 sm:$0xff] }
 0x214   :  { %v1844_v44 = vpop.eup %1843  ;;  %v899_v16 = vadd.f32 1e-05, %v860_v39  ;;  %v880_v6 = vadd.f32 1e-05, %v841_v26  ;;  %1863 = vrcp.f32 %v1354_v7  ;;  %v1340_v7 = vadd.f32 1.0, %v1836_v48 }
 0x215   :  { %v1846_v61 = vpop.eup %1845  ;;  %v959_v27 = vmul.f32 %v1844_v44, %v2473_v36  ;;  %v788_v41 = vpop.xlane.xlu0 %787  ;;  %1865 = vpow2.f32 %v1656_v4  ;;  %v1090_v4 = vld [vmem:[%s3477_s1 + $0x10] sm:$0xff]  ;;  %v1642_v44 = vmul.f32 -1.442695, %v1185_v47 }
 0x216   :  { %v2870_v22 = vpop.eup %1847  ;;  %1867 = vrsqrt.f32 %v899_v16  ;;  %v861_v26 = vmul.f32 0.125, %v788_v41 }
 0x217   :  { %3523 = vst [vmem:[#allocation28_spill] sm:$0xff] %v2870_v22  ;;  %v2877_v37 = vpop.eup %1849  ;;  %v1005_v36 = vmul.f32 %v2864_v45, %v959_v27  ;;  %1869 = vrsqrt.f32 %v880_v6  ;;  %v1183_v22 = vld [vmem:[%s3474_s2 + $0x88] sm:$0xff]  ;;  %v1357_v6 = vadd.f32 1.0, %v1840_v56  ;;  %v1110_v56 = vld [vmem:[%s3477_s1 + $0xb0] sm:$0xff] }
 0x218   :  { %v1852_v60 = vpop.eup %1851  ;;  %v900_v39 = vadd.f32 1e-05, %v861_v26  ;;  %1871 = vrcp.f32 %v1337_v8  ;;  %v1640_v31 = vmul.f32 -1.442695, %v1183_v22  ;;  %v1091_v22 = vld [vmem:[%s3477_s1 + $0x18] sm:$0xff] }
 0x219   :  { %v1854_v16 = vpop.eup %1853  ;;  %v1051_v41 = vadd.f32 %v2875_v52, %v1005_v36  ;;  %v979_v2 = vmul.f32 %v1852_v60, %v2470_v14  ;;  %v743_v27 = vpop.xlane.xlu1 %742  ;;  %1873 = vpow2.f32 %v1661_v9  ;;  %v1480_v14 = vld [vmem:[%s3478_s3 + $0x10] sm:$0xff]  ;;  %v1338_v36 = vadd.f32 1.0, %v1846_v61 }
 0x21a   :  { %v2888_v48 = vpop.eup %1855  ;;  %v960_v25 = vmul.f32 %v1854_v16, %v2480_v54  ;;  %1875 = vrsqrt.f32 %v900_v39  ;;  %v846_v26 = vmul.f32 0.125, %v743_v27 }
 0x21b   :  { %v2891_v8 = vpop.eup %1857  ;;  %v1129_v47 = vadd.f32 %v1090_v4, %v1051_v41  ;;  %v1025_v35 = vmul.f32 %v2864_v45, %v979_v2  ;;  %1877 = vrcp.f32 %v1340_v7 }
 0x21c   :  { %v1860_v12 = vpop.eup %1859  ;;  %v1006_v54 = vmul.f32 %v2864_v45, %v960_v25  ;;  %v885_v9 = vadd.f32 1e-05, %v846_v26  ;;  %1879 = vpow2.f32 %v1642_v44 }
 0x21d   :  { %v1862_v60 = vpop.eup %1861  ;;  %v1441_v4 = vmul.f32 %v2754_v63, %v1129_v47  ;;  %v1071_v2 = vadd.f32 %v2875_v52, %v1025_v35  ;;  %v957_v7 = vmul.f32 %v1860_v12, %v2483_v59  ;;  %v803_v39 = vpop.xlane.xlu1 %802  ;;  %1881 = vrcp.f32 %v1357_v6  ;;  %v1500_v59 = vld [vmem:[%s3478_s3 + $0xb0] sm:$0xff]  ;;  %v1088_v6 = vld [vmem:[%s3477_s1] sm:$0xff] }
 0x21e   :  { %v2907_v16 = vpop.eup %1863  ;;  %v1052_v25 = vadd.f32 %v2875_v52, %v1006_v54  ;;  %v980_v61 = vmul.f32 %v1862_v60, %v2490_v13  ;;  %1883 = vrsqrt.f32 %v885_v9  ;;  %v866_v44 = vmul.f32 0.125, %v803_v39  ;;  %v1111_v9 = vld [vmem:[%s3477_s1 + $0xb8] sm:$0xff] }
 0x21f   :  { %v2911_v41 = vpop.eup %1865  ;;  %v1519_v63 = vadd.f32 %v1480_v14, %v1441_v4  ;;  %v1149_v35 = vadd.f32 %v1110_v56, %v1071_v2  ;;  %v1003_v27 = vmul.f32 %v2864_v45, %v957_v7  ;;  %1885 = vpow2.f32 %v1640_v31  ;;  %v1481_v14 = vld [vmem:[%s3478_s3 + $0x18] sm:$0xff] }
 0x220   :  { %v1868_v26 = vpop.eup %1867  ;;  %v1130_v12 = vadd.f32 %v1091_v22, %v1052_v25  ;;  %v1026_v13 = vmul.f32 %v2864_v45, %v980_v61  ;;  %v905_v47 = vadd.f32 1e-05, %v866_v44  ;;  %1887 = vrcp.f32 %v1338_v36 }
 0x221   :  { %v1870_v54 = vpop.eup %1869  ;;  %1558 = vst.msk [vmem:[%s3479_s9 + $0x10] sm:$0xff] %vm103_vm1, %v1519_v63  ;;  %v1461_v31 = vmul.f32 %v2759_v5, %v1149_v35  ;;  %v1049_v56 = vadd.f32 %v2875_v52, %v1003_v27  ;;  %v977_v36 = vmul.f32 %v1868_v26, %v2493_v29  ;;  %v737_v60 = vpop.xlane.xlu1 %736  ;;  %v2935_v2 = vadd.f32 1.0, %v2877_v37  ;;  %v1478_v37 = vld [vmem:[%s3478_s3] sm:$0xff] }
 0x222   :  { %v746_v4 = vpop.xlane.xlu0 %745  ;;  %v2937_v22 = vpop.eup %1871  ;;  %v1442_v5 = vmul.f32 %v2764_v21, %v1130_v12  ;;  %v1072_v7 = vadd.f32 %v2875_v52, %v1026_v13  ;;  %v958_v39 = vmul.f32 %v1870_v54, %v2501_v43  ;;  %1889 = vrsqrt.f32 %v905_v47  ;;  %v1108_v21 = vld [vmem:[%s3477_s1 + $0xa0] sm:$0xff]  ;;  %v1089_v54 = vld [vmem:[%s3477_s1 + $0x8] sm:$0xff] }
 0x223   :  { %v2942_v25 = vpop.eup %1873  ;;  %v1539_v61 = vadd.f32 %v1500_v59, %v1461_v31  ;;  %v1127_v44 = vadd.f32 %v1088_v6, %v1049_v56  ;;  %v1023_v29 = vmul.f32 %v2864_v45, %v977_v36  ;;  %v844_v63 = vmul.f32 0.125, %v737_v60  ;;  %v1501_v6 = vld [vmem:[%s3478_s3 + $0xb8] sm:$0xff] }
 0x224   :  { %v1876_v35 = vpop.eup %1875  ;;  %v1520_v27 = vadd.f32 %v1481_v14, %v1442_v5  ;;  %v1150_v26 = vadd.f32 %v1111_v9, %v1072_v7  ;;  %v1004_v43 = vmul.f32 %v2864_v45, %v958_v39  ;;  %v847_v12 = vmul.f32 0.125, %v746_v4 }
 0x225   :  { %v2952_v13 = vpop.eup %1877  ;;  %1578 = vst.msk [vmem:[%s3479_s9 + $0xb0] sm:$0xff] %vm103_vm1, %v1539_v61  ;;  %v1439_v59 = vmul.f32 %v2769_v57, %v1127_v44  ;;  %v1069_v47 = vadd.f32 %v2875_v52, %v1023_v29  ;;  %v978_v31 = vmul.f32 %v1876_v35, %v2510_v49  ;;  %v883_v14 = vadd.f32 1e-05, %v844_v63  ;;  %v797_v56 = vpop.xlane.xlu1 %796  ;;  %v1498_v63 = vld [vmem:[%s3478_s3 + $0xa0] sm:$0xff] }
 0x226   :  { %v806_v9 = vpop.xlane.xlu0 %805  ;;  %v2967_v36 = vpop.eup %1879  ;;  %1559 = vst.msk [vmem:[%s3479_s9 + $0x18] sm:$0xff] %vm103_vm1, %v1520_v27  ;;  %v1462_v57 = vmul.f32 %v2774_v42, %v1150_v26  ;;  %v1050_v60 = vadd.f32 %v2875_v52, %v1004_v43  ;;  %v886_v4 = vadd.f32 1e-05, %v847_v12  ;;  %v864_v5 = vmul.f32 0.125, %v797_v56  ;;  %v1109_v42 = vld [vmem:[%s3477_s1 + $0xa8] sm:$0xff] }
 0x227   :  { %v2975_v7 = vpop.eup %1881  ;;  %v1517_v39 = vadd.f32 %v1478_v37, %v1439_v59  ;;  %v1147_v49 = vadd.f32 %v1108_v21, %v1069_v47  ;;  %v1024_v61 = vmul.f32 %v2864_v45, %v978_v31  ;;  %1891 = vrsqrt.f32 %v883_v14  ;;  %v1479_v21 = vld [vmem:[%s3478_s3 + $0x8] sm:$0xff] }
 0x228   :  { %v1884_v44 = vpop.eup %1883  ;;  %v1540_v29 = vadd.f32 %v1501_v6, %v1462_v57  ;;  %v1128_v35 = vadd.f32 %v1089_v54, %v1050_v60  ;;  %1893 = vrsqrt.f32 %v886_v4  ;;  %v903_v27 = vadd.f32 1e-05, %v864_v5  ;;  %v1203_v54 = vld [vmem:[%s3474_s2 + $0x128] sm:$0xff]  ;;  %v1094_v60 = vld [vmem:[%s3477_s1 + $0x30] sm:$0xff] }
 0x229   :  { %v2984_v26 = vpop.eup %1885  ;;  %1556 = vst.msk [vmem:[%s3479_s9] sm:$0xff] %vm103_vm1, %v1517_v39  ;;  %v1459_v37 = vmul.f32 %v2779_v0, %v1147_v49  ;;  %v1070_v43 = vadd.f32 %v2875_v52, %v1024_v61  ;;  %v963_v12 = vmul.f32 %v1884_v44, %v2520_v34  ;;  %v867_v59 = vmul.f32 0.125, %v806_v9  ;;  %v755_v6 = vpop.xlane.xlu1 %754  ;;  %v1499_v9 = vld [vmem:[%s3478_s3 + $0xa8] sm:$0xff] }
 0x22a   :  { %v740_v47 = vpop.xlane.xlu0 %739  ;;  %v2999_v31 = vpop.eup %1887  ;;  %1579 = vst.msk [vmem:[%s3479_s9 + $0xb8] sm:$0xff] %vm103_vm1, %v1540_v29  ;;  %v1440_v0 = vmul.f32 %v2784_v19, %v1128_v35  ;;  %1895 = vrsqrt.f32 %v903_v27  ;;  %v850_v14 = vmul.f32 0.125, %v755_v6  ;;  %v1660_v44 = vmul.f32 -1.442695, %v1203_v54 }
 0x22b   :  { %v845_v56 = vmul.f32 0.125, %v740_v47  ;;  %v1537_v34 = vadd.f32 %v1498_v63, %v1459_v37  ;;  %v1148_v57 = vadd.f32 %v1109_v42, %v1070_v43  ;;  %v1009_v4 = vmul.f32 %v2864_v45, %v963_v12 }
 0x22c   :  { %v906_v5 = vadd.f32 1e-05, %v867_v59  ;;  %v1890_v39 = vpop.eup %1889  ;;  %v1518_v49 = vadd.f32 %v1479_v21, %v1440_v0  ;;  %v889_v61 = vadd.f32 1e-05, %v850_v14  ;;  %v1358_v54 = vadd.f32 1.0, %v2891_v8 }
 0x22d   :  { %v884_v19 = vadd.f32 1e-05, %v845_v56  ;;  %1576 = vst.msk [vmem:[%s3479_s9 + $0xa0] sm:$0xff] %vm103_vm1, %v1537_v34  ;;  %v1460_v29 = vmul.f32 %v2789_v30, %v1148_v57  ;;  %v1055_v63 = vadd.f32 %v2875_v52, %v1009_v4  ;;  %v983_v35 = vmul.f32 %v1890_v39, %v2517_v3  ;;  %v815_v42 = vpop.xlane.xlu1 %814  ;;  %v1484_v30 = vld [vmem:[%s3478_s3 + $0x30] sm:$0xff] }
 0x22e   :  { %1897 = vrsqrt.f32 %v906_v5  ;;  %v800_v27 = vpop.xlane.xlu0 %799  ;;  %1557 = vst.msk [vmem:[%s3479_s9 + $0x8] sm:$0xff] %vm103_vm1, %v1518_v49  ;;  %v870_v37 = vmul.f32 0.125, %v815_v42  ;;  %v1114_v3 = vld [vmem:[%s3477_s1 + $0xd0] sm:$0xff]  ;;  %v1095_v42 = vld [vmem:[%s3477_s1 + $0x38] sm:$0xff] }
 0x22f   :  { %1899 = vrsqrt.f32 %v889_v61  ;;  %v865_v21 = vmul.f32 0.125, %v800_v27  ;;  %v1538_v43 = vadd.f32 %v1499_v9, %v1460_v29  ;;  %v1133_v12 = vadd.f32 %v1094_v60, %v1055_v63 }
 0x230   :  { %v1029_v59 = vmul.f32 %v2864_v45, %v983_v35  ;;  %1901 = vrsqrt.f32 %v884_v19  ;;  %v909_v6 = vadd.f32 1e-05, %v870_v37  ;;  %v1360_v63 = vadd.f32 1.0, %v2942_v25  ;;  %v1112_v25 = vld [vmem:[%s3477_s1 + $0xc0] sm:$0xff] }
 0x231   :  { %v904_v47 = vadd.f32 1e-05, %v865_v21  ;;  %1903 = vrcp.f32 %v2935_v2  ;;  %v1892_v0 = vpop.eup %1891  ;;  %1577 = vst.msk [vmem:[%s3479_s9 + $0xa8] sm:$0xff] %vm103_vm1, %v1538_v43  ;;  %v1445_v14 = vmul.f32 %v2794_v58, %v1133_v12  ;;  %v749_v34 = vpop.xlane.xlu1 %748  ;;  %v1355_v2 = vadd.f32 1.0, %v2911_v41  ;;  %v1504_v58 = vld [vmem:[%s3478_s3 + $0xd0] sm:$0xff] }
 0x232   :  { %v1075_v56 = vadd.f32 %v2875_v52, %v1029_v59  ;;  %1905 = vpow2.f32 %v1660_v44  ;;  %v1894_v9 = vpop.eup %1893  ;;  %v961_v57 = vmul.f32 %v1892_v0, %v2526_v40  ;;  %v848_v60 = vmul.f32 0.125, %v749_v34 }
 0x233   :  { %1907 = vrsqrt.f32 %v909_v6  ;;  %v1523_v8 = vadd.f32 %v1484_v30, %v1445_v14  ;;  %v964_v5 = vmul.f32 %v1894_v9, %v2535_v32  ;;  %v1092_v32 = vld [vmem:[%s3477_s1 + $0x20] sm:$0xff] }
 0x234   :  { %v1153_v4 = vadd.f32 %v1114_v3, %v1075_v56  ;;  %1909 = vrsqrt.f32 %v904_v47  ;;  %v1896_v39 = vpop.eup %1895  ;;  %v1007_v49 = vmul.f32 %v2864_v45, %v961_v57  ;;  %v887_v61 = vadd.f32 1e-05, %v848_v60  ;;  %v1485_v60 = vld [vmem:[%s3478_s3 + $0x38] sm:$0xff] }
 0x235   :  { %1911 = vrcp.f32 %v1358_v54  ;;  %1562 = vst.msk [vmem:[%s3479_s9 + $0x30] sm:$0xff] %vm103_vm1, %v1523_v8  ;;  %v1010_v41 = vmul.f32 %v2864_v45, %v964_v5  ;;  %v981_v19 = vmul.f32 %v1896_v39, %v2532_v46  ;;  %v809_v44 = vpop.xlane.xlu1 %808  ;;  %v758_v29 = vpop.xlane.xlu0 %757  ;;  %v1482_v54 = vld [vmem:[%s3478_s3 + $0x20] sm:$0xff]  ;;  %v1115_v39 = vld [vmem:[%s3477_s1 + $0xd8] sm:$0xff] }
 0x236   :  { %v1465_v40 = vmul.f32 %v2799_v23, %v1153_v4  ;;  %v1053_v35 = vadd.f32 %v2875_v52, %v1007_v49  ;;  %1913 = vrsqrt.f32 %v887_v61  ;;  %v868_v23 = vmul.f32 0.125, %v809_v44  ;;  %v1502_v61 = vld [vmem:[%s3478_s3 + $0xc0] sm:$0xff] }
 0x237   :  { %v851_v27 = vmul.f32 0.125, %v758_v29  ;;  %v1056_v43 = vadd.f32 %v2875_v52, %v1010_v41  ;;  %v1027_v30 = vmul.f32 %v2864_v45, %v981_v19  ;;  %1915 = vrcp.f32 %v1355_v2 }
 0x238   :  { %v1898_v37 = vpop.eup %1897  ;;  %v1543_v21 = vadd.f32 %v1504_v58, %v1465_v40  ;;  %v1131_v12 = vadd.f32 %v1092_v32, %v1053_v35  ;;  %v907_v3 = vadd.f32 1e-05, %v868_v23  ;;  %1917 = vrcp.f32 %v1360_v63  ;;  %v1093_v63 = vld [vmem:[%s3477_s1 + $0x28] sm:$0xff] }
 0x239   :  { %v1900_v46 = vpop.eup %1899  ;;  %v984_v59 = vmul.f32 %v1898_v37, %v2548_v53  ;;  %v890_v6 = vadd.f32 1e-05, %v851_v27  ;;  %v1134_v0 = vadd.f32 %v1095_v42, %v1056_v43  ;;  %v1073_v14 = vadd.f32 %v2875_v52, %v1027_v30  ;;  %v767_v34 = vpop.xlane.xlu1 %766  ;;  %v1505_v30 = vld [vmem:[%s3478_s3 + $0xd8] sm:$0xff] }
 0x23a   :  { %v1902_v47 = vpop.eup %1901  ;;  %1582 = vst.msk [vmem:[%s3479_s9 + $0xd0] sm:$0xff] %vm103_vm1, %v1543_v21  ;;  %v967_v56 = vmul.f32 %v1900_v46, %v2543_v17  ;;  %v818_v9 = vpop.xlane.xlu0 %817  ;;  %v1443_v57 = vmul.f32 %v2804_v10, %v1131_v12  ;;  %1919 = vrsqrt.f32 %v907_v3  ;;  %v854_v32 = vmul.f32 0.125, %v767_v34  ;;  %v1113_v34 = vld [vmem:[%s3477_s1 + $0xc8] sm:$0xff] }
 0x23b   :  { %v3076_v53 = vpop.eup %1903  ;;  %v1030_v2 = vmul.f32 %v2864_v45, %v984_v59  ;;  %v962_v8 = vmul.f32 %v1902_v47, %v2560_v18  ;;  %v1446_v17 = vmul.f32 %v2809_v20, %v1134_v0  ;;  %v1151_v5 = vadd.f32 %v1112_v25, %v1073_v14  ;;  %v1098_v20 = vld [vmem:[%s3477_s1 + $0x50] sm:$0xff]  ;;  %v1483_v14 = vld [vmem:[%s3478_s3 + $0x28] sm:$0xff] }
 0x23c   :  { %v3084_v4 = vpop.eup %1905  ;;  %v1013_v10 = vmul.f32 %v2864_v45, %v967_v56  ;;  %1921 = vrsqrt.f32 %v890_v6  ;;  %v1521_v49 = vadd.f32 %v1482_v54, %v1443_v57  ;;  %v893_v43 = vadd.f32 1e-05, %v854_v32  ;;  %v1118_v47 = vld [vmem:[%s3477_s1 + $0xf0] sm:$0xff] }
 0x23d   :  { %v1908_v58 = vpop.eup %1907  ;;  %v1076_v18 = vadd.f32 %v2875_v52, %v1030_v2  ;;  %v1008_v40 = vmul.f32 %v2864_v45, %v962_v8  ;;  %v1524_v19 = vadd.f32 %v1485_v60, %v1446_v17  ;;  %v1463_v44 = vmul.f32 %v2814_v51, %v1151_v5  ;;  %v827_v42 = vpop.xlane.xlu1 %826 }
 0x23e   :  { %v1910_v41 = vpop.eup %1909  ;;  %v1059_v29 = vadd.f32 %v2875_v52, %v1013_v10  ;;  %v987_v35 = vmul.f32 %v1908_v58, %v2557_v62  ;;  %v752_v23 = vpop.xlane.xlu0 %751  ;;  %1560 = vst.msk [vmem:[%s3479_s9 + $0x20] sm:$0xff] %vm103_vm1, %v1521_v49  ;;  %v871_v25 = vmul.f32 0.125, %v818_v9  ;;  %1923 = vrsqrt.f32 %v893_v43 }
 0x23f   :  { %v3105_v27 = vpop.eup %1911  ;;  %v1154_v37 = vadd.f32 %v1115_v39, %v1076_v18  ;;  %v1054_v51 = vadd.f32 %v2875_v52, %v1008_v40  ;;  %v982_v21 = vmul.f32 %v1910_v41, %v2568_v38  ;;  %1563 = vst.msk [vmem:[%s3479_s9 + $0x38] sm:$0xff] %vm103_vm1, %v1524_v19  ;;  %v1541_v62 = vadd.f32 %v1502_v61, %v1463_v44  ;;  %v1488_v38 = vld [vmem:[%s3478_s3 + $0x50] sm:$0xff]  ;;  %v1503_v44 = vld [vmem:[%s3478_s3 + $0xc8] sm:$0xff] }
 0x240   :  { %v1137_v46 = vadd.f32 %v1098_v20, %v1059_v29  ;;  %v1033_v12 = vmul.f32 %v2864_v45, %v987_v35  ;;  %v1914_v59 = vpop.eup %1913  ;;  %v910_v57 = vadd.f32 1e-05, %v871_v25  ;;  %v874_v5 = vmul.f32 0.125, %v827_v42  ;;  %v1096_v20 = vld [vmem:[%s3477_s1 + $0x40] sm:$0xff]  ;;  %v3524_v25 = vld [vmem:[#allocation21_spill] sm:$0xff] }
 0x241   :  { %v1466_v3 = vmul.f32 %v2819_v11, %v1154_v37  ;;  %v1132_v6 = vadd.f32 %v1093_v63, %v1054_v51  ;;  %v1028_v54 = vmul.f32 %v2864_v45, %v982_v21  ;;  %v3129_v0 = vpop.eup %1915  ;;  %1580 = vst.msk [vmem:[%s3479_s9 + $0xc0] sm:$0xff] %vm103_vm1, %v1541_v62  ;;  %v965_v9 = vmul.f32 %v1914_v59, %v2579_v55  ;;  %v761_v60 = vpop.xlane.xlu1 %760 }
 0x242   :  { %v1449_v11 = vmul.f32 %v2824_v28, %v1137_v46  ;;  %v1079_v56 = vadd.f32 %v2875_v52, %v1033_v12  ;;  %v812_v2 = vpop.xlane.xlu0 %811  ;;  %v3146_v39 = vpop.eup %1917  ;;  %1925 = vrsqrt.f32 %v910_v57  ;;  %v913_v40 = vadd.f32 1e-05, %v874_v5  ;;  %v1486_v46 = vld [vmem:[%s3478_s3 + $0x40] sm:$0xff] }
 0x243   :  { %v1544_v8 = vadd.f32 %v1505_v30, %v1466_v3  ;;  %v1444_v17 = vmul.f32 %v2826_v24, %v1132_v6  ;;  %v1074_v28 = vadd.f32 %v2875_v52, %v1028_v54  ;;  %v1011_v49 = vmul.f32 %v2864_v45, %v965_v9  ;;  %v1508_v24 = vld [vmem:[%s3478_s3 + $0xf0] sm:$0xff]  ;;  %v1116_v12 = vld [vmem:[%s3477_s1 + $0xe0] sm:$0xff] }
 0x244   :  { %v1527_v10 = vadd.f32 %v1488_v38, %v1449_v11  ;;  %v1157_v58 = vadd.f32 %v1118_v47, %v1079_v56  ;;  %v1920_v61 = vpop.eup %1919  ;;  %v849_v32 = vmul.f32 0.125, %v752_v23  ;;  %v852_v35 = vmul.f32 0.125, %v761_v60  ;;  %v1099_v38 = vld [vmem:[%s3477_s1 + $0x58] sm:$0xff] }
 0x245   :  { %1583 = vst.msk [vmem:[%s3479_s9 + $0xd8] sm:$0xff] %vm103_vm1, %v1544_v8  ;;  %v1522_v55 = vadd.f32 %v1483_v14, %v1444_v17  ;;  %v1152_v18 = vadd.f32 %v1113_v34, %v1074_v28  ;;  %v1057_v29 = vadd.f32 %v2875_v52, %v1011_v49  ;;  %v985_v63 = vmul.f32 %v1920_v61, %v2576_v50  ;;  %v821_v42 = vpop.xlane.xlu1 %820  ;;  %v1506_v28 = vld [vmem:[%s3478_s3 + $0xe0] sm:$0xff] }
 0x246   :  { %v1922_v41 = vpop.eup %1921  ;;  %1566 = vst.msk [vmem:[%s3479_s9 + $0x50] sm:$0xff] %vm103_vm1, %v1527_v10  ;;  %v1469_v19 = vmul.f32 %v2831_v1, %v1157_v58  ;;  %v770_v37 = vpop.xlane.xlu0 %769  ;;  %1927 = vrsqrt.f32 %v913_v40  ;;  %v888_v51 = vadd.f32 1e-05, %v849_v32  ;;  %v891_v30 = vadd.f32 1e-05, %v852_v35  ;;  %v3526_v61 = vld [vmem:[#allocation22_spill] sm:$0xff] }
 0x247   :  { %1561 = vst.msk [vmem:[%s3479_s9 + $0x28] sm:$0xff] %vm103_vm1, %v1522_v55  ;;  %v1464_v23 = vmul.f32 %v2836_v15, %v1152_v18  ;;  %v968_v1 = vmul.f32 %v1922_v41, %v2589_v33  ;;  %v1135_v43 = vadd.f32 %v1096_v20, %v1057_v29  ;;  %v1031_v62 = vmul.f32 %v2864_v45, %v985_v63  ;;  %v3527_v41 = vld [vmem:[#allocation23_spill] sm:$0xff]  ;;  %v3528_v29 = vld [vmem:[#allocation5_spill] sm:$0xff] }
 0x248   :  { %v1547_v21 = vadd.f32 %v1508_v24, %v1469_v19  ;;  %1929 = vrsqrt.f32 %v888_v51  ;;  %v869_v33 = vmul.f32 0.125, %v812_v2  ;;  %v872_v6 = vmul.f32 0.125, %v821_v42  ;;  %v1924_v11 = vpop.eup %1923  ;;  %v3525_v2 = vld [vmem:[#allocation3_spill] sm:$0xff]  ;;  %v1489_v24 = vld [vmem:[%s3478_s3 + $0x58] sm:$0xff] }
 0x249   :  { %v1542_v50 = vadd.f32 %v1503_v44, %v1464_v23  ;;  %v1014_v15 = vmul.f32 %v2864_v45, %v968_v1  ;;  %v1447_v59 = vmul.f32 %v3524_v25, %v1135_v43  ;;  %v1077_v3 = vadd.f32 %v2875_v52, %v1031_v62  ;;  %v779_v47 = vpop.xlane.xlu1 %778  ;;  %v1102_v44 = vld [vmem:[%s3477_s1 + $0x70] sm:$0xff] }
 0x24a   :  { %1586 = vst.msk [vmem:[%s3479_s9 + $0xf0] sm:$0xff] %vm103_vm1, %v1547_v21  ;;  %1931 = vrsqrt.f32 %v891_v30  ;;  %v830_v54 = vpop.xlane.xlu0 %829  ;;  %v908_v56 = vadd.f32 1e-05, %v869_v33  ;;  %v855_v34 = vmul.f32 0.125, %v770_v37  ;;  %v858_v9 = vmul.f32 0.125, %v779_v47 }
 0x24b   :  { %1581 = vst.msk [vmem:[%s3479_s9 + $0xc8] sm:$0xff] %vm103_vm1, %v1542_v50  ;;  %v1060_v14 = vadd.f32 %v2875_v52, %v1014_v15  ;;  %v1525_v57 = vadd.f32 %v1486_v46, %v1447_v59  ;;  %v1155_v60 = vadd.f32 %v1116_v12, %v1077_v3  ;;  %v971_v8 = vmul.f32 %v1924_v11, %v3525_v2  ;;  %v1119_v50 = vld [vmem:[%s3477_s1 + $0xf8] sm:$0xff]  ;;  %v3529_v46 = vld [vmem:[#allocation4_spill] sm:$0xff] }
 0x24c   :  { %v911_v17 = vadd.f32 1e-05, %v872_v6  ;;  %1933 = vrsqrt.f32 %v908_v56  ;;  %v894_v10 = vadd.f32 1e-05, %v855_v34  ;;  %v897_v58 = vadd.f32 1e-05, %v858_v9  ;;  %v1926_v49 = vpop.eup %1925 }
 0x24d   :  { %v1138_v5 = vadd.f32 %v1099_v38, %v1060_v14  ;;  %1564 = vst.msk [vmem:[%s3479_s9 + $0x40] sm:$0xff] %vm103_vm1, %v1525_v57  ;;  %v1467_v55 = vmul.f32 %v3526_v61, %v1155_v60  ;;  %v1017_v18 = vmul.f32 %v2864_v45, %v971_v8  ;;  %v875_v20 = vmul.f32 0.125, %v830_v54  ;;  %v773_v40 = vpop.xlane.xlu1 %772  ;;  %v1492_v3 = vld [vmem:[%s3478_s3 + $0x70] sm:$0xff]  ;;  %v3531_v56 = vld [vmem:[#allocation7_spill] sm:$0xff]  ;;  %v3532_v2 = vld [vmem:[#allocation6_spill] sm:$0xff] }
 0x24e   :  { %1935 = vrsqrt.f32 %v911_v17  ;;  %v764_v32 = vpop.xlane.xlu0 %763  ;;  %v988_v63 = vmul.f32 %v1926_v49, %v3528_v29  ;;  %v856_v35 = vmul.f32 0.125, %v773_v40  ;;  %v3226_v25 = vadd.f32 1.0, %v2967_v36  ;;  %v3530_v11 = vld [vmem:[#allocation24_spill] sm:$0xff]  ;;  %v1100_v29 = vld [vmem:[%s3477_s1 + $0x60] sm:$0xff] }
 0x24f   :  { %v1450_v19 = vmul.f32 %v3527_v41, %v1138_v5  ;;  %1937 = vrsqrt.f32 %v894_v10  ;;  %v1545_v42 = vadd.f32 %v1506_v28, %v1467_v55  ;;  %v1063_v37 = vadd.f32 %v2875_v52, %v1017_v18  ;;  %v1122_v60 = vld [vmem:[%s3477_s1 + $0x110] sm:$0xff]  ;;  %v1509_v5 = vld [vmem:[%s3478_s3 + $0xf8] sm:$0xff] }
 0x250   :  { %1939 = vrsqrt.f32 %v897_v58  ;;  %v914_v23 = vadd.f32 1e-05, %v875_v20  ;;  %v1928_v1 = vpop.eup %1927  ;;  %v1034_v21 = vmul.f32 %v2864_v45, %v988_v63  ;;  %v895_v43 = vadd.f32 1e-05, %v856_v35  ;;  %v1097_v20 = vld [vmem:[%s3477_s1 + $0x48] sm:$0xff]  ;;  %v3534_v63 = vld [vmem:[#allocation9_spill] sm:$0xff] }
 0x251   :  { %v1528_v51 = vadd.f32 %v1489_v24, %v1450_v19  ;;  %v853_v62 = vmul.f32 0.125, %v764_v32  ;;  %1584 = vst.msk [vmem:[%s3479_s9 + $0xe0] sm:$0xff] %vm103_vm1, %v1545_v42  ;;  %v1141_v30 = vadd.f32 %v1102_v44, %v1063_v37  ;;  %v991_v12 = vmul.f32 %v1928_v1, %v3529_v46  ;;  %v833_v15 = vpop.xlane.xlu1 %832  ;;  %v3533_v24 = vld [vmem:[#allocation25_spill] sm:$0xff] }
 0x252   :  { %1941 = vrsqrt.f32 %v914_v23  ;;  %v824_v33 = vpop.xlane.xlu0 %823  ;;  %v1930_v59 = vpop.eup %1929  ;;  %v1080_v38 = vadd.f32 %v2875_v52, %v1034_v21  ;;  %v876_v47 = vmul.f32 0.125, %v833_v15  ;;  %v1512_v23 = vld [vmem:[%s3478_s3 + $0x110] sm:$0xff]  ;;  %v3537_v15 = vld [vmem:[#allocation11_spill] sm:$0xff] }
 0x253   :  { %1567 = vst.msk [vmem:[%s3479_s9 + $0x58] sm:$0xff] %vm103_vm1, %v1528_v51  ;;  %1943 = vrsqrt.f32 %v895_v43  ;;  %v892_v6 = vadd.f32 1e-05, %v853_v62  ;;  %v1453_v14 = vmul.f32 %v3530_v11, %v1141_v30  ;;  %v1037_v36 = vmul.f32 %v2864_v45, %v991_v12  ;;  %v3535_v51 = vld [vmem:[#allocation8_spill] sm:$0xff]  ;;  %v3536_v30 = vld [vmem:[#allocation26_spill] sm:$0xff] }
 0x254   :  { %v1932_v54 = vpop.eup %1931  ;;  %v966_v34 = vmul.f32 %v1930_v59, %v3531_v56  ;;  %v873_v9 = vmul.f32 0.125, %v824_v33  ;;  %v1158_v57 = vadd.f32 %v1119_v50, %v1080_v38  ;;  %v915_v17 = vadd.f32 1e-05, %v876_v47  ;;  %v3539_v56 = vld [vmem:[#allocation27_spill] sm:$0xff] }
 0x255   :  { %v969_v8 = vmul.f32 %v1932_v54, %v3532_v2  ;;  %1945 = vrsqrt.f32 %v892_v6  ;;  %v1531_v28 = vadd.f32 %v1492_v3, %v1453_v14  ;;  %v1083_v10 = vadd.f32 %v2875_v52, %v1037_v36  ;;  %v839_v61 = vpop.xlane.xlu1 %838  ;;  %v1487_v3 = vld [vmem:[%s3478_s3 + $0x48] sm:$0xff]  ;;  %v3538_v54 = vld [vmem:[#allocation10_spill] sm:$0xff] }
 0x256   :  { %v1012_v58 = vmul.f32 %v2864_v45, %v966_v34  ;;  %v912_v49 = vadd.f32 1e-05, %v873_v9  ;;  %v1934_v55 = vpop.eup %1933  ;;  %v1470_v18 = vmul.f32 %v3533_v24, %v1158_v57  ;;  %1947 = vrsqrt.f32 %v915_v17  ;;  %v782_v59 = vpop.xlane.xlu0 %781  ;;  %v1117_v6 = vld [vmem:[%s3477_s1 + $0xe8] sm:$0xff]  ;;  %v1490_v9 = vld [vmem:[%s3478_s3 + $0x60] sm:$0xff] }
 0x257   :  { %v1015_v40 = vmul.f32 %v2864_v45, %v969_v8  ;;  %v878_v32 = vmul.f32 0.125, %v839_v61  ;;  %1570 = vst.msk [vmem:[%s3479_s9 + $0x70] sm:$0xff] %vm103_vm1, %v1531_v28  ;;  %v1161_v19 = vadd.f32 %v1122_v60, %v1083_v10  ;;  %v986_v35 = vmul.f32 %v1934_v55, %v3534_v63  ;;  %v1120_v60 = vld [vmem:[%s3477_s1 + $0x100] sm:$0xff]  ;;  %v3540_v17 = vld [vmem:[#allocation28_spill] sm:$0xff]  ;;  %v1103_v10 = vld [vmem:[%s3477_s1 + $0x78] sm:$0xff] }
 0x258   :  { %v1936_v41 = vpop.eup %1935  ;;  %v1058_v44 = vadd.f32 %v2875_v52, %v1012_v58  ;;  %1949 = vrsqrt.f32 %v912_v49  ;;  %v1548_v37 = vadd.f32 %v1509_v5, %v1470_v18  ;;  %v3541_v49 = vld [vmem:[#allocation13_spill] sm:$0xff] }
 0x259   :  { %v1938_v42 = vpop.eup %1937  ;;  %v1061_v1 = vadd.f32 %v2875_v52, %v1015_v40  ;;  %v989_v21 = vmul.f32 %v1936_v41, %v3535_v51  ;;  %v917_v43 = vadd.f32 1e-05, %v878_v32  ;;  %v1473_v50 = vmul.f32 %v3536_v30, %v1161_v19  ;;  %v3542_v40 = vld [vmem:[#allocation12_spill] sm:$0xff] }
 0x25a   :  { %v1940_v62 = vpop.eup %1939  ;;  %v1136_v46 = vadd.f32 %v1097_v20, %v1058_v44  ;;  %v1032_v12 = vmul.f32 %v2864_v45, %v986_v35  ;;  %v972_v33 = vmul.f32 %v1938_v42, %v3537_v15  ;;  %1587 = vst.msk [vmem:[%s3479_s9 + $0xf8] sm:$0xff] %vm103_vm1, %v1548_v37  ;;  %v1106_v20 = vld [vmem:[%s3477_s1 + $0x90] sm:$0xff]  ;;  %v1507_v44 = vld [vmem:[%s3478_s3 + $0xe8] sm:$0xff]  ;;  %v1510_v37 = vld [vmem:[%s3478_s3 + $0x100] sm:$0xff] }
 0x25b   :  { %v1139_v38 = vadd.f32 %v1100_v29, %v1061_v1  ;;  %v1035_v47 = vmul.f32 %v2864_v45, %v989_v21  ;;  %v975_v11 = vmul.f32 %v1940_v62, %v3538_v54  ;;  %1951 = vrsqrt.f32 %v917_v43  ;;  %v1123_v1 = vld [vmem:[%s3477_s1 + $0x118] sm:$0xff]  ;;  %v3543_v21 = vld [vmem:[#allocation15_spill] sm:$0xff]  ;;  %v776_v62 = vpop.xlane.xlu0 %775 }
 0x25c   :  { %v1942_v14 = vpop.eup %1941  ;;  %v1551_v36 = vadd.f32 %v1512_v23, %v1473_v50  ;;  %v1448_v34 = vmul.f32 %v3539_v56, %v1136_v46  ;;  %v1078_v57 = vadd.f32 %v2875_v52, %v1032_v12  ;;  %v1018_v2 = vmul.f32 %v2864_v45, %v972_v33  ;;  %v1493_v50 = vld [vmem:[%s3478_s3 + $0x78] sm:$0xff]  ;;  %v1104_v15 = vld [vmem:[%s3477_s1 + $0x80] sm:$0xff] }
 0x25d   :  { %v1944_v8 = vpop.eup %1943  ;;  %v1451_v28 = vmul.f32 %v3540_v17, %v1139_v38  ;;  %v1081_v5 = vadd.f32 %v2875_v52, %v1035_v47  ;;  %v1021_v58 = vmul.f32 %v2864_v45, %v975_v11  ;;  %v992_v61 = vmul.f32 %v1942_v14, %v3541_v49  ;;  %v3544_v56 = vld [vmem:[#allocation14_spill] sm:$0xff] }
 0x25e   :  { %1590 = vst.msk [vmem:[%s3479_s9 + $0x110] sm:$0xff] %vm103_vm1, %v1551_v36  ;;  %v1526_v55 = vadd.f32 %v1487_v3, %v1448_v34  ;;  %v1156_v24 = vadd.f32 %v1117_v6, %v1078_v57  ;;  %v1064_v18 = vadd.f32 %v2875_v52, %v1018_v2  ;;  %v973_v32 = vmul.f32 %v1944_v8, %v3542_v40 }
 0x25f   :  { %v1946_v41 = vpop.eup %1945  ;;  %v1529_v19 = vadd.f32 %v1490_v9, %v1451_v28  ;;  %v1159_v29 = vadd.f32 %v1120_v60, %v1081_v5  ;;  %v1067_v63 = vadd.f32 %v2875_v52, %v1021_v58  ;;  %v1038_v35 = vmul.f32 %v2864_v45, %v992_v61  ;;  %v1513_v9 = vld [vmem:[%s3478_s3 + $0x118] sm:$0xff]  ;;  %v1494_v5 = vld [vmem:[%s3478_s3 + $0x80] sm:$0xff] }
 0x260   :  { %1565 = vst.msk [vmem:[%s3479_s9 + $0x48] sm:$0xff] %vm103_vm1, %v1526_v55  ;;  %v1468_v42 = vmul.f32 %v2888_v48, %v1156_v24  ;;  %v1142_v23 = vadd.f32 %v1103_v10, %v1064_v18  ;;  %v1019_v51 = vmul.f32 %v2864_v45, %v973_v32  ;;  %v970_v43 = vmul.f32 %v1946_v41, %v3543_v21  ;;  %v1948_v30 = vpop.eup %1947  ;;  %v3545_v60 = vld [vmem:[#allocation17_spill] sm:$0xff]  ;;  %v1124_v55 = vld [vmem:[%s3477_s1 + $0x120] sm:$0xff]  ;;  %v3546_v24 = vld [vmem:[#allocation16_spill] sm:$0xff] }
 0x261   :  { %1568 = vst.msk [vmem:[%s3479_s9 + $0x60] sm:$0xff] %vm103_vm1, %v1529_v19  ;;  %v1471_v48 = vmul.f32 %v2907_v16, %v1159_v29  ;;  %v1145_v46 = vadd.f32 %v1106_v20, %v1067_v63  ;;  %v1084_v12 = vadd.f32 %v2875_v52, %v1038_v35  ;;  %v859_v33 = vmul.f32 0.125, %v782_v59  ;;  %v1496_v16 = vld [vmem:[%s3478_s3 + $0x90] sm:$0xff]  ;;  %v1101_v59 = vld [vmem:[%s3477_s1 + $0x68] sm:$0xff]  ;;  %v836_v20 = vpop.xlane.xlu0 %835  ;;  %v1965_v63 = vld [vmem:[%s3475_s7] ss:$0 sm:$0xff] }
 0x262   :  { %v1950_v3 = vpop.eup %1949  ;;  %v1546_v38 = vadd.f32 %v1507_v44, %v1468_v42  ;;  %v1454_v6 = vmul.f32 %v2937_v22, %v1142_v23  ;;  %v1065_v47 = vadd.f32 %v2875_v52, %v1019_v51  ;;  %v1016_v54 = vmul.f32 %v2864_v45, %v970_v43  ;;  %v1121_v41 = vld [vmem:[%s3477_s1 + $0x108] sm:$0xff]  ;;  %v1966_v21 = vld [vmem:[%s3476_s8] ss:$0 sm:$0xff] }
 0x263   :  { %v1549_v11 = vadd.f32 %v1510_v37, %v1471_v48  ;;  %v1457_v14 = vmul.f32 %v2952_v13, %v1145_v46  ;;  %v1162_v36 = vadd.f32 %v1123_v1, %v1084_v12  ;;  %v993_v34 = vmul.f32 %v1948_v30, %v3544_v56  ;;  %v1126_v37 = vld [vmem:[%s3477_s1 + $0x130] sm:$0x3]  ;;  %v1511_v30 = vld [vmem:[%s3478_s3 + $0x108] sm:$0xff] }
 0x264   :  { %1585 = vst.msk [vmem:[%s3479_s9 + $0xe8] sm:$0xff] %vm103_vm1, %v1546_v38  ;;  %v1532_v22 = vadd.f32 %v1493_v50, %v1454_v6  ;;  %v1143_v57 = vadd.f32 %v1104_v15, %v1065_v47  ;;  %v1062_v13 = vadd.f32 %v2875_v52, %v1016_v54  ;;  %v990_v2 = vmul.f32 %v1950_v3, %v3545_v60 }
 0x265   :  { %v1952_v8 = vpop.eup %1951  ;;  %1588 = vst.msk [vmem:[%s3479_s9 + $0x100] sm:$0xff] %vm103_vm1, %v1549_v11  ;;  %v1535_v17 = vadd.f32 %v1496_v16, %v1457_v14  ;;  %v1474_v28 = vmul.f32 %v2975_v7, %v1162_v36  ;;  %v1039_v10 = vmul.f32 %v2864_v45, %v993_v34  ;;  %v898_v58 = vadd.f32 1e-05, %v859_v33  ;;  %v3548_v11 = vld [vmem:[#allocation19_spill] sm:$0xff]  ;;  %v3549_v34 = vld [vmem:[#allocation20_spill] sm:$0xff] }
 0x266   :  { %1571 = vst.msk [vmem:[%s3479_s9 + $0x78] sm:$0xff] %vm103_vm1, %v1532_v22  ;;  %v1455_v49 = vmul.f32 %v2999_v31, %v1143_v57  ;;  %v1140_v61 = vadd.f32 %v1101_v59, %v1062_v13  ;;  %v1036_v7 = vmul.f32 %v2864_v45, %v990_v2  ;;  %v995_v18 = vmul.f32 %v1952_v8, %v3546_v24  ;;  %v1491_v31 = vld [vmem:[%s3478_s3 + $0x68] sm:$0xff] }
 0x267   :  { %1574 = vst.msk [vmem:[%s3479_s9 + $0x90] sm:$0xff] %vm103_vm1, %v1535_v17  ;;  %v1552_v40 = vadd.f32 %v1513_v9, %v1474_v28  ;;  %v1085_v32 = vadd.f32 %v2875_v52, %v1039_v10  ;;  %1953 = vrsqrt.f32 %v898_v58  ;;  %v857_v45 = vmul.f32 0.125, %v776_v62  ;;  %v1497_v9 = vld [vmem:[%s3478_s3 + $0x98] sm:$0xff]  ;;  %v1105_v57 = vld [vmem:[%s3477_s1 + $0x88] sm:$0xff] }
 0x268   :  { %v1533_v19 = vadd.f32 %v1494_v5, %v1455_v49  ;;  %v1452_v44 = vmul.f32 %v3076_v53, %v1140_v61  ;;  %v1082_v29 = vadd.f32 %v2875_v52, %v1036_v7  ;;  %v1041_v35 = vmul.f32 %v1965_v63, %v995_v18  ;;  %v1514_v53 = vld [vmem:[%s3478_s3 + $0x120] sm:$0xff]  ;;  %v1125_v17 = vld [vmem:[%s3477_s1 + $0x128] sm:$0xff] }
 0x269   :  { %1591 = vst.msk [vmem:[%s3479_s9 + $0x118] sm:$0xff] %vm103_vm1, %v1552_v40  ;;  %v1163_v42 = vadd.f32 %v1124_v55, %v1085_v32  ;;  %v896_v23 = vadd.f32 1e-05, %v857_v45  ;;  %v877_v1 = vmul.f32 0.125, %v836_v20  ;;  %v1339_v15 = vadd.f32 1.0, %v2984_v26  ;;  %v3547_v26 = vld [vmem:[#allocation18_spill] sm:$0xff] }
 0x26a   :  { %1572 = vst.msk [vmem:[%s3479_s9 + $0x80] sm:$0xff] %vm103_vm1, %v1533_v19  ;;  %v1530_v52 = vadd.f32 %v1491_v31, %v1452_v44  ;;  %v1160_v51 = vadd.f32 %v1121_v41, %v1082_v29  ;;  %v1087_v43 = vadd.f32 %v1966_v21, %v1041_v35  ;;  %v1495_v49 = vld [vmem:[%s3478_s3 + $0x88] sm:$0xff] }
 0x26b   :  { %v1475_v62 = vmul.f32 %v3105_v27, %v1163_v42  ;;  %1955 = vrsqrt.f32 %v896_v23  ;;  %v916_v48 = vadd.f32 1e-05, %v877_v1  ;;  %v1516_v27 = vld [vmem:[%s3478_s3 + $0x130] sm:$0x3]  ;;  %v1515_v7 = vld [vmem:[%s3478_s3 + $0x128] sm:$0xff] }
 0x26c   :  { %1569 = vst.msk [vmem:[%s3479_s9 + $0x68] sm:$0xff] %vm103_vm1, %v1530_v52  ;;  %v1472_v50 = vmul.f32 %v3129_v0, %v1160_v51  ;;  %v1165_v46 = vadd.f32 %v1126_v37, %v1087_v43  ;;  %1957 = vrcp.f32 %v3226_v25  ;;  %v1359_v0 = vadd.f32 1.0, %v3084_v4  ;;  %v1107_v4 = vld [vmem:[%s3477_s1 + $0x98] sm:$0xff] }
 0x26d   :  { %v1553_v12 = vadd.f32 %v1514_v53, %v1475_v62  ;;  %1959 = vrsqrt.f32 %v916_v48 }
 0x26e   :  { %v1550_v33 = vadd.f32 %v1511_v30, %v1472_v50  ;;  %v1477_v3 = vmul.f32 %v3146_v39, %v1165_v46  ;;  %1961 = vrcp.f32 %v1339_v15 }
 0x26f   :  { %1592 = vst.msk [vmem:[%s3479_s9 + $0x120] sm:$0xff] %vm103_vm1, %v1553_v12  ;;  %1963 = vrcp.f32 %v1359_v0 }
 0x270   :  { %1589 = vst.msk [vmem:[%s3479_s9 + $0x108] sm:$0xff] %vm103_vm1, %v1550_v33  ;;  %v1555_v25 = vadd.f32 %v1516_v27, %v1477_v3 }
 0x271   :  { %v1954_v38 = vpop.eup %1953 }
 0x272   :  { %1594 = vst.msk [vmem:[%s3479_s9 + $0x130] sm:$0x3] %vm601_vm4, %v1555_v25  ;;  %v976_v39 = vmul.f32 %v1954_v38, %v3547_v26 }
 0x274   :  { %v1022_v6 = vmul.f32 %v1965_v63, %v976_v39 }
 0x275   :  { %v1956_v16 = vpop.eup %1955 }
 0x276   :  { %v1958_v47 = vpop.eup %1957  ;;  %v1068_v54 = vadd.f32 %v1966_v21, %v1022_v6  ;;  %v974_v14 = vmul.f32 %v1956_v16, %v3548_v11 }
 0x277   :  { %v1960_v36 = vpop.eup %1959 }
 0x278   :  { %v1146_v59 = vadd.f32 %v1107_v4, %v1068_v54  ;;  %v1020_v56 = vmul.f32 %v1965_v63, %v974_v14  ;;  %v994_v22 = vmul.f32 %v1960_v36, %v3549_v34  ;;  %v1962_v8 = vpop.eup %1961 }
 0x279   :  { %v1964_v58 = vpop.eup %1963 }
 0x27a   :  { %v1458_v13 = vmul.f32 %v1958_v47, %v1146_v59  ;;  %v1066_v60 = vadd.f32 %v1966_v21, %v1020_v56  ;;  %v1040_v2 = vmul.f32 %v1965_v63, %v994_v22 }
 0x27c   :  { %v1536_v28 = vadd.f32 %v1497_v9, %v1458_v13  ;;  %v1144_v5 = vadd.f32 %v1105_v57, %v1066_v60  ;;  %v1086_v10 = vadd.f32 %v1966_v21, %v1040_v2 }
 0x27e   :  { %1575 = vst.msk [vmem:[%s3479_s9 + $0x98] sm:$0xff] %vm103_vm1, %v1536_v28  ;;  %v1456_v61 = vmul.f32 %v1962_v8, %v1144_v5  ;;  %v1164_v55 = vadd.f32 %v1125_v17, %v1086_v10 }
 0x280   :  { %v1534_v24 = vadd.f32 %v1495_v49, %v1456_v61  ;;  %v1476_v18 = vmul.f32 %v1964_v58, %v1164_v55 }
 0x282   :  { %1573 = vst.msk [vmem:[%s3479_s9 + $0x88] sm:$0xff] %vm103_vm1, %v1534_v24  ;;  %v1554_v20 = vadd.f32 %v1515_v7, %v1476_v18 }
 0x284   :  { %1593 = vst.msk [vmem:[%s3479_s9 + $0x128] sm:$0xff] %vm103_vm1, %v1554_v20 }

// kernel: reverse.1
= control target key start
LH: loop header
LB: loop body
LE: loop exit
PB: predicated region body
PF: predicated region fallthrough
CT: control target
= control target key end

     0   :  { %v2_v0 = vlaneseq  ;;  %s160_s0 = inlined_call_operand.vmem [shape: f32[2,1,9,15], index: 0, kind: input, shape index: {}]   ;;  %s161_s1 = inlined_call_operand.vmem [shape: f32[2,1,9,15], index: 1, kind: output, shape index: {}]  }
   0x1   :  { %v42_v2 = vld [vmem:[%s160_s0 + $0x10] sm:$0xff]  ;;  %v38_v3 = vld [vmem:[%s160_s0] sm:$0xff]  ;;  %v44_v4 = vld [vmem:[%s160_s0 + $0x18] sm:$0xff] }
   0x2   :  { %v3_v1 = vsub.s32 14, %v2_v0  ;;  %v40_v5 = vld [vmem:[%s160_s0 + $0x8] sm:$0xff] }
   0x4   :  { %4 = vset.pattern.permute.xlu0 %v3_v1  ;;  %125 = vset.pattern.permute.xlu1 %v3_v1 }
   0x5   :  { %62 = vperm.xlu1 %125, %v42_v2   ;;  %50 = vperm.xlu0 %4, %v38_v3  }
   0x9   :  { %68 = vperm.xlu1 %125, %v44_v4   ;;  %56 = vperm.xlu0 %4, %v40_v5  }
  0x84   :  { %v63_v6 = vpop.permute.xlu1 %62  ;;  %v51_v7 = vpop.permute.xlu0 %50 }
  0x85   :  { %109 = vst [vmem:[%s161_s1 + $0x10] sm:$0xff] %v63_v6  ;;  %105 = vst [vmem:[%s161_s1] sm:$0xff] %v51_v7 }
  0x88   :  { %v69_v8 = vpop.permute.xlu1 %68  ;;  %v57_v9 = vpop.permute.xlu0 %56 }
  0x89   :  { %111 = vst [vmem:[%s161_s1 + $0x18] sm:$0xff] %v69_v8  ;;  %107 = vst [vmem:[%s161_s1 + $0x8] sm:$0xff] %v57_v9 }

// kernel: whyv2_forward.51
= control target key start
LH: loop header
LB: loop body
LE: loop exit
PB: predicated region body
PF: predicated region fallthrough
CT: control target
= control target key end

     0   :  { %vm95_vm0 = vcmask 588800   ;;  %vm156_vm1 = vcmask 1043456   ;;  %vm352_vm2 = vcmask 15360   ;;  %vm391_vm3 = vcmask 9216   ;;  %s888_s1 = inlined_call_operand.vmem [shape: f32[72,2], index: 1, kind: input, shape index: {}]   ;;  %s889_s0 = inlined_call_operand.vmem [shape: f32[306,72], index: 0, kind: input, shape index: {}]   ;;  %s890_s2 = inlined_call_operand.vmem [shape: f32[1,2], index: 2, kind: input, shape index: {}]   ;;  %s891_s3 = inlined_call_operand.vmem [shape: f32[306,2], index: 3, kind: output, shape index: {}]  }
   0x1   :  { %v74_v0 = vld [vmem:[%s888_s1] sm:$0xff]  ;;  %v75_v1 = vld [vmem:[%s888_s1 + $0x8] sm:$0xff]  ;;  %v76_v2 = vld [vmem:[%s888_s1 + $0x10] sm:$0xff] }
   0x2   :  { %v83_v3 = vpack.c.bf16 %v75_v1, %v74_v0  ;;  %v77_v4 = vld [vmem:[%s888_s1 + $0x18] sm:$0xff]  ;;  %v78_v6 = vld [vmem:[%s888_s1 + $0x20] sm:$0xff]  ;;  %v79_v7 = vld [vmem:[%s888_s1 + $0x28] sm:$0xff] }
   0x3   :  { %v84_v5 = vpack.c.bf16 %v77_v4, %v76_v2  ;;  %v15_v8 = vld [vmem:[%s889_s0] sm:$0xff]  ;;  %v16_v9 = vld [vmem:[%s889_s0 + $0x8] sm:$0xff]  ;;  %v85_v13 = vpack.c.bf16 %v79_v7, %v78_v6  ;;  %v80_v15 = vld [vmem:[%s888_s1 + $0x30] sm:$0xff] }
   0x4   :  { %443 = vmatprep.subr.bf16.mxu0 %v83_v3  ;;  %493 = vmatprep.subr.bf16.mxu1 %v83_v3  ;;  %v35_v10 = vld [vmem:[%s889_s0 + $0xa0] sm:$0xff]  ;;  %v54_v11 = vpack.c.bf16 %v16_v9, %v15_v8  ;;  %v36_v12 = vld [vmem:[%s889_s0 + $0xa8] sm:$0xff]  ;;  %v81_v16 = vld [vmem:[%s888_s1 + $0x38] sm:$0xff] }
   0x5   :  { %444 = vmatpush3.bf16.msra.mxu0 %v83_v3  ;;  %498 = vmatpush3.bf16.msra.mxu1 %v83_v3  ;;  %v64_v14 = vpack.c.bf16 %v36_v12, %v35_v10  ;;  %v86_v17 = vpack.c.bf16 %v81_v16, %v80_v15  ;;  %v82_v18 = vld [vmem:[%s888_s1 + $0x40] sm:$0xff]  ;;  %v17_v20 = vld [vmem:[%s889_s0 + $0x10] sm:$0xff]  ;;  %v18_v21 = vld [vmem:[%s889_s0 + $0x18] sm:$0xff] }
   0x6   :  { %445 = vmatprep.subr.bf16.mxu0 %v84_v5  ;;  %494 = vmatprep.subr.bf16.mxu1 %v84_v5  ;;  %v87_v19 = vpack.c.bf16 %v82_v18, %v82_v18  ;;  %v37_v22 = vld [vmem:[%s889_s0 + $0xb0] sm:$0xff]  ;;  %v38_v23 = vld [vmem:[%s889_s0 + $0xb8] sm:$0xff]  ;;  %v19_v24 = vld [vmem:[%s889_s0 + $0x20] sm:$0xff]  ;;  %v55_v29 = vpack.c.bf16 %v18_v21, %v17_v20 }
   0x7   :  { %453 = vmatprep.mubr.msk.bf16.mxu0 %vm95_vm0, %v54_v11  ;;  %473 = vmatprep.mubr.msk.bf16.mxu1 %vm95_vm0, %v64_v14  ;;  %v20_v26 = vld [vmem:[%s889_s0 + $0x28] sm:$0xff]  ;;  %v39_v27 = vld [vmem:[%s889_s0 + $0xc0] sm:$0xff]  ;;  %v65_v30 = vpack.c.bf16 %v38_v23, %v37_v22  ;;  %v21_v33 = vld [vmem:[%s889_s0 + $0x30] sm:$0xff] }
   0x8   :  { %v158_v25 = vsel %vm156_vm1, %v87_v19, 0  ;;  %v40_v28 = vld [vmem:[%s889_s0 + $0xc8] sm:$0xff]  ;;  %v56_v31 = vpack.c.bf16 %v20_v26, %v19_v24  ;;  %v22_v34 = vld [vmem:[%s889_s0 + $0x38] sm:$0xff]  ;;  %v41_v35 = vld [vmem:[%s889_s0 + $0xd0] sm:$0xff] }
   0x9   :  { %446 = vmatpush3.bf16.msra.mxu0 %v84_v5  ;;  %499 = vmatpush3.bf16.msra.mxu1 %v84_v5  ;;  %v66_v32 = vpack.c.bf16 %v40_v28, %v39_v27  ;;  %v42_v36 = vld [vmem:[%s889_s0 + $0xd8] sm:$0xff]  ;;  %v23_v37 = vld [vmem:[%s889_s0 + $0x40] sm:$0xff]  ;;  %v24_v38 = vld [vmem:[%s889_s0 + $0x48] sm:$0xff]  ;;  %v57_v41 = vpack.c.bf16 %v22_v34, %v21_v33 }
   0xa   :  { %447 = vmatprep.subr.bf16.mxu0 %v85_v13  ;;  %495 = vmatprep.subr.bf16.mxu1 %v85_v13  ;;  %v43_v39 = vld [vmem:[%s889_s0 + $0xe0] sm:$0xff]  ;;  %v44_v40 = vld [vmem:[%s889_s0 + $0xe8] sm:$0xff]  ;;  %v67_v42 = vpack.c.bf16 %v42_v36, %v41_v35  ;;  %v58_v43 = vpack.c.bf16 %v24_v38, %v23_v37  ;;  %v25_v45 = vld [vmem:[%s889_s0 + $0x50] sm:$0xff] }
   0xb   :  { %v68_v44 = vpack.c.bf16 %v44_v40, %v43_v39  ;;  %v26_v46 = vld [vmem:[%s889_s0 + $0x58] sm:$0xff]  ;;  %v45_v47 = vld [vmem:[%s889_s0 + $0xf0] sm:$0xff]  ;;  %v27_v49 = vld [vmem:[%s889_s0 + $0x60] sm:$0xff] }
   0xc   :  { %v46_v48 = vld [vmem:[%s889_s0 + $0xf8] sm:$0xff]  ;;  %v28_v50 = vld [vmem:[%s889_s0 + $0x68] sm:$0xff]  ;;  %v47_v51 = vld [vmem:[%s889_s0 + $0x100] sm:$0xff]  ;;  %v59_v53 = vpack.c.bf16 %v26_v46, %v25_v45 }
   0xd   :  { %448 = vmatpush3.bf16.msra.mxu0 %v85_v13  ;;  %500 = vmatpush3.bf16.msra.mxu1 %v85_v13  ;;  %v48_v52 = vld [vmem:[%s889_s0 + $0x108] sm:$0xff]  ;;  %v69_v54 = vpack.c.bf16 %v46_v48, %v45_v47  ;;  %v60_v55 = vpack.c.bf16 %v28_v50, %v27_v49  ;;  %v29_v57 = vld [vmem:[%s889_s0 + $0x70] sm:$0xff]  ;;  %v30_v58 = vld [vmem:[%s889_s0 + $0x78] sm:$0xff] }
   0xe   :  { %449 = vmatprep.subr.bf16.mxu0 %v86_v17  ;;  %496 = vmatprep.subr.bf16.mxu1 %v86_v17  ;;  %v70_v56 = vpack.c.bf16 %v48_v52, %v47_v51  ;;  %v49_v59 = vld [vmem:[%s889_s0 + $0x110] sm:$0xff]  ;;  %v50_v60 = vld [vmem:[%s889_s0 + $0x118] sm:$0xff]  ;;  %v31_v61 = vld [vmem:[%s889_s0 + $0x80] sm:$0xff]  ;;  %v61_v1 = vpack.c.bf16 %v30_v58, %v29_v57 }
   0xf   :  { %v32_v62 = vld [vmem:[%s889_s0 + $0x88] sm:$0xff]  ;;  %v51_v63 = vld [vmem:[%s889_s0 + $0x120] sm:$0xff]  ;;  %v71_v2 = vpack.c.bf16 %v50_v60, %v49_v59  ;;  %v33_v5 = vld [vmem:[%s889_s0 + $0x90] sm:$0xff] }
  0x10   :  { %v52_v0 = vld [vmem:[%s889_s0 + $0x128] sm:$0xff]  ;;  %v62_v3 = vpack.c.bf16 %v32_v62, %v31_v61  ;;  %v34_v6 = vld [vmem:[%s889_s0 + $0x98] sm:$0xff]  ;;  %v53_v7 = vld [vmem:[%s889_s0 + $0x130] sm:$0x3] }
  0x11   :  { %450 = vmatpush3.bf16.msra.mxu0 %v86_v17  ;;  %501 = vmatpush3.bf16.msra.mxu1 %v86_v17  ;;  %v72_v4 = vpack.c.bf16 %v52_v0, %v51_v63  ;;  %v63_v8 = vpack.c.bf16 %v34_v6, %v33_v5  ;;  %v73_v9 = vpack.c.bf16 %v53_v7, %v53_v7  ;;  %v692_v10 = vld [vmem:[%s890_s2] ss:$0 sm:$0xff] }
  0x12   :  { %503 = vmatprep.subr.msk.bf16.mxu0 %vm156_vm1, %v87_v19  ;;  %504 = vmatprep.subr.msk.bf16.mxu1 %vm156_vm1, %v87_v19 }
  0x15   :  { %452 = vmatpush3.bf16.msra.mxu0 %v158_v25  ;;  %502 = vmatpush3.bf16.msra.mxu1 %v158_v25 }
  0x18   :  { %454 = vmatmul.mubr.msk.bf16.vlgmr.msra.gmra.mrb[0].mxu0 %vm95_vm0, %v55_v29  ;;  %474 = vmatmul.mubr.msk.bf16.vlgmr.msra.gmra.mrb[0].mxu1 %vm95_vm0, %v65_v30 }
  0x19   :  { %457 = vmatprep.mubr.msk.bf16.mxu0 %vm95_vm0, %v56_v31  ;;  %477 = vmatprep.mubr.msk.bf16.mxu1 %vm95_vm0, %v66_v32 }
  0x20   :  { %458 = vmatmul.mubr.msk.bf16.gmra.mrb[4].mxu0 %vm95_vm0, %v57_v41  ;;  %478 = vmatmul.mubr.msk.bf16.gmra.mrb[4].mxu1 %vm95_vm0, %v67_v42 }
  0x21   :  { %461 = vmatprep.mubr.msk.bf16.mxu0 %vm95_vm0, %v58_v43  ;;  %481 = vmatprep.mubr.msk.bf16.mxu1 %vm95_vm0, %v68_v44 }
  0x28   :  { %462 = vmatmul.mubr.msk.bf16.gmra.mrb[8].mxu0 %vm95_vm0, %v59_v53  ;;  %482 = vmatmul.mubr.msk.bf16.gmra.mrb[8].mxu1 %vm95_vm0, %v69_v54 }
  0x29   :  { %465 = vmatprep.mubr.msk.bf16.mxu0 %vm95_vm0, %v60_v55  ;;  %485 = vmatprep.mubr.msk.bf16.mxu1 %vm95_vm0, %v70_v56 }
  0x30   :  { %466 = vmatmul.mubr.msk.bf16.gmra.mrb[12].mxu0 %vm95_vm0, %v61_v1  ;;  %486 = vmatmul.mubr.msk.bf16.gmra.mrb[12].mxu1 %vm95_vm0, %v71_v2 }
  0x31   :  { %469 = vmatprep.mubr.msk.bf16.mxu0 %vm95_vm0, %v62_v3  ;;  %489 = vmatprep.mubr.msk.bf16.mxu1 %vm95_vm0, %v72_v4 }
  0x38   :  { %470 = vmatmul.mubr.msk.bf16.gmra.mrb[16].mxu0 %vm95_vm0, %v63_v8  ;;  %490 = vmatmul.mubr.msk.bf16.gmra.mrb[16].mxu1 %vm95_vm0, %v73_v9 }
  0xeb   :  { %v455_v11 = vpop.f32.mrb[0].mxu0  ;;  %v475_v12 = vpop.f32.mrb[0].mxu1 }
  0xec   :  { %v203_v13 = vadd.f32 %v455_v11, %v692_v10  ;;  %v283_v14 = vadd.f32 %v475_v12, %v692_v10  ;;  %v194_v15 = vpop.f32.mrb[1].mxu0  ;;  %v274_v16 = vpop.f32.mrb[1].mxu1 }
  0xed   :  { %v195_v17 = vadd.f32 %v692_v10, %v194_v15  ;;  %v275_v18 = vadd.f32 %v692_v10, %v274_v16  ;;  %v456_v19 = vpop.f32.mrb[2].mxu0  ;;  %v476_v20 = vpop.f32.mrb[2].mxu1 }
  0xee   :  { %355 = vst.msk [vmem:[%s891_s3 + $0x10] sm:$0xff] %vm352_vm2, %v203_v13  ;;  %375 = vst.msk [vmem:[%s891_s3 + $0xb0] sm:$0xff] %vm352_vm2, %v283_v14  ;;  %v206_v21 = vadd.f32 %v456_v19, %v692_v10  ;;  %v286_v22 = vadd.f32 %v476_v20, %v692_v10  ;;  %v197_v23 = vpop.f32.mrb[3].mxu0  ;;  %v277_v24 = vpop.f32.mrb[3].mxu1 }
  0xef   :  { %353 = vst.msk [vmem:[%s891_s3] sm:$0xff] %vm352_vm2, %v195_v17  ;;  %373 = vst.msk [vmem:[%s891_s3 + $0xa0] sm:$0xff] %vm352_vm2, %v275_v18  ;;  %v198_v25 = vadd.f32 %v692_v10, %v197_v23  ;;  %v278_v26 = vadd.f32 %v692_v10, %v277_v24 }
  0xf0   :  { %356 = vst.msk [vmem:[%s891_s3 + $0x18] sm:$0xff] %vm352_vm2, %v206_v21  ;;  %376 = vst.msk [vmem:[%s891_s3 + $0xb8] sm:$0xff] %vm352_vm2, %v286_v22 }
  0xf1   :  { %354 = vst.msk [vmem:[%s891_s3 + $0x8] sm:$0xff] %vm352_vm2, %v198_v25  ;;  %374 = vst.msk [vmem:[%s891_s3 + $0xa8] sm:$0xff] %vm352_vm2, %v278_v26 }
  0xf3   :  { %v459_v27 = vpop.f32.mrb[4].mxu0  ;;  %v479_v28 = vpop.f32.mrb[4].mxu1 }
  0xf4   :  { %v219_v29 = vadd.f32 %v459_v27, %v692_v10  ;;  %v299_v30 = vadd.f32 %v479_v28, %v692_v10  ;;  %v210_v31 = vpop.f32.mrb[5].mxu0  ;;  %v290_v32 = vpop.f32.mrb[5].mxu1 }
  0xf5   :  { %v211_v33 = vadd.f32 %v692_v10, %v210_v31  ;;  %v291_v34 = vadd.f32 %v692_v10, %v290_v32  ;;  %v460_v35 = vpop.f32.mrb[6].mxu0  ;;  %v480_v36 = vpop.f32.mrb[6].mxu1 }
  0xf6   :  { %359 = vst.msk [vmem:[%s891_s3 + $0x30] sm:$0xff] %vm352_vm2, %v219_v29  ;;  %379 = vst.msk [vmem:[%s891_s3 + $0xd0] sm:$0xff] %vm352_vm2, %v299_v30  ;;  %v222_v37 = vadd.f32 %v460_v35, %v692_v10  ;;  %v302_v38 = vadd.f32 %v480_v36, %v692_v10  ;;  %v213_v39 = vpop.f32.mrb[7].mxu0  ;;  %v293_v40 = vpop.f32.mrb[7].mxu1 }
  0xf7   :  { %357 = vst.msk [vmem:[%s891_s3 + $0x20] sm:$0xff] %vm352_vm2, %v211_v33  ;;  %377 = vst.msk [vmem:[%s891_s3 + $0xc0] sm:$0xff] %vm352_vm2, %v291_v34  ;;  %v214_v41 = vadd.f32 %v692_v10, %v213_v39  ;;  %v294_v42 = vadd.f32 %v692_v10, %v293_v40 }
  0xf8   :  { %360 = vst.msk [vmem:[%s891_s3 + $0x38] sm:$0xff] %vm352_vm2, %v222_v37  ;;  %380 = vst.msk [vmem:[%s891_s3 + $0xd8] sm:$0xff] %vm352_vm2, %v302_v38 }
  0xf9   :  { %358 = vst.msk [vmem:[%s891_s3 + $0x28] sm:$0xff] %vm352_vm2, %v214_v41  ;;  %378 = vst.msk [vmem:[%s891_s3 + $0xc8] sm:$0xff] %vm352_vm2, %v294_v42 }
  0xfb   :  { %v463_v43 = vpop.f32.mrb[8].mxu0  ;;  %v483_v44 = vpop.f32.mrb[8].mxu1 }
  0xfc   :  { %v235_v45 = vadd.f32 %v463_v43, %v692_v10  ;;  %v315_v46 = vadd.f32 %v483_v44, %v692_v10  ;;  %v226_v47 = vpop.f32.mrb[9].mxu0  ;;  %v306_v48 = vpop.f32.mrb[9].mxu1 }
  0xfd   :  { %v227_v49 = vadd.f32 %v692_v10, %v226_v47  ;;  %v307_v50 = vadd.f32 %v692_v10, %v306_v48  ;;  %v464_v51 = vpop.f32.mrb[10].mxu0  ;;  %v484_v52 = vpop.f32.mrb[10].mxu1 }
  0xfe   :  { %363 = vst.msk [vmem:[%s891_s3 + $0x50] sm:$0xff] %vm352_vm2, %v235_v45  ;;  %383 = vst.msk [vmem:[%s891_s3 + $0xf0] sm:$0xff] %vm352_vm2, %v315_v46  ;;  %v238_v53 = vadd.f32 %v464_v51, %v692_v10  ;;  %v318_v54 = vadd.f32 %v484_v52, %v692_v10  ;;  %v229_v55 = vpop.f32.mrb[11].mxu0  ;;  %v309_v56 = vpop.f32.mrb[11].mxu1 }
  0xff   :  { %361 = vst.msk [vmem:[%s891_s3 + $0x40] sm:$0xff] %vm352_vm2, %v227_v49  ;;  %381 = vst.msk [vmem:[%s891_s3 + $0xe0] sm:$0xff] %vm352_vm2, %v307_v50  ;;  %v230_v57 = vadd.f32 %v692_v10, %v229_v55  ;;  %v310_v58 = vadd.f32 %v692_v10, %v309_v56 }
 0x100   :  { %364 = vst.msk [vmem:[%s891_s3 + $0x58] sm:$0xff] %vm352_vm2, %v238_v53  ;;  %384 = vst.msk [vmem:[%s891_s3 + $0xf8] sm:$0xff] %vm352_vm2, %v318_v54 }
 0x101   :  { %362 = vst.msk [vmem:[%s891_s3 + $0x48] sm:$0xff] %vm352_vm2, %v230_v57  ;;  %382 = vst.msk [vmem:[%s891_s3 + $0xe8] sm:$0xff] %vm352_vm2, %v310_v58 }
 0x103   :  { %v467_v59 = vpop.f32.mrb[12].mxu0  ;;  %v487_v60 = vpop.f32.mrb[12].mxu1 }
 0x104   :  { %v251_v61 = vadd.f32 %v467_v59, %v692_v10  ;;  %v331_v62 = vadd.f32 %v487_v60, %v692_v10  ;;  %v242_v63 = vpop.f32.mrb[13].mxu0  ;;  %v322_v0 = vpop.f32.mrb[13].mxu1 }
 0x105   :  { %v243_v1 = vadd.f32 %v692_v10, %v242_v63  ;;  %v323_v2 = vadd.f32 %v692_v10, %v322_v0  ;;  %v468_v3 = vpop.f32.mrb[14].mxu0  ;;  %v488_v4 = vpop.f32.mrb[14].mxu1 }
 0x106   :  { %367 = vst.msk [vmem:[%s891_s3 + $0x70] sm:$0xff] %vm352_vm2, %v251_v61  ;;  %387 = vst.msk [vmem:[%s891_s3 + $0x110] sm:$0xff] %vm352_vm2, %v331_v62  ;;  %v254_v5 = vadd.f32 %v468_v3, %v692_v10  ;;  %v334_v6 = vadd.f32 %v488_v4, %v692_v10  ;;  %v245_v7 = vpop.f32.mrb[15].mxu0  ;;  %v325_v8 = vpop.f32.mrb[15].mxu1 }
 0x107   :  { %365 = vst.msk [vmem:[%s891_s3 + $0x60] sm:$0xff] %vm352_vm2, %v243_v1  ;;  %385 = vst.msk [vmem:[%s891_s3 + $0x100] sm:$0xff] %vm352_vm2, %v323_v2  ;;  %v246_v9 = vadd.f32 %v692_v10, %v245_v7  ;;  %v326_v11 = vadd.f32 %v692_v10, %v325_v8 }
 0x108   :  { %368 = vst.msk [vmem:[%s891_s3 + $0x78] sm:$0xff] %vm352_vm2, %v254_v5  ;;  %388 = vst.msk [vmem:[%s891_s3 + $0x118] sm:$0xff] %vm352_vm2, %v334_v6 }
 0x109   :  { %366 = vst.msk [vmem:[%s891_s3 + $0x68] sm:$0xff] %vm352_vm2, %v246_v9  ;;  %386 = vst.msk [vmem:[%s891_s3 + $0x108] sm:$0xff] %vm352_vm2, %v326_v11 }
 0x10b   :  { %v471_v12 = vpop.f32.mrb[16].mxu0  ;;  %v491_v13 = vpop.f32.mrb[16].mxu1 }
 0x10c   :  { %v267_v14 = vadd.f32 %v471_v12, %v692_v10  ;;  %v347_v15 = vadd.f32 %v491_v13, %v692_v10  ;;  %v258_v16 = vpop.f32.mrb[17].mxu0  ;;  %v338_v17 = vpop.f32.mrb[17].mxu1 }
 0x10d   :  { %v259_v18 = vadd.f32 %v692_v10, %v258_v16  ;;  %v339_v19 = vadd.f32 %v692_v10, %v338_v17  ;;  %v472_v20 = vpop.f32.mrb[18].mxu0  ;;  %v492_v21 = vpop.f32.mrb[18].mxu1 }
 0x10e   :  { %371 = vst.msk [vmem:[%s891_s3 + $0x90] sm:$0xff] %vm352_vm2, %v267_v14  ;;  %v270_v22 = vadd.f32 %v472_v20, %v692_v10  ;;  %v261_v23 = vpop.f32.mrb[19].mxu0  ;;  %v341_v24 = vpop.f32.mrb[19].mxu1 }
 0x10f   :  { %392 = vst.msk [vmem:[%s891_s3 + $0x130] sm:$0x3] %vm391_vm3, %v347_v15  ;;  %v262_v25 = vadd.f32 %v692_v10, %v261_v23  ;;  %v342_v26 = vadd.f32 %v692_v10, %v341_v24 }
 0x110   :  { %369 = vst.msk [vmem:[%s891_s3 + $0x80] sm:$0xff] %vm352_vm2, %v259_v18  ;;  %389 = vst.msk [vmem:[%s891_s3 + $0x120] sm:$0xff] %vm352_vm2, %v339_v19 }
 0x111   :  { %372 = vst.msk [vmem:[%s891_s3 + $0x98] sm:$0xff] %vm352_vm2, %v270_v22  ;;  %370 = vst.msk [vmem:[%s891_s3 + $0x88] sm:$0xff] %vm352_vm2, %v262_v25 }
 0x112   :  { %390 = vst.msk [vmem:[%s891_s3 + $0x128] sm:$0xff] %vm352_vm2, %v342_v26 }

</bundles_post_ra>
